<compile_context>
chip_gen: v7x
topology: tpu7x:2x2x1
jax: 0.10.0
libtpu: 0.0.40
codegen_flags: <defaults>
</compile_context>

<pallas_src>
import functools

import jax
import jax.numpy as jnp
import numpy as np
from jax import lax
from jax.experimental import pallas as pl
from jax.experimental.pallas import tpu as pltpu


def _seq_decoder_kernel(
    kproj_ref, vproj_ref, mask_ref, emb_ref,
    wq_ref, bq_ref, head_mix_ref, wo_ref, bo_ref,
    w1e_ref, w1c_ref, w1h_ref, b1_ref,
    w2i_ref, w2h_ref, b2_ref,
    wch_ref, wcc_ref, bc_ref,
    out_ref,
    *, num_steps, scale):
  Bt, T, H = kproj_ref.shape
  V, E = emb_ref.shape
  f32 = jnp.float32

  # ---------- step-invariant loads (outside the serial decode loop) ----------
  kproj = kproj_ref[...]           # [Bt, T, H]  (already in-projected in the wrapper)
  vproj = vproj_ref[...]           # [Bt, T, H]
  mask3 = mask_ref[...]            # [Bt, T, 1]  additive (0 / -1e30)
  emb = emb_ref[...]
  wq = wq_ref[...]
  bq = bq_ref[...]
  head_mix = head_mix_ref[...]     # [H, H] block-diagonal ones (per-head sum + expand)
  wo = wo_ref[...]
  bo = bo_ref[...]
  w1e = w1e_ref[...]
  w1c = w1c_ref[...]
  w1h = w1h_ref[...]
  b1 = b1_ref[...]
  w2i = w2i_ref[...]
  w2h = w2h_ref[...]
  b2 = b2_ref[...]
  wch = wch_ref[...]
  wcc = wcc_ref[...]
  bc = bc_ref[...]

  v_iota = lax.broadcasted_iota(jnp.int32, (Bt, V), 1)

  h1 = jnp.zeros((Bt, H), f32)
  c1 = jnp.zeros((Bt, H), f32)
  h2 = jnp.zeros((Bt, H), f32)
  c2 = jnp.zeros((Bt, H), f32)
  tok = jnp.zeros((Bt, 1), jnp.int32)   # argmax of the initial all-zeros prediction

  logits_steps = []

  # ---------- greedy decode, fully unrolled (num_steps is a small static constant) ----------
  for _ in range(num_steps):
    # embedding lookup of previous prediction via one-hot matmul (no gather on TPU).
    onehot = (v_iota == tok).astype(f32)                                   # [Bt, V]
    char_embed = jnp.dot(onehot, emb, preferred_element_type=f32)          # [Bt, E]

    # ---- fused multi-head attention, query = h2 (all heads in one pass) ----
    q = (jnp.dot(h2, wq, preferred_element_type=f32) + bq) * scale         # [Bt, H]
    prod = q[:, None, :] * kproj                                           # [Bt, T, H]
    # block-diag ones matmul: per-head score, replicated across that head's hd lanes.
    s = jnp.dot(prod.reshape(Bt * T, H), head_mix,
                preferred_element_type=f32).reshape(Bt, T, H) + mask3      # [Bt, T, H]
    m = jnp.max(s, axis=1, keepdims=True)                                  # softmax over T
    e = jnp.exp(s - m)
    w = e / jnp.sum(e, axis=1, keepdims=True)                              # [Bt, T, H]
    ctx = jnp.sum(w * vproj, axis=1)                                       # [Bt, H]
    context = jnp.dot(ctx, wo, preferred_element_type=f32) + bo            # [Bt, H]

    # ---- LSTM cell 1 on cat([char_embed, context]) (concat folded into split weights) ----
    g1 = (jnp.dot(char_embed, w1e, preferred_element_type=f32)
          + jnp.dot(context, w1c, preferred_element_type=f32)
          + jnp.dot(h1, w1h, preferred_element_type=f32) + b1)             # [Bt, 4H]
    s1 = jax.nn.sigmoid(g1)                      # single 128-lane EUP pass
    gg1 = jnp.tanh(g1[:, 2 * H:3 * H])
    c1 = s1[:, H:2 * H] * c1 + s1[:, 0:H] * gg1
    h1 = s1[:, 3 * H:4 * H] * jnp.tanh(c1)

    # ---- LSTM cell 2 ----
    g2 = (jnp.dot(h1, w2i, preferred_element_type=f32)
          + jnp.dot(h2, w2h, preferred_element_type=f32) + b2)             # [Bt, 4H]
    s2 = jax.nn.sigmoid(g2)
    gg2 = jnp.tanh(g2[:, 2 * H:3 * H])
    c2 = s2[:, H:2 * H] * c2 + s2[:, 0:H] * gg2
    h2 = s2[:, 3 * H:4 * H] * jnp.tanh(c2)

    # ---- classifier on cat([h2, context]) (concat folded into split weights) ----
    logits = (jnp.dot(h2, wch, preferred_element_type=f32)
              + jnp.dot(context, wcc, preferred_element_type=f32) + bc)    # [Bt, V]
    logits_steps.append(logits)

    # greedy argmax for the next step (first max index, matching torch/jnp argmax ties)
    mx = jnp.max(logits, axis=-1, keepdims=True)
    tok = jnp.min(jnp.where(logits >= mx, v_iota, V),
                  axis=-1, keepdims=True).astype(jnp.int32)

  # single bulk store per batch tile (no per-step masked partial stores)
  out_ref[...] = jnp.stack(logits_steps, axis=1)                           # [Bt, S, V]


def _choose_batch_tile(b_pad):
  """Batch tile: multiple of 8, <= 256, and >= 2 tiles when possible (v7x megacore)."""
  if b_pad <= 8:
    return b_pad
  bt = max(8, (min(256, b_pad // 2) // 8) * 8)
  while b_pad % bt != 0:
    bt -= 8
  return bt


def _pick_vmem_limit():
  """~48 MiB on v7x (64 MiB/TC), ~96 MiB on v5e/v6e (128 MiB)."""
  try:
    kind = jax.devices()[0].device_kind.lower()
  except Exception:
    return 48 * 1024 * 1024
  if "v5" in kind or "v6" in kind:
    return 96 * 1024 * 1024
  return 48 * 1024 * 1024


def simple_seq_decoder(keys, values, lengths, params, *, num_heads, max_len=10):
  """keys, values: [B, T, H] f32; lengths: [B] int. Returns [B, max_len-1, vocab]."""
  B, T, H = keys.shape
  emb = params["embedding"].astype(jnp.float32)                      # [V, E]
  V, E = emb.shape
  S = max_len - 1
  assert H % num_heads == 0
  hd = H // num_heads
  scale = 1.0 / float(np.sqrt(hd))
  f32 = jnp.float32

  keys = keys.astype(f32)
  values = values.astype(f32)
  lengths = lengths.astype(jnp.int32)

  # ---- pad batch to a multiple of 8 so every tile fills all 8 sublanes ----
  B_pad = max(8, ((B + 7) // 8) * 8)
  pad = B_pad - B
  if pad:
    keys = jnp.pad(keys, ((0, pad), (0, 0), (0, 0)))
    values = jnp.pad(values, ((0, pad), (0, 0), (0, 0)))
    lengths = jnp.concatenate([lengths, jnp.full((pad,), T, jnp.int32)])

  # ---- one-time weight prep (transposes / splits / bias fusion outside the kernel) ----
  ipw = params["in_proj_weight"].astype(f32)                         # [3H, H]
  ipb = params["in_proj_bias"].astype(f32)                           # [3H]
  wq = ipw[0:H].T
  wk = ipw[H:2 * H].T
  wv = ipw[2 * H:3 * H].T                                            # [H, H] each
  bq = ipb[0:H][None, :]
  bk = ipb[H:2 * H][None, :]
  bv = ipb[2 * H:3 * H][None, :]                                     # [1, H] each
  wo = params["out_proj_weight"].astype(f32).T                       # [H, H]
  bo = params["out_proj_bias"].astype(f32)[None, :]                  # [1, H]

  # K/V in-projections hoisted out of the kernel: one full-batch matmul each.
  kproj = (keys.reshape(B_pad * T, H) @ wk + bk).reshape(B_pad, T, H)
  vproj = (values.reshape(B_pad * T, H) @ wv + bv).reshape(B_pad, T, H)

  # Additive key-padding mask, computed once: [B_pad, T, 1].
  mask_add = jnp.where(jnp.arange(T)[None, :] < lengths[:, None],
                       0.0, -1e30).astype(f32)[:, :, None]

  # Block-diagonal ones matrix: sums each head's hd products and replicates the score
  # across that head's lanes (fused multi-head attention in one matmul).
  head_mix = jnp.kron(jnp.eye(num_heads, dtype=f32), jnp.ones((hd, hd), f32))  # [H, H]

  w_ih1 = params["lstm1_weight_ih"].astype(f32)                      # [4H, E+H]
  w1e = w_ih1[:, :E].T                                               # [E, 4H]
  w1c = w_ih1[:, E:].T                                               # [H, 4H]
  w1h = params["lstm1_weight_hh"].astype(f32).T                      # [H, 4H]
  b1 = (params["lstm1_bias_ih"] + params["lstm1_bias_hh"]).astype(f32)[None, :]
  w2i = params["lstm2_weight_ih"].astype(f32).T                      # [H, 4H]
  w2h = params["lstm2_weight_hh"].astype(f32).T                      # [H, 4H]
  b2 = (params["lstm2_bias_ih"] + params["lstm2_bias_hh"]).astype(f32)[None, :]

  wc = params["cls_weight"].astype(f32)                              # [V, 2H]
  wch = wc[:, :H].T                                                  # [H, V]
  wcc = wc[:, H:].T                                                  # [H, V]
  bc = params["cls_bias"].astype(f32)[None, :]                       # [1, V]

  # ---- batch-tile grid: serial in time, embarrassingly parallel in B ----
  Bt = _choose_batch_tile(B_pad)
  grid = (B_pad // Bt,)
  _full = lambda i: (0, 0)

  in_specs = [
      pl.BlockSpec((Bt, T, H), lambda i: (i, 0, 0)),   # kproj
      pl.BlockSpec((Bt, T, H), lambda i: (i, 0, 0)),   # vproj
      pl.BlockSpec((Bt, T, 1), lambda i: (i, 0, 0)),   # additive mask
      pl.BlockSpec((V, E), _full),                     # embedding table
      pl.BlockSpec((H, H), _full), pl.BlockSpec((1, H), _full),          # wq, bq
      pl.BlockSpec((H, H), _full),                                       # head_mix
      pl.BlockSpec((H, H), _full), pl.BlockSpec((1, H), _full),          # wo, bo
      pl.BlockSpec((E, 4 * H), _full), pl.BlockSpec((H, 4 * H), _full),
      pl.BlockSpec((H, 4 * H), _full), pl.BlockSpec((1, 4 * H), _full),  # lstm1
      pl.BlockSpec((H, 4 * H), _full), pl.BlockSpec((H, 4 * H), _full),
      pl.BlockSpec((1, 4 * H), _full),                                   # lstm2
      pl.BlockSpec((H, V), _full), pl.BlockSpec((H, V), _full),
      pl.BlockSpec((1, V), _full),                                       # classifier
  ]
  out_specs = pl.BlockSpec((Bt, S, V), lambda i: (i, 0, 0))

  kernel = functools.partial(_seq_decoder_kernel, num_steps=S, scale=scale)
  out = pl.pallas_call(
      kernel,
      out_shape=jax.ShapeDtypeStruct((B_pad, S, V), f32),
      grid_spec=pltpu.PrefetchScalarGridSpec(
          num_scalar_prefetch=0,
          grid=grid,
          in_specs=in_specs,
          out_specs=out_specs,
      ),
      compiler_params=pltpu.CompilerParams(
          dimension_semantics=("parallel",),          # megacore batch sharding on v7x
          vmem_limit_bytes=_pick_vmem_limit()),
  )(kproj, vproj, mask_add,
    emb, wq, bq, head_mix, wo, bo,
    w1e, w1c, w1h, b1, w2i, w2h, b2, wch, wcc, bc)

  return out[:B] if pad else out                      # [B, max_len-1, V]


def _reference(keys, values, lengths, params, *, num_heads, max_len=10):
  """Pure-JAX reference matching the PyTorch SimpleSeqDecoder.forward (training=False)."""
  B, T, H = keys.shape
  emb = params["embedding"]
  V, E = emb.shape
  hd = H // num_heads

  ipw, ipb = params["in_proj_weight"], params["in_proj_bias"]
  wq, wk, wv = ipw[0:H], ipw[H:2 * H], ipw[2 * H:3 * H]
  bq, bk, bv = ipb[0:H], ipb[H:2 * H], ipb[2 * H:3 * H]
  wo, bo = params["out_proj_weight"], params["out_proj_bias"]
  w_ih1, w_hh1 = params["lstm1_weight_ih"], params["lstm1_weight_hh"]
  b1 = params["lstm1_bias_ih"] + params["lstm1_bias_hh"]
  w_ih2, w_hh2 = params["lstm2_weight_ih"], params["lstm2_weight_hh"]
  b2 = params["lstm2_bias_ih"] + params["lstm2_bias_hh"]
  wc, bc = params["cls_weight"], params["cls_bias"]

  kp = keys @ wk.T + bk
  vp = values @ wv.T + bv
  mask = jnp.arange(T)[None, :] < lengths[:, None]               # [B, T]

  def attend(query):
    q = (query @ wq.T + bq) * (1.0 / float(np.sqrt(hd)))
    qh = q.reshape(B, num_heads, hd)
    kh = kp.reshape(B, T, num_heads, hd)
    vh = vp.reshape(B, T, num_heads, hd)
    scores = jnp.einsum('bnd,btnd->bnt', qh, kh)
    scores = jnp.where(mask[:, None, :], scores, -jnp.inf)
    w = jax.nn.softmax(scores, axis=-1)
    ctx = jnp.einsum('bnt,btnd->bnd', w, vh).reshape(B, H)
    return ctx @ wo.T + bo

  def cell(x, h, c, w_ih, w_hh, b):
    g = x @ w_ih.T + h @ w_hh.T + b
    i = jax.nn.sigmoid(g[:, 0:H])
    f = jax.nn.sigmoid(g[:, H:2 * H])
    gg = jnp.tanh(g[:, 2 * H:3 * H])
    o = jax.nn.sigmoid(g[:, 3 * H:4 * H])
    c = f * c + i * gg
    return o * jnp.tanh(c), c

  h1 = c1 = h2 = c2 = jnp.zeros((B, H), jnp.float32)
  pred = jnp.zeros((B, 1), jnp.float32)
  outs = []
  for _ in range(max_len - 1):
    tok = jnp.argmax(pred, axis=-1)
    char_embed = emb[tok]
    ctx = attend(h2)
    h1, c1 = cell(jnp.concatenate([char_embed, ctx], axis=1), h1, c1, w_ih1, w_hh1, b1)
    h2, c2 = cell(h1, h2, c2, w_ih2, w_hh2, b2)
    pred = jnp.concatenate([h2, ctx], axis=1) @ wc.T + bc
    outs.append(pred[:, None, :])
  return jnp.concatenate(outs, axis=1)                           # [B, max_len-1, V]


if __name__ == "__main__":
  B, T = 2, 8
  hidden_dim = 32
  embedding_dim = 16
  vocab_size = 32
  num_heads = 4
  max_len = 10
  H = hidden_dim

  key = jax.random.PRNGKey(0)
  ks = jax.random.split(key, 18)
  s_lstm = 1.0 / np.sqrt(H)
  s_att = 1.0 / np.sqrt(H)
  s_cls = 1.0 / np.sqrt(2 * H)
  u = lambda k, shape, s: jax.random.uniform(k, shape, jnp.float32, -s, s)

  params = {
      "embedding": 0.1 * jax.random.normal(ks[0], (vocab_size, embedding_dim), jnp.float32),
      "lstm1_weight_ih": u(ks[1], (4 * H, embedding_dim + H), s_lstm),
      "lstm1_weight_hh": u(ks[2], (4 * H, H), s_lstm),
      "lstm1_bias_ih": u(ks[3], (4 * H,), s_lstm),
      "lstm1_bias_hh": u(ks[4], (4 * H,), s_lstm),
      "lstm2_weight_ih": u(ks[5], (4 * H, H), s_lstm),
      "lstm2_weight_hh": u(ks[6], (4 * H, H), s_lstm),
      "lstm2_bias_ih": u(ks[7], (4 * H,), s_lstm),
      "lstm2_bias_hh": u(ks[8], (4 * H,), s_lstm),
      "in_proj_weight": u(ks[9], (3 * H, H), s_att),
      "in_proj_bias": u(ks[10], (3 * H,), s_att),
      "out_proj_weight": u(ks[11], (H, H), s_att),
      "out_proj_bias": u(ks[12], (H,), s_att),
      "cls_weight": u(ks[13], (vocab_size, 2 * H), s_cls),
      "cls_bias": u(ks[14], (vocab_size,), s_cls),
  }

  keys_in = jax.random.normal(ks[15], (B, T, H), jnp.float32)
  values_in = jax.random.normal(ks[16], (B, T, H), jnp.float32)
  lengths = jnp.array([T, T - 3], dtype=jnp.int32)

  out = simple_seq_decoder(keys_in, values_in, lengths, params,
                           num_heads=num_heads, max_len=max_len)
  out = jax.block_until_ready(out)

  ref = _reference(keys_in, values_in, lengths, params,
                   num_heads=num_heads, max_len=max_len)
  np.testing.assert_allclose(np.asarray(out), np.asarray(ref), rtol=2e-3, atol=2e-3)

  print("KERNEL_OK")
</pallas_src>

<mosaic_0001>
module attributes {stable_mosaic.version = 11 : i64} {
  func.func @_seq_decoder_kernel(%arg0: i32, %arg1: memref<8x8x32xf32, #tpu.memory_space<vmem>>, %arg2: memref<8x8x32xf32, #tpu.memory_space<vmem>>, %arg3: memref<8x8x1xf32, #tpu.memory_space<vmem>>, %arg4: memref<32x16xf32, #tpu.memory_space<vmem>>, %arg5: memref<32x32xf32, #tpu.memory_space<vmem>>, %arg6: memref<1x32xf32, #tpu.memory_space<vmem>>, %arg7: memref<32x32xf32, #tpu.memory_space<vmem>>, %arg8: memref<32x32xf32, #tpu.memory_space<vmem>>, %arg9: memref<1x32xf32, #tpu.memory_space<vmem>>, %arg10: memref<16x128xf32, #tpu.memory_space<vmem>>, %arg11: memref<32x128xf32, #tpu.memory_space<vmem>>, %arg12: memref<32x128xf32, #tpu.memory_space<vmem>>, %arg13: memref<1x128xf32, #tpu.memory_space<vmem>>, %arg14: memref<32x128xf32, #tpu.memory_space<vmem>>, %arg15: memref<32x128xf32, #tpu.memory_space<vmem>>, %arg16: memref<1x128xf32, #tpu.memory_space<vmem>>, %arg17: memref<32x32xf32, #tpu.memory_space<vmem>>, %arg18: memref<32x32xf32, #tpu.memory_space<vmem>>, %arg19: memref<1x32xf32, #tpu.memory_space<vmem>>, %arg20: memref<8x9x32xf32, #tpu.memory_space<vmem>>) attributes {dimension_semantics = [#tpu.dimension_semantics<parallel>], iteration_bounds = array<i64: 1>, scalar_prefetch = 0 : i64, scratch_operands = 0 : i64, tpu.core_type = #tpu.core_type<tc>, window_params = [{transform_indices = @transform_0, window_bounds = array<i64: 8, 8, 32>}, {transform_indices = @transform_1, window_bounds = array<i64: 8, 8, 32>}, {transform_indices = @transform_2, window_bounds = array<i64: 8, 8, 1>}, {pipeline_mode = #tpu.pipeline_mode<synchronous>, transform_indices = @transform_3, window_bounds = array<i64: 32, 16>}, {pipeline_mode = #tpu.pipeline_mode<synchronous>, transform_indices = @transform_4, window_bounds = array<i64: 32, 32>}, {pipeline_mode = #tpu.pipeline_mode<synchronous>, transform_indices = @transform_5, window_bounds = array<i64: 1, 32>}, {pipeline_mode = #tpu.pipeline_mode<synchronous>, transform_indices = @transform_6, window_bounds = array<i64: 32, 32>}, {pipeline_mode = #tpu.pipeline_mode<synchronous>, transform_indices = @transform_7, window_bounds = array<i64: 32, 32>}, {pipeline_mode = #tpu.pipeline_mode<synchronous>, transform_indices = @transform_8, window_bounds = array<i64: 1, 32>}, {pipeline_mode = #tpu.pipeline_mode<synchronous>, transform_indices = @transform_9, window_bounds = array<i64: 16, 128>}, {pipeline_mode = #tpu.pipeline_mode<synchronous>, transform_indices = @transform_10, window_bounds = array<i64: 32, 128>}, {pipeline_mode = #tpu.pipeline_mode<synchronous>, transform_indices = @transform_11, window_bounds = array<i64: 32, 128>}, {pipeline_mode = #tpu.pipeline_mode<synchronous>, transform_indices = @transform_12, window_bounds = array<i64: 1, 128>}, {pipeline_mode = #tpu.pipeline_mode<synchronous>, transform_indices = @transform_13, window_bounds = array<i64: 32, 128>}, {pipeline_mode = #tpu.pipeline_mode<synchronous>, transform_indices = @transform_14, window_bounds = array<i64: 32, 128>}, {pipeline_mode = #tpu.pipeline_mode<synchronous>, transform_indices = @transform_15, window_bounds = array<i64: 1, 128>}, {pipeline_mode = #tpu.pipeline_mode<synchronous>, transform_indices = @transform_16, window_bounds = array<i64: 32, 32>}, {pipeline_mode = #tpu.pipeline_mode<synchronous>, transform_indices = @transform_17, window_bounds = array<i64: 32, 32>}, {pipeline_mode = #tpu.pipeline_mode<synchronous>, transform_indices = @transform_18, window_bounds = array<i64: 1, 32>}, {transform_indices = @transform_19, window_bounds = array<i64: 8, 9, 32>}]} {
    %c0 = arith.constant 0 : index
    %c0_0 = arith.constant 0 : index
    %c0_1 = arith.constant 0 : index
    %0 = vector.load %arg1[%c0, %c0_0, %c0_1] : memref<8x8x32xf32, #tpu.memory_space<vmem>>, vector<8x8x32xf32>
    %c0_2 = arith.constant 0 : index
    %c0_3 = arith.constant 0 : index
    %c0_4 = arith.constant 0 : index
    %1 = vector.load %arg2[%c0_2, %c0_3, %c0_4] : memref<8x8x32xf32, #tpu.memory_space<vmem>>, vector<8x8x32xf32>
    %c0_5 = arith.constant 0 : index
    %c0_6 = arith.constant 0 : index
    %c0_7 = arith.constant 0 : index
    %2 = vector.load %arg3[%c0_5, %c0_6, %c0_7] : memref<8x8x1xf32, #tpu.memory_space<vmem>>, vector<8x8x1xf32>
    %c0_8 = arith.constant 0 : index
    %c0_9 = arith.constant 0 : index
    %3 = vector.load %arg4[%c0_8, %c0_9] : memref<32x16xf32, #tpu.memory_space<vmem>>, vector<32x16xf32>
    %c0_10 = arith.constant 0 : index
    %c0_11 = arith.constant 0 : index
    %4 = vector.load %arg5[%c0_10, %c0_11] : memref<32x32xf32, #tpu.memory_space<vmem>>, vector<32x32xf32>
    %c0_12 = arith.constant 0 : index
    %c0_13 = arith.constant 0 : index
    %5 = vector.load %arg6[%c0_12, %c0_13] : memref<1x32xf32, #tpu.memory_space<vmem>>, vector<1x32xf32>
    %c0_14 = arith.constant 0 : index
    %c0_15 = arith.constant 0 : index
    %6 = vector.load %arg7[%c0_14, %c0_15] : memref<32x32xf32, #tpu.memory_space<vmem>>, vector<32x32xf32>
    %c0_16 = arith.constant 0 : index
    %c0_17 = arith.constant 0 : index
    %7 = vector.load %arg8[%c0_16, %c0_17] : memref<32x32xf32, #tpu.memory_space<vmem>>, vector<32x32xf32>
    %c0_18 = arith.constant 0 : index
    %c0_19 = arith.constant 0 : index
    %8 = vector.load %arg9[%c0_18, %c0_19] : memref<1x32xf32, #tpu.memory_space<vmem>>, vector<1x32xf32>
    %c0_20 = arith.constant 0 : index
    %c0_21 = arith.constant 0 : index
    %9 = vector.load %arg10[%c0_20, %c0_21] : memref<16x128xf32, #tpu.memory_space<vmem>>, vector<16x128xf32>
    %c0_22 = arith.constant 0 : index
    %c0_23 = arith.constant 0 : index
    %10 = vector.load %arg11[%c0_22, %c0_23] : memref<32x128xf32, #tpu.memory_space<vmem>>, vector<32x128xf32>
    %c0_24 = arith.constant 0 : index
    %c0_25 = arith.constant 0 : index
    %11 = vector.load %arg12[%c0_24, %c0_25] : memref<32x128xf32, #tpu.memory_space<vmem>>, vector<32x128xf32>
    %c0_26 = arith.constant 0 : index
    %c0_27 = arith.constant 0 : index
    %12 = vector.load %arg13[%c0_26, %c0_27] : memref<1x128xf32, #tpu.memory_space<vmem>>, vector<1x128xf32>
    %c0_28 = arith.constant 0 : index
    %c0_29 = arith.constant 0 : index
    %13 = vector.load %arg14[%c0_28, %c0_29] : memref<32x128xf32, #tpu.memory_space<vmem>>, vector<32x128xf32>
    %c0_30 = arith.constant 0 : index
    %c0_31 = arith.constant 0 : index
    %14 = vector.load %arg15[%c0_30, %c0_31] : memref<32x128xf32, #tpu.memory_space<vmem>>, vector<32x128xf32>
    %c0_32 = arith.constant 0 : index
    %c0_33 = arith.constant 0 : index
    %15 = vector.load %arg16[%c0_32, %c0_33] : memref<1x128xf32, #tpu.memory_space<vmem>>, vector<1x128xf32>
    %c0_34 = arith.constant 0 : index
    %c0_35 = arith.constant 0 : index
    %16 = vector.load %arg17[%c0_34, %c0_35] : memref<32x32xf32, #tpu.memory_space<vmem>>, vector<32x32xf32>
    %c0_36 = arith.constant 0 : index
    %c0_37 = arith.constant 0 : index
    %17 = vector.load %arg18[%c0_36, %c0_37] : memref<32x32xf32, #tpu.memory_space<vmem>>, vector<32x32xf32>
    %c0_38 = arith.constant 0 : index
    %c0_39 = arith.constant 0 : index
    %18 = vector.load %arg19[%c0_38, %c0_39] : memref<1x32xf32, #tpu.memory_space<vmem>>, vector<1x32xf32>
    %19 = tpu.iota {dimensions = array<i32: 1>} : vector<8x32xi32>
    %cst = arith.constant 0.000000e+00 : f32
    %20 = vector.broadcast %cst : f32 to vector<8x32xf32>
    %cst_40 = arith.constant 0.000000e+00 : f32
    %21 = vector.broadcast %cst_40 : f32 to vector<8x32xf32>
    %cst_41 = arith.constant 0.000000e+00 : f32
    %22 = vector.broadcast %cst_41 : f32 to vector<8x32xf32>
    %cst_42 = arith.constant 0.000000e+00 : f32
    %23 = vector.broadcast %cst_42 : f32 to vector<8x32xf32>
    %c0_i32 = arith.constant 0 : i32
    %24 = vector.broadcast %c0_i32 : i32 to vector<8x1xi32>
    %25 = vector.broadcast %24 : vector<8x1xi32> to vector<8x32xi32>
    %26 = arith.cmpi eq, %19, %25 : vector<8x32xi32>
    %27 = arith.extui %26 : vector<8x32xi1> to vector<8x32xi32>
    %28 = arith.sitofp %27 : vector<8x32xi32> to vector<8x32xf32>
    %cst_43 = arith.constant dense<0.000000e+00> : vector<8x16xf32>
    %29 = tpu.matmul %28, %3, %cst_43 {dimension_numbers = #tpu.dot_dimension_numbers<[1], [0], [0], [1], [0, 0, 1, 1], [], []>} : vector<8x32xf32>, vector<32x16xf32>, vector<8x16xf32> -> vector<8x16xf32>
    %cst_44 = arith.constant dense<0.000000e+00> : vector<8x32xf32>
    %30 = tpu.matmul %22, %4, %cst_44 {dimension_numbers = #tpu.dot_dimension_numbers<[1], [0], [0], [1], [0, 0, 1, 1], [], []>} : vector<8x32xf32>, vector<32x32xf32>, vector<8x32xf32> -> vector<8x32xf32>
    %31 = vector.broadcast %5 : vector<1x32xf32> to vector<8x32xf32>
    %32 = arith.addf %30, %31 : vector<8x32xf32>
    %cst_45 = arith.constant 0.353553385 : f32
    %33 = vector.broadcast %cst_45 : f32 to vector<8x32xf32>
    %34 = arith.mulf %32, %33 : vector<8x32xf32>
    %35 = vector.shape_cast %34 : vector<8x32xf32> to vector<8x1x32xf32>
    %36 = vector.broadcast %35 : vector<8x1x32xf32> to vector<8x8x32xf32>
    %37 = arith.mulf %36, %0 : vector<8x8x32xf32>
    %38 = vector.shape_cast %37 : vector<8x8x32xf32> to vector<64x32xf32>
    %cst_46 = arith.constant dense<0.000000e+00> : vector<64x32xf32>
    %39 = tpu.matmul %38, %6, %cst_46 {dimension_numbers = #tpu.dot_dimension_numbers<[1], [0], [0], [1], [0, 0, 1, 1], [], []>} : vector<64x32xf32>, vector<32x32xf32>, vector<64x32xf32> -> vector<64x32xf32>
    %40 = vector.shape_cast %39 : vector<64x32xf32> to vector<8x8x32xf32>
    %41 = vector.broadcast %2 : vector<8x8x1xf32> to vector<8x8x32xf32>
    %42 = arith.addf %40, %41 : vector<8x8x32xf32>
    %cst_47 = arith.constant dense<0xFF800000> : vector<8x32xf32>
    %43 = vector.multi_reduction <maximumf>, %42, %cst_47 [1] : vector<8x8x32xf32> to vector<8x32xf32>
    %44 = vector.shape_cast %43 : vector<8x32xf32> to vector<8x1x32xf32>
    %45 = vector.broadcast %44 : vector<8x1x32xf32> to vector<8x8x32xf32>
    %46 = arith.subf %42, %45 : vector<8x8x32xf32>
    %47 = math.exp %46 : vector<8x8x32xf32>
    %cst_48 = arith.constant dense<0.000000e+00> : vector<8x32xf32>
    %48 = vector.multi_reduction <add>, %47, %cst_48 [1] : vector<8x8x32xf32> to vector<8x32xf32>
    %49 = vector.shape_cast %48 : vector<8x32xf32> to vector<8x1x32xf32>
    %50 = vector.broadcast %49 : vector<8x1x32xf32> to vector<8x8x32xf32>
    %51 = arith.divf %47, %50 : vector<8x8x32xf32>
    %52 = arith.mulf %51, %1 : vector<8x8x32xf32>
    %cst_49 = arith.constant dense<0.000000e+00> : vector<8x32xf32>
    %53 = vector.multi_reduction <add>, %52, %cst_49 [1] : vector<8x8x32xf32> to vector<8x32xf32>
    %cst_50 = arith.constant dense<0.000000e+00> : vector<8x32xf32>
    %54 = tpu.matmul %53, %7, %cst_50 {dimension_numbers = #tpu.dot_dimension_numbers<[1], [0], [0], [1], [0, 0, 1, 1], [], []>} : vector<8x32xf32>, vector<32x32xf32>, vector<8x32xf32> -> vector<8x32xf32>
    %55 = vector.broadcast %8 : vector<1x32xf32> to vector<8x32xf32>
    %56 = arith.addf %54, %55 : vector<8x32xf32>
    %cst_51 = arith.constant dense<0.000000e+00> : vector<8x128xf32>
    %57 = tpu.matmul %29, %9, %cst_51 {dimension_numbers = #tpu.dot_dimension_numbers<[1], [0], [0], [1], [0, 0, 1, 1], [], []>} : vector<8x16xf32>, vector<16x128xf32>, vector<8x128xf32> -> vector<8x128xf32>
    %cst_52 = arith.constant dense<0.000000e+00> : vector<8x128xf32>
    %58 = tpu.matmul %56, %10, %cst_52 {dimension_numbers = #tpu.dot_dimension_numbers<[1], [0], [0], [1], [0, 0, 1, 1], [], []>} : vector<8x32xf32>, vector<32x128xf32>, vector<8x128xf32> -> vector<8x128xf32>
    %59 = arith.addf %57, %58 : vector<8x128xf32>
    %cst_53 = arith.constant dense<0.000000e+00> : vector<8x128xf32>
    %60 = tpu.matmul %20, %11, %cst_53 {dimension_numbers = #tpu.dot_dimension_numbers<[1], [0], [0], [1], [0, 0, 1, 1], [], []>} : vector<8x32xf32>, vector<32x128xf32>, vector<8x128xf32> -> vector<8x128xf32>
    %61 = arith.addf %59, %60 : vector<8x128xf32>
    %62 = vector.broadcast %12 : vector<1x128xf32> to vector<8x128xf32>
    %63 = arith.addf %61, %62 : vector<8x128xf32>
    %64 = arith.negf %63 : vector<8x128xf32>
    %65 = math.exp %64 : vector<8x128xf32>
    %cst_54 = arith.constant 1.000000e+00 : f32
    %66 = vector.broadcast %cst_54 : f32 to vector<8x128xf32>
    %67 = arith.addf %66, %65 : vector<8x128xf32>
    %68 = arith.divf %66, %67 : vector<8x128xf32>
    %69 = vector.extract_strided_slice %63 {offsets = [0, 64], sizes = [8, 32], strides = [1, 1]} : vector<8x128xf32> to vector<8x32xf32>
    %70 = math.tanh %69 : vector<8x32xf32>
    %71 = vector.extract_strided_slice %68 {offsets = [0, 32], sizes = [8, 32], strides = [1, 1]} : vector<8x128xf32> to vector<8x32xf32>
    %72 = arith.mulf %71, %21 : vector<8x32xf32>
    %73 = vector.extract_strided_slice %68 {offsets = [0, 0], sizes = [8, 32], strides = [1, 1]} : vector<8x128xf32> to vector<8x32xf32>
    %74 = arith.mulf %73, %70 : vector<8x32xf32>
    %75 = arith.addf %72, %74 : vector<8x32xf32>
    %76 = vector.extract_strided_slice %68 {offsets = [0, 96], sizes = [8, 32], strides = [1, 1]} : vector<8x128xf32> to vector<8x32xf32>
    %77 = math.tanh %75 : vector<8x32xf32>
    %78 = arith.mulf %76, %77 : vector<8x32xf32>
    %cst_55 = arith.constant dense<0.000000e+00> : vector<8x128xf32>
    %79 = tpu.matmul %78, %13, %cst_55 {dimension_numbers = #tpu.dot_dimension_numbers<[1], [0], [0], [1], [0, 0, 1, 1], [], []>} : vector<8x32xf32>, vector<32x128xf32>, vector<8x128xf32> -> vector<8x128xf32>
    %cst_56 = arith.constant dense<0.000000e+00> : vector<8x128xf32>
    %80 = tpu.matmul %22, %14, %cst_56 {dimension_numbers = #tpu.dot_dimension_numbers<[1], [0], [0], [1], [0, 0, 1, 1], [], []>} : vector<8x32xf32>, vector<32x128xf32>, vector<8x128xf32> -> vector<8x128xf32>
    %81 = arith.addf %79, %80 : vector<8x128xf32>
    %82 = vector.broadcast %15 : vector<1x128xf32> to vector<8x128xf32>
    %83 = arith.addf %81, %82 : vector<8x128xf32>
    %84 = arith.negf %83 : vector<8x128xf32>
    %85 = math.exp %84 : vector<8x128xf32>
    %cst_57 = arith.constant 1.000000e+00 : f32
    %86 = vector.broadcast %cst_57 : f32 to vector<8x128xf32>
    %87 = arith.addf %86, %85 : vector<8x128xf32>
    %88 = arith.divf %86, %87 : vector<8x128xf32>
    %89 = vector.extract_strided_slice %83 {offsets = [0, 64], sizes = [8, 32], strides = [1, 1]} : vector<8x128xf32> to vector<8x32xf32>
    %90 = math.tanh %89 : vector<8x32xf32>
    %91 = vector.extract_strided_slice %88 {offsets = [0, 32], sizes = [8, 32], strides = [1, 1]} : vector<8x128xf32> to vector<8x32xf32>
    %92 = arith.mulf %91, %23 : vector<8x32xf32>
    %93 = vector.extract_strided_slice %88 {offsets = [0, 0], sizes = [8, 32], strides = [1, 1]} : vector<8x128xf32> to vector<8x32xf32>
    %94 = arith.mulf %93, %90 : vector<8x32xf32>
    %95 = arith.addf %92, %94 : vector<8x32xf32>
    %96 = vector.extract_strided_slice %88 {offsets = [0, 96], sizes = [8, 32], strides = [1, 1]} : vector<8x128xf32> to vector<8x32xf32>
    %97 = math.tanh %95 : vector<8x32xf32>
    %98 = arith.mulf %96, %97 : vector<8x32xf32>
    %cst_58 = arith.constant dense<0.000000e+00> : vector<8x32xf32>
    %99 = tpu.matmul %98, %16, %cst_58 {dimension_numbers = #tpu.dot_dimension_numbers<[1], [0], [0], [1], [0, 0, 1, 1], [], []>} : vector<8x32xf32>, vector<32x32xf32>, vector<8x32xf32> -> vector<8x32xf32>
    %cst_59 = arith.constant dense<0.000000e+00> : vector<8x32xf32>
    %100 = tpu.matmul %56, %17, %cst_59 {dimension_numbers = #tpu.dot_dimension_numbers<[1], [0], [0], [1], [0, 0, 1, 1], [], []>} : vector<8x32xf32>, vector<32x32xf32>, vector<8x32xf32> -> vector<8x32xf32>
    %101 = arith.addf %99, %100 : vector<8x32xf32>
    %102 = vector.broadcast %18 : vector<1x32xf32> to vector<8x32xf32>
    %103 = arith.addf %101, %102 : vector<8x32xf32>
    %cst_60 = arith.constant dense<0xFF800000> : vector<8xf32>
    %104 = vector.multi_reduction <maximumf>, %103, %cst_60 [1] : vector<8x32xf32> to vector<8xf32>
    %105 = vector.shape_cast %104 : vector<8xf32> to vector<8x1xf32>
    %106 = vector.broadcast %105 : vector<8x1xf32> to vector<8x32xf32>
    %107 = arith.cmpf oge, %103, %106 : vector<8x32xf32>
    %c32_i32 = arith.constant 32 : i32
    %108 = vector.broadcast %c32_i32 : i32 to vector<8x32xi32>
    %109 = arith.select %107, %19, %108 : vector<8x32xi1>, vector<8x32xi32>
    %cst_61 = arith.constant dense<2147483647> : vector<8xi32>
    %110 = vector.multi_reduction <minsi>, %109, %cst_61 [1] : vector<8x32xi32> to vector<8xi32>
    %111 = vector.shape_cast %110 : vector<8xi32> to vector<8x1xi32>
    %112 = vector.broadcast %111 : vector<8x1xi32> to vector<8x32xi32>
    %113 = arith.cmpi eq, %19, %112 : vector<8x32xi32>
    %114 = arith.extui %113 : vector<8x32xi1> to vector<8x32xi32>
    %115 = arith.sitofp %114 : vector<8x32xi32> to vector<8x32xf32>
    %cst_62 = arith.constant dense<0.000000e+00> : vector<8x16xf32>
    %116 = tpu.matmul %115, %3, %cst_62 {dimension_numbers = #tpu.dot_dimension_numbers<[1], [0], [0], [1], [0, 0, 1, 1], [], []>} : vector<8x32xf32>, vector<32x16xf32>, vector<8x16xf32> -> vector<8x16xf32>
    %cst_63 = arith.constant dense<0.000000e+00> : vector<8x32xf32>
    %117 = tpu.matmul %98, %4, %cst_63 {dimension_numbers = #tpu.dot_dimension_numbers<[1], [0], [0], [1], [0, 0, 1, 1], [], []>} : vector<8x32xf32>, vector<32x32xf32>, vector<8x32xf32> -> vector<8x32xf32>
    %118 = vector.broadcast %5 : vector<1x32xf32> to vector<8x32xf32>
    %119 = arith.addf %117, %118 : vector<8x32xf32>
    %cst_64 = arith.constant 0.353553385 : f32
    %120 = vector.broadcast %cst_64 : f32 to vector<8x32xf32>
    %121 = arith.mulf %119, %120 : vector<8x32xf32>
    %122 = vector.shape_cast %121 : vector<8x32xf32> to vector<8x1x32xf32>
    %123 = vector.broadcast %122 : vector<8x1x32xf32> to vector<8x8x32xf32>
    %124 = arith.mulf %123, %0 : vector<8x8x32xf32>
    %125 = vector.shape_cast %124 : vector<8x8x32xf32> to vector<64x32xf32>
    %cst_65 = arith.constant dense<0.000000e+00> : vector<64x32xf32>
    %126 = tpu.matmul %125, %6, %cst_65 {dimension_numbers = #tpu.dot_dimension_numbers<[1], [0], [0], [1], [0, 0, 1, 1], [], []>} : vector<64x32xf32>, vector<32x32xf32>, vector<64x32xf32> -> vector<64x32xf32>
    %127 = vector.shape_cast %126 : vector<64x32xf32> to vector<8x8x32xf32>
    %128 = vector.broadcast %2 : vector<8x8x1xf32> to vector<8x8x32xf32>
    %129 = arith.addf %127, %128 : vector<8x8x32xf32>
    %cst_66 = arith.constant dense<0xFF800000> : vector<8x32xf32>
    %130 = vector.multi_reduction <maximumf>, %129, %cst_66 [1] : vector<8x8x32xf32> to vector<8x32xf32>
    %131 = vector.shape_cast %130 : vector<8x32xf32> to vector<8x1x32xf32>
    %132 = vector.broadcast %131 : vector<8x1x32xf32> to vector<8x8x32xf32>
    %133 = arith.subf %129, %132 : vector<8x8x32xf32>
    %134 = math.exp %133 : vector<8x8x32xf32>
    %cst_67 = arith.constant dense<0.000000e+00> : vector<8x32xf32>
    %135 = vector.multi_reduction <add>, %134, %cst_67 [1] : vector<8x8x32xf32> to vector<8x32xf32>
    %136 = vector.shape_cast %135 : vector<8x32xf32> to vector<8x1x32xf32>
    %137 = vector.broadcast %136 : vector<8x1x32xf32> to vector<8x8x32xf32>
    %138 = arith.divf %134, %137 : vector<8x8x32xf32>
    %139 = arith.mulf %138, %1 : vector<8x8x32xf32>
    %cst_68 = arith.constant dense<0.000000e+00> : vector<8x32xf32>
    %140 = vector.multi_reduction <add>, %139, %cst_68 [1] : vector<8x8x32xf32> to vector<8x32xf32>
    %cst_69 = arith.constant dense<0.000000e+00> : vector<8x32xf32>
    %141 = tpu.matmul %140, %7, %cst_69 {dimension_numbers = #tpu.dot_dimension_numbers<[1], [0], [0], [1], [0, 0, 1, 1], [], []>} : vector<8x32xf32>, vector<32x32xf32>, vector<8x32xf32> -> vector<8x32xf32>
    %142 = vector.broadcast %8 : vector<1x32xf32> to vector<8x32xf32>
    %143 = arith.addf %141, %142 : vector<8x32xf32>
    %cst_70 = arith.constant dense<0.000000e+00> : vector<8x128xf32>
    %144 = tpu.matmul %116, %9, %cst_70 {dimension_numbers = #tpu.dot_dimension_numbers<[1], [0], [0], [1], [0, 0, 1, 1], [], []>} : vector<8x16xf32>, vector<16x128xf32>, vector<8x128xf32> -> vector<8x128xf32>
    %cst_71 = arith.constant dense<0.000000e+00> : vector<8x128xf32>
    %145 = tpu.matmul %143, %10, %cst_71 {dimension_numbers = #tpu.dot_dimension_numbers<[1], [0], [0], [1], [0, 0, 1, 1], [], []>} : vector<8x32xf32>, vector<32x128xf32>, vector<8x128xf32> -> vector<8x128xf32>
    %146 = arith.addf %144, %145 : vector<8x128xf32>
    %cst_72 = arith.constant dense<0.000000e+00> : vector<8x128xf32>
    %147 = tpu.matmul %78, %11, %cst_72 {dimension_numbers = #tpu.dot_dimension_numbers<[1], [0], [0], [1], [0, 0, 1, 1], [], []>} : vector<8x32xf32>, vector<32x128xf32>, vector<8x128xf32> -> vector<8x128xf32>
    %148 = arith.addf %146, %147 : vector<8x128xf32>
    %149 = vector.broadcast %12 : vector<1x128xf32> to vector<8x128xf32>
    %150 = arith.addf %148, %149 : vector<8x128xf32>
    %151 = arith.negf %150 : vector<8x128xf32>
    %152 = math.exp %151 : vector<8x128xf32>
    %cst_73 = arith.constant 1.000000e+00 : f32
    %153 = vector.broadcast %cst_73 : f32 to vector<8x128xf32>
    %154 = arith.addf %153, %152 : vector<8x128xf32>
    %155 = arith.divf %153, %154 : vector<8x128xf32>
    %156 = vector.extract_strided_slice %150 {offsets = [0, 64], sizes = [8, 32], strides = [1, 1]} : vector<8x128xf32> to vector<8x32xf32>
    %157 = math.tanh %156 : vector<8x32xf32>
    %158 = vector.extract_strided_slice %155 {offsets = [0, 32], sizes = [8, 32], strides = [1, 1]} : vector<8x128xf32> to vector<8x32xf32>
    %159 = arith.mulf %158, %75 : vector<8x32xf32>
    %160 = vector.extract_strided_slice %155 {offsets = [0, 0], sizes = [8, 32], strides = [1, 1]} : vector<8x128xf32> to vector<8x32xf32>
    %161 = arith.mulf %160, %157 : vector<8x32xf32>
    %162 = arith.addf %159, %161 : vector<8x32xf32>
    %163 = vector.extract_strided_slice %155 {offsets = [0, 96], sizes = [8, 32], strides = [1, 1]} : vector<8x128xf32> to vector<8x32xf32>
    %164 = math.tanh %162 : vector<8x32xf32>
    %165 = arith.mulf %163, %164 : vector<8x32xf32>
    %cst_74 = arith.constant dense<0.000000e+00> : vector<8x128xf32>
    %166 = tpu.matmul %165, %13, %cst_74 {dimension_numbers = #tpu.dot_dimension_numbers<[1], [0], [0], [1], [0, 0, 1, 1], [], []>} : vector<8x32xf32>, vector<32x128xf32>, vector<8x128xf32> -> vector<8x128xf32>
    %cst_75 = arith.constant dense<0.000000e+00> : vector<8x128xf32>
    %167 = tpu.matmul %98, %14, %cst_75 {dimension_numbers = #tpu.dot_dimension_numbers<[1], [0], [0], [1], [0, 0, 1, 1], [], []>} : vector<8x32xf32>, vector<32x128xf32>, vector<8x128xf32> -> vector<8x128xf32>
    %168 = arith.addf %166, %167 : vector<8x128xf32>
    %169 = vector.broadcast %15 : vector<1x128xf32> to vector<8x128xf32>
    %170 = arith.addf %168, %169 : vector<8x128xf32>
    %171 = arith.negf %170 : vector<8x128xf32>
    %172 = math.exp %171 : vector<8x128xf32>
    %cst_76 = arith.constant 1.000000e+00 : f32
    %173 = vector.broadcast %cst_76 : f32 to vector<8x128xf32>
    %174 = arith.addf %173, %172 : vector<8x128xf32>
    %175 = arith.divf %173, %174 : vector<8x128xf32>
    %176 = vector.extract_strided_slice %170 {offsets = [0, 64], sizes = [8, 32], strides = [1, 1]} : vector<8x128xf32> to vector<8x32xf32>
    %177 = math.tanh %176 : vector<8x32xf32>
    %178 = vector.extract_strided_slice %175 {offsets = [0, 32], sizes = [8, 32], strides = [1, 1]} : vector<8x128xf32> to vector<8x32xf32>
    %179 = arith.mulf %178, %95 : vector<8x32xf32>
    %180 = vector.extract_strided_slice %175 {offsets = [0, 0], sizes = [8, 32], strides = [1, 1]} : vector<8x128xf32> to vector<8x32xf32>
    %181 = arith.mulf %180, %177 : vector<8x32xf32>
    %182 = arith.addf %179, %181 : vector<8x32xf32>
    %183 = vector.extract_strided_slice %175 {offsets = [0, 96], sizes = [8, 32], strides = [1, 1]} : vector<8x128xf32> to vector<8x32xf32>
    %184 = math.tanh %182 : vector<8x32xf32>
    %185 = arith.mulf %183, %184 : vector<8x32xf32>
    %cst_77 = arith.constant dense<0.000000e+00> : vector<8x32xf32>
    %186 = tpu.matmul %185, %16, %cst_77 {dimension_numbers = #tpu.dot_dimension_numbers<[1], [0], [0], [1], [0, 0, 1, 1], [], []>} : vector<8x32xf32>, vector<32x32xf32>, vector<8x32xf32> -> vector<8x32xf32>
    %cst_78 = arith.constant dense<0.000000e+00> : vector<8x32xf32>
    %187 = tpu.matmul %143, %17, %cst_78 {dimension_numbers = #tpu.dot_dimension_numbers<[1], [0], [0], [1], [0, 0, 1, 1], [], []>} : vector<8x32xf32>, vector<32x32xf32>, vector<8x32xf32> -> vector<8x32xf32>
    %188 = arith.addf %186, %187 : vector<8x32xf32>
    %189 = vector.broadcast %18 : vector<1x32xf32> to vector<8x32xf32>
    %190 = arith.addf %188, %189 : vector<8x32xf32>
    %cst_79 = arith.constant dense<0xFF800000> : vector<8xf32>
    %191 = vector.multi_reduction <maximumf>, %190, %cst_79 [1] : vector<8x32xf32> to vector<8xf32>
    %192 = vector.shape_cast %191 : vector<8xf32> to vector<8x1xf32>
    %193 = vector.broadcast %192 : vector<8x1xf32> to vector<8x32xf32>
    %194 = arith.cmpf oge, %190, %193 : vector<8x32xf32>
    %c32_i32_80 = arith.constant 32 : i32
    %195 = vector.broadcast %c32_i32_80 : i32 to vector<8x32xi32>
    %196 = arith.select %194, %19, %195 : vector<8x32xi1>, vector<8x32xi32>
    %cst_81 = arith.constant dense<2147483647> : vector<8xi32>
    %197 = vector.multi_reduction <minsi>, %196, %cst_81 [1] : vector<8x32xi32> to vector<8xi32>
    %198 = vector.shape_cast %197 : vector<8xi32> to vector<8x1xi32>
    %199 = vector.broadcast %198 : vector<8x1xi32> to vector<8x32xi32>
    %200 = arith.cmpi eq, %19, %199 : vector<8x32xi32>
    %201 = arith.extui %200 : vector<8x32xi1> to vector<8x32xi32>
    %202 = arith.sitofp %201 : vector<8x32xi32> to vector<8x32xf32>
    %cst_82 = arith.constant dense<0.000000e+00> : vector<8x16xf32>
    %203 = tpu.matmul %202, %3, %cst_82 {dimension_numbers = #tpu.dot_dimension_numbers<[1], [0], [0], [1], [0, 0, 1, 1], [], []>} : vector<8x32xf32>, vector<32x16xf32>, vector<8x16xf32> -> vector<8x16xf32>
    %cst_83 = arith.constant dense<0.000000e+00> : vector<8x32xf32>
    %204 = tpu.matmul %185, %4, %cst_83 {dimension_numbers = #tpu.dot_dimension_numbers<[1], [0], [0], [1], [0, 0, 1, 1], [], []>} : vector<8x32xf32>, vector<32x32xf32>, vector<8x32xf32> -> vector<8x32xf32>
    %205 = vector.broadcast %5 : vector<1x32xf32> to vector<8x32xf32>
    %206 = arith.addf %204, %205 : vector<8x32xf32>
    %cst_84 = arith.constant 0.353553385 : f32
    %207 = vector.broadcast %cst_84 : f32 to vector<8x32xf32>
    %208 = arith.mulf %206, %207 : vector<8x32xf32>
    %209 = vector.shape_cast %208 : vector<8x32xf32> to vector<8x1x32xf32>
    %210 = vector.broadcast %209 : vector<8x1x32xf32> to vector<8x8x32xf32>
    %211 = arith.mulf %210, %0 : vector<8x8x32xf32>
    %212 = vector.shape_cast %211 : vector<8x8x32xf32> to vector<64x32xf32>
    %cst_85 = arith.constant dense<0.000000e+00> : vector<64x32xf32>
    %213 = tpu.matmul %212, %6, %cst_85 {dimension_numbers = #tpu.dot_dimension_numbers<[1], [0], [0], [1], [0, 0, 1, 1], [], []>} : vector<64x32xf32>, vector<32x32xf32>, vector<64x32xf32> -> vector<64x32xf32>
    %214 = vector.shape_cast %213 : vector<64x32xf32> to vector<8x8x32xf32>
    %215 = vector.broadcast %2 : vector<8x8x1xf32> to vector<8x8x32xf32>
    %216 = arith.addf %214, %215 : vector<8x8x32xf32>
    %cst_86 = arith.constant dense<0xFF800000> : vector<8x32xf32>
    %217 = vector.multi_reduction <maximumf>, %216, %cst_86 [1] : vector<8x8x32xf32> to vector<8x32xf32>
    %218 = vector.shape_cast %217 : vector<8x32xf32> to vector<8x1x32xf32>
    %219 = vector.broadcast %218 : vector<8x1x32xf32> to vector<8x8x32xf32>
    %220 = arith.subf %216, %219 : vector<8x8x32xf32>
    %221 = math.exp %220 : vector<8x8x32xf32>
    %cst_87 = arith.constant dense<0.000000e+00> : vector<8x32xf32>
    %222 = vector.multi_reduction <add>, %221, %cst_87 [1] : vector<8x8x32xf32> to vector<8x32xf32>
    %223 = vector.shape_cast %222 : vector<8x32xf32> to vector<8x1x32xf32>
    %224 = vector.broadcast %223 : vector<8x1x32xf32> to vector<8x8x32xf32>
    %225 = arith.divf %221, %224 : vector<8x8x32xf32>
    %226 = arith.mulf %225, %1 : vector<8x8x32xf32>
    %cst_88 = arith.constant dense<0.000000e+00> : vector<8x32xf32>
    %227 = vector.multi_reduction <add>, %226, %cst_88 [1] : vector<8x8x32xf32> to vector<8x32xf32>
    %cst_89 = arith.constant dense<0.000000e+00> : vector<8x32xf32>
    %228 = tpu.matmul %227, %7, %cst_89 {dimension_numbers = #tpu.dot_dimension_numbers<[1], [0], [0], [1], [0, 0, 1, 1], [], []>} : vector<8x32xf32>, vector<32x32xf32>, vector<8x32xf32> -> vector<8x32xf32>
    %229 = vector.broadcast %8 : vector<1x32xf32> to vector<8x32xf32>
    %230 = arith.addf %228, %229 : vector<8x32xf32>
    %cst_90 = arith.constant dense<0.000000e+00> : vector<8x128xf32>
    %231 = tpu.matmul %203, %9, %cst_90 {dimension_numbers = #tpu.dot_dimension_numbers<[1], [0], [0], [1], [0, 0, 1, 1], [], []>} : vector<8x16xf32>, vector<16x128xf32>, vector<8x128xf32> -> vector<8x128xf32>
    %cst_91 = arith.constant dense<0.000000e+00> : vector<8x128xf32>
    %232 = tpu.matmul %230, %10, %cst_91 {dimension_numbers = #tpu.dot_dimension_numbers<[1], [0], [0], [1], [0, 0, 1, 1], [], []>} : vector<8x32xf32>, vector<32x128xf32>, vector<8x128xf32> -> vector<8x128xf32>
    %233 = arith.addf %231, %232 : vector<8x128xf32>
    %cst_92 = arith.constant dense<0.000000e+00> : vector<8x128xf32>
    %234 = tpu.matmul %165, %11, %cst_92 {dimension_numbers = #tpu.dot_dimension_numbers<[1], [0], [0], [1], [0, 0, 1, 1], [], []>} : vector<8x32xf32>, vector<32x128xf32>, vector<8x128xf32> -> vector<8x128xf32>
    %235 = arith.addf %233, %234 : vector<8x128xf32>
    %236 = vector.broadcast %12 : vector<1x128xf32> to vector<8x128xf32>
    %237 = arith.addf %235, %236 : vector<8x128xf32>
    %238 = arith.negf %237 : vector<8x128xf32>
    %239 = math.exp %238 : vector<8x128xf32>
    %cst_93 = arith.constant 1.000000e+00 : f32
    %240 = vector.broadcast %cst_93 : f32 to vector<8x128xf32>
    %241 = arith.addf %240, %239 : vector<8x128xf32>
    %242 = arith.divf %240, %241 : vector<8x128xf32>
    %243 = vector.extract_strided_slice %237 {offsets = [0, 64], sizes = [8, 32], strides = [1, 1]} : vector<8x128xf32> to vector<8x32xf32>
    %244 = math.tanh %243 : vector<8x32xf32>
    %245 = vector.extract_strided_slice %242 {offsets = [0, 32], sizes = [8, 32], strides = [1, 1]} : vector<8x128xf32> to vector<8x32xf32>
    %246 = arith.mulf %245, %162 : vector<8x32xf32>
    %247 = vector.extract_strided_slice %242 {offsets = [0, 0], sizes = [8, 32], strides = [1, 1]} : vector<8x128xf32> to vector<8x32xf32>
    %248 = arith.mulf %247, %244 : vector<8x32xf32>
    %249 = arith.addf %246, %248 : vector<8x32xf32>
    %250 = vector.extract_strided_slice %242 {offsets = [0, 96], sizes = [8, 32], strides = [1, 1]} : vector<8x128xf32> to vector<8x32xf32>
    %251 = math.tanh %249 : vector<8x32xf32>
    %252 = arith.mulf %250, %251 : vector<8x32xf32>
    %cst_94 = arith.constant dense<0.000000e+00> : vector<8x128xf32>
    %253 = tpu.matmul %252, %13, %cst_94 {dimension_numbers = #tpu.dot_dimension_numbers<[1], [0], [0], [1], [0, 0, 1, 1], [], []>} : vector<8x32xf32>, vector<32x128xf32>, vector<8x128xf32> -> vector<8x128xf32>
    %cst_95 = arith.constant dense<0.000000e+00> : vector<8x128xf32>
    %254 = tpu.matmul %185, %14, %cst_95 {dimension_numbers = #tpu.dot_dimension_numbers<[1], [0], [0], [1], [0, 0, 1, 1], [], []>} : vector<8x32xf32>, vector<32x128xf32>, vector<8x128xf32> -> vector<8x128xf32>
    %255 = arith.addf %253, %254 : vector<8x128xf32>
    %256 = vector.broadcast %15 : vector<1x128xf32> to vector<8x128xf32>
    %257 = arith.addf %255, %256 : vector<8x128xf32>
    %258 = arith.negf %257 : vector<8x128xf32>
    %259 = math.exp %258 : vector<8x128xf32>
    %cst_96 = arith.constant 1.000000e+00 : f32
    %260 = vector.broadcast %cst_96 : f32 to vector<8x128xf32>
    %261 = arith.addf %260, %259 : vector<8x128xf32>
    %262 = arith.divf %260, %261 : vector<8x128xf32>
    %263 = vector.extract_strided_slice %257 {offsets = [0, 64], sizes = [8, 32], strides = [1, 1]} : vector<8x128xf32> to vector<8x32xf32>
    %264 = math.tanh %263 : vector<8x32xf32>
    %265 = vector.extract_strided_slice %262 {offsets = [0, 32], sizes = [8, 32], strides = [1, 1]} : vector<8x128xf32> to vector<8x32xf32>
    %266 = arith.mulf %265, %182 : vector<8x32xf32>
    %267 = vector.extract_strided_slice %262 {offsets = [0, 0], sizes = [8, 32], strides = [1, 1]} : vector<8x128xf32> to vector<8x32xf32>
    %268 = arith.mulf %267, %264 : vector<8x32xf32>
    %269 = arith.addf %266, %268 : vector<8x32xf32>
    %270 = vector.extract_strided_slice %262 {offsets = [0, 96], sizes = [8, 32], strides = [1, 1]} : vector<8x128xf32> to vector<8x32xf32>
    %271 = math.tanh %269 : vector<8x32xf32>
    %272 = arith.mulf %270, %271 : vector<8x32xf32>
    %cst_97 = arith.constant dense<0.000000e+00> : vector<8x32xf32>
    %273 = tpu.matmul %272, %16, %cst_97 {dimension_numbers = #tpu.dot_dimension_numbers<[1], [0], [0], [1], [0, 0, 1, 1], [], []>} : vector<8x32xf32>, vector<32x32xf32>, vector<8x32xf32> -> vector<8x32xf32>
    %cst_98 = arith.constant dense<0.000000e+00> : vector<8x32xf32>
    %274 = tpu.matmul %230, %17, %cst_98 {dimension_numbers = #tpu.dot_dimension_numbers<[1], [0], [0], [1], [0, 0, 1, 1], [], []>} : vector<8x32xf32>, vector<32x32xf32>, vector<8x32xf32> -> vector<8x32xf32>
    %275 = arith.addf %273, %274 : vector<8x32xf32>
    %276 = vector.broadcast %18 : vector<1x32xf32> to vector<8x32xf32>
    %277 = arith.addf %275, %276 : vector<8x32xf32>
    %cst_99 = arith.constant dense<0xFF800000> : vector<8xf32>
    %278 = vector.multi_reduction <maximumf>, %277, %cst_99 [1] : vector<8x32xf32> to vector<8xf32>
    %279 = vector.shape_cast %278 : vector<8xf32> to vector<8x1xf32>
    %280 = vector.broadcast %279 : vector<8x1xf32> to vector<8x32xf32>
    %281 = arith.cmpf oge, %277, %280 : vector<8x32xf32>
    %c32_i32_100 = arith.constant 32 : i32
    %282 = vector.broadcast %c32_i32_100 : i32 to vector<8x32xi32>
    %283 = arith.select %281, %19, %282 : vector<8x32xi1>, vector<8x32xi32>
    %cst_101 = arith.constant dense<2147483647> : vector<8xi32>
    %284 = vector.multi_reduction <minsi>, %283, %cst_101 [1] : vector<8x32xi32> to vector<8xi32>
    %285 = vector.shape_cast %284 : vector<8xi32> to vector<8x1xi32>
    %286 = vector.broadcast %285 : vector<8x1xi32> to vector<8x32xi32>
    %287 = arith.cmpi eq, %19, %286 : vector<8x32xi32>
    %288 = arith.extui %287 : vector<8x32xi1> to vector<8x32xi32>
    %289 = arith.sitofp %288 : vector<8x32xi32> to vector<8x32xf32>
    %cst_102 = arith.constant dense<0.000000e+00> : vector<8x16xf32>
    %290 = tpu.matmul %289, %3, %cst_102 {dimension_numbers = #tpu.dot_dimension_numbers<[1], [0], [0], [1], [0, 0, 1, 1], [], []>} : vector<8x32xf32>, vector<32x16xf32>, vector<8x16xf32> -> vector<8x16xf32>
    %cst_103 = arith.constant dense<0.000000e+00> : vector<8x32xf32>
    %291 = tpu.matmul %272, %4, %cst_103 {dimension_numbers = #tpu.dot_dimension_numbers<[1], [0], [0], [1], [0, 0, 1, 1], [], []>} : vector<8x32xf32>, vector<32x32xf32>, vector<8x32xf32> -> vector<8x32xf32>
    %292 = vector.broadcast %5 : vector<1x32xf32> to vector<8x32xf32>
    %293 = arith.addf %291, %292 : vector<8x32xf32>
    %cst_104 = arith.constant 0.353553385 : f32
    %294 = vector.broadcast %cst_104 : f32 to vector<8x32xf32>
    %295 = arith.mulf %293, %294 : vector<8x32xf32>
    %296 = vector.shape_cast %295 : vector<8x32xf32> to vector<8x1x32xf32>
    %297 = vector.broadcast %296 : vector<8x1x32xf32> to vector<8x8x32xf32>
    %298 = arith.mulf %297, %0 : vector<8x8x32xf32>
    %299 = vector.shape_cast %298 : vector<8x8x32xf32> to vector<64x32xf32>
    %cst_105 = arith.constant dense<0.000000e+00> : vector<64x32xf32>
    %300 = tpu.matmul %299, %6, %cst_105 {dimension_numbers = #tpu.dot_dimension_numbers<[1], [0], [0], [1], [0, 0, 1, 1], [], []>} : vector<64x32xf32>, vector<32x32xf32>, vector<64x32xf32> -> vector<64x32xf32>
    %301 = vector.shape_cast %300 : vector<64x32xf32> to vector<8x8x32xf32>
    %302 = vector.broadcast %2 : vector<8x8x1xf32> to vector<8x8x32xf32>
    %303 = arith.addf %301, %302 : vector<8x8x32xf32>
    %cst_106 = arith.constant dense<0xFF800000> : vector<8x32xf32>
    %304 = vector.multi_reduction <maximumf>, %303, %cst_106 [1] : vector<8x8x32xf32> to vector<8x32xf32>
    %305 = vector.shape_cast %304 : vector<8x32xf32> to vector<8x1x32xf32>
    %306 = vector.broadcast %305 : vector<8x1x32xf32> to vector<8x8x32xf32>
    %307 = arith.subf %303, %306 : vector<8x8x32xf32>
    %308 = math.exp %307 : vector<8x8x32xf32>
    %cst_107 = arith.constant dense<0.000000e+00> : vector<8x32xf32>
    %309 = vector.multi_reduction <add>, %308, %cst_107 [1] : vector<8x8x32xf32> to vector<8x32xf32>
    %310 = vector.shape_cast %309 : vector<8x32xf32> to vector<8x1x32xf32>
    %311 = vector.broadcast %310 : vector<8x1x32xf32> to vector<8x8x32xf32>
    %312 = arith.divf %308, %311 : vector<8x8x32xf32>
    %313 = arith.mulf %312, %1 : vector<8x8x32xf32>
    %cst_108 = arith.constant dense<0.000000e+00> : vector<8x32xf32>
    %314 = vector.multi_reduction <add>, %313, %cst_108 [1] : vector<8x8x32xf32> to vector<8x32xf32>
    %cst_109 = arith.constant dense<0.000000e+00> : vector<8x32xf32>
    %315 = tpu.matmul %314, %7, %cst_109 {dimension_numbers = #tpu.dot_dimension_numbers<[1], [0], [0], [1], [0, 0, 1, 1], [], []>} : vector<8x32xf32>, vector<32x32xf32>, vector<8x32xf32> -> vector<8x32xf32>
    %316 = vector.broadcast %8 : vector<1x32xf32> to vector<8x32xf32>
    %317 = arith.addf %315, %316 : vector<8x32xf32>
    %cst_110 = arith.constant dense<0.000000e+00> : vector<8x128xf32>
    %318 = tpu.matmul %290, %9, %cst_110 {dimension_numbers = #tpu.dot_dimension_numbers<[1], [0], [0], [1], [0, 0, 1, 1], [], []>} : vector<8x16xf32>, vector<16x128xf32>, vector<8x128xf32> -> vector<8x128xf32>
    %cst_111 = arith.constant dense<0.000000e+00> : vector<8x128xf32>
    %319 = tpu.matmul %317, %10, %cst_111 {dimension_numbers = #tpu.dot_dimension_numbers<[1], [0], [0], [1], [0, 0, 1, 1], [], []>} : vector<8x32xf32>, vector<32x128xf32>, vector<8x128xf32> -> vector<8x128xf32>
    %320 = arith.addf %318, %319 : vector<8x128xf32>
    %cst_112 = arith.constant dense<0.000000e+00> : vector<8x128xf32>
    %321 = tpu.matmul %252, %11, %cst_112 {dimension_numbers = #tpu.dot_dimension_numbers<[1], [0], [0], [1], [0, 0, 1, 1], [], []>} : vector<8x32xf32>, vector<32x128xf32>, vector<8x128xf32> -> vector<8x128xf32>
    %322 = arith.addf %320, %321 : vector<8x128xf32>
    %323 = vector.broadcast %12 : vector<1x128xf32> to vector<8x128xf32>
    %324 = arith.addf %322, %323 : vector<8x128xf32>
    %325 = arith.negf %324 : vector<8x128xf32>
    %326 = math.exp %325 : vector<8x128xf32>
    %cst_113 = arith.constant 1.000000e+00 : f32
    %327 = vector.broadcast %cst_113 : f32 to vector<8x128xf32>
    %328 = arith.addf %327, %326 : vector<8x128xf32>
    %329 = arith.divf %327, %328 : vector<8x128xf32>
    %330 = vector.extract_strided_slice %324 {offsets = [0, 64], sizes = [8, 32], strides = [1, 1]} : vector<8x128xf32> to vector<8x32xf32>
    %331 = math.tanh %330 : vector<8x32xf32>
    %332 = vector.extract_strided_slice %329 {offsets = [0, 32], sizes = [8, 32], strides = [1, 1]} : vector<8x128xf32> to vector<8x32xf32>
    %333 = arith.mulf %332, %249 : vector<8x32xf32>
    %334 = vector.extract_strided_slice %329 {offsets = [0, 0], sizes = [8, 32], strides = [1, 1]} : vector<8x128xf32> to vector<8x32xf32>
    %335 = arith.mulf %334, %331 : vector<8x32xf32>
    %336 = arith.addf %333, %335 : vector<8x32xf32>
    %337 = vector.extract_strided_slice %329 {offsets = [0, 96], sizes = [8, 32], strides = [1, 1]} : vector<8x128xf32> to vector<8x32xf32>
    %338 = math.tanh %336 : vector<8x32xf32>
    %339 = arith.mulf %337, %338 : vector<8x32xf32>
    %cst_114 = arith.constant dense<0.000000e+00> : vector<8x128xf32>
    %340 = tpu.matmul %339, %13, %cst_114 {dimension_numbers = #tpu.dot_dimension_numbers<[1], [0], [0], [1], [0, 0, 1, 1], [], []>} : vector<8x32xf32>, vector<32x128xf32>, vector<8x128xf32> -> vector<8x128xf32>
    %cst_115 = arith.constant dense<0.000000e+00> : vector<8x128xf32>
    %341 = tpu.matmul %272, %14, %cst_115 {dimension_numbers = #tpu.dot_dimension_numbers<[1], [0], [0], [1], [0, 0, 1, 1], [], []>} : vector<8x32xf32>, vector<32x128xf32>, vector<8x128xf32> -> vector<8x128xf32>
    %342 = arith.addf %340, %341 : vector<8x128xf32>
    %343 = vector.broadcast %15 : vector<1x128xf32> to vector<8x128xf32>
    %344 = arith.addf %342, %343 : vector<8x128xf32>
    %345 = arith.negf %344 : vector<8x128xf32>
    %346 = math.exp %345 : vector<8x128xf32>
    %cst_116 = arith.constant 1.000000e+00 : f32
    %347 = vector.broadcast %cst_116 : f32 to vector<8x128xf32>
    %348 = arith.addf %347, %346 : vector<8x128xf32>
    %349 = arith.divf %347, %348 : vector<8x128xf32>
    %350 = vector.extract_strided_slice %344 {offsets = [0, 64], sizes = [8, 32], strides = [1, 1]} : vector<8x128xf32> to vector<8x32xf32>
    %351 = math.tanh %350 : vector<8x32xf32>
    %352 = vector.extract_strided_slice %349 {offsets = [0, 32], sizes = [8, 32], strides = [1, 1]} : vector<8x128xf32> to vector<8x32xf32>
    %353 = arith.mulf %352, %269 : vector<8x32xf32>
    %354 = vector.extract_strided_slice %349 {offsets = [0, 0], sizes = [8, 32], strides = [1, 1]} : vector<8x128xf32> to vector<8x32xf32>
    %355 = arith.mulf %354, %351 : vector<8x32xf32>
    %356 = arith.addf %353, %355 : vector<8x32xf32>
    %357 = vector.extract_strided_slice %349 {offsets = [0, 96], sizes = [8, 32], strides = [1, 1]} : vector<8x128xf32> to vector<8x32xf32>
    %358 = math.tanh %356 : vector<8x32xf32>
    %359 = arith.mulf %357, %358 : vector<8x32xf32>
    %cst_117 = arith.constant dense<0.000000e+00> : vector<8x32xf32>
    %360 = tpu.matmul %359, %16, %cst_117 {dimension_numbers = #tpu.dot_dimension_numbers<[1], [0], [0], [1], [0, 0, 1, 1], [], []>} : vector<8x32xf32>, vector<32x32xf32>, vector<8x32xf32> -> vector<8x32xf32>
    %cst_118 = arith.constant dense<0.000000e+00> : vector<8x32xf32>
    %361 = tpu.matmul %317, %17, %cst_118 {dimension_numbers = #tpu.dot_dimension_numbers<[1], [0], [0], [1], [0, 0, 1, 1], [], []>} : vector<8x32xf32>, vector<32x32xf32>, vector<8x32xf32> -> vector<8x32xf32>
    %362 = arith.addf %360, %361 : vector<8x32xf32>
    %363 = vector.broadcast %18 : vector<1x32xf32> to vector<8x32xf32>
    %364 = arith.addf %362, %363 : vector<8x32xf32>
    %cst_119 = arith.constant dense<0xFF800000> : vector<8xf32>
    %365 = vector.multi_reduction <maximumf>, %364, %cst_119 [1] : vector<8x32xf32> to vector<8xf32>
    %366 = vector.shape_cast %365 : vector<8xf32> to vector<8x1xf32>
    %367 = vector.broadcast %366 : vector<8x1xf32> to vector<8x32xf32>
    %368 = arith.cmpf oge, %364, %367 : vector<8x32xf32>
    %c32_i32_120 = arith.constant 32 : i32
    %369 = vector.broadcast %c32_i32_120 : i32 to vector<8x32xi32>
    %370 = arith.select %368, %19, %369 : vector<8x32xi1>, vector<8x32xi32>
    %cst_121 = arith.constant dense<2147483647> : vector<8xi32>
    %371 = vector.multi_reduction <minsi>, %370, %cst_121 [1] : vector<8x32xi32> to vector<8xi32>
    %372 = vector.shape_cast %371 : vector<8xi32> to vector<8x1xi32>
    %373 = vector.broadcast %372 : vector<8x1xi32> to vector<8x32xi32>
    %374 = arith.cmpi eq, %19, %373 : vector<8x32xi32>
    %375 = arith.extui %374 : vector<8x32xi1> to vector<8x32xi32>
    %376 = arith.sitofp %375 : vector<8x32xi32> to vector<8x32xf32>
    %cst_122 = arith.constant dense<0.000000e+00> : vector<8x16xf32>
    %377 = tpu.matmul %376, %3, %cst_122 {dimension_numbers = #tpu.dot_dimension_numbers<[1], [0], [0], [1], [0, 0, 1, 1], [], []>} : vector<8x32xf32>, vector<32x16xf32>, vector<8x16xf32> -> vector<8x16xf32>
    %cst_123 = arith.constant dense<0.000000e+00> : vector<8x32xf32>
    %378 = tpu.matmul %359, %4, %cst_123 {dimension_numbers = #tpu.dot_dimension_numbers<[1], [0], [0], [1], [0, 0, 1, 1], [], []>} : vector<8x32xf32>, vector<32x32xf32>, vector<8x32xf32> -> vector<8x32xf32>
    %379 = vector.broadcast %5 : vector<1x32xf32> to vector<8x32xf32>
    %380 = arith.addf %378, %379 : vector<8x32xf32>
    %cst_124 = arith.constant 0.353553385 : f32
    %381 = vector.broadcast %cst_124 : f32 to vector<8x32xf32>
    %382 = arith.mulf %380, %381 : vector<8x32xf32>
    %383 = vector.shape_cast %382 : vector<8x32xf32> to vector<8x1x32xf32>
    %384 = vector.broadcast %383 : vector<8x1x32xf32> to vector<8x8x32xf32>
    %385 = arith.mulf %384, %0 : vector<8x8x32xf32>
    %386 = vector.shape_cast %385 : vector<8x8x32xf32> to vector<64x32xf32>
    %cst_125 = arith.constant dense<0.000000e+00> : vector<64x32xf32>
    %387 = tpu.matmul %386, %6, %cst_125 {dimension_numbers = #tpu.dot_dimension_numbers<[1], [0], [0], [1], [0, 0, 1, 1], [], []>} : vector<64x32xf32>, vector<32x32xf32>, vector<64x32xf32> -> vector<64x32xf32>
    %388 = vector.shape_cast %387 : vector<64x32xf32> to vector<8x8x32xf32>
    %389 = vector.broadcast %2 : vector<8x8x1xf32> to vector<8x8x32xf32>
    %390 = arith.addf %388, %389 : vector<8x8x32xf32>
    %cst_126 = arith.constant dense<0xFF800000> : vector<8x32xf32>
    %391 = vector.multi_reduction <maximumf>, %390, %cst_126 [1] : vector<8x8x32xf32> to vector<8x32xf32>
    %392 = vector.shape_cast %391 : vector<8x32xf32> to vector<8x1x32xf32>
    %393 = vector.broadcast %392 : vector<8x1x32xf32> to vector<8x8x32xf32>
    %394 = arith.subf %390, %393 : vector<8x8x32xf32>
    %395 = math.exp %394 : vector<8x8x32xf32>
    %cst_127 = arith.constant dense<0.000000e+00> : vector<8x32xf32>
    %396 = vector.multi_reduction <add>, %395, %cst_127 [1] : vector<8x8x32xf32> to vector<8x32xf32>
    %397 = vector.shape_cast %396 : vector<8x32xf32> to vector<8x1x32xf32>
    %398 = vector.broadcast %397 : vector<8x1x32xf32> to vector<8x8x32xf32>
    %399 = arith.divf %395, %398 : vector<8x8x32xf32>
    %400 = arith.mulf %399, %1 : vector<8x8x32xf32>
    %cst_128 = arith.constant dense<0.000000e+00> : vector<8x32xf32>
    %401 = vector.multi_reduction <add>, %400, %cst_128 [1] : vector<8x8x32xf32> to vector<8x32xf32>
    %cst_129 = arith.constant dense<0.000000e+00> : vector<8x32xf32>
    %402 = tpu.matmul %401, %7, %cst_129 {dimension_numbers = #tpu.dot_dimension_numbers<[1], [0], [0], [1], [0, 0, 1, 1], [], []>} : vector<8x32xf32>, vector<32x32xf32>, vector<8x32xf32> -> vector<8x32xf32>
    %403 = vector.broadcast %8 : vector<1x32xf32> to vector<8x32xf32>
    %404 = arith.addf %402, %403 : vector<8x32xf32>
    %cst_130 = arith.constant dense<0.000000e+00> : vector<8x128xf32>
    %405 = tpu.matmul %377, %9, %cst_130 {dimension_numbers = #tpu.dot_dimension_numbers<[1], [0], [0], [1], [0, 0, 1, 1], [], []>} : vector<8x16xf32>, vector<16x128xf32>, vector<8x128xf32> -> vector<8x128xf32>
    %cst_131 = arith.constant dense<0.000000e+00> : vector<8x128xf32>
    %406 = tpu.matmul %404, %10, %cst_131 {dimension_numbers = #tpu.dot_dimension_numbers<[1], [0], [0], [1], [0, 0, 1, 1], [], []>} : vector<8x32xf32>, vector<32x128xf32>, vector<8x128xf32> -> vector<8x128xf32>
    %407 = arith.addf %405, %406 : vector<8x128xf32>
    %cst_132 = arith.constant dense<0.000000e+00> : vector<8x128xf32>
    %408 = tpu.matmul %339, %11, %cst_132 {dimension_numbers = #tpu.dot_dimension_numbers<[1], [0], [0], [1], [0, 0, 1, 1], [], []>} : vector<8x32xf32>, vector<32x128xf32>, vector<8x128xf32> -> vector<8x128xf32>
    %409 = arith.addf %407, %408 : vector<8x128xf32>
    %410 = vector.broadcast %12 : vector<1x128xf32> to vector<8x128xf32>
    %411 = arith.addf %409, %410 : vector<8x128xf32>
    %412 = arith.negf %411 : vector<8x128xf32>
    %413 = math.exp %412 : vector<8x128xf32>
    %cst_133 = arith.constant 1.000000e+00 : f32
    %414 = vector.broadcast %cst_133 : f32 to vector<8x128xf32>
    %415 = arith.addf %414, %413 : vector<8x128xf32>
    %416 = arith.divf %414, %415 : vector<8x128xf32>
    %417 = vector.extract_strided_slice %411 {offsets = [0, 64], sizes = [8, 32], strides = [1, 1]} : vector<8x128xf32> to vector<8x32xf32>
    %418 = math.tanh %417 : vector<8x32xf32>
    %419 = vector.extract_strided_slice %416 {offsets = [0, 32], sizes = [8, 32], strides = [1, 1]} : vector<8x128xf32> to vector<8x32xf32>
    %420 = arith.mulf %419, %336 : vector<8x32xf32>
    %421 = vector.extract_strided_slice %416 {offsets = [0, 0], sizes = [8, 32], strides = [1, 1]} : vector<8x128xf32> to vector<8x32xf32>
    %422 = arith.mulf %421, %418 : vector<8x32xf32>
    %423 = arith.addf %420, %422 : vector<8x32xf32>
    %424 = vector.extract_strided_slice %416 {offsets = [0, 96], sizes = [8, 32], strides = [1, 1]} : vector<8x128xf32> to vector<8x32xf32>
    %425 = math.tanh %423 : vector<8x32xf32>
    %426 = arith.mulf %424, %425 : vector<8x32xf32>
    %cst_134 = arith.constant dense<0.000000e+00> : vector<8x128xf32>
    %427 = tpu.matmul %426, %13, %cst_134 {dimension_numbers = #tpu.dot_dimension_numbers<[1], [0], [0], [1], [0, 0, 1, 1], [], []>} : vector<8x32xf32>, vector<32x128xf32>, vector<8x128xf32> -> vector<8x128xf32>
    %cst_135 = arith.constant dense<0.000000e+00> : vector<8x128xf32>
    %428 = tpu.matmul %359, %14, %cst_135 {dimension_numbers = #tpu.dot_dimension_numbers<[1], [0], [0], [1], [0, 0, 1, 1], [], []>} : vector<8x32xf32>, vector<32x128xf32>, vector<8x128xf32> -> vector<8x128xf32>
    %429 = arith.addf %427, %428 : vector<8x128xf32>
    %430 = vector.broadcast %15 : vector<1x128xf32> to vector<8x128xf32>
    %431 = arith.addf %429, %430 : vector<8x128xf32>
    %432 = arith.negf %431 : vector<8x128xf32>
    %433 = math.exp %432 : vector<8x128xf32>
    %cst_136 = arith.constant 1.000000e+00 : f32
    %434 = vector.broadcast %cst_136 : f32 to vector<8x128xf32>
    %435 = arith.addf %434, %433 : vector<8x128xf32>
    %436 = arith.divf %434, %435 : vector<8x128xf32>
    %437 = vector.extract_strided_slice %431 {offsets = [0, 64], sizes = [8, 32], strides = [1, 1]} : vector<8x128xf32> to vector<8x32xf32>
    %438 = math.tanh %437 : vector<8x32xf32>
    %439 = vector.extract_strided_slice %436 {offsets = [0, 32], sizes = [8, 32], strides = [1, 1]} : vector<8x128xf32> to vector<8x32xf32>
    %440 = arith.mulf %439, %356 : vector<8x32xf32>
    %441 = vector.extract_strided_slice %436 {offsets = [0, 0], sizes = [8, 32], strides = [1, 1]} : vector<8x128xf32> to vector<8x32xf32>
    %442 = arith.mulf %441, %438 : vector<8x32xf32>
    %443 = arith.addf %440, %442 : vector<8x32xf32>
    %444 = vector.extract_strided_slice %436 {offsets = [0, 96], sizes = [8, 32], strides = [1, 1]} : vector<8x128xf32> to vector<8x32xf32>
    %445 = math.tanh %443 : vector<8x32xf32>
    %446 = arith.mulf %444, %445 : vector<8x32xf32>
    %cst_137 = arith.constant dense<0.000000e+00> : vector<8x32xf32>
    %447 = tpu.matmul %446, %16, %cst_137 {dimension_numbers = #tpu.dot_dimension_numbers<[1], [0], [0], [1], [0, 0, 1, 1], [], []>} : vector<8x32xf32>, vector<32x32xf32>, vector<8x32xf32> -> vector<8x32xf32>
    %cst_138 = arith.constant dense<0.000000e+00> : vector<8x32xf32>
    %448 = tpu.matmul %404, %17, %cst_138 {dimension_numbers = #tpu.dot_dimension_numbers<[1], [0], [0], [1], [0, 0, 1, 1], [], []>} : vector<8x32xf32>, vector<32x32xf32>, vector<8x32xf32> -> vector<8x32xf32>
    %449 = arith.addf %447, %448 : vector<8x32xf32>
    %450 = vector.broadcast %18 : vector<1x32xf32> to vector<8x32xf32>
    %451 = arith.addf %449, %450 : vector<8x32xf32>
    %cst_139 = arith.constant dense<0xFF800000> : vector<8xf32>
    %452 = vector.multi_reduction <maximumf>, %451, %cst_139 [1] : vector<8x32xf32> to vector<8xf32>
    %453 = vector.shape_cast %452 : vector<8xf32> to vector<8x1xf32>
    %454 = vector.broadcast %453 : vector<8x1xf32> to vector<8x32xf32>
    %455 = arith.cmpf oge, %451, %454 : vector<8x32xf32>
    %c32_i32_140 = arith.constant 32 : i32
    %456 = vector.broadcast %c32_i32_140 : i32 to vector<8x32xi32>
    %457 = arith.select %455, %19, %456 : vector<8x32xi1>, vector<8x32xi32>
    %cst_141 = arith.constant dense<2147483647> : vector<8xi32>
    %458 = vector.multi_reduction <minsi>, %457, %cst_141 [1] : vector<8x32xi32> to vector<8xi32>
    %459 = vector.shape_cast %458 : vector<8xi32> to vector<8x1xi32>
    %460 = vector.broadcast %459 : vector<8x1xi32> to vector<8x32xi32>
    %461 = arith.cmpi eq, %19, %460 : vector<8x32xi32>
    %462 = arith.extui %461 : vector<8x32xi1> to vector<8x32xi32>
    %463 = arith.sitofp %462 : vector<8x32xi32> to vector<8x32xf32>
    %cst_142 = arith.constant dense<0.000000e+00> : vector<8x16xf32>
    %464 = tpu.matmul %463, %3, %cst_142 {dimension_numbers = #tpu.dot_dimension_numbers<[1], [0], [0], [1], [0, 0, 1, 1], [], []>} : vector<8x32xf32>, vector<32x16xf32>, vector<8x16xf32> -> vector<8x16xf32>
    %cst_143 = arith.constant dense<0.000000e+00> : vector<8x32xf32>
    %465 = tpu.matmul %446, %4, %cst_143 {dimension_numbers = #tpu.dot_dimension_numbers<[1], [0], [0], [1], [0, 0, 1, 1], [], []>} : vector<8x32xf32>, vector<32x32xf32>, vector<8x32xf32> -> vector<8x32xf32>
    %466 = vector.broadcast %5 : vector<1x32xf32> to vector<8x32xf32>
    %467 = arith.addf %465, %466 : vector<8x32xf32>
    %cst_144 = arith.constant 0.353553385 : f32
    %468 = vector.broadcast %cst_144 : f32 to vector<8x32xf32>
    %469 = arith.mulf %467, %468 : vector<8x32xf32>
    %470 = vector.shape_cast %469 : vector<8x32xf32> to vector<8x1x32xf32>
    %471 = vector.broadcast %470 : vector<8x1x32xf32> to vector<8x8x32xf32>
    %472 = arith.mulf %471, %0 : vector<8x8x32xf32>
    %473 = vector.shape_cast %472 : vector<8x8x32xf32> to vector<64x32xf32>
    %cst_145 = arith.constant dense<0.000000e+00> : vector<64x32xf32>
    %474 = tpu.matmul %473, %6, %cst_145 {dimension_numbers = #tpu.dot_dimension_numbers<[1], [0], [0], [1], [0, 0, 1, 1], [], []>} : vector<64x32xf32>, vector<32x32xf32>, vector<64x32xf32> -> vector<64x32xf32>
    %475 = vector.shape_cast %474 : vector<64x32xf32> to vector<8x8x32xf32>
    %476 = vector.broadcast %2 : vector<8x8x1xf32> to vector<8x8x32xf32>
    %477 = arith.addf %475, %476 : vector<8x8x32xf32>
    %cst_146 = arith.constant dense<0xFF800000> : vector<8x32xf32>
    %478 = vector.multi_reduction <maximumf>, %477, %cst_146 [1] : vector<8x8x32xf32> to vector<8x32xf32>
    %479 = vector.shape_cast %478 : vector<8x32xf32> to vector<8x1x32xf32>
    %480 = vector.broadcast %479 : vector<8x1x32xf32> to vector<8x8x32xf32>
    %481 = arith.subf %477, %480 : vector<8x8x32xf32>
    %482 = math.exp %481 : vector<8x8x32xf32>
    %cst_147 = arith.constant dense<0.000000e+00> : vector<8x32xf32>
    %483 = vector.multi_reduction <add>, %482, %cst_147 [1] : vector<8x8x32xf32> to vector<8x32xf32>
    %484 = vector.shape_cast %483 : vector<8x32xf32> to vector<8x1x32xf32>
    %485 = vector.broadcast %484 : vector<8x1x32xf32> to vector<8x8x32xf32>
    %486 = arith.divf %482, %485 : vector<8x8x32xf32>
    %487 = arith.mulf %486, %1 : vector<8x8x32xf32>
    %cst_148 = arith.constant dense<0.000000e+00> : vector<8x32xf32>
    %488 = vector.multi_reduction <add>, %487, %cst_148 [1] : vector<8x8x32xf32> to vector<8x32xf32>
    %cst_149 = arith.constant dense<0.000000e+00> : vector<8x32xf32>
    %489 = tpu.matmul %488, %7, %cst_149 {dimension_numbers = #tpu.dot_dimension_numbers<[1], [0], [0], [1], [0, 0, 1, 1], [], []>} : vector<8x32xf32>, vector<32x32xf32>, vector<8x32xf32> -> vector<8x32xf32>
    %490 = vector.broadcast %8 : vector<1x32xf32> to vector<8x32xf32>
    %491 = arith.addf %489, %490 : vector<8x32xf32>
    %cst_150 = arith.constant dense<0.000000e+00> : vector<8x128xf32>
    %492 = tpu.matmul %464, %9, %cst_150 {dimension_numbers = #tpu.dot_dimension_numbers<[1], [0], [0], [1], [0, 0, 1, 1], [], []>} : vector<8x16xf32>, vector<16x128xf32>, vector<8x128xf32> -> vector<8x128xf32>
    %cst_151 = arith.constant dense<0.000000e+00> : vector<8x128xf32>
    %493 = tpu.matmul %491, %10, %cst_151 {dimension_numbers = #tpu.dot_dimension_numbers<[1], [0], [0], [1], [0, 0, 1, 1], [], []>} : vector<8x32xf32>, vector<32x128xf32>, vector<8x128xf32> -> vector<8x128xf32>
    %494 = arith.addf %492, %493 : vector<8x128xf32>
    %cst_152 = arith.constant dense<0.000000e+00> : vector<8x128xf32>
    %495 = tpu.matmul %426, %11, %cst_152 {dimension_numbers = #tpu.dot_dimension_numbers<[1], [0], [0], [1], [0, 0, 1, 1], [], []>} : vector<8x32xf32>, vector<32x128xf32>, vector<8x128xf32> -> vector<8x128xf32>
    %496 = arith.addf %494, %495 : vector<8x128xf32>
    %497 = vector.broadcast %12 : vector<1x128xf32> to vector<8x128xf32>
    %498 = arith.addf %496, %497 : vector<8x128xf32>
    %499 = arith.negf %498 : vector<8x128xf32>
    %500 = math.exp %499 : vector<8x128xf32>
    %cst_153 = arith.constant 1.000000e+00 : f32
    %501 = vector.broadcast %cst_153 : f32 to vector<8x128xf32>
    %502 = arith.addf %501, %500 : vector<8x128xf32>
    %503 = arith.divf %501, %502 : vector<8x128xf32>
    %504 = vector.extract_strided_slice %498 {offsets = [0, 64], sizes = [8, 32], strides = [1, 1]} : vector<8x128xf32> to vector<8x32xf32>
    %505 = math.tanh %504 : vector<8x32xf32>
    %506 = vector.extract_strided_slice %503 {offsets = [0, 32], sizes = [8, 32], strides = [1, 1]} : vector<8x128xf32> to vector<8x32xf32>
    %507 = arith.mulf %506, %423 : vector<8x32xf32>
    %508 = vector.extract_strided_slice %503 {offsets = [0, 0], sizes = [8, 32], strides = [1, 1]} : vector<8x128xf32> to vector<8x32xf32>
    %509 = arith.mulf %508, %505 : vector<8x32xf32>
    %510 = arith.addf %507, %509 : vector<8x32xf32>
    %511 = vector.extract_strided_slice %503 {offsets = [0, 96], sizes = [8, 32], strides = [1, 1]} : vector<8x128xf32> to vector<8x32xf32>
    %512 = math.tanh %510 : vector<8x32xf32>
    %513 = arith.mulf %511, %512 : vector<8x32xf32>
    %cst_154 = arith.constant dense<0.000000e+00> : vector<8x128xf32>
    %514 = tpu.matmul %513, %13, %cst_154 {dimension_numbers = #tpu.dot_dimension_numbers<[1], [0], [0], [1], [0, 0, 1, 1], [], []>} : vector<8x32xf32>, vector<32x128xf32>, vector<8x128xf32> -> vector<8x128xf32>
    %cst_155 = arith.constant dense<0.000000e+00> : vector<8x128xf32>
    %515 = tpu.matmul %446, %14, %cst_155 {dimension_numbers = #tpu.dot_dimension_numbers<[1], [0], [0], [1], [0, 0, 1, 1], [], []>} : vector<8x32xf32>, vector<32x128xf32>, vector<8x128xf32> -> vector<8x128xf32>
    %516 = arith.addf %514, %515 : vector<8x128xf32>
    %517 = vector.broadcast %15 : vector<1x128xf32> to vector<8x128xf32>
    %518 = arith.addf %516, %517 : vector<8x128xf32>
    %519 = arith.negf %518 : vector<8x128xf32>
    %520 = math.exp %519 : vector<8x128xf32>
    %cst_156 = arith.constant 1.000000e+00 : f32
    %521 = vector.broadcast %cst_156 : f32 to vector<8x128xf32>
    %522 = arith.addf %521, %520 : vector<8x128xf32>
    %523 = arith.divf %521, %522 : vector<8x128xf32>
    %524 = vector.extract_strided_slice %518 {offsets = [0, 64], sizes = [8, 32], strides = [1, 1]} : vector<8x128xf32> to vector<8x32xf32>
    %525 = math.tanh %524 : vector<8x32xf32>
    %526 = vector.extract_strided_slice %523 {offsets = [0, 32], sizes = [8, 32], strides = [1, 1]} : vector<8x128xf32> to vector<8x32xf32>
    %527 = arith.mulf %526, %443 : vector<8x32xf32>
    %528 = vector.extract_strided_slice %523 {offsets = [0, 0], sizes = [8, 32], strides = [1, 1]} : vector<8x128xf32> to vector<8x32xf32>
    %529 = arith.mulf %528, %525 : vector<8x32xf32>
    %530 = arith.addf %527, %529 : vector<8x32xf32>
    %531 = vector.extract_strided_slice %523 {offsets = [0, 96], sizes = [8, 32], strides = [1, 1]} : vector<8x128xf32> to vector<8x32xf32>
    %532 = math.tanh %530 : vector<8x32xf32>
    %533 = arith.mulf %531, %532 : vector<8x32xf32>
    %cst_157 = arith.constant dense<0.000000e+00> : vector<8x32xf32>
    %534 = tpu.matmul %533, %16, %cst_157 {dimension_numbers = #tpu.dot_dimension_numbers<[1], [0], [0], [1], [0, 0, 1, 1], [], []>} : vector<8x32xf32>, vector<32x32xf32>, vector<8x32xf32> -> vector<8x32xf32>
    %cst_158 = arith.constant dense<0.000000e+00> : vector<8x32xf32>
    %535 = tpu.matmul %491, %17, %cst_158 {dimension_numbers = #tpu.dot_dimension_numbers<[1], [0], [0], [1], [0, 0, 1, 1], [], []>} : vector<8x32xf32>, vector<32x32xf32>, vector<8x32xf32> -> vector<8x32xf32>
    %536 = arith.addf %534, %535 : vector<8x32xf32>
    %537 = vector.broadcast %18 : vector<1x32xf32> to vector<8x32xf32>
    %538 = arith.addf %536, %537 : vector<8x32xf32>
    %cst_159 = arith.constant dense<0xFF800000> : vector<8xf32>
    %539 = vector.multi_reduction <maximumf>, %538, %cst_159 [1] : vector<8x32xf32> to vector<8xf32>
    %540 = vector.shape_cast %539 : vector<8xf32> to vector<8x1xf32>
    %541 = vector.broadcast %540 : vector<8x1xf32> to vector<8x32xf32>
    %542 = arith.cmpf oge, %538, %541 : vector<8x32xf32>
    %c32_i32_160 = arith.constant 32 : i32
    %543 = vector.broadcast %c32_i32_160 : i32 to vector<8x32xi32>
    %544 = arith.select %542, %19, %543 : vector<8x32xi1>, vector<8x32xi32>
    %cst_161 = arith.constant dense<2147483647> : vector<8xi32>
    %545 = vector.multi_reduction <minsi>, %544, %cst_161 [1] : vector<8x32xi32> to vector<8xi32>
    %546 = vector.shape_cast %545 : vector<8xi32> to vector<8x1xi32>
    %547 = vector.broadcast %546 : vector<8x1xi32> to vector<8x32xi32>
    %548 = arith.cmpi eq, %19, %547 : vector<8x32xi32>
    %549 = arith.extui %548 : vector<8x32xi1> to vector<8x32xi32>
    %550 = arith.sitofp %549 : vector<8x32xi32> to vector<8x32xf32>
    %cst_162 = arith.constant dense<0.000000e+00> : vector<8x16xf32>
    %551 = tpu.matmul %550, %3, %cst_162 {dimension_numbers = #tpu.dot_dimension_numbers<[1], [0], [0], [1], [0, 0, 1, 1], [], []>} : vector<8x32xf32>, vector<32x16xf32>, vector<8x16xf32> -> vector<8x16xf32>
    %cst_163 = arith.constant dense<0.000000e+00> : vector<8x32xf32>
    %552 = tpu.matmul %533, %4, %cst_163 {dimension_numbers = #tpu.dot_dimension_numbers<[1], [0], [0], [1], [0, 0, 1, 1], [], []>} : vector<8x32xf32>, vector<32x32xf32>, vector<8x32xf32> -> vector<8x32xf32>
    %553 = vector.broadcast %5 : vector<1x32xf32> to vector<8x32xf32>
    %554 = arith.addf %552, %553 : vector<8x32xf32>
    %cst_164 = arith.constant 0.353553385 : f32
    %555 = vector.broadcast %cst_164 : f32 to vector<8x32xf32>
    %556 = arith.mulf %554, %555 : vector<8x32xf32>
    %557 = vector.shape_cast %556 : vector<8x32xf32> to vector<8x1x32xf32>
    %558 = vector.broadcast %557 : vector<8x1x32xf32> to vector<8x8x32xf32>
    %559 = arith.mulf %558, %0 : vector<8x8x32xf32>
    %560 = vector.shape_cast %559 : vector<8x8x32xf32> to vector<64x32xf32>
    %cst_165 = arith.constant dense<0.000000e+00> : vector<64x32xf32>
    %561 = tpu.matmul %560, %6, %cst_165 {dimension_numbers = #tpu.dot_dimension_numbers<[1], [0], [0], [1], [0, 0, 1, 1], [], []>} : vector<64x32xf32>, vector<32x32xf32>, vector<64x32xf32> -> vector<64x32xf32>
    %562 = vector.shape_cast %561 : vector<64x32xf32> to vector<8x8x32xf32>
    %563 = vector.broadcast %2 : vector<8x8x1xf32> to vector<8x8x32xf32>
    %564 = arith.addf %562, %563 : vector<8x8x32xf32>
    %cst_166 = arith.constant dense<0xFF800000> : vector<8x32xf32>
    %565 = vector.multi_reduction <maximumf>, %564, %cst_166 [1] : vector<8x8x32xf32> to vector<8x32xf32>
    %566 = vector.shape_cast %565 : vector<8x32xf32> to vector<8x1x32xf32>
    %567 = vector.broadcast %566 : vector<8x1x32xf32> to vector<8x8x32xf32>
    %568 = arith.subf %564, %567 : vector<8x8x32xf32>
    %569 = math.exp %568 : vector<8x8x32xf32>
    %cst_167 = arith.constant dense<0.000000e+00> : vector<8x32xf32>
    %570 = vector.multi_reduction <add>, %569, %cst_167 [1] : vector<8x8x32xf32> to vector<8x32xf32>
    %571 = vector.shape_cast %570 : vector<8x32xf32> to vector<8x1x32xf32>
    %572 = vector.broadcast %571 : vector<8x1x32xf32> to vector<8x8x32xf32>
    %573 = arith.divf %569, %572 : vector<8x8x32xf32>
    %574 = arith.mulf %573, %1 : vector<8x8x32xf32>
    %cst_168 = arith.constant dense<0.000000e+00> : vector<8x32xf32>
    %575 = vector.multi_reduction <add>, %574, %cst_168 [1] : vector<8x8x32xf32> to vector<8x32xf32>
    %cst_169 = arith.constant dense<0.000000e+00> : vector<8x32xf32>
    %576 = tpu.matmul %575, %7, %cst_169 {dimension_numbers = #tpu.dot_dimension_numbers<[1], [0], [0], [1], [0, 0, 1, 1], [], []>} : vector<8x32xf32>, vector<32x32xf32>, vector<8x32xf32> -> vector<8x32xf32>
    %577 = vector.broadcast %8 : vector<1x32xf32> to vector<8x32xf32>
    %578 = arith.addf %576, %577 : vector<8x32xf32>
    %cst_170 = arith.constant dense<0.000000e+00> : vector<8x128xf32>
    %579 = tpu.matmul %551, %9, %cst_170 {dimension_numbers = #tpu.dot_dimension_numbers<[1], [0], [0], [1], [0, 0, 1, 1], [], []>} : vector<8x16xf32>, vector<16x128xf32>, vector<8x128xf32> -> vector<8x128xf32>
    %cst_171 = arith.constant dense<0.000000e+00> : vector<8x128xf32>
    %580 = tpu.matmul %578, %10, %cst_171 {dimension_numbers = #tpu.dot_dimension_numbers<[1], [0], [0], [1], [0, 0, 1, 1], [], []>} : vector<8x32xf32>, vector<32x128xf32>, vector<8x128xf32> -> vector<8x128xf32>
    %581 = arith.addf %579, %580 : vector<8x128xf32>
    %cst_172 = arith.constant dense<0.000000e+00> : vector<8x128xf32>
    %582 = tpu.matmul %513, %11, %cst_172 {dimension_numbers = #tpu.dot_dimension_numbers<[1], [0], [0], [1], [0, 0, 1, 1], [], []>} : vector<8x32xf32>, vector<32x128xf32>, vector<8x128xf32> -> vector<8x128xf32>
    %583 = arith.addf %581, %582 : vector<8x128xf32>
    %584 = vector.broadcast %12 : vector<1x128xf32> to vector<8x128xf32>
    %585 = arith.addf %583, %584 : vector<8x128xf32>
    %586 = arith.negf %585 : vector<8x128xf32>
    %587 = math.exp %586 : vector<8x128xf32>
    %cst_173 = arith.constant 1.000000e+00 : f32
    %588 = vector.broadcast %cst_173 : f32 to vector<8x128xf32>
    %589 = arith.addf %588, %587 : vector<8x128xf32>
    %590 = arith.divf %588, %589 : vector<8x128xf32>
    %591 = vector.extract_strided_slice %585 {offsets = [0, 64], sizes = [8, 32], strides = [1, 1]} : vector<8x128xf32> to vector<8x32xf32>
    %592 = math.tanh %591 : vector<8x32xf32>
    %593 = vector.extract_strided_slice %590 {offsets = [0, 32], sizes = [8, 32], strides = [1, 1]} : vector<8x128xf32> to vector<8x32xf32>
    %594 = arith.mulf %593, %510 : vector<8x32xf32>
    %595 = vector.extract_strided_slice %590 {offsets = [0, 0], sizes = [8, 32], strides = [1, 1]} : vector<8x128xf32> to vector<8x32xf32>
    %596 = arith.mulf %595, %592 : vector<8x32xf32>
    %597 = arith.addf %594, %596 : vector<8x32xf32>
    %598 = vector.extract_strided_slice %590 {offsets = [0, 96], sizes = [8, 32], strides = [1, 1]} : vector<8x128xf32> to vector<8x32xf32>
    %599 = math.tanh %597 : vector<8x32xf32>
    %600 = arith.mulf %598, %599 : vector<8x32xf32>
    %cst_174 = arith.constant dense<0.000000e+00> : vector<8x128xf32>
    %601 = tpu.matmul %600, %13, %cst_174 {dimension_numbers = #tpu.dot_dimension_numbers<[1], [0], [0], [1], [0, 0, 1, 1], [], []>} : vector<8x32xf32>, vector<32x128xf32>, vector<8x128xf32> -> vector<8x128xf32>
    %cst_175 = arith.constant dense<0.000000e+00> : vector<8x128xf32>
    %602 = tpu.matmul %533, %14, %cst_175 {dimension_numbers = #tpu.dot_dimension_numbers<[1], [0], [0], [1], [0, 0, 1, 1], [], []>} : vector<8x32xf32>, vector<32x128xf32>, vector<8x128xf32> -> vector<8x128xf32>
    %603 = arith.addf %601, %602 : vector<8x128xf32>
    %604 = vector.broadcast %15 : vector<1x128xf32> to vector<8x128xf32>
    %605 = arith.addf %603, %604 : vector<8x128xf32>
    %606 = arith.negf %605 : vector<8x128xf32>
    %607 = math.exp %606 : vector<8x128xf32>
    %cst_176 = arith.constant 1.000000e+00 : f32
    %608 = vector.broadcast %cst_176 : f32 to vector<8x128xf32>
    %609 = arith.addf %608, %607 : vector<8x128xf32>
    %610 = arith.divf %608, %609 : vector<8x128xf32>
    %611 = vector.extract_strided_slice %605 {offsets = [0, 64], sizes = [8, 32], strides = [1, 1]} : vector<8x128xf32> to vector<8x32xf32>
    %612 = math.tanh %611 : vector<8x32xf32>
    %613 = vector.extract_strided_slice %610 {offsets = [0, 32], sizes = [8, 32], strides = [1, 1]} : vector<8x128xf32> to vector<8x32xf32>
    %614 = arith.mulf %613, %530 : vector<8x32xf32>
    %615 = vector.extract_strided_slice %610 {offsets = [0, 0], sizes = [8, 32], strides = [1, 1]} : vector<8x128xf32> to vector<8x32xf32>
    %616 = arith.mulf %615, %612 : vector<8x32xf32>
    %617 = arith.addf %614, %616 : vector<8x32xf32>
    %618 = vector.extract_strided_slice %610 {offsets = [0, 96], sizes = [8, 32], strides = [1, 1]} : vector<8x128xf32> to vector<8x32xf32>
    %619 = math.tanh %617 : vector<8x32xf32>
    %620 = arith.mulf %618, %619 : vector<8x32xf32>
    %cst_177 = arith.constant dense<0.000000e+00> : vector<8x32xf32>
    %621 = tpu.matmul %620, %16, %cst_177 {dimension_numbers = #tpu.dot_dimension_numbers<[1], [0], [0], [1], [0, 0, 1, 1], [], []>} : vector<8x32xf32>, vector<32x32xf32>, vector<8x32xf32> -> vector<8x32xf32>
    %cst_178 = arith.constant dense<0.000000e+00> : vector<8x32xf32>
    %622 = tpu.matmul %578, %17, %cst_178 {dimension_numbers = #tpu.dot_dimension_numbers<[1], [0], [0], [1], [0, 0, 1, 1], [], []>} : vector<8x32xf32>, vector<32x32xf32>, vector<8x32xf32> -> vector<8x32xf32>
    %623 = arith.addf %621, %622 : vector<8x32xf32>
    %624 = vector.broadcast %18 : vector<1x32xf32> to vector<8x32xf32>
    %625 = arith.addf %623, %624 : vector<8x32xf32>
    %cst_179 = arith.constant dense<0xFF800000> : vector<8xf32>
    %626 = vector.multi_reduction <maximumf>, %625, %cst_179 [1] : vector<8x32xf32> to vector<8xf32>
    %627 = vector.shape_cast %626 : vector<8xf32> to vector<8x1xf32>
    %628 = vector.broadcast %627 : vector<8x1xf32> to vector<8x32xf32>
    %629 = arith.cmpf oge, %625, %628 : vector<8x32xf32>
    %c32_i32_180 = arith.constant 32 : i32
    %630 = vector.broadcast %c32_i32_180 : i32 to vector<8x32xi32>
    %631 = arith.select %629, %19, %630 : vector<8x32xi1>, vector<8x32xi32>
    %cst_181 = arith.constant dense<2147483647> : vector<8xi32>
    %632 = vector.multi_reduction <minsi>, %631, %cst_181 [1] : vector<8x32xi32> to vector<8xi32>
    %633 = vector.shape_cast %632 : vector<8xi32> to vector<8x1xi32>
    %634 = vector.broadcast %633 : vector<8x1xi32> to vector<8x32xi32>
    %635 = arith.cmpi eq, %19, %634 : vector<8x32xi32>
    %636 = arith.extui %635 : vector<8x32xi1> to vector<8x32xi32>
    %637 = arith.sitofp %636 : vector<8x32xi32> to vector<8x32xf32>
    %cst_182 = arith.constant dense<0.000000e+00> : vector<8x16xf32>
    %638 = tpu.matmul %637, %3, %cst_182 {dimension_numbers = #tpu.dot_dimension_numbers<[1], [0], [0], [1], [0, 0, 1, 1], [], []>} : vector<8x32xf32>, vector<32x16xf32>, vector<8x16xf32> -> vector<8x16xf32>
    %cst_183 = arith.constant dense<0.000000e+00> : vector<8x32xf32>
    %639 = tpu.matmul %620, %4, %cst_183 {dimension_numbers = #tpu.dot_dimension_numbers<[1], [0], [0], [1], [0, 0, 1, 1], [], []>} : vector<8x32xf32>, vector<32x32xf32>, vector<8x32xf32> -> vector<8x32xf32>
    %640 = vector.broadcast %5 : vector<1x32xf32> to vector<8x32xf32>
    %641 = arith.addf %639, %640 : vector<8x32xf32>
    %cst_184 = arith.constant 0.353553385 : f32
    %642 = vector.broadcast %cst_184 : f32 to vector<8x32xf32>
    %643 = arith.mulf %641, %642 : vector<8x32xf32>
    %644 = vector.shape_cast %643 : vector<8x32xf32> to vector<8x1x32xf32>
    %645 = vector.broadcast %644 : vector<8x1x32xf32> to vector<8x8x32xf32>
    %646 = arith.mulf %645, %0 : vector<8x8x32xf32>
    %647 = vector.shape_cast %646 : vector<8x8x32xf32> to vector<64x32xf32>
    %cst_185 = arith.constant dense<0.000000e+00> : vector<64x32xf32>
    %648 = tpu.matmul %647, %6, %cst_185 {dimension_numbers = #tpu.dot_dimension_numbers<[1], [0], [0], [1], [0, 0, 1, 1], [], []>} : vector<64x32xf32>, vector<32x32xf32>, vector<64x32xf32> -> vector<64x32xf32>
    %649 = vector.shape_cast %648 : vector<64x32xf32> to vector<8x8x32xf32>
    %650 = vector.broadcast %2 : vector<8x8x1xf32> to vector<8x8x32xf32>
    %651 = arith.addf %649, %650 : vector<8x8x32xf32>
    %cst_186 = arith.constant dense<0xFF800000> : vector<8x32xf32>
    %652 = vector.multi_reduction <maximumf>, %651, %cst_186 [1] : vector<8x8x32xf32> to vector<8x32xf32>
    %653 = vector.shape_cast %652 : vector<8x32xf32> to vector<8x1x32xf32>
    %654 = vector.broadcast %653 : vector<8x1x32xf32> to vector<8x8x32xf32>
    %655 = arith.subf %651, %654 : vector<8x8x32xf32>
    %656 = math.exp %655 : vector<8x8x32xf32>
    %cst_187 = arith.constant dense<0.000000e+00> : vector<8x32xf32>
    %657 = vector.multi_reduction <add>, %656, %cst_187 [1] : vector<8x8x32xf32> to vector<8x32xf32>
    %658 = vector.shape_cast %657 : vector<8x32xf32> to vector<8x1x32xf32>
    %659 = vector.broadcast %658 : vector<8x1x32xf32> to vector<8x8x32xf32>
    %660 = arith.divf %656, %659 : vector<8x8x32xf32>
    %661 = arith.mulf %660, %1 : vector<8x8x32xf32>
    %cst_188 = arith.constant dense<0.000000e+00> : vector<8x32xf32>
    %662 = vector.multi_reduction <add>, %661, %cst_188 [1] : vector<8x8x32xf32> to vector<8x32xf32>
    %cst_189 = arith.constant dense<0.000000e+00> : vector<8x32xf32>
    %663 = tpu.matmul %662, %7, %cst_189 {dimension_numbers = #tpu.dot_dimension_numbers<[1], [0], [0], [1], [0, 0, 1, 1], [], []>} : vector<8x32xf32>, vector<32x32xf32>, vector<8x32xf32> -> vector<8x32xf32>
    %664 = vector.broadcast %8 : vector<1x32xf32> to vector<8x32xf32>
    %665 = arith.addf %663, %664 : vector<8x32xf32>
    %cst_190 = arith.constant dense<0.000000e+00> : vector<8x128xf32>
    %666 = tpu.matmul %638, %9, %cst_190 {dimension_numbers = #tpu.dot_dimension_numbers<[1], [0], [0], [1], [0, 0, 1, 1], [], []>} : vector<8x16xf32>, vector<16x128xf32>, vector<8x128xf32> -> vector<8x128xf32>
    %cst_191 = arith.constant dense<0.000000e+00> : vector<8x128xf32>
    %667 = tpu.matmul %665, %10, %cst_191 {dimension_numbers = #tpu.dot_dimension_numbers<[1], [0], [0], [1], [0, 0, 1, 1], [], []>} : vector<8x32xf32>, vector<32x128xf32>, vector<8x128xf32> -> vector<8x128xf32>
    %668 = arith.addf %666, %667 : vector<8x128xf32>
    %cst_192 = arith.constant dense<0.000000e+00> : vector<8x128xf32>
    %669 = tpu.matmul %600, %11, %cst_192 {dimension_numbers = #tpu.dot_dimension_numbers<[1], [0], [0], [1], [0, 0, 1, 1], [], []>} : vector<8x32xf32>, vector<32x128xf32>, vector<8x128xf32> -> vector<8x128xf32>
    %670 = arith.addf %668, %669 : vector<8x128xf32>
    %671 = vector.broadcast %12 : vector<1x128xf32> to vector<8x128xf32>
    %672 = arith.addf %670, %671 : vector<8x128xf32>
    %673 = arith.negf %672 : vector<8x128xf32>
    %674 = math.exp %673 : vector<8x128xf32>
    %cst_193 = arith.constant 1.000000e+00 : f32
    %675 = vector.broadcast %cst_193 : f32 to vector<8x128xf32>
    %676 = arith.addf %675, %674 : vector<8x128xf32>
    %677 = arith.divf %675, %676 : vector<8x128xf32>
    %678 = vector.extract_strided_slice %672 {offsets = [0, 64], sizes = [8, 32], strides = [1, 1]} : vector<8x128xf32> to vector<8x32xf32>
    %679 = math.tanh %678 : vector<8x32xf32>
    %680 = vector.extract_strided_slice %677 {offsets = [0, 32], sizes = [8, 32], strides = [1, 1]} : vector<8x128xf32> to vector<8x32xf32>
    %681 = arith.mulf %680, %597 : vector<8x32xf32>
    %682 = vector.extract_strided_slice %677 {offsets = [0, 0], sizes = [8, 32], strides = [1, 1]} : vector<8x128xf32> to vector<8x32xf32>
    %683 = arith.mulf %682, %679 : vector<8x32xf32>
    %684 = arith.addf %681, %683 : vector<8x32xf32>
    %685 = vector.extract_strided_slice %677 {offsets = [0, 96], sizes = [8, 32], strides = [1, 1]} : vector<8x128xf32> to vector<8x32xf32>
    %686 = math.tanh %684 : vector<8x32xf32>
    %687 = arith.mulf %685, %686 : vector<8x32xf32>
    %cst_194 = arith.constant dense<0.000000e+00> : vector<8x128xf32>
    %688 = tpu.matmul %687, %13, %cst_194 {dimension_numbers = #tpu.dot_dimension_numbers<[1], [0], [0], [1], [0, 0, 1, 1], [], []>} : vector<8x32xf32>, vector<32x128xf32>, vector<8x128xf32> -> vector<8x128xf32>
    %cst_195 = arith.constant dense<0.000000e+00> : vector<8x128xf32>
    %689 = tpu.matmul %620, %14, %cst_195 {dimension_numbers = #tpu.dot_dimension_numbers<[1], [0], [0], [1], [0, 0, 1, 1], [], []>} : vector<8x32xf32>, vector<32x128xf32>, vector<8x128xf32> -> vector<8x128xf32>
    %690 = arith.addf %688, %689 : vector<8x128xf32>
    %691 = vector.broadcast %15 : vector<1x128xf32> to vector<8x128xf32>
    %692 = arith.addf %690, %691 : vector<8x128xf32>
    %693 = arith.negf %692 : vector<8x128xf32>
    %694 = math.exp %693 : vector<8x128xf32>
    %cst_196 = arith.constant 1.000000e+00 : f32
    %695 = vector.broadcast %cst_196 : f32 to vector<8x128xf32>
    %696 = arith.addf %695, %694 : vector<8x128xf32>
    %697 = arith.divf %695, %696 : vector<8x128xf32>
    %698 = vector.extract_strided_slice %692 {offsets = [0, 64], sizes = [8, 32], strides = [1, 1]} : vector<8x128xf32> to vector<8x32xf32>
    %699 = math.tanh %698 : vector<8x32xf32>
    %700 = vector.extract_strided_slice %697 {offsets = [0, 32], sizes = [8, 32], strides = [1, 1]} : vector<8x128xf32> to vector<8x32xf32>
    %701 = arith.mulf %700, %617 : vector<8x32xf32>
    %702 = vector.extract_strided_slice %697 {offsets = [0, 0], sizes = [8, 32], strides = [1, 1]} : vector<8x128xf32> to vector<8x32xf32>
    %703 = arith.mulf %702, %699 : vector<8x32xf32>
    %704 = arith.addf %701, %703 : vector<8x32xf32>
    %705 = vector.extract_strided_slice %697 {offsets = [0, 96], sizes = [8, 32], strides = [1, 1]} : vector<8x128xf32> to vector<8x32xf32>
    %706 = math.tanh %704 : vector<8x32xf32>
    %707 = arith.mulf %705, %706 : vector<8x32xf32>
    %cst_197 = arith.constant dense<0.000000e+00> : vector<8x32xf32>
    %708 = tpu.matmul %707, %16, %cst_197 {dimension_numbers = #tpu.dot_dimension_numbers<[1], [0], [0], [1], [0, 0, 1, 1], [], []>} : vector<8x32xf32>, vector<32x32xf32>, vector<8x32xf32> -> vector<8x32xf32>
    %cst_198 = arith.constant dense<0.000000e+00> : vector<8x32xf32>
    %709 = tpu.matmul %665, %17, %cst_198 {dimension_numbers = #tpu.dot_dimension_numbers<[1], [0], [0], [1], [0, 0, 1, 1], [], []>} : vector<8x32xf32>, vector<32x32xf32>, vector<8x32xf32> -> vector<8x32xf32>
    %710 = arith.addf %708, %709 : vector<8x32xf32>
    %711 = vector.broadcast %18 : vector<1x32xf32> to vector<8x32xf32>
    %712 = arith.addf %710, %711 : vector<8x32xf32>
    %cst_199 = arith.constant dense<0xFF800000> : vector<8xf32>
    %713 = vector.multi_reduction <maximumf>, %712, %cst_199 [1] : vector<8x32xf32> to vector<8xf32>
    %714 = vector.shape_cast %713 : vector<8xf32> to vector<8x1xf32>
    %715 = vector.broadcast %714 : vector<8x1xf32> to vector<8x32xf32>
    %716 = arith.cmpf oge, %712, %715 : vector<8x32xf32>
    %c32_i32_200 = arith.constant 32 : i32
    %717 = vector.broadcast %c32_i32_200 : i32 to vector<8x32xi32>
    %718 = arith.select %716, %19, %717 : vector<8x32xi1>, vector<8x32xi32>
    %cst_201 = arith.constant dense<2147483647> : vector<8xi32>
    %719 = vector.multi_reduction <minsi>, %718, %cst_201 [1] : vector<8x32xi32> to vector<8xi32>
    %720 = vector.shape_cast %719 : vector<8xi32> to vector<8x1xi32>
    %721 = vector.broadcast %720 : vector<8x1xi32> to vector<8x32xi32>
    %722 = arith.cmpi eq, %19, %721 : vector<8x32xi32>
    %723 = arith.extui %722 : vector<8x32xi1> to vector<8x32xi32>
    %724 = arith.sitofp %723 : vector<8x32xi32> to vector<8x32xf32>
    %cst_202 = arith.constant dense<0.000000e+00> : vector<8x16xf32>
    %725 = tpu.matmul %724, %3, %cst_202 {dimension_numbers = #tpu.dot_dimension_numbers<[1], [0], [0], [1], [0, 0, 1, 1], [], []>} : vector<8x32xf32>, vector<32x16xf32>, vector<8x16xf32> -> vector<8x16xf32>
    %cst_203 = arith.constant dense<0.000000e+00> : vector<8x32xf32>
    %726 = tpu.matmul %707, %4, %cst_203 {dimension_numbers = #tpu.dot_dimension_numbers<[1], [0], [0], [1], [0, 0, 1, 1], [], []>} : vector<8x32xf32>, vector<32x32xf32>, vector<8x32xf32> -> vector<8x32xf32>
    %727 = vector.broadcast %5 : vector<1x32xf32> to vector<8x32xf32>
    %728 = arith.addf %726, %727 : vector<8x32xf32>
    %cst_204 = arith.constant 0.353553385 : f32
    %729 = vector.broadcast %cst_204 : f32 to vector<8x32xf32>
    %730 = arith.mulf %728, %729 : vector<8x32xf32>
    %731 = vector.shape_cast %730 : vector<8x32xf32> to vector<8x1x32xf32>
    %732 = vector.broadcast %731 : vector<8x1x32xf32> to vector<8x8x32xf32>
    %733 = arith.mulf %732, %0 : vector<8x8x32xf32>
    %734 = vector.shape_cast %733 : vector<8x8x32xf32> to vector<64x32xf32>
    %cst_205 = arith.constant dense<0.000000e+00> : vector<64x32xf32>
    %735 = tpu.matmul %734, %6, %cst_205 {dimension_numbers = #tpu.dot_dimension_numbers<[1], [0], [0], [1], [0, 0, 1, 1], [], []>} : vector<64x32xf32>, vector<32x32xf32>, vector<64x32xf32> -> vector<64x32xf32>
    %736 = vector.shape_cast %735 : vector<64x32xf32> to vector<8x8x32xf32>
    %737 = vector.broadcast %2 : vector<8x8x1xf32> to vector<8x8x32xf32>
    %738 = arith.addf %736, %737 : vector<8x8x32xf32>
    %cst_206 = arith.constant dense<0xFF800000> : vector<8x32xf32>
    %739 = vector.multi_reduction <maximumf>, %738, %cst_206 [1] : vector<8x8x32xf32> to vector<8x32xf32>
    %740 = vector.shape_cast %739 : vector<8x32xf32> to vector<8x1x32xf32>
    %741 = vector.broadcast %740 : vector<8x1x32xf32> to vector<8x8x32xf32>
    %742 = arith.subf %738, %741 : vector<8x8x32xf32>
    %743 = math.exp %742 : vector<8x8x32xf32>
    %cst_207 = arith.constant dense<0.000000e+00> : vector<8x32xf32>
    %744 = vector.multi_reduction <add>, %743, %cst_207 [1] : vector<8x8x32xf32> to vector<8x32xf32>
    %745 = vector.shape_cast %744 : vector<8x32xf32> to vector<8x1x32xf32>
    %746 = vector.broadcast %745 : vector<8x1x32xf32> to vector<8x8x32xf32>
    %747 = arith.divf %743, %746 : vector<8x8x32xf32>
    %748 = arith.mulf %747, %1 : vector<8x8x32xf32>
    %cst_208 = arith.constant dense<0.000000e+00> : vector<8x32xf32>
    %749 = vector.multi_reduction <add>, %748, %cst_208 [1] : vector<8x8x32xf32> to vector<8x32xf32>
    %cst_209 = arith.constant dense<0.000000e+00> : vector<8x32xf32>
    %750 = tpu.matmul %749, %7, %cst_209 {dimension_numbers = #tpu.dot_dimension_numbers<[1], [0], [0], [1], [0, 0, 1, 1], [], []>} : vector<8x32xf32>, vector<32x32xf32>, vector<8x32xf32> -> vector<8x32xf32>
    %751 = vector.broadcast %8 : vector<1x32xf32> to vector<8x32xf32>
    %752 = arith.addf %750, %751 : vector<8x32xf32>
    %cst_210 = arith.constant dense<0.000000e+00> : vector<8x128xf32>
    %753 = tpu.matmul %725, %9, %cst_210 {dimension_numbers = #tpu.dot_dimension_numbers<[1], [0], [0], [1], [0, 0, 1, 1], [], []>} : vector<8x16xf32>, vector<16x128xf32>, vector<8x128xf32> -> vector<8x128xf32>
    %cst_211 = arith.constant dense<0.000000e+00> : vector<8x128xf32>
    %754 = tpu.matmul %752, %10, %cst_211 {dimension_numbers = #tpu.dot_dimension_numbers<[1], [0], [0], [1], [0, 0, 1, 1], [], []>} : vector<8x32xf32>, vector<32x128xf32>, vector<8x128xf32> -> vector<8x128xf32>
    %755 = arith.addf %753, %754 : vector<8x128xf32>
    %cst_212 = arith.constant dense<0.000000e+00> : vector<8x128xf32>
    %756 = tpu.matmul %687, %11, %cst_212 {dimension_numbers = #tpu.dot_dimension_numbers<[1], [0], [0], [1], [0, 0, 1, 1], [], []>} : vector<8x32xf32>, vector<32x128xf32>, vector<8x128xf32> -> vector<8x128xf32>
    %757 = arith.addf %755, %756 : vector<8x128xf32>
    %758 = vector.broadcast %12 : vector<1x128xf32> to vector<8x128xf32>
    %759 = arith.addf %757, %758 : vector<8x128xf32>
    %760 = arith.negf %759 : vector<8x128xf32>
    %761 = math.exp %760 : vector<8x128xf32>
    %cst_213 = arith.constant 1.000000e+00 : f32
    %762 = vector.broadcast %cst_213 : f32 to vector<8x128xf32>
    %763 = arith.addf %762, %761 : vector<8x128xf32>
    %764 = arith.divf %762, %763 : vector<8x128xf32>
    %765 = vector.extract_strided_slice %759 {offsets = [0, 64], sizes = [8, 32], strides = [1, 1]} : vector<8x128xf32> to vector<8x32xf32>
    %766 = math.tanh %765 : vector<8x32xf32>
    %767 = vector.extract_strided_slice %764 {offsets = [0, 32], sizes = [8, 32], strides = [1, 1]} : vector<8x128xf32> to vector<8x32xf32>
    %768 = arith.mulf %767, %684 : vector<8x32xf32>
    %769 = vector.extract_strided_slice %764 {offsets = [0, 0], sizes = [8, 32], strides = [1, 1]} : vector<8x128xf32> to vector<8x32xf32>
    %770 = arith.mulf %769, %766 : vector<8x32xf32>
    %771 = arith.addf %768, %770 : vector<8x32xf32>
    %772 = vector.extract_strided_slice %764 {offsets = [0, 96], sizes = [8, 32], strides = [1, 1]} : vector<8x128xf32> to vector<8x32xf32>
    %773 = math.tanh %771 : vector<8x32xf32>
    %774 = arith.mulf %772, %773 : vector<8x32xf32>
    %cst_214 = arith.constant dense<0.000000e+00> : vector<8x128xf32>
    %775 = tpu.matmul %774, %13, %cst_214 {dimension_numbers = #tpu.dot_dimension_numbers<[1], [0], [0], [1], [0, 0, 1, 1], [], []>} : vector<8x32xf32>, vector<32x128xf32>, vector<8x128xf32> -> vector<8x128xf32>
    %cst_215 = arith.constant dense<0.000000e+00> : vector<8x128xf32>
    %776 = tpu.matmul %707, %14, %cst_215 {dimension_numbers = #tpu.dot_dimension_numbers<[1], [0], [0], [1], [0, 0, 1, 1], [], []>} : vector<8x32xf32>, vector<32x128xf32>, vector<8x128xf32> -> vector<8x128xf32>
    %777 = arith.addf %775, %776 : vector<8x128xf32>
    %778 = vector.broadcast %15 : vector<1x128xf32> to vector<8x128xf32>
    %779 = arith.addf %777, %778 : vector<8x128xf32>
    %780 = arith.negf %779 : vector<8x128xf32>
    %781 = math.exp %780 : vector<8x128xf32>
    %cst_216 = arith.constant 1.000000e+00 : f32
    %782 = vector.broadcast %cst_216 : f32 to vector<8x128xf32>
    %783 = arith.addf %782, %781 : vector<8x128xf32>
    %784 = arith.divf %782, %783 : vector<8x128xf32>
    %785 = vector.extract_strided_slice %779 {offsets = [0, 64], sizes = [8, 32], strides = [1, 1]} : vector<8x128xf32> to vector<8x32xf32>
    %786 = math.tanh %785 : vector<8x32xf32>
    %787 = vector.extract_strided_slice %784 {offsets = [0, 32], sizes = [8, 32], strides = [1, 1]} : vector<8x128xf32> to vector<8x32xf32>
    %788 = arith.mulf %787, %704 : vector<8x32xf32>
    %789 = vector.extract_strided_slice %784 {offsets = [0, 0], sizes = [8, 32], strides = [1, 1]} : vector<8x128xf32> to vector<8x32xf32>
    %790 = arith.mulf %789, %786 : vector<8x32xf32>
    %791 = arith.addf %788, %790 : vector<8x32xf32>
    %792 = vector.extract_strided_slice %784 {offsets = [0, 96], sizes = [8, 32], strides = [1, 1]} : vector<8x128xf32> to vector<8x32xf32>
    %793 = math.tanh %791 : vector<8x32xf32>
    %794 = arith.mulf %792, %793 : vector<8x32xf32>
    %cst_217 = arith.constant dense<0.000000e+00> : vector<8x32xf32>
    %795 = tpu.matmul %794, %16, %cst_217 {dimension_numbers = #tpu.dot_dimension_numbers<[1], [0], [0], [1], [0, 0, 1, 1], [], []>} : vector<8x32xf32>, vector<32x32xf32>, vector<8x32xf32> -> vector<8x32xf32>
    %cst_218 = arith.constant dense<0.000000e+00> : vector<8x32xf32>
    %796 = tpu.matmul %752, %17, %cst_218 {dimension_numbers = #tpu.dot_dimension_numbers<[1], [0], [0], [1], [0, 0, 1, 1], [], []>} : vector<8x32xf32>, vector<32x32xf32>, vector<8x32xf32> -> vector<8x32xf32>
    %797 = arith.addf %795, %796 : vector<8x32xf32>
    %798 = vector.broadcast %18 : vector<1x32xf32> to vector<8x32xf32>
    %799 = arith.addf %797, %798 : vector<8x32xf32>
    %800 = vector.shape_cast %103 : vector<8x32xf32> to vector<8x1x32xf32>
    %801 = vector.shape_cast %190 : vector<8x32xf32> to vector<8x1x32xf32>
    %802 = vector.shape_cast %277 : vector<8x32xf32> to vector<8x1x32xf32>
    %803 = vector.shape_cast %364 : vector<8x32xf32> to vector<8x1x32xf32>
    %804 = vector.shape_cast %451 : vector<8x32xf32> to vector<8x1x32xf32>
    %805 = vector.shape_cast %538 : vector<8x32xf32> to vector<8x1x32xf32>
    %806 = vector.shape_cast %625 : vector<8x32xf32> to vector<8x1x32xf32>
    %807 = vector.shape_cast %712 : vector<8x32xf32> to vector<8x1x32xf32>
    %808 = vector.shape_cast %799 : vector<8x32xf32> to vector<8x1x32xf32>
    %809 = tpu.concatenate %800, %801, %802, %803, %804, %805, %806, %807, %808 in 1 : vector<8x1x32xf32>, vector<8x1x32xf32>, vector<8x1x32xf32>, vector<8x1x32xf32>, vector<8x1x32xf32>, vector<8x1x32xf32>, vector<8x1x32xf32>, vector<8x1x32xf32>, vector<8x1x32xf32> -> vector<8x9x32xf32>
    %c0_219 = arith.constant 0 : index
    %c0_220 = arith.constant 0 : index
    %c0_221 = arith.constant 0 : index
    %810 = vector.load %arg20[%c0_219, %c0_220, %c0_221] : memref<8x9x32xf32, #tpu.memory_space<vmem>>, vector<8x9x32xf32>
    tpu.vector_store %arg20[%c0_219, %c0_220, %c0_221], %809 {strides = array<i32>} : memref<8x9x32xf32, #tpu.memory_space<vmem>>, vector<8x9x32xf32>,
    return
  }
  func.func @transform_0(%arg0: i32) -> (i32, i32, i32) {
    %c0_i32 = arith.constant 0 : i32
    %c0_i32_0 = arith.constant 0 : i32
    %c0_i32_1 = arith.constant 0 : i32
    return %arg0, %c0_i32, %c0_i32_0 : i32, i32, i32
  }
  func.func @transform_1(%arg0: i32) -> (i32, i32, i32) {
    %c0_i32 = arith.constant 0 : i32
    %c0_i32_0 = arith.constant 0 : i32
    %c0_i32_1 = arith.constant 0 : i32
    return %arg0, %c0_i32, %c0_i32_0 : i32, i32, i32
  }
  func.func @transform_2(%arg0: i32) -> (i32, i32, i32) {
    %c0_i32 = arith.constant 0 : i32
    %c0_i32_0 = arith.constant 0 : i32
    %c0_i32_1 = arith.constant 0 : i32
    return %arg0, %c0_i32, %c0_i32_0 : i32, i32, i32
  }
  func.func @transform_3(%arg0: i32) -> (i32, i32) {
    %c0_i32 = arith.constant 0 : i32
    %c0_i32_0 = arith.constant 0 : i32
    %c0_i32_1 = arith.constant 0 : i32
    return %c0_i32, %c0_i32_0 : i32, i32
  }
  func.func @transform_4(%arg0: i32) -> (i32, i32) {
    %c0_i32 = arith.constant 0 : i32
    %c0_i32_0 = arith.constant 0 : i32
    %c0_i32_1 = arith.constant 0 : i32
    return %c0_i32, %c0_i32_0 : i32, i32
  }
  func.func @transform_5(%arg0: i32) -> (i32, i32) {
    %c0_i32 = arith.constant 0 : i32
    %c0_i32_0 = arith.constant 0 : i32
    %c0_i32_1 = arith.constant 0 : i32
    return %c0_i32, %c0_i32_0 : i32, i32
  }
  func.func @transform_6(%arg0: i32) -> (i32, i32) {
    %c0_i32 = arith.constant 0 : i32
    %c0_i32_0 = arith.constant 0 : i32
    %c0_i32_1 = arith.constant 0 : i32
    return %c0_i32, %c0_i32_0 : i32, i32
  }
  func.func @transform_7(%arg0: i32) -> (i32, i32) {
    %c0_i32 = arith.constant 0 : i32
    %c0_i32_0 = arith.constant 0 : i32
    %c0_i32_1 = arith.constant 0 : i32
    return %c0_i32, %c0_i32_0 : i32, i32
  }
  func.func @transform_8(%arg0: i32) -> (i32, i32) {
    %c0_i32 = arith.constant 0 : i32
    %c0_i32_0 = arith.constant 0 : i32
    %c0_i32_1 = arith.constant 0 : i32
    return %c0_i32, %c0_i32_0 : i32, i32
  }
  func.func @transform_9(%arg0: i32) -> (i32, i32) {
    %c0_i32 = arith.constant 0 : i32
    %c0_i32_0 = arith.constant 0 : i32
    %c0_i32_1 = arith.constant 0 : i32
    return %c0_i32, %c0_i32_0 : i32, i32
  }
  func.func @transform_10(%arg0: i32) -> (i32, i32) {
    %c0_i32 = arith.constant 0 : i32
    %c0_i32_0 = arith.constant 0 : i32
    %c0_i32_1 = arith.constant 0 : i32
    return %c0_i32, %c0_i32_0 : i32, i32
  }
  func.func @transform_11(%arg0: i32) -> (i32, i32) {
    %c0_i32 = arith.constant 0 : i32
    %c0_i32_0 = arith.constant 0 : i32
    %c0_i32_1 = arith.constant 0 : i32
    return %c0_i32, %c0_i32_0 : i32, i32
  }
  func.func @transform_12(%arg0: i32) -> (i32, i32) {
    %c0_i32 = arith.constant 0 : i32
    %c0_i32_0 = arith.constant 0 : i32
    %c0_i32_1 = arith.constant 0 : i32
    return %c0_i32, %c0_i32_0 : i32, i32
  }
  func.func @transform_13(%arg0: i32) -> (i32, i32) {
    %c0_i32 = arith.constant 0 : i32
    %c0_i32_0 = arith.constant 0 : i32
    %c0_i32_1 = arith.constant 0 : i32
    return %c0_i32, %c0_i32_0 : i32, i32
  }
  func.func @transform_14(%arg0: i32) -> (i32, i32) {
    %c0_i32 = arith.constant 0 : i32
    %c0_i32_0 = arith.constant 0 : i32
    %c0_i32_1 = arith.constant 0 : i32
    return %c0_i32, %c0_i32_0 : i32, i32
  }
  func.func @transform_15(%arg0: i32) -> (i32, i32) {
    %c0_i32 = arith.constant 0 : i32
    %c0_i32_0 = arith.constant 0 : i32
    %c0_i32_1 = arith.constant 0 : i32
    return %c0_i32, %c0_i32_0 : i32, i32
  }
  func.func @transform_16(%arg0: i32) -> (i32, i32) {
    %c0_i32 = arith.constant 0 : i32
    %c0_i32_0 = arith.constant 0 : i32
    %c0_i32_1 = arith.constant 0 : i32
    return %c0_i32, %c0_i32_0 : i32, i32
  }
  func.func @transform_17(%arg0: i32) -> (i32, i32) {
    %c0_i32 = arith.constant 0 : i32
    %c0_i32_0 = arith.constant 0 : i32
    %c0_i32_1 = arith.constant 0 : i32
    return %c0_i32, %c0_i32_0 : i32, i32
  }
  func.func @transform_18(%arg0: i32) -> (i32, i32) {
    %c0_i32 = arith.constant 0 : i32
    %c0_i32_0 = arith.constant 0 : i32
    %c0_i32_1 = arith.constant 0 : i32
    return %c0_i32, %c0_i32_0 : i32, i32
  }
  func.func @transform_19(%arg0: i32) -> (i32, i32, i32) {
    %c0_i32 = arith.constant 0 : i32
    %c0_i32_0 = arith.constant 0 : i32
    %c0_i32_1 = arith.constant 0 : i32
    return %arg0, %c0_i32, %c0_i32_0 : i32, i32, i32
  }
}

</mosaic_0001>

<bundles_post_ra>
// kernel: tpu_custom_call.1
= control target key start
LH: loop header
LB: loop body
LE: loop exit
PB: predicated region body
PF: predicated region fallthrough
CT: control target
= control target key end

     0   :  { %s18816_s0 = inlined_call_operand.vmem [shape: f32[8,8,32], index: 0, kind: input, shape index: {}]   ;;  %s18817_s1 = inlined_call_operand.hbm [shape: f32[8,8,32], index: 1, kind: input, shape index: {}]   ;;  %s18818_s2 = inlined_call_operand.vmem [shape: f32[8,8,1], index: 2, kind: input, shape index: {}]   ;;  %s18819_s3 = inlined_call_operand.vmem [shape: f32[32,16], index: 3, kind: input, shape index: {}]   ;;  %s18820_s4 = inlined_call_operand.vmem [shape: f32[32,32], index: 4, kind: input, shape index: {}]   ;;  %s18821_s5 = inlined_call_operand.vmem [shape: f32[1,32], index: 5, kind: input, shape index: {}]   ;;  %s18822_s6 = inlined_call_operand.vmem [shape: f32[32,32], index: 6, kind: input, shape index: {}]   ;;  %s18823_s7 = inlined_call_operand.hbm [shape: f32[32,32], index: 7, kind: input, shape index: {}]   ;;  %s18824_s8 = inlined_call_operand.hbm [shape: f32[1,32], index: 8, kind: input, shape index: {}]   ;;  %s18825_s9 = inlined_call_operand.hbm [shape: f32[16,128], index: 9, kind: input, shape index: {}]   ;;  %s18826_s10 = inlined_call_operand.hbm [shape: f32[32,128], index: 10, kind: input, shape index: {}]   ;;  %s18827_s11 = inlined_call_operand.vmem [shape: f32[32,128], index: 11, kind: input, shape index: {}]   ;;  %s18828_s12 = inlined_call_operand.vmem [shape: f32[1,128], index: 12, kind: input, shape index: {}]   ;;  %s18829_s13 = inlined_call_operand.hbm [shape: f32[32,128], index: 13, kind: input, shape index: {}]   ;;  %s18830_s14 = inlined_call_operand.hbm [shape: f32[32,128], index: 14, kind: input, shape index: {}]   ;;  %s18831_s15 = inlined_call_operand.vmem [shape: f32[1,128], index: 15, kind: input, shape index: {}]   ;;  %s18832_s16 = inlined_call_operand.hbm [shape: f32[32,32], index: 16, kind: input, shape index: {}]   ;;  %s18833_s17 = inlined_call_operand.hbm [shape: f32[32,32], index: 17, kind: input, shape index: {}]   ;;  %s18834_s18 = inlined_call_operand.vmem [shape: f32[1,32], index: 18, kind: input, shape index: {}]   ;;  %s18835_s19 = inlined_call_operand.vmem [shape: f32[8,9,32], index: 19, kind: output, shape index: {}]  }
   0x1   :  { %18947 = sst [smem:[#allocation54_spill]] %s18816_s0 }
   0x2   :  { %18948 = sst [smem:[#allocation55_spill]] %s18817_s1 }
   0x3   :  { %18949 = sst [smem:[#allocation56_spill]] %s18818_s2 }
   0x4   :  { %18950 = sst [smem:[#allocation57_spill]] %s18819_s3 }
   0x5   :  { %24 = vsyncpa [#allocation3], 0 }
   0x6   :  { %25 = vsyncpa [#allocation5], 0 }
   0x7   :  { %26 = vsyncpa [#allocation8], 0 }
   0x8   :  { %27 = vsyncpa [#allocation11], 0 }
   0x9   :  { %28 = vsyncpa [#allocation14], 0  ;;  %s15730_s0 = smov [#allocation4]   ;;  %s15731_s20 = smov [#allocation7]  }
   0xa   :  { %s58_s30 = sshll.u32 %s15730_s0, 4  ;;  %s80_s21 = sshll.u32 %s15731_s20, 4  ;;  %s59_s30 = int_to_ptr.vmem [resolvable:$true] %s58_s30  ;;  %s15848_s21 = int_to_ptr.vmem [resolvable:$true] %s80_s21 }
   0xb   :  { %s15522_s2 = scalar_lea.hbm %s18823_s7, 512 }
   0xc   :  { %p15523_p0 = scmp.ne.s32.totalorder %s18823_s7, %s15522_s2  ;;  %p15526_p1 = scmp.lt.u32.totalorder %s15522_s2, %s18823_s7 }
   0xe   :  { %p15528_p2 = pnand %p15526_p1, %p15523_p0 }
  0x10   :  { %15531 = shalt.err (!%p15528_p2)
}
  0x11   :  { %s15532_s26 = scalar_lea.vmem %s59_s30, 512  ;;  %p15537_p4 = scmp.lt.s32.totalorder %s59_s30, %s59_s30 }
  0x12   :  { %p15533_p3 = scmp.ne.s32.totalorder %s59_s30, %s15532_s26  ;;  %p15538_p5 = scmp.lt.s32.totalorder %s15532_s26, %s15532_s26 }
  0x14   :  { %p15539_p6 = por %p15538_p5, %p15537_p4 }
  0x16   :  { %p15540_p7 = pnand %p15539_p6, %p15533_p3 }
  0x18   :  { %15543 = shalt.err (!%p15540_p7)
}
  0x19   :  { %s15732_s27 = smov 128   ;;  %s15733_s28 = smov 8  }
  0x1a   :  { %64 = dma.hbm_to_vmem [thread:$0]  %s18823_s7, 512, %s59_s30, [#allocation5], %s15732_s27, %s15732_s27, %s15733_s28  }
  0x1b   :  { %s15544_s22 = scalar_lea.hbm %s18825_s9, 256 }
  0x1c   :  { %p15545_p8 = scmp.ne.s32.totalorder %s18825_s9, %s15544_s22  ;;  %p15548_p9 = scmp.lt.u32.totalorder %s15544_s22, %s18825_s9 }
  0x1e   :  { %p15550_p10 = pnand %p15548_p9, %p15545_p8 }
  0x20   :  { %15553 = shalt.err (!%p15550_p10)
}
  0x21   :  { %s15554_s3 = scalar_lea.vmem %s15848_s21, 256  ;;  %p15559_p12 = scmp.lt.s32.totalorder %s15848_s21, %s15848_s21 }
  0x22   :  { %p15555_p11 = scmp.ne.s32.totalorder %s15848_s21, %s15554_s3  ;;  %p15560_p13 = scmp.lt.s32.totalorder %s15554_s3, %s15554_s3 }
  0x24   :  { %p15561_p0 = por %p15560_p13, %p15559_p12 }
  0x26   :  { %p15562_p1 = pnand %p15561_p0, %p15555_p11 }
  0x28   :  { %15565 = shalt.err (!%p15562_p1)
}
  0x29   :  { %86 = dma.hbm_to_vmem [thread:$0]  %s18825_s9, 256, %s15848_s21, [#allocation8], %s15732_s27, %s15732_s27, %s15733_s28  }
  0x2a   :  { %s15734_s26 = smov [#allocation10]   ;;  %s15735_s0 = smov [#allocation13]  }
  0x2b   :  { %s108_s29 = sshll.u32 %s15734_s26, 4  ;;  %s134_s20 = sshll.u32 %s15735_s0, 4  ;;  %s109_s29 = int_to_ptr.vmem [resolvable:$true] %s108_s29  ;;  %s15885_s20 = int_to_ptr.vmem [resolvable:$true] %s134_s20 }
  0x2c   :  { %s15566_s2 = scalar_lea.hbm %s18829_s13, 512 }
  0x2d   :  { %p15567_p2 = scmp.ne.s32.totalorder %s18829_s13, %s15566_s2  ;;  %p15570_p3 = scmp.lt.u32.totalorder %s15566_s2, %s18829_s13 }
  0x2f   :  { %p15572_p4 = pnand %p15570_p3, %p15567_p2 }
  0x31   :  { %15575 = shalt.err (!%p15572_p4)
}
  0x32   :  { %s15576_s9 = scalar_lea.vmem %s109_s29, 512  ;;  %p15581_p6 = scmp.lt.s32.totalorder %s109_s29, %s109_s29 }
  0x33   :  { %p15577_p5 = scmp.ne.s32.totalorder %s109_s29, %s15576_s9  ;;  %p15582_p7 = scmp.lt.s32.totalorder %s15576_s9, %s15576_s9 }
  0x35   :  { %p15583_p8 = por %p15582_p7, %p15581_p6 }
  0x37   :  { %p15584_p9 = pnand %p15583_p8, %p15577_p5 }
  0x39   :  { %15587 = shalt.err (!%p15584_p9)
}
  0x3a   :  { %114 = dma.hbm_to_vmem [thread:$0]  %s18829_s13, 512, %s109_s29, [#allocation11], %s15732_s27, %s15732_s27, %s15733_s28  }
  0x3b   :  { %s15588_s0 = scalar_lea.hbm %s18832_s16, 512 }
  0x3c   :  { %p15589_p10 = scmp.ne.s32.totalorder %s18832_s16, %s15588_s0  ;;  %p15592_p11 = scmp.lt.u32.totalorder %s15588_s0, %s18832_s16 }
  0x3e   :  { %p15594_p12 = pnand %p15592_p11, %p15589_p10 }
  0x40   :  { %15597 = shalt.err (!%p15594_p12)
}
  0x41   :  { %s15598_s24 = scalar_lea.vmem %s15885_s20, 512  ;;  %p15603_p0 = scmp.lt.s32.totalorder %s15885_s20, %s15885_s20 }
  0x42   :  { %p15599_p13 = scmp.ne.s32.totalorder %s15885_s20, %s15598_s24  ;;  %p15604_p1 = scmp.lt.s32.totalorder %s15598_s24, %s15598_s24 }
  0x44   :  { %p15605_p2 = por %p15604_p1, %p15603_p0 }
  0x46   :  { %p15606_p3 = pnand %p15605_p2, %p15599_p13 }
  0x48   :  { %15609 = shalt.err (!%p15606_p3)
}
  0x49   :  { %140 = dma.hbm_to_vmem [thread:$0]  %s18832_s16, 512, %s15885_s20, [#allocation14], %s15732_s27, %s15732_s27, %s15733_s28  }
  0x4a   :  { %s15736_s25 = smov [#allocation2]   ;;  %s15737_s9 = smov [#allocation6]  }
  0x4b   :  { %s36_s3 = sshll.u32 %s15736_s25, 4  ;;  %s71_s21 = sshll.u32 %s15737_s9, 4  ;;  %s37_s3 = int_to_ptr.vmem [resolvable:$true] %s36_s3  ;;  %s72_s21 = int_to_ptr.vmem [resolvable:$true] %s71_s21 }
  0x4c   :  { %s18951_s26 = sld [smem:[#allocation55_spill]] }
  0x52   :  { %s15610_s0 = scalar_lea.hbm %s18951_s26, 1024 }
  0x53   :  { %p15611_p4 = scmp.ne.s32.totalorder %s18951_s26, %s15610_s0  ;;  %p15614_p5 = scmp.lt.u32.totalorder %s15610_s0, %s18951_s26 }
  0x55   :  { %p15616_p6 = pnand %p15614_p5, %p15611_p4 }
  0x57   :  { %15619 = shalt.err (!%p15616_p6)
}
  0x58   :  { %s15620_s16 = scalar_lea.vmem %s37_s3, 1024  ;;  %p15625_p8 = scmp.lt.s32.totalorder %s37_s3, %s37_s3 }
  0x59   :  { %p15621_p7 = scmp.ne.s32.totalorder %s37_s3, %s15620_s16  ;;  %p15626_p9 = scmp.lt.s32.totalorder %s15620_s16, %s15620_s16 }
  0x5b   :  { %p15627_p10 = por %p15626_p9, %p15625_p8 }
  0x5d   :  { %p15628_p11 = pnand %p15627_p10, %p15621_p7 }
  0x5f   :  { %15631 = shalt.err (!%p15628_p11)
}
  0x60   :  { %42 = dma.hbm_to_vmem [thread:$0]  %s18951_s26, 1024, %s37_s3, [#allocation3], %s15732_s27, %s15732_s27, %s15733_s28  }
  0x61   :  { %s15632_s25 = scalar_lea.hbm %s18824_s8, 16 }
  0x62   :  { %p15633_p12 = scmp.ne.s32.totalorder %s18824_s8, %s15632_s25  ;;  %p15636_p13 = scmp.lt.u32.totalorder %s15632_s25, %s18824_s8 }
  0x64   :  { %p15638_p0 = pnand %p15636_p13, %p15633_p12 }
  0x66   :  { %15641 = shalt.err (!%p15638_p0)
}
  0x67   :  { %s15642_s1 = scalar_lea.vmem %s72_s21, 16  ;;  %s15646_s22 = scalar_lea.vmem %s72_s21, 32 }
  0x68   :  { %p15643_p1 = scmp.ne.s32.totalorder %s72_s21, %s15642_s1  ;;  %p15647_p2 = scmp.lt.s32.totalorder %s72_s21, %s72_s21 }
  0x69   :  { %p15648_p3 = scmp.lt.s32.totalorder %s15646_s22, %s15642_s1 }
  0x6b   :  { %p15649_p4 = por %p15648_p3, %p15647_p2 }
  0x6d   :  { %p15650_p5 = pnand %p15649_p4, %p15643_p1 }
  0x6f   :  { %15653 = shalt.err (!%p15650_p5)
}
  0x70   :  { %74 = dma.hbm_to_vmem [thread:$0]  %s18824_s8, 16, %s72_s21, [#allocation5]  }
  0x71   :  { %s15738_s2 = smov [#allocation9]   ;;  %s15739_s16 = smov [#allocation12]  }
  0x72   :  { %s92_s23 = sshll.u32 %s15738_s2, 4  ;;  %s120_s20 = sshll.u32 %s15739_s16, 4  ;;  %s93_s23 = int_to_ptr.vmem [resolvable:$true] %s92_s23  ;;  %s15949_s20 = int_to_ptr.vmem [resolvable:$true] %s120_s20 }
  0x73   :  { %s15654_s29 = scalar_lea.hbm %s18826_s10, 512 }
  0x74   :  { %p15655_p6 = scmp.ne.s32.totalorder %s18826_s10, %s15654_s29  ;;  %p15658_p7 = scmp.lt.u32.totalorder %s15654_s29, %s18826_s10 }
  0x76   :  { %p15660_p8 = pnand %p15658_p7, %p15655_p6 }
  0x78   :  { %15663 = shalt.err (!%p15660_p8)
}
  0x79   :  { %s15664_s8 = scalar_lea.vmem %s93_s23, 512  ;;  %p15669_p10 = scmp.lt.s32.totalorder %s93_s23, %s93_s23 }
  0x7a   :  { %p15665_p9 = scmp.ne.s32.totalorder %s93_s23, %s15664_s8  ;;  %p15670_p11 = scmp.lt.s32.totalorder %s15664_s8, %s15664_s8 }
  0x7c   :  { %p15671_p12 = por %p15670_p11, %p15669_p10 }
  0x7e   :  { %p15672_p13 = pnand %p15671_p12, %p15665_p9 }
  0x80   :  { %15675 = shalt.err (!%p15672_p13)
}
  0x81   :  { %98 = dma.hbm_to_vmem [thread:$0]  %s18826_s10, 512, %s93_s23, [#allocation8], %s15732_s27, %s15732_s27, %s15733_s28  }
  0x82   :  { %s15676_s3 = scalar_lea.hbm %s18830_s14, 512 }
  0x83   :  { %p15677_p0 = scmp.ne.s32.totalorder %s18830_s14, %s15676_s3  ;;  %p15680_p1 = scmp.lt.u32.totalorder %s15676_s3, %s18830_s14 }
  0x85   :  { %p15682_p2 = pnand %p15680_p1, %p15677_p0 }
  0x87   :  { %15685 = shalt.err (!%p15682_p2)
}
  0x88   :  { %s15686_s13 = scalar_lea.vmem %s15949_s20, 512  ;;  %p15691_p4 = scmp.lt.s32.totalorder %s15949_s20, %s15949_s20 }
  0x89   :  { %p15687_p3 = scmp.ne.s32.totalorder %s15949_s20, %s15686_s13  ;;  %p15692_p5 = scmp.lt.s32.totalorder %s15686_s13, %s15686_s13 }
  0x8b   :  { %p15693_p6 = por %p15692_p5, %p15691_p4 }
  0x8d   :  { %p15694_p7 = pnand %p15693_p6, %p15687_p3 }
  0x8f   :  { %15697 = shalt.err (!%p15694_p7)
}
  0x90   :  { %126 = dma.hbm_to_vmem [thread:$0]  %s18830_s14, 512, %s15949_s20, [#allocation11], %s15732_s27, %s15732_s27, %s15733_s28  }
  0x91   :  { %s15740_s29 = smov [#allocation15]   ;;  %s15698_s30 = scalar_lea.hbm %s18833_s17, 512 }
  0x92   :  { %s146_s25 = sshll.u32 %s15740_s29, 4  ;;  %p15699_p8 = scmp.ne.s32.totalorder %s18833_s17, %s15698_s30  ;;  %s147_s25 = int_to_ptr.vmem [resolvable:$true] %s146_s25 }
  0x93   :  { %p15702_p9 = scmp.lt.u32.totalorder %s15698_s30, %s18833_s17 }
  0x95   :  { %p15704_p10 = pnand %p15702_p9, %p15699_p8 }
  0x97   :  { %15707 = shalt.err (!%p15704_p10)
}
  0x98   :  { %s15708_s22 = scalar_lea.vmem %s147_s25, 512  ;;  %p15713_p12 = scmp.lt.s32.totalorder %s147_s25, %s147_s25 }
  0x99   :  { %p15709_p11 = scmp.ne.s32.totalorder %s147_s25, %s15708_s22  ;;  %p15714_p13 = scmp.lt.s32.totalorder %s15708_s22, %s15708_s22 }
  0x9b   :  { %p15715_p0 = por %p15714_p13, %p15713_p12 }
  0x9d   :  { %p15716_p1 = pnand %p15715_p0, %p15709_p11 }
  0x9f   :  { %15719 = shalt.err (!%p15716_p1)
}
  0xa0   :  { %152 = dma.hbm_to_vmem [thread:$0]  %s18833_s17, 512, %s147_s25, [#allocation14], %s15732_s27, %s15732_s27, %s15733_s28  }
  0xa1   :  { %15720 = dma.done.wait [#allocation3], 1024  }
  0xa2   :  { %15721 = vsyncadd [#allocation3], 4294966272 }
  0xa3   :  { %15722 = dma.done.wait [#allocation5], 528  }
  0xa4   :  { %15723 = vsyncadd [#allocation5], 4294966768 }
  0xa5   :  { %15724 = dma.done.wait [#allocation8], 768  }
  0xa6   :  { %15725 = vsyncadd [#allocation8], 4294966528 }
  0xa7   :  { %15726 = dma.done.wait [#allocation11], 1024  }
  0xa8   :  { %15727 = vsyncadd [#allocation11], 4294966272 }
  0xa9   :  { %15728 = dma.done.wait [#allocation14], 1024  }
  0xaa   :  { %15729 = vsyncadd [#allocation14], 4294966272  ;;  %v18840_v0 = vmov 0.0|0.0   ;;  %vm15742_vm0 = vmmov 0   ;;  %v18842_v1 = vmov 0.0   ;;  %v210_v2 = vld [vmem:[%s18820_s4] sm:$0xff]  ;;  %v253_v11 = vlaneseq }
  0xab   :  { %14390 = vmatprep.subr.bf16.mxu1 %v18840_v0  ;;  %13269 = vmatprep.mubr.msk.f32.mxu1 %vm15742_vm0, %v18842_v1  ;;  %v211_v3 = vld [vmem:[%s18820_s4 + $0x8] sm:$0xff]  ;;  %v212_v4 = vld [vmem:[%s18820_s4 + $0x10] sm:$0xff]  ;;  %v213_v6 = vld [vmem:[%s18820_s4 + $0x18] sm:$0xff]  ;;  %s18952_s23 = sld [smem:[#allocation57_spill]]  ;;  %vm258_vm2 = vcmask 261120   ;;  %s18955_s3 = sld [smem:[#allocation56_spill]] }
  0xac   :  { %14384 = vmatprep.subr.bf16.mxu0 %v18840_v0  ;;  %13258 = vmatprep.mubr.msk.f32.mxu0 %vm15742_vm0, %v18842_v1  ;;  %v16016_v5 = vpack.c.bf16 %v211_v3, %v210_v2  ;;  %v16030_v10 = vpack.c.bf16 %v213_v6, %v212_v4  ;;  %v16048_v15 = vand.u32 127, %v253_v11  ;;  %v215_v16 = vld [vmem:[%s18822_s6] sm:$0xff]  ;;  %v216_v17 = vld [vmem:[%s18822_s6 + $0x8] sm:$0xff]  ;;  %v217_v20 = vld [vmem:[%s18822_s6 + $0x10] sm:$0xff]  ;;  %v15744_v25 = vmov 0   ;;  %s18958_s22 = sld [smem:[#allocation54_spill]] }
  0xad   :  { %v16058_v18 = vpack.c.bf16 %v216_v17, %v215_v16  ;;  %v218_v21 = vld [vmem:[%s18822_s6 + $0x18] sm:$0xff]  ;;  %14987 = vset.pattern.permute.xlu0 %v15744_v25  ;;  %14988 = vset.pattern.permute.xlu1 %v15744_v25  ;;  %v15745_v32 = vmov 1966171168   ;;  %v418_v35 = vshrl.u32 %v253_v11, 7  ;;  %v12521_v36 = vld [vmem:[%s18821_s5] ss:$0 sm:$0xff] }
  0xae   :  { %14392 = vmatpush3.bf16.msra.mxu1 %v16016_v5  ;;  %18953 = vst [vmem:[#allocation21_spill] sm:$0xff] %v16048_v15  ;;  %vm255_vm1 = vcmp.eq.s32.totalorder %v16048_v15, 0  ;;  %v16070_v22 = vpack.c.bf16 %v218_v21, %v217_v20  ;;  %v415_v33 = vunpack.c.l.s4 %v15745_v32  ;;  %vm917_vm3 = vcmask 1041409   ;;  %s15746_s1 = smov 64   ;;  %s15747_s14 = smov 32  }
  0xaf   :  { %14393 = vmatprep.subr.bf16.mxu1 %v18840_v0  ;;  %v12519_v19 = vsel %vm255_vm1, 1.0, %v18842_v1  ;;  %v16105_v44 = vsub.s32 0, %v418_v35  ;;  %vm919_vm4 = vcmask 1042434   ;;  %vm921_vm5 = vcmask 1043459  }
  0xb0   :  { %18954 = vst [vmem:[#allocation22_spill] sm:$0xff] %v16070_v22  ;;  %v416_v34 = vunpack.c.0.s8 %v415_v33  ;;  %v230_v33 = vld [vmem:[%s18827_s11] sm:$0xff]  ;;  %vm923_vm6 = vcmask 1044484   ;;  %vm925_vm7 = vcmask 1045509   ;;  %vm927_vm8 = vcmask 1046534  }
  0xb1   :  { %v206_v7 = vld [vmem:[%s18952_s23] sm:$0xff]  ;;  %v207_v8 = vld [vmem:[%s18952_s23 + $0x8] sm:$0xff]  ;;  %v208_v12 = vld [vmem:[%s18952_s23 + $0x10] sm:$0xff]  ;;  %18957 = vst [vmem:[#allocation24_spill] sm:$0xff] %v16105_v44  ;;  %vm929_vm9 = vcmask 1047559   ;;  %vm1076_vm10 = vcmask 130048  }
  0xb2   :  { %v16027_v9 = vpack.c.bf16 %v207_v8, %v206_v7  ;;  %14395 = vmatpush3.bf16.msra.mxu1 %v16030_v10  ;;  %v209_v13 = vld [vmem:[%s18952_s23 + $0x18] sm:$0xff]  ;;  %v198_v23 = vld [vmem:[%s18955_s3] sm:$0xff]  ;;  %v200_v24 = vld [vmem:[%s18955_s3 + $0x10] sm:$0xff]  ;;  %v16102_v39 = vsub.s32 %v416_v34, %v418_v35 }
  0xb3   :  { %14404 = vmatprep.subr.bf16.mxu1 %v18840_v0  ;;  %v16046_v14 = vpack.c.bf16 %v209_v13, %v208_v12  ;;  %641 = vperm.xlu0 %14987, %v198_v23   ;;  %v199_v26 = vld [vmem:[%s18955_s3 + $0x8] sm:$0xff]  ;;  %v201_v27 = vld [vmem:[%s18955_s3 + $0x18] sm:$0xff]  ;;  %v202_v28 = vld [vmem:[%s18955_s3 + $0x20] sm:$0xff] }
  0xb4   :  { %14386 = vmatpush3.bf16.msra.mxu0 %v16027_v9  ;;  %651 = vperm.xlu1 %14988, %v200_v24   ;;  %v203_v29 = vld [vmem:[%s18955_s3 + $0x28] sm:$0xff]  ;;  %v204_v30 = vld [vmem:[%s18955_s3 + $0x30] sm:$0xff]  ;;  %v205_v31 = vld [vmem:[%s18955_s3 + $0x38] sm:$0xff]  ;;  %18956 = vst [vmem:[#allocation23_spill] sm:$0xff] %v16102_v39 }
  0xb5   :  { %14387 = vmatprep.subr.bf16.mxu0 %v18840_v0  ;;  %13270 = vmatmul.mubr.f32.vlgmr.msra.gmra.mrb[0].mxu1 %v18842_v1  ;;  %v182_v51 = vld [vmem:[%s18958_s22] sm:$0xff]  ;;  %v183_v52 = vld [vmem:[%s18958_s22 + $0x8] sm:$0xff]  ;;  %v184_v57 = vld [vmem:[%s18958_s22 + $0x10] sm:$0xff] }
  0xb6   :  { %13300 = vmatprep.mubr.msk.f32.mxu1 %vm15742_vm0, %v18842_v1  ;;  %v185_v4 = vld [vmem:[%s18958_s22 + $0x18] sm:$0xff]  ;;  %v186_v6 = vld [vmem:[%s18958_s22 + $0x20] sm:$0xff]  ;;  %v187_v13 = vld [vmem:[%s18958_s22 + $0x28] sm:$0xff] }
  0xb7   :  { %646 = vperm.xlu0 %14987, %v199_v26   ;;  %v188_v17 = vld [vmem:[%s18958_s22 + $0x30] sm:$0xff]  ;;  %v189_v23 = vld [vmem:[%s18958_s22 + $0x38] sm:$0xff]  ;;  %v231_v34 = vld [vmem:[%s18827_s11 + $0x8] sm:$0xff] }
  0xb8   :  { %14389 = vmatpush3.bf16.msra.mxu0 %v16046_v14  ;;  %656 = vperm.xlu1 %14988, %v201_v27   ;;  %v219_v27 = vld [vmem:[#allocation4] sm:$0xff]  ;;  %v16170_v35 = vpack.c.bf16 %v231_v34, %v230_v33 }
  0xb9   :  { %14397 = vmatprep.subr.bf16.mxu0 %v16058_v18 }
  0xba   :  { %18960 = vst [vmem:[#allocation26_spill] sm:$0xff] %v16170_v35 }
  0xbb   :  { %13259 = vmatmul.mubr.msk.f32.vlgmr.msra.gmra.mrb[0].mxu0 %vm258_vm2, %v12519_v19  ;;  %661 = vperm.xlu0 %14987, %v202_v28   ;;  %v220_v28 = vld [vmem:[#allocation4 + $0x8] sm:$0xff] }
  0xbc   :  { %14399 = vmatpush3.bf16.msra.mxu0 %v16058_v18  ;;  %666 = vperm.xlu1 %14988, %v203_v29   ;;  %v221_v29 = vld [vmem:[#allocation4 + $0x10] sm:$0xff] }
  0xbd   :  { %14401 = vmatprep.subr.bf16.mxu0 %v16070_v22 }
  0xbf   :  { %671 = vperm.xlu0 %14987, %v204_v30   ;;  %v16156_v30 = vpack.c.bf16 %v220_v28, %v219_v27 }
  0xc0   :  { %14403 = vmatpush3.bf16.msra.mxu0 %v16070_v22  ;;  %676 = vperm.xlu1 %14988, %v205_v31   ;;  %v222_v31 = vld [vmem:[#allocation4 + $0x18] sm:$0xff] }
  0xc1   :  { %14419 = vmatprep.subr.bf16.mxu0 %v18840_v0  ;;  %14406 = vmatpush3.bf16.msra.mxu1 %v16156_v30  ;;  %v16159_v32 = vpack.c.bf16 %v222_v31, %v221_v29 }
  0xc2   :  { %14407 = vmatprep.subr.bf16.mxu1 %v18840_v0 }
  0xc3   :  { %18959 = vst [vmem:[#allocation25_spill] sm:$0xff] %v16159_v32 }
  0xc5   :  { %14409 = vmatpush3.bf16.msra.mxu1 %v16159_v32 }
  0xc6   :  { %14410 = vmatprep.subr.bf16.mxu1 %v18840_v0 }
 0x188   :  { %v407_v37 = vpop.f32.mrb[0].mxu1 }
 0x189   :  { %v408_v38 = vadd.f32 %v12521_v36, %v407_v37  ;;  %v13271_v40 = vpop.f32.mrb[1].mxu1  ;;  %v16174_v36 = vpop.permute.xlu0 %641 }
 0x18a   :  { %18961 = vst [vmem:[#allocation27_spill] sm:$0xff] %v16174_v36  ;;  %v16176_v37 = vpop.permute.xlu1 %651 }
 0x18b   :  { %v411_v41 = vmul.f32 0.35355338, %v408_v38  ;;  %18962 = vst [vmem:[#allocation28_spill] sm:$0xff] %v16176_v37 }
 0x18d   :  { %v413_v42 = vcombine.high %v411_v41, %v411_v41  ;;  %v420_v43 = vrot.slane %v411_v41, %v16102_v39  ;;  %v16178_v38 = vpop.permute.xlu0 %646 }
 0x18e   :  { %v16154_v25 = vpop.f32.mrb[0].mxu0  ;;  %18963 = vst [vmem:[#allocation29_spill] sm:$0xff] %v16178_v38  ;;  %v16180_v40 = vpop.permute.xlu1 %656 }
 0x18f   :  { %v427_v45 = vrot.slane %v413_v42, %v16102_v39  ;;  %v428_v46 = vcombine.high %v420_v43, %v420_v43  ;;  %v436_v47 = vrot.slane %v420_v43, %v16102_v39  ;;  %v13260_v26 = vpop.f32.mrb[1].mxu0  ;;  %18964 = vst [vmem:[#allocation30_spill] sm:$0xff] %v16180_v40 }
 0x191   :  { %v429_v48 = vcombine.high %v427_v45, %v427_v45  ;;  %v450_v49 = vrot.slane %v428_v46, %v16102_v39  ;;  %v458_v50 = vcombine.high %v436_v47, %v436_v47  ;;  %v443_v53 = vrot.slane %v427_v45, %v16102_v39 }
 0x192   :  { %v465_v54 = vrot.slane %v436_v47, %v16105_v44 }
 0x193   :  { %v460_v55 = vcombine.high %v450_v49, %v450_v49  ;;  %v469_v56 = vrot.slane %v450_v49, %v16105_v44  ;;  %v473_v58 = vrot.slane %v458_v50, %v16105_v44  ;;  %v457_v60 = vrot.slane %v429_v48, %v16102_v39 }
 0x194   :  { %v502_v59 = vmul.f32 %v465_v54, %v182_v51  ;;  %v459_v63 = vcombine.high %v443_v53, %v443_v53  ;;  %v481_v2 = vrot.slane %v443_v53, %v16105_v44  ;;  %v16189_v53 = vpop.permute.xlu1 %666 }
 0x195   :  { %v503_v61 = vmul.f32 %v469_v56, %v183_v52  ;;  %v477_v62 = vrot.slane %v460_v55, %v16105_v44  ;;  %v504_v3 = vmul.f32 %v473_v58, %v184_v57  ;;  %v461_v7 = vcombine.high %v457_v60, %v457_v60  ;;  %18965 = vst [vmem:[#allocation31_spill] sm:$0xff] %v16189_v53  ;;  %v16194_v56 = vpop.permute.xlu0 %661 }
 0x196   :  { %13280 = vmatprep.mubr.msk.f32.mxu0 %vm258_vm2, %v502_v59  ;;  %v485_v11 = vrot.slane %v457_v60, %v16105_v44  ;;  %v506_v12 = vmul.f32 %v481_v2, %v186_v6  ;;  %v489_v16 = vrot.slane %v459_v63, %v16105_v44  ;;  %18966 = vst [vmem:[#allocation32_spill] sm:$0xff] %v16194_v56 }
 0x197   :  { %13281 = vmatmul.mubr.msk.f32.vlgmr.msra.gmra.mrb[2].mxu0 %vm258_vm2, %v503_v61  ;;  %v505_v8 = vmul.f32 %v477_v62, %v185_v4  ;;  %v493_v20 = vrot.slane %v461_v7, %v16105_v44 }
 0x198   :  { %13283 = vmatprep.mubr.msk.f32.mxu0 %vm258_vm2, %v504_v3  ;;  %v507_v19 = vmul.f32 %v485_v11, %v187_v13  ;;  %v508_v21 = vmul.f32 %v489_v16, %v188_v17  ;;  %14421 = vmatpush3.bf16.msra.mxu0 %v16170_v35  ;;  %v16206_v17 = vpop.permute.xlu1 %676 }
 0x199   :  { %v509_v24 = vmul.f32 %v493_v20, %v189_v23  ;;  %14422 = vmatprep.subr.bf16.mxu0 %v18840_v0 }
 0x19b   :  { %13284 = vmatmul.mubr.msk.f32.gmra.mrb[4].mxu0 %vm258_vm2, %v505_v8 }
 0x19c   :  { %13286 = vmatprep.mubr.msk.f32.mxu0 %vm258_vm2, %v506_v12 }
 0x19f   :  { %13287 = vmatmul.mubr.msk.f32.gmra.mrb[6].mxu0 %vm258_vm2, %v507_v19 }
 0x1a0   :  { %13289 = vmatprep.mubr.msk.f32.mxu0 %vm258_vm2, %v508_v21 }
 0x1a3   :  { %13290 = vmatmul.mubr.msk.f32.gmra.mrb[8].mxu0 %vm258_vm2, %v509_v24  ;;  %v16209_v24 = vpop.permute.xlu0 %671 }
 0x1a4   :  { %13329 = vmatprep.mubr.msk.f32.mxu0 %vm15742_vm0, %v18842_v1 }
 0x26a   :  { %v13282_v41 = vpop.f32.mrb[2].mxu0 }
 0x26b   :  { %v680_v42 = vadd.f32 %v13282_v41, %v16178_v38  ;;  %v600_v43 = vpop.f32.mrb[3].mxu0 }
 0x26c   :  { %v679_v45 = vadd.f32 %v16174_v36, %v600_v43 }
 0x26d   :  { %v694_v46 = vsel %vm258_vm2, %v680_v42, -inf }
 0x26e   :  { %v695_v47 = vrot.slane %v694_v46, 4  ;;  %v687_v48 = vsel %vm258_vm2, %v679_v45, -inf  ;;  %v13285_v49 = vpop.f32.mrb[4].mxu0 }
 0x26f   :  { %v688_v50 = vrot.slane %v687_v48, 4  ;;  %v16187_v51 = vadd.f32 %v13285_v49, %v16180_v40  ;;  %v610_v52 = vpop.f32.mrb[5].mxu0 }
 0x270   :  { %v696_v54 = vmax.f32 %v694_v46, %v695_v47  ;;  %v16192_v55 = vadd.f32 %v16176_v37, %v610_v52 }
 0x271   :  { %v689_v57 = vmax.f32 %v687_v48, %v688_v50  ;;  %v708_v58 = vsel %vm258_vm2, %v16187_v51, -inf }
 0x272   :  { %v697_v59 = vrot.slane %v696_v54, 2  ;;  %v709_v60 = vrot.slane %v708_v58, 4  ;;  %v701_v61 = vsel %vm258_vm2, %v16192_v55, -inf  ;;  %v13288_v62 = vpop.f32.mrb[6].mxu0 }
 0x273   :  { %v690_v63 = vrot.slane %v689_v57, 2  ;;  %v702_v2 = vrot.slane %v701_v61, 4  ;;  %v16201_v3 = vadd.f32 %v13288_v62, %v16189_v53  ;;  %v620_v4 = vpop.f32.mrb[7].mxu0 }
 0x274   :  { %v698_v6 = vmax.f32 %v696_v54, %v697_v59  ;;  %v710_v7 = vmax.f32 %v708_v58, %v709_v60  ;;  %v683_v8 = vadd.f32 %v16194_v56, %v620_v4 }
 0x275   :  { %v691_v11 = vmax.f32 %v689_v57, %v690_v63  ;;  %v703_v12 = vmax.f32 %v701_v61, %v702_v2  ;;  %v722_v13 = vsel %vm258_vm2, %v16201_v3, -inf }
 0x276   :  { %v699_v16 = vrot.slane %v698_v6, 1  ;;  %v711_v19 = vrot.slane %v710_v7, 2  ;;  %v723_v20 = vrot.slane %v722_v13, 4  ;;  %v715_v21 = vsel %vm258_vm2, %v683_v8, -inf  ;;  %v13291_v23 = vpop.f32.mrb[8].mxu0 }
 0x277   :  { %v692_v26 = vrot.slane %v691_v11, 1  ;;  %v704_v27 = vrot.slane %v703_v12, 2  ;;  %v716_v28 = vrot.slane %v715_v21, 4  ;;  %v686_v29 = vadd.f32 %v13291_v23, %v16206_v17  ;;  %v630_v31 = vpop.f32.mrb[9].mxu0 }
 0x278   :  { %v700_v33 = vmax.f32 %v698_v6, %v699_v16  ;;  %v712_v34 = vmax.f32 %v710_v7, %v711_v19  ;;  %v724_v41 = vmax.f32 %v722_v13, %v723_v20  ;;  %v685_v43 = vadd.f32 %v16209_v24, %v630_v31 }
 0x279   :  { %v693_v46 = vmax.f32 %v691_v11, %v692_v26  ;;  %v705_v47 = vmax.f32 %v703_v12, %v704_v27  ;;  %v717_v48 = vmax.f32 %v715_v21, %v716_v28  ;;  %v736_v49 = vsel %vm258_vm2, %v686_v29, -inf }
 0x27a   :  { %v744_v50 = vsub.f32 %v680_v42, %v700_v33  ;;  %v713_v52 = vrot.slane %v712_v34, 1  ;;  %v725_v54 = vrot.slane %v724_v41, 2  ;;  %v737_v57 = vrot.slane %v736_v49, 4 }
 0x27b   :  { %v743_v58 = vsub.f32 %v679_v45, %v693_v46  ;;  %v706_v59 = vrot.slane %v705_v47, 1  ;;  %v718_v60 = vrot.slane %v717_v48, 2  ;;  %v729_v61 = vsel %vm258_vm2, %v685_v43, -inf }
 0x27c   :  { %v753_v62 = vmul.f32 1.442695, %v744_v50  ;;  %v714_v63 = vmax.f32 %v712_v34, %v713_v52  ;;  %v726_v2 = vmax.f32 %v724_v41, %v725_v54  ;;  %v738_v4 = vmax.f32 %v736_v49, %v737_v57 }
 0x27d   :  { %v751_v6 = vmul.f32 1.442695, %v743_v58  ;;  %v707_v7 = vmax.f32 %v705_v47, %v706_v59  ;;  %v719_v11 = vmax.f32 %v717_v48, %v718_v60  ;;  %v730_v12 = vrot.slane %v729_v61, 4 }
 0x27e   :  { %14989 = vpow2.f32 %v753_v62  ;;  %v746_v13 = vsub.f32 %v16187_v51, %v714_v63  ;;  %v727_v42 = vrot.slane %v726_v2, 1  ;;  %v739_v16 = vrot.slane %v738_v4, 2 }
 0x27f   :  { %14991 = vpow2.f32 %v751_v6  ;;  %v745_v45 = vsub.f32 %v16192_v55, %v707_v7  ;;  %v720_v19 = vrot.slane %v719_v11, 1  ;;  %v731_v20 = vmax.f32 %v729_v61, %v730_v12 }
 0x280   :  { %v757_v21 = vmul.f32 1.442695, %v746_v13  ;;  %v728_v23 = vmax.f32 %v726_v2, %v727_v42  ;;  %v740_v26 = vmax.f32 %v738_v4, %v739_v16 }
 0x281   :  { %v755_v27 = vmul.f32 1.442695, %v745_v45  ;;  %v721_v28 = vmax.f32 %v719_v11, %v720_v19  ;;  %v732_v31 = vrot.slane %v731_v20, 2 }
 0x282   :  { %14993 = vpow2.f32 %v757_v21  ;;  %v748_v33 = vsub.f32 %v16201_v3, %v728_v23  ;;  %v741_v34 = vrot.slane %v740_v26, 1 }
 0x283   :  { %14995 = vpow2.f32 %v755_v27  ;;  %v747_v41 = vsub.f32 %v683_v8, %v721_v28  ;;  %v733_v51 = vmax.f32 %v731_v20, %v732_v31 }
 0x284   :  { %v761_v46 = vmul.f32 1.442695, %v748_v33  ;;  %v742_v47 = vmax.f32 %v740_v26, %v741_v34 }
 0x285   :  { %v759_v48 = vmul.f32 1.442695, %v747_v41  ;;  %v734_v49 = vrot.slane %v733_v51, 1 }
 0x286   :  { %14997 = vpow2.f32 %v761_v46  ;;  %v750_v55 = vsub.f32 %v686_v29, %v742_v47 }
 0x287   :  { %14999 = vpow2.f32 %v759_v48  ;;  %v735_v50 = vmax.f32 %v733_v51, %v734_v49 }
 0x288   :  { %v16218_v52 = vpop.eup %14989  ;;  %v765_v54 = vmul.f32 1.442695, %v750_v55 }
 0x289   :  { %v16220_v57 = vpop.eup %14991  ;;  %v774_v3 = vsel %vm258_vm2, %v16218_v52, 0.0  ;;  %v749_v58 = vsub.f32 %v685_v43, %v735_v50 }
 0x28a   :  { %v775_v59 = vrot.slane %v774_v3, 4  ;;  %v767_v8 = vsel %vm258_vm2, %v16220_v57, 0.0  ;;  %15001 = vpow2.f32 %v765_v54 }
 0x28b   :  { %v768_v60 = vrot.slane %v767_v8, 4  ;;  %v763_v61 = vmul.f32 1.442695, %v749_v58 }
 0x28c   :  { %v16226_v62 = vpop.eup %14993  ;;  %v776_v29 = vadd.f32 %v775_v59, %v774_v3 }
 0x28d   :  { %v16228_v63 = vpop.eup %14995  ;;  %v769_v2 = vadd.f32 %v768_v60, %v767_v8  ;;  %v788_v4 = vsel %vm258_vm2, %v16226_v62, 0.0  ;;  %15003 = vpow2.f32 %v763_v61 }
 0x28e   :  { %v777_v6 = vrot.slane %v776_v29, 2  ;;  %v789_v7 = vrot.slane %v788_v4, 4  ;;  %v781_v43 = vsel %vm258_vm2, %v16228_v63, 0.0 }
 0x28f   :  { %v770_v11 = vrot.slane %v769_v2, 2  ;;  %v782_v12 = vrot.slane %v781_v43, 4 }
 0x290   :  { %v16234_v13 = vpop.eup %14997  ;;  %v778_v42 = vadd.f32 %v777_v6, %v776_v29  ;;  %v790_v16 = vadd.f32 %v789_v7, %v788_v4 }
 0x291   :  { %v16236_v45 = vpop.eup %14999  ;;  %v771_v19 = vadd.f32 %v770_v11, %v769_v2  ;;  %v783_v20 = vadd.f32 %v782_v12, %v781_v43  ;;  %v802_v21 = vsel %vm258_vm2, %v16234_v13, 0.0 }
 0x292   :  { %v779_v23 = vrot.slane %v778_v42, 1  ;;  %v791_v26 = vrot.slane %v790_v16, 2  ;;  %v803_v27 = vrot.slane %v802_v21, 4  ;;  %v795_v28 = vsel %vm258_vm2, %v16236_v45, 0.0 }
 0x293   :  { %v772_v31 = vrot.slane %v771_v19, 1  ;;  %v784_v33 = vrot.slane %v783_v20, 2  ;;  %v796_v34 = vrot.slane %v795_v28, 4 }
 0x294   :  { %v16242_v41 = vpop.eup %15001  ;;  %v780_v51 = vadd.f32 %v779_v23, %v778_v42  ;;  %v792_v46 = vadd.f32 %v791_v26, %v790_v16  ;;  %v804_v47 = vadd.f32 %v803_v27, %v802_v21 }
 0x295   :  { %v773_v48 = vadd.f32 %v772_v31, %v771_v19  ;;  %v785_v49 = vadd.f32 %v784_v33, %v783_v20  ;;  %v797_v55 = vadd.f32 %v796_v34, %v795_v28  ;;  %v816_v50 = vsel %vm258_vm2, %v16242_v41, 0.0  ;;  %v191_v31 = vld [vmem:[#allocation2 + $0x8] sm:$0xff] }
 0x296   :  { %15005 = vrcp.f32 %v780_v51  ;;  %v793_v54 = vrot.slane %v792_v46, 1  ;;  %v805_v3 = vrot.slane %v804_v47, 2  ;;  %v817_v58 = vrot.slane %v816_v50, 4 }
 0x297   :  { %v16246_v59 = vpop.eup %15003  ;;  %15007 = vrcp.f32 %v773_v48  ;;  %v786_v8 = vrot.slane %v785_v49, 1  ;;  %v798_v60 = vrot.slane %v797_v55, 2 }
 0x298   :  { %v794_v61 = vadd.f32 %v793_v54, %v792_v46  ;;  %v806_v29 = vadd.f32 %v805_v3, %v804_v47  ;;  %v818_v2 = vadd.f32 %v817_v58, %v816_v50  ;;  %v809_v4 = vsel %vm258_vm2, %v16246_v59, 0.0  ;;  %v190_v46 = vld [vmem:[#allocation2] sm:$0xff]  ;;  %v193_v3 = vld [vmem:[#allocation2 + $0x18] sm:$0xff] }
 0x299   :  { %v787_v6 = vadd.f32 %v786_v8, %v785_v49  ;;  %v799_v7 = vadd.f32 %v798_v60, %v797_v55  ;;  %v810_v43 = vrot.slane %v809_v4, 4 }
 0x29a   :  { %15009 = vrcp.f32 %v794_v61  ;;  %v807_v11 = vrot.slane %v806_v29, 1  ;;  %v819_v12 = vrot.slane %v818_v2, 2  ;;  %v192_v61 = vld [vmem:[#allocation2 + $0x10] sm:$0xff] }
 0x29b   :  { %15011 = vrcp.f32 %v787_v6  ;;  %v800_v42 = vrot.slane %v799_v7, 1  ;;  %v811_v16 = vadd.f32 %v810_v43, %v809_v4 }
 0x29c   :  { %v808_v19 = vadd.f32 %v807_v11, %v806_v29  ;;  %v820_v20 = vadd.f32 %v819_v12, %v818_v2  ;;  %v195_v11 = vld [vmem:[#allocation2 + $0x28] sm:$0xff] }
 0x29d   :  { %v801_v21 = vadd.f32 %v800_v42, %v799_v7  ;;  %v812_v23 = vrot.slane %v811_v16, 2 }
 0x29e   :  { %15013 = vrcp.f32 %v808_v19  ;;  %v821_v26 = vrot.slane %v820_v20, 1 }
 0x29f   :  { %15015 = vrcp.f32 %v801_v21  ;;  %v813_v27 = vadd.f32 %v812_v23, %v811_v16 }
 0x2a0   :  { %v15006_v28 = vpop.eup %15005  ;;  %v822_v33 = vadd.f32 %v821_v26, %v820_v20 }
 0x2a1   :  { %v15008_v34 = vpop.eup %15007  ;;  %v826_v51 = vmul.f32 %v15006_v28, %v16218_v52  ;;  %v814_v47 = vrot.slane %v813_v27, 1 }
 0x2a2   :  { %v824_v48 = vmul.f32 %v15008_v34, %v16220_v57  ;;  %15017 = vrcp.f32 %v822_v33 }
 0x2a3   :  { %v840_v49 = vmul.f32 %v826_v51, %v191_v31  ;;  %v815_v55 = vadd.f32 %v814_v47, %v813_v27 }
 0x2a4   :  { %v15010_v50 = vpop.eup %15009  ;;  %v839_v54 = vmul.f32 %v824_v48, %v190_v46  ;;  %v197_v46 = vld [vmem:[#allocation2 + $0x38] sm:$0xff] }
 0x2a5   :  { %v15012_v58 = vpop.eup %15011  ;;  %v854_v8 = vsel %vm258_vm2, %v840_v49, 0.0  ;;  %v830_v60 = vmul.f32 %v15010_v50, %v16226_v62  ;;  %15019 = vrcp.f32 %v815_v55  ;;  %v194_v62 = vld [vmem:[#allocation2 + $0x20] sm:$0xff] }
 0x2a6   :  { %v855_v29 = vrot.slane %v854_v8, 4  ;;  %v847_v52 = vsel %vm258_vm2, %v839_v54, 0.0  ;;  %v828_v2 = vmul.f32 %v15012_v58, %v16228_v63 }
 0x2a7   :  { %v848_v4 = vrot.slane %v847_v52, 4  ;;  %v842_v57 = vmul.f32 %v830_v60, %v193_v3 }
 0x2a8   :  { %v15014_v6 = vpop.eup %15013  ;;  %v856_v7 = vadd.f32 %v855_v29, %v854_v8  ;;  %v841_v43 = vmul.f32 %v828_v2, %v192_v61  ;;  %v196_v29 = vld [vmem:[#allocation2 + $0x30] sm:$0xff] }
 0x2a9   :  { %v15016_v12 = vpop.eup %15015  ;;  %v849_v42 = vadd.f32 %v848_v4, %v847_v52  ;;  %v868_v16 = vsel %vm258_vm2, %v842_v57, 0.0  ;;  %v834_v19 = vmul.f32 %v15014_v6, %v16234_v13 }
 0x2aa   :  { %v857_v20 = vrot.slane %v856_v7, 2  ;;  %v869_v21 = vrot.slane %v868_v16, 4  ;;  %v861_v23 = vsel %vm258_vm2, %v841_v43, 0.0  ;;  %v832_v26 = vmul.f32 %v15016_v12, %v16236_v45 }
 0x2ab   :  { %v850_v63 = vrot.slane %v849_v42, 2  ;;  %v862_v27 = vrot.slane %v861_v23, 4  ;;  %v844_v28 = vmul.f32 %v834_v19, %v195_v11 }
 0x2ac   :  { %v15018_v31 = vpop.eup %15017  ;;  %v858_v33 = vadd.f32 %v857_v20, %v856_v7  ;;  %v870_v34 = vadd.f32 %v869_v21, %v868_v16  ;;  %v843_v51 = vmul.f32 %v832_v26, %v194_v62 }
 0x2ad   :  { %v851_v47 = vadd.f32 %v850_v63, %v849_v42  ;;  %v863_v48 = vadd.f32 %v862_v27, %v861_v23  ;;  %v882_v13 = vsel %vm258_vm2, %v844_v28, 0.0  ;;  %v838_v49 = vmul.f32 %v15018_v31, %v16242_v41 }
 0x2ae   :  { %v859_v55 = vrot.slane %v858_v33, 1  ;;  %v871_v50 = vrot.slane %v870_v34, 2  ;;  %v883_v54 = vrot.slane %v882_v13, 4  ;;  %v875_v45 = vsel %vm258_vm2, %v843_v51, 0.0 }
 0x2af   :  { %v15020_v3 = vpop.eup %15019  ;;  %v852_v58 = vrot.slane %v851_v47, 1  ;;  %v864_v8 = vrot.slane %v863_v48, 2  ;;  %v876_v60 = vrot.slane %v875_v45, 4  ;;  %v846_v61 = vmul.f32 %v838_v49, %v197_v46 }
 0x2b0   :  { %v860_v52 = vadd.f32 %v859_v55, %v858_v33  ;;  %v836_v2 = vmul.f32 %v15020_v3, %v16246_v59  ;;  %v872_v4 = vadd.f32 %v871_v50, %v870_v34  ;;  %v884_v57 = vadd.f32 %v883_v54, %v882_v13 }
 0x2b1   :  { %v853_v6 = vadd.f32 %v852_v58, %v851_v47  ;;  %v865_v7 = vadd.f32 %v864_v8, %v863_v48  ;;  %v877_v43 = vadd.f32 %v876_v60, %v875_v45  ;;  %v896_v41 = vsel %vm258_vm2, %v846_v61, 0.0  ;;  %v226_v8 = vld [vmem:[#allocation9] sm:$0xff]  ;;  %v227_v60 = vld [vmem:[#allocation9 + $0x8] sm:$0xff] }
 0x2b2   :  { %v845_v11 = vmul.f32 %v836_v2, %v196_v29  ;;  %v873_v12 = vrot.slane %v872_v4, 1  ;;  %v885_v42 = vrot.slane %v884_v57, 2  ;;  %v897_v16 = vrot.slane %v896_v41, 4 }
 0x2b3   :  { %v866_v19 = vrot.slane %v865_v7, 1  ;;  %v878_v62 = vrot.slane %v877_v43, 2  ;;  %v918_v20 = vsel %vm917_vm3, %v860_v52, %v853_v6  ;;  %v16271_v52 = vpack.c.bf16 %v227_v60, %v226_v8 }
 0x2b4   :  { %v886_v21 = vadd.f32 %v885_v42, %v884_v57  ;;  %v889_v23 = vsel %vm258_vm2, %v845_v11, 0.0  ;;  %v898_v26 = vadd.f32 %v897_v16, %v896_v41  ;;  %v874_v28 = vadd.f32 %v873_v12, %v872_v4  ;;  %v228_v4 = vld [vmem:[#allocation9 + $0x10] sm:$0xff]  ;;  %v229_v57 = vld [vmem:[#allocation9 + $0x18] sm:$0xff]  ;;  %v233_v41 = vld [vmem:[%s18827_s11 + $0x18] sm:$0xff] }
 0x2b5   :  { %v867_v59 = vadd.f32 %v866_v19, %v865_v7  ;;  %v879_v63 = vadd.f32 %v878_v62, %v877_v43  ;;  %v890_v27 = vrot.slane %v889_v23, 4  ;;  %v16277_v7 = vpack.c.bf16 %v229_v57, %v228_v4  ;;  %v232_v43 = vld [vmem:[%s18827_s11 + $0x10] sm:$0xff]  ;;  %v224_v12 = vld [vmem:[#allocation7] sm:$0xff]  ;;  %v16297_v16 = vld [vmem:[#allocation6] ss:$0 sm:$0xff] }
 0x2b6   :  { %v887_v31 = vrot.slane %v886_v21, 1  ;;  %v899_v33 = vrot.slane %v898_v26, 2  ;;  %v16290_v11 = vpack.c.bf16 %v233_v41, %v232_v43  ;;  %v225_v42 = vld [vmem:[#allocation7 + $0x8] sm:$0xff] }
 0x2b7   :  { %v880_v34 = vrot.slane %v879_v63, 1  ;;  %v891_v51 = vadd.f32 %v890_v27, %v889_v23  ;;  %v920_v46 = vsel %vm919_vm4, %v867_v59, %v918_v20  ;;  %v16299_v62 = vpack.c.bf16 %v225_v42, %v224_v12  ;;  %v239_v23 = vld [vmem:[#allocation12] sm:$0xff]  ;;  %v242_v27 = vld [vmem:[#allocation12 + $0x18] sm:$0xff] }
 0x2b8   :  { %v900_v47 = vadd.f32 %v899_v33, %v898_v26  ;;  %v922_v48 = vsel %vm921_vm5, %v874_v28, %v920_v46  ;;  %v888_v55 = vadd.f32 %v887_v31, %v886_v21  ;;  %18967 = vst [vmem:[#allocation33_spill] sm:$0xff] %v16290_v11  ;;  %14424 = vmatpush3.bf16.msra.mxu0 %v16290_v11  ;;  %v240_v26 = vld [vmem:[#allocation12 + $0x8] sm:$0xff]  ;;  %v248_v31 = vld [vmem:[#allocation15] sm:$0xff]  ;;  %v251_v46 = vld [vmem:[#allocation15 + $0x18] sm:$0xff] }
 0x2b9   :  { %v881_v13 = vadd.f32 %v880_v34, %v879_v63  ;;  %v892_v49 = vrot.slane %v891_v51, 2  ;;  %14431 = vmatprep.subr.bf16.mxu0 %v18840_v0  ;;  %v16306_v59 = vpack.c.bf16 %v240_v26, %v239_v23  ;;  %v241_v63 = vld [vmem:[#allocation12 + $0x10] sm:$0xff]  ;;  %v249_v33 = vld [vmem:[#allocation15 + $0x8] sm:$0xff] }
 0x2ba   :  { %v901_v45 = vrot.slane %v900_v47, 1  ;;  %v16312_v28 = vpack.c.bf16 %v242_v27, %v241_v63  ;;  %v16318_v34 = vpack.c.bf16 %v249_v33, %v248_v31  ;;  %v236_v23 = vld [vmem:[#allocation10 + $0x8] sm:$0xff]  ;;  %v237_v26 = vld [vmem:[#allocation10 + $0x10] sm:$0xff]  ;;  %v238_v27 = vld [vmem:[#allocation10 + $0x18] sm:$0xff] }
 0x2bb   :  { %v893_v50 = vadd.f32 %v892_v49, %v891_v51  ;;  %v924_v54 = vsel %vm923_vm6, %v881_v13, %v922_v48  ;;  %13330 = vmatmul.mubr.f32.vlgmr.msra.gmra.mrb[10].mxu0 %v18842_v1  ;;  %v250_v51 = vld [vmem:[#allocation15 + $0x10] sm:$0xff]  ;;  %v16353_v31 = vpack.c.bf16 %v238_v27, %v237_v26 }
 0x2bc   :  { %v926_v3 = vsel %vm925_vm7, %v888_v55, %v924_v54  ;;  %v902_v29 = vadd.f32 %v901_v45, %v900_v47  ;;  %13351 = vmatprep.mubr.msk.f32.mxu0 %vm15742_vm0, %v18842_v1  ;;  %v16340_v45 = vld [vmem:[%s18828_s12] ss:$0 sm:$0xff] }
 0x2bd   :  { %v894_v58 = vrot.slane %v893_v50, 1  ;;  %18969 = vst [vmem:[#allocation35_spill] sm:$0xff] %v16353_v31 }
 0x2bf   :  { %v895_v61 = vadd.f32 %v894_v58, %v893_v50 }
 0x2c1   :  { %v928_v2 = vsel %vm927_vm8, %v895_v61, %v926_v3 }
 0x2c2   :  { %v930_v6 = vsel %vm929_vm9, %v902_v29, %v928_v2 }
 0x2c3   :  { %13301 = vmatmul.mubr.msk.f32.vlgmr.msra.gmra.mrb[2].mxu1 %vm258_vm2, %v930_v6 }
 0x2c4   :  { %14412 = vmatpush3.bf16.msra.mxu1 %v16271_v52  ;;  %13311 = vmatprep.mubr.msk.f32.mxu1 %vm15742_vm0, %v18842_v1 }
 0x2c5   :  { %14413 = vmatprep.subr.bf16.mxu1 %v18840_v0 }
 0x2c8   :  { %14415 = vmatpush3.bf16.msra.mxu1 %v16277_v7 }
 0x2c9   :  { %14416 = vmatprep.subr.bf16.mxu1 %v18840_v0 }
 0x38e   :  { %v1216_v47 = vpop.f32.mrb[10].mxu0 }
 0x38f   :  { %v13331_v48 = vpop.f32.mrb[11].mxu0 }
 0x390   :  { %v16369_v48 = vld [vmem:[%s18831_s15] ss:$0 sm:$0xff] }
 0x396   :  { %v999_v19 = vpop.f32.mrb[2].mxu1 }
 0x397   :  { %v1000_v20 = vadd.f32 %v16297_v16, %v999_v19  ;;  %v13302_v21 = vpop.f32.mrb[3].mxu1 }
 0x398   :  { %v235_v21 = vld [vmem:[#allocation10] sm:$0xff] }
 0x399   :  { %13312 = vmatmul.mubr.msk.f32.vlgmr.msra.gmra.mrb[4].mxu1 %vm258_vm2, %v1000_v20  ;;  %v16350_v63 = vpack.c.bf16 %v236_v23, %v235_v21 }
 0x39a   :  { %14418 = vmatpush3.bf16.msra.mxu1 %v16299_v62  ;;  %13318 = vmatprep.mubr.msk.f32.mxu1 %vm15742_vm0, %v18842_v1 }
 0x39b   :  { %14425 = vmatprep.subr.bf16.mxu1 %v18840_v0  ;;  %18968 = vst [vmem:[#allocation34_spill] sm:$0xff] %v16350_v63  ;;  %14433 = vmatpush3.bf16.msra.mxu0 %v16350_v63 }
 0x39c   :  { %14434 = vmatprep.subr.bf16.mxu0 %v18840_v0 }
 0x39d   :  { %13319 = vmatmul.mubr.msk.f32.vlgmr.msra.gmra.mrb[6].mxu1 %vm1076_vm10, %v16154_v25  ;;  %v16323_v25 = vpack.c.bf16 %v251_v46, %v250_v51 }
 0x39e   :  { %14427 = vmatpush3.bf16.msra.mxu1 %v16306_v59  ;;  %13340 = vmatprep.mubr.msk.f32.mxu1 %vm15742_vm0, %v18842_v1 }
 0x39f   :  { %14428 = vmatprep.subr.bf16.mxu1 %v18840_v0  ;;  %14436 = vmatpush3.bf16.msra.mxu0 %v16353_v31 }
 0x3a0   :  { %14443 = vmatprep.subr.bf16.mxu0 %v18840_v0 }
 0x3a2   :  { %14430 = vmatpush3.bf16.msra.mxu1 %v16312_v28 }
 0x3a3   :  { %14437 = vmatprep.subr.bf16.mxu1 %v18840_v0 }
 0x3a5   :  { %13341 = vmatmul.mubr.f32.vlgmr.msra.gmra.mrb[8].mxu1 %v18842_v1 }
 0x3a6   :  { %14439 = vmatpush3.bf16.msra.mxu1 %v16318_v34  ;;  %13362 = vmatprep.mubr.msk.f32.mxu1 %vm15742_vm0, %v18842_v1 }
 0x3a7   :  { %14440 = vmatprep.subr.bf16.mxu1 %v18840_v0 }
 0x3aa   :  { %14442 = vmatpush3.bf16.msra.mxu1 %v16323_v25 }
 0x3ab   :  { %14449 = vmatprep.subr.bf16.mxu1 %v18840_v0 }
 0x3ad   :  { %13363 = vmatmul.mubr.msk.f32.vlgmr.msra.gmra.mrb[10].mxu1 %vm258_vm2, %v1000_v20 }
 0x3ae   :  { %14451 = vmatpush3.bf16.msra.mxu1 %v16027_v9  ;;  %13384 = vmatprep.mubr.msk.f32.mxu1 %vm15742_vm0, %v18842_v1 }
 0x3af   :  { %14452 = vmatprep.subr.bf16.mxu1 %v18840_v0 }
 0x3b2   :  { %14454 = vmatpush3.bf16.msra.mxu1 %v16046_v14 }
 0x3b3   :  { %14462 = vmatprep.subr.bf16.mxu1 %v16058_v18 }
 0x46c   :  { %v1072_v13 = vpop.f32.mrb[4].mxu1 }
 0x46d   :  { %v13313_v49 = vpop.f32.mrb[5].mxu1 }
 0x470   :  { %v1146_v55 = vpop.f32.mrb[6].mxu1 }
 0x471   :  { %v1147_v50 = vadd.f32 %v1146_v55, %v1072_v13  ;;  %v13320_v54 = vpop.f32.mrb[7].mxu1 }
 0x473   :  { %v1220_v3 = vadd.f32 %v1216_v47, %v1147_v50 }
 0x475   :  { %v1227_v58 = vadd.f32 %v16340_v45, %v1220_v3 }
 0x477   :  { %15021 = vtanh.f32 %v1227_v58  ;;  %v12535_v4 = vmul.f32 -1.442695, %v1227_v58 }
 0x478   :  { %v1318_v8 = vpop.f32.mrb[8].mxu1 }
 0x479   :  { %v13342_v60 = vpop.f32.mrb[9].mxu1  ;;  %15023 = vpow2.f32 %v12535_v4 }
 0x480   :  { %v16343_v61 = vpop.f32.mrb[10].mxu1 }
 0x481   :  { %v15022_v29 = vpop.eup %15021  ;;  %v13364_v2 = vpop.f32.mrb[11].mxu1 }
 0x482   :  { %1237 = vrot.lane.b32.xlu0 %v15022_v29, %s15746_s1 }
 0x483   :  { %v15024_v57 = vpop.eup %15023 }
 0x484   :  { %v1231_v6 = vadd.f32 1.0, %v15024_v57 }
 0x486   :  { %15025 = vrcp.f32 %v1231_v6 }
 0x490   :  { %v15026_v43 = vpop.eup %15025 }
 0x491   :  { %v1235_v42 = vmul.f32 0.0, %v15026_v43 }
 0x4f4   :  { %v1238_v41 = vpop.permute.xlu0 %1237 }
 0x4f5   :  { %v1240_v12 = vmul.f32 %v15026_v43, %v1238_v41  ;;  %v245_v41 = vld [vmem:[#allocation13 + $0x8] sm:$0xff] }
 0x4f7   :  { %1242 = vrot.lane.b32.xlu1 %v1240_v12, %s15747_s14  ;;  %v246_v12 = vld [vmem:[#allocation13 + $0x10] sm:$0xff] }
 0x569   :  { %v1243_v19 = vpop.permute.xlu1 %1242 }
 0x56a   :  { %v16347_v20 = vadd.f32 %v1243_v19, %v1235_v42  ;;  %v247_v19 = vld [vmem:[#allocation13 + $0x18] sm:$0xff] }
 0x56b   :  { %v16380_v21 = vpack.c.bf16 %v247_v19, %v246_v12 }
 0x56c   :  { %15027 = vtanh.f32 %v16347_v20 }
 0x576   :  { %v15028_v33 = vpop.eup %15027 }
 0x577   :  { %1248 = vrot.lane.b32.xlu0 %v15028_v33, %s15746_s1 }
 0x5e9   :  { %v1249_v51 = vpop.permute.xlu0 %1248 }
 0x5ea   :  { %v1251_v46 = vmul.f32 %v15026_v43, %v1249_v51  ;;  %v244_v43 = vld [vmem:[#allocation13] sm:$0xff]  ;;  %v16408_v51 = vld [vmem:[%s18834_s18] ss:$0 sm:$0xff] }
 0x5eb   :  { %v16377_v42 = vpack.c.bf16 %v245_v41, %v244_v43  ;;  %v16422_v41 = vld [vmem:[%s18821_s5] ss:$0 sm:$0xff] }
 0x5ec   :  { %1323 = vrot.lane.b32.xlu1 %v1251_v46, %s15747_s14 }
 0x65e   :  { %v16360_v47 = vpop.permute.xlu1 %1323 }
 0x65f   :  { %13352 = vmatmul.mubr.msk.f32.vlgmr.msra.gmra.mrb[12].mxu0 %vm258_vm2, %v16360_v47 }
 0x660   :  { %13373 = vmatprep.mubr.msk.f32.mxu0 %vm15742_vm0, %v18842_v1  ;;  %14445 = vmatpush3.bf16.msra.mxu0 %v16377_v42 }
 0x661   :  { %14446 = vmatprep.subr.bf16.mxu0 %v18840_v0 }
 0x664   :  { %14448 = vmatpush3.bf16.msra.mxu0 %v16380_v21 }
 0x665   :  { %14455 = vmatprep.subr.bf16.mxu0 %v18840_v0 }
 0x732   :  { %v1393_v13 = vpop.f32.mrb[12].mxu0 }
 0x733   :  { %v1394_v49 = vadd.f32 %v1393_v13, %v1318_v8  ;;  %v13353_v55 = vpop.f32.mrb[13].mxu0 }
 0x735   :  { %v1403_v50 = vadd.f32 %v16369_v48, %v1394_v49 }
 0x737   :  { %15029 = vtanh.f32 %v1403_v50  ;;  %v12538_v3 = vmul.f32 -1.442695, %v1403_v50 }
 0x739   :  { %15031 = vpow2.f32 %v12538_v3 }
 0x741   :  { %v15030_v54 = vpop.eup %15029 }
 0x742   :  { %1413 = vrot.lane.b32.xlu0 %v15030_v54, %s15746_s1 }
 0x743   :  { %v15032_v58 = vpop.eup %15031 }
 0x744   :  { %v1407_v60 = vadd.f32 1.0, %v15032_v58 }
 0x746   :  { %15033 = vrcp.f32 %v1407_v60 }
 0x750   :  { %v15034_v29 = vpop.eup %15033 }
 0x751   :  { %v1411_v57 = vmul.f32 0.0, %v15034_v29 }
 0x7b4   :  { %v1414_v2 = vpop.permute.xlu0 %1413 }
 0x7b5   :  { %v1416_v4 = vmul.f32 %v15034_v29, %v1414_v2 }
 0x7b7   :  { %1418 = vrot.lane.b32.xlu1 %v1416_v4, %s15747_s14 }
 0x829   :  { %v1419_v6 = vpop.permute.xlu1 %1418 }
 0x82a   :  { %v16374_v8 = vadd.f32 %v1419_v6, %v1411_v57 }
 0x82c   :  { %15035 = vtanh.f32 %v16374_v8 }
 0x836   :  { %v15036_v23 = vpop.eup %15035 }
 0x837   :  { %1424 = vrot.lane.b32.xlu0 %v15036_v23, %s15746_s1 }
 0x8a9   :  { %v1425_v26 = vpop.permute.xlu0 %1424 }
 0x8aa   :  { %v1427_v27 = vmul.f32 %v15034_v29, %v1425_v26 }
 0x8ac   :  { %1499 = vrot.lane.b32.xlu1 %v1427_v27, %s15747_s14 }
 0x91e   :  { %v16387_v33 = vpop.permute.xlu1 %1499 }
 0x91f   :  { %13374 = vmatmul.mubr.msk.f32.vlgmr.msra.gmra.mrb[14].mxu0 %vm258_vm2, %v16387_v33 }
 0x920   :  { %14457 = vmatpush3.bf16.msra.mxu0 %v16016_v5  ;;  %13395 = vmatprep.mubr.msk.f32.mxu0 %vm15742_vm0, %v18842_v1 }
 0x921   :  { %14458 = vmatprep.subr.bf16.mxu0 %v18840_v0 }
 0x924   :  { %14460 = vmatpush3.bf16.msra.mxu0 %v16030_v10 }
 0x925   :  { %14469 = vmatprep.subr.bf16.mxu0 %v18840_v0 }
 0x927   :  { %13396 = vmatmul.mubr.msk.f32.vlgmr.msra.gmra.mrb[16].mxu0 %vm258_vm2, %v16387_v33 }
 0x928   :  { %14471 = vmatpush3.bf16.msra.mxu0 %v16156_v30  ;;  %13426 = vmatprep.mubr.msk.f32.mxu0 %vm15742_vm0, %v18842_v1 }
 0x929   :  { %14472 = vmatprep.subr.bf16.mxu0 %v18840_v0 }
 0x92c   :  { %14474 = vmatpush3.bf16.msra.mxu0 %v16159_v32 }
 0x92d   :  { %14475 = vmatprep.subr.bf16.mxu0 %v18840_v0 }
 0x9f2   :  { %v1569_v46 = vpop.f32.mrb[14].mxu0 }
 0x9f3   :  { %v1570_v13 = vadd.f32 %v1569_v46, %v16343_v61  ;;  %v13375_v49 = vpop.f32.mrb[15].mxu0 }
 0x9f5   :  { %v16412_v55 = vadd.f32 %v16408_v51, %v1570_v13 }
 0x9f7   :  { %18970 = vst [vmem:[#allocation36_spill] sm:$0xff] %v16412_v55  ;;  %v1580_v50 = vsel %vm258_vm2, %v16412_v55, -inf }
 0x9f8   :  { %1581 = vmax.xlane.f32.xlu0 %v1580_v50 }
 0x9fa   :  { %v1742_v54 = vpop.f32.mrb[16].mxu0 }
 0x9fb   :  { %v13397_v3 = vpop.f32.mrb[17].mxu0  ;;  %v1743_v12 = vadd.f32 %v16422_v41, %v1742_v54 }
 0x9fd   :  { %v1746_v19 = vmul.f32 0.35355338, %v1743_v12 }
 0x9ff   :  { %v1755_v23 = vrot.slane %v1746_v19, %v16102_v39  ;;  %v1748_v13 = vcombine.high %v1746_v19, %v1746_v19 }
 0xa01   :  { %v1771_v27 = vrot.slane %v1755_v23, %v16102_v39  ;;  %v1763_v49 = vcombine.high %v1755_v23, %v1755_v23 }
 0xa03   :  { %v1793_v54 = vcombine.high %v1771_v27, %v1771_v27 }
 0xa05   :  { %v1808_v23 = vrot.slane %v1793_v54, %v16105_v44 }
 0xa85   :  { %v1582_v58 = vpop.xlane.xlu0 %1581 }
 0xa86   :  { %vm1583_vm11 = vcmp.ge.f32.partialorder %v16412_v55, %v1582_v58  ;;  %v1800_v58 = vrot.slane %v1771_v27, %v16105_v44  ;;  %v16450_v27 = vld [vmem:[%s18958_s22 + $0x8] sm:$0xff] }
 0xa87   :  { %v1584_v60 = vsel %vm1583_vm11, %v16048_v15, 32  ;;  %18972 = vst [vmem:[#allocation38_spill] sm:$0xff] %v16450_v27 }
 0xa88   :  { %v1585_v29 = vsel %vm258_vm2, %v1584_v60, 2147483647 }
 0xa89   :  { %v1587_v2 = vshra.s32 %v1585_v29, 16  ;;  %v1586_v61 = vand.u32 65535, %v1585_v29  ;;  %v1762_v29 = vrot.slane %v1748_v13, %v16102_v39 }
 0xa8b   :  { %v1589_v4 = vcvt.s32.f32 %v1587_v2  ;;  %v1588_v6 = vcvt.s32.f32 %v1586_v61  ;;  %v1785_v2 = vrot.slane %v1763_v49, %v16102_v39  ;;  %v16435_v61 = vld [vmem:[%s18958_s22] sm:$0xff]  ;;  %v1778_v19 = vrot.slane %v1762_v29, %v16102_v39 }
 0xa8c   :  { %18971 = vst [vmem:[#allocation37_spill] sm:$0xff] %v16435_v61 }
 0xa8d   :  { %1590 = vmin.xlane.f32.xlu1 %v1589_v4  ;;  %v1804_v12 = vrot.slane %v1785_v2, %v16105_v44  ;;  %v1794_v49 = vcombine.high %v1778_v19, %v1778_v19 }
 0xb1a   :  { %v1591_v57 = vpop.xlane.xlu1 %1590 }
 0xb1b   :  { %vm1592_vm12 = vcmp.eq.f32.partialorder %v1589_v4, %v1591_v57  ;;  %v1597_v26 = vcvt.f32.s32 %v1591_v57  ;;  %v1837_v57 = vmul.f32 %v16435_v61, %v1800_v58 }
 0xb1c   :  { %v1593_v43 = vsel %vm1592_vm12, %v1588_v6, inf  ;;  %v1764_v6 = vcombine.high %v1762_v29, %v1762_v29  ;;  %v16468_v29 = vld [vmem:[%s18958_s22 + $0x18] sm:$0xff] }
 0xb1d   :  { %1594 = vmin.xlane.f32.xlu0 %v1593_v43  ;;  %v1598_v50 = vshll.u32 %v1597_v26, 16  ;;  %v1795_v43 = vcombine.high %v1785_v2, %v1785_v2  ;;  %18974 = vst [vmem:[#allocation40_spill] sm:$0xff] %v16468_v29 }
 0xb1e   :  { %v1792_v26 = vrot.slane %v1764_v6, %v16102_v39  ;;  %v1824_v6 = vrot.slane %v1794_v49, %v16105_v44 }
 0xb1f   :  { %v1812_v13 = vrot.slane %v1795_v43, %v16105_v44  ;;  %v16486_v43 = vld [vmem:[%s18958_s22 + $0x28] sm:$0xff] }
 0xb20   :  { %v1820_v54 = vrot.slane %v1792_v26, %v16105_v44  ;;  %18976 = vst [vmem:[#allocation42_spill] sm:$0xff] %v16486_v43 }
 0xb21   :  { %v1840_v2 = vmul.f32 %v16468_v29, %v1812_v13 }
 0xbaa   :  { %v1595_v46 = vpop.xlane.xlu0 %1594 }
 0xbab   :  { %v1596_v3 = vcvt.f32.s32 %v1595_v46  ;;  %v1838_v46 = vmul.f32 %v16450_v27, %v1804_v12  ;;  %v1842_v12 = vmul.f32 %v16486_v43, %v1820_v54 }
 0xbad   :  { %v1599_v60 = vadd.s32 %v1598_v50, %v1596_v3  ;;  %v1816_v50 = vrot.slane %v1778_v19, %v16105_v44  ;;  %v16459_v3 = vld [vmem:[%s18958_s22 + $0x10] sm:$0xff] }
 0xbae   :  { %18973 = vst [vmem:[#allocation39_spill] sm:$0xff] %v16459_v3  ;;  %v1839_v58 = vmul.f32 %v16459_v3, %v1808_v23  ;;  %v16494_v23 = vld [vmem:[%s18958_s22 + $0x30] sm:$0xff] }
 0xbaf   :  { %vm1600_vm13 = vcmp.eq.s32.totalorder %v16048_v15, %v1599_v60  ;;  %v1796_v60 = vcombine.high %v1792_v26, %v1792_v26  ;;  %18977 = vst [vmem:[#allocation43_spill] sm:$0xff] %v16494_v23  ;;  %v1843_v26 = vmul.f32 %v16494_v23, %v1824_v6 }
 0xbb0   :  { %v12542_v4 = vsel %vm1600_vm13, 1.0, %v18842_v1 }
 0xbb1   :  { %13385 = vmatmul.mubr.msk.f32.vlgmr.msra.gmra.mrb[12].mxu1 %vm258_vm2, %v12542_v4  ;;  %v16476_v4 = vld [vmem:[%s18958_s22 + $0x20] sm:$0xff]  ;;  %v1828_v19 = vrot.slane %v1796_v60, %v16105_v44 }
 0xbb2   :  { %14464 = vmatpush3.bf16.msra.mxu1 %v16058_v18  ;;  %13406 = vmatprep.mubr.msk.f32.mxu1 %vm258_vm2, %v1837_v57  ;;  %18975 = vst [vmem:[#allocation41_spill] sm:$0xff] %v16476_v4  ;;  %v1841_v57 = vmul.f32 %v16476_v4, %v1816_v50 }
 0xbb3   :  { %14466 = vmatprep.subr.bf16.mxu1 %v16070_v22 }
 0xbb6   :  { %14468 = vmatpush3.bf16.msra.mxu1 %v16070_v22 }
 0xbb7   :  { %14484 = vmatprep.subr.bf16.mxu1 %v18840_v0 }
 0xbb9   :  { %13407 = vmatmul.mubr.msk.f32.vlgmr.msra.gmra.mrb[14].mxu1 %vm258_vm2, %v1838_v46  ;;  %v16502_v46 = vld [vmem:[%s18958_s22 + $0x38] sm:$0xff] }
 0xbba   :  { %13409 = vmatprep.mubr.msk.f32.mxu1 %vm258_vm2, %v1839_v58  ;;  %14486 = vmatpush3.bf16.msra.mxu1 %v16170_v35  ;;  %18978 = vst [vmem:[#allocation44_spill] sm:$0xff] %v16502_v46  ;;  %v1844_v13 = vmul.f32 %v16502_v46, %v1828_v19 }
 0xbbb   :  { %14487 = vmatprep.subr.bf16.mxu1 %v18840_v0 }
 0xbbd   :  { %13410 = vmatmul.mubr.msk.f32.gmra.mrb[16].mxu1 %vm258_vm2, %v1840_v2 }
 0xbbe   :  { %13412 = vmatprep.mubr.msk.f32.mxu1 %vm258_vm2, %v1841_v57  ;;  %14489 = vmatpush3.bf16.msra.mxu1 %v16290_v11 }
 0xbbf   :  { %14496 = vmatprep.subr.bf16.mxu1 %v18840_v0 }
 0xbc1   :  { %13413 = vmatmul.mubr.msk.f32.gmra.mrb[18].mxu1 %vm258_vm2, %v1842_v12 }
 0xbc2   :  { %13415 = vmatprep.mubr.msk.f32.mxu1 %vm258_vm2, %v1843_v26 }
 0xbc5   :  { %13416 = vmatmul.mubr.msk.f32.gmra.mrb[20].mxu1 %vm258_vm2, %v1844_v13 }
 0xbc6   :  { %13455 = vmatprep.mubr.msk.f32.mxu1 %vm15742_vm0, %v18842_v1 }
 0xbc9   :  { %13456 = vmatmul.mubr.msk.f32.vlgmr.msra.gmra.mrb[22].mxu1 %vm258_vm2, %v16360_v47 }
 0xbca   :  { %14498 = vmatpush3.bf16.msra.mxu1 %v16350_v63  ;;  %13477 = vmatprep.mubr.msk.f32.mxu1 %vm15742_vm0, %v18842_v1 }
 0xbcb   :  { %14499 = vmatprep.subr.bf16.mxu1 %v18840_v0 }
 0xbce   :  { %14501 = vmatpush3.bf16.msra.mxu1 %v16353_v31 }
 0xbcf   :  { %14508 = vmatprep.subr.bf16.mxu1 %v18840_v0 }
 0xc84   :  { %v16516_v49 = vpop.f32.mrb[12].mxu1 }
 0xc85   :  { %v13386_v50 = vpop.f32.mrb[13].mxu1 }
 0xc8c   :  { %v13408_v58 = vpop.f32.mrb[14].mxu1 }
 0xc8d   :  { %v1975_v60 = vadd.f32 %v13408_v58, %v16178_v38  ;;  %v1935_v2 = vpop.f32.mrb[15].mxu1 }
 0xc8e   :  { %v1974_v47 = vadd.f32 %v1935_v2, %v16174_v36 }
 0xc8f   :  { %v1989_v54 = vsel %vm258_vm2, %v1975_v60, -inf }
 0xc90   :  { %v1990_v57 = vrot.slane %v1989_v54, 4  ;;  %v1982_v6 = vsel %vm258_vm2, %v1974_v47, -inf  ;;  %v13411_v12 = vpop.f32.mrb[16].mxu1 }
 0xc91   :  { %v1983_v19 = vrot.slane %v1982_v6, 4  ;;  %v16523_v26 = vadd.f32 %v13411_v12, %v16180_v40  ;;  %v1945_v13 = vpop.f32.mrb[17].mxu1 }
 0xc92   :  { %v1991_v0 = vmax.f32 %v1989_v54, %v1990_v57  ;;  %v16526_v50 = vadd.f32 %v1945_v13, %v16176_v37 }
 0xc93   :  { %v1984_v1 = vmax.f32 %v1982_v6, %v1983_v19  ;;  %v2003_v58 = vsel %vm258_vm2, %v16523_v26, -inf }
 0xc94   :  { %v1992_v2 = vrot.slane %v1991_v0, 2  ;;  %v2004_v55 = vrot.slane %v2003_v58, 4  ;;  %v1996_v36 = vsel %vm258_vm2, %v16526_v50, -inf  ;;  %v13414_v38 = vpop.f32.mrb[18].mxu1 }
 0xc95   :  { %v1985_v31 = vrot.slane %v1984_v1, 2  ;;  %v1997_v63 = vrot.slane %v1996_v36, 4  ;;  %v16533_v12 = vadd.f32 %v13414_v38, %v16189_v53  ;;  %v1955_v40 = vpop.f32.mrb[19].mxu1 }
 0xc96   :  { %v1993_v54 = vmax.f32 %v1991_v0, %v1992_v2  ;;  %v2005_v57 = vmax.f32 %v2003_v58, %v2004_v55  ;;  %v1978_v13 = vadd.f32 %v1955_v40, %v16194_v56 }
 0xc97   :  { %v1986_v6 = vmax.f32 %v1984_v1, %v1985_v31  ;;  %v1998_v19 = vmax.f32 %v1996_v36, %v1997_v63  ;;  %v2017_v37 = vsel %vm258_vm2, %v16533_v12, -inf }
 0xc98   :  { %v1994_v46 = vrot.slane %v1993_v54, 1  ;;  %v2006_v23 = vrot.slane %v2005_v57, 2  ;;  %v2018_v43 = vrot.slane %v2017_v37, 4  ;;  %v2010_v11 = vsel %vm258_vm2, %v1978_v13, -inf  ;;  %v13417_v4 = vpop.f32.mrb[20].mxu1 }
 0xc99   :  { %v1987_v29 = vrot.slane %v1986_v6, 1  ;;  %v1999_v35 = vrot.slane %v1998_v19, 2  ;;  %v2011_v38 = vrot.slane %v2010_v11, 4  ;;  %v1981_v53 = vadd.f32 %v13417_v4, %v16206_v17  ;;  %v1965_v0 = vpop.f32.mrb[21].mxu1 }
 0xc9a   :  { %v1995_v55 = vmax.f32 %v1993_v54, %v1994_v46  ;;  %v2007_v58 = vmax.f32 %v2005_v57, %v2006_v23  ;;  %v2019_v40 = vmax.f32 %v2017_v37, %v2018_v43  ;;  %v1980_v1 = vadd.f32 %v1965_v0, %v16209_v24 }
 0xc9b   :  { %v1988_v36 = vmax.f32 %v1986_v6, %v1987_v29  ;;  %v2000_v63 = vmax.f32 %v1998_v19, %v1999_v35  ;;  %v2012_v31 = vmax.f32 %v2010_v11, %v2011_v38  ;;  %v2031_v2 = vsel %vm258_vm2, %v1981_v53, -inf }
 0xc9c   :  { %v2039_v56 = vsub.f32 %v1975_v60, %v1995_v55  ;;  %v2008_v3 = vrot.slane %v2007_v58, 1  ;;  %v2020_v27 = vrot.slane %v2019_v40, 2  ;;  %v2032_v22 = vrot.slane %v2031_v2, 4  ;;  %v16542_v61 = vpop.f32.mrb[22].mxu1 }
 0xc9d   :  { %v2038_v44 = vsub.f32 %v1974_v47, %v1988_v36  ;;  %v2001_v39 = vrot.slane %v2000_v63, 1  ;;  %v2013_v4 = vrot.slane %v2012_v31, 2  ;;  %v2024_v46 = vsel %vm258_vm2, %v1980_v1, -inf  ;;  %v13457_v23 = vpop.f32.mrb[23].mxu1 }
 0xc9e   :  { %v2048_v37 = vmul.f32 1.442695, %v2039_v56  ;;  %v2009_v43 = vmax.f32 %v2007_v58, %v2008_v3  ;;  %v2021_v54 = vmax.f32 %v2019_v40, %v2020_v27  ;;  %v2033_v29 = vmax.f32 %v2031_v2, %v2032_v22 }
 0xc9f   :  { %v2046_v35 = vmul.f32 1.442695, %v2038_v44  ;;  %v2002_v11 = vmax.f32 %v2000_v63, %v2001_v39  ;;  %v2014_v57 = vmax.f32 %v2012_v31, %v2013_v4  ;;  %v2025_v6 = vrot.slane %v2024_v46, 4 }
 0xca0   :  { %15037 = vpow2.f32 %v2048_v37  ;;  %v2041_v60 = vsub.f32 %v16523_v26, %v2009_v43  ;;  %v2022_v19 = vrot.slane %v2021_v54, 1  ;;  %v2034_v38 = vrot.slane %v2033_v29, 2 }
 0xca1   :  { %15039 = vpow2.f32 %v2046_v35  ;;  %v2040_v47 = vsub.f32 %v16526_v50, %v2002_v11  ;;  %v2015_v0 = vrot.slane %v2014_v57, 1  ;;  %v2026_v55 = vmax.f32 %v2024_v46, %v2025_v6 }
 0xca2   :  { %v2052_v36 = vmul.f32 1.442695, %v2041_v60  ;;  %v2023_v23 = vmax.f32 %v2021_v54, %v2022_v19  ;;  %v2035_v56 = vmax.f32 %v2033_v29, %v2034_v38 }
 0xca3   :  { %v2050_v3 = vmul.f32 1.442695, %v2040_v47  ;;  %v2016_v27 = vmax.f32 %v2014_v57, %v2015_v0  ;;  %v2027_v22 = vrot.slane %v2026_v55, 2 }
 0xca4   :  { %15041 = vpow2.f32 %v2052_v36  ;;  %v2043_v39 = vsub.f32 %v16533_v12, %v2023_v23  ;;  %v2036_v44 = vrot.slane %v2035_v56, 1 }
 0xca5   :  { %15043 = vpow2.f32 %v2050_v3  ;;  %v2042_v58 = vsub.f32 %v1978_v13, %v2016_v27  ;;  %v2028_v26 = vmax.f32 %v2026_v55, %v2027_v22 }
 0xca6   :  { %v2056_v40 = vmul.f32 1.442695, %v2043_v39  ;;  %v2037_v63 = vmax.f32 %v2035_v56, %v2036_v44 }
 0xca7   :  { %v2054_v31 = vmul.f32 1.442695, %v2042_v58  ;;  %v2029_v2 = vrot.slane %v2028_v26, 1 }
 0xca8   :  { %15045 = vpow2.f32 %v2056_v40  ;;  %v2045_v50 = vsub.f32 %v1981_v53, %v2037_v63 }
 0xca9   :  { %15047 = vpow2.f32 %v2054_v31  ;;  %v2030_v4 = vmax.f32 %v2028_v26, %v2029_v2 }
 0xcaa   :  { %v16548_v46 = vpop.eup %15037  ;;  %v2060_v37 = vmul.f32 1.442695, %v2045_v50 }
 0xcab   :  { %v16550_v43 = vpop.eup %15039  ;;  %v2069_v12 = vsel %vm258_vm2, %v16548_v46, 0.0  ;;  %v2044_v54 = vsub.f32 %v1980_v1, %v2030_v4 }
 0xcac   :  { %v2070_v29 = vrot.slane %v2069_v12, 4  ;;  %v2062_v13 = vsel %vm258_vm2, %v16550_v43, 0.0  ;;  %15049 = vpow2.f32 %v2060_v37 }
 0xcad   :  { %v2063_v35 = vrot.slane %v2062_v13, 4  ;;  %v2058_v11 = vmul.f32 1.442695, %v2044_v54 }
 0xcae   :  { %v16556_v57 = vpop.eup %15041  ;;  %v2071_v53 = vadd.f32 %v2070_v29, %v2069_v12 }
 0xcaf   :  { %v16558_v6 = vpop.eup %15043  ;;  %v2064_v60 = vadd.f32 %v2063_v35, %v2062_v13  ;;  %v2083_v19 = vsel %vm258_vm2, %v16556_v57, 0.0  ;;  %15051 = vpow2.f32 %v2058_v11 }
 0xcb0   :  { %v2072_v38 = vrot.slane %v2071_v53, 2  ;;  %v2084_v47 = vrot.slane %v2083_v19, 4  ;;  %v2076_v1 = vsel %vm258_vm2, %v16558_v6, 0.0 }
 0xcb1   :  { %v2065_v0 = vrot.slane %v2064_v60, 2  ;;  %v2077_v55 = vrot.slane %v2076_v1, 4 }
 0xcb2   :  { %v16564_v36 = vpop.eup %15045  ;;  %v2073_v23 = vadd.f32 %v2072_v38, %v2071_v53  ;;  %v2085_v56 = vadd.f32 %v2084_v47, %v2083_v19 }
 0xcb3   :  { %v16566_v3 = vpop.eup %15047  ;;  %v2066_v27 = vadd.f32 %v2065_v0, %v2064_v60  ;;  %v2078_v22 = vadd.f32 %v2077_v55, %v2076_v1  ;;  %v2097_v39 = vsel %vm258_vm2, %v16564_v36, 0.0 }
 0xcb4   :  { %v2074_v44 = vrot.slane %v2073_v23, 1  ;;  %v2086_v58 = vrot.slane %v2085_v56, 2  ;;  %v2098_v26 = vrot.slane %v2097_v39, 4  ;;  %v2090_v40 = vsel %vm258_vm2, %v16566_v3, 0.0 }
 0xcb5   :  { %v2067_v63 = vrot.slane %v2066_v27, 1  ;;  %v2079_v31 = vrot.slane %v2078_v22, 2  ;;  %v2091_v2 = vrot.slane %v2090_v40, 4 }
 0xcb6   :  { %v16572_v50 = vpop.eup %15049  ;;  %v2075_v4 = vadd.f32 %v2074_v44, %v2073_v23  ;;  %v2087_v37 = vadd.f32 %v2086_v58, %v2085_v56  ;;  %v2099_v12 = vadd.f32 %v2098_v26, %v2097_v39 }
 0xcb7   :  { %v2068_v54 = vadd.f32 %v2067_v63, %v2066_v27  ;;  %v2080_v29 = vadd.f32 %v2079_v31, %v2078_v22  ;;  %v2092_v13 = vadd.f32 %v2091_v2, %v2090_v40  ;;  %v2111_v35 = vsel %vm258_vm2, %v16572_v50, 0.0 }
 0xcb8   :  { %15053 = vrcp.f32 %v2075_v4  ;;  %v2088_v11 = vrot.slane %v2087_v37, 1  ;;  %v2100_v53 = vrot.slane %v2099_v12, 2  ;;  %v2112_v60 = vrot.slane %v2111_v35, 4 }
 0xcb9   :  { %v16576_v19 = vpop.eup %15051  ;;  %15055 = vrcp.f32 %v2068_v54  ;;  %v2081_v38 = vrot.slane %v2080_v29, 1  ;;  %v2093_v47 = vrot.slane %v2092_v13, 2 }
 0xcba   :  { %v2089_v1 = vadd.f32 %v2088_v11, %v2087_v37  ;;  %v2101_v0 = vadd.f32 %v2100_v53, %v2099_v12  ;;  %v2113_v55 = vadd.f32 %v2112_v60, %v2111_v35  ;;  %v2104_v23 = vsel %vm258_vm2, %v16576_v19, 0.0  ;;  %v16582_v53 = vld [vmem:[#allocation2 + $0x8] sm:$0xff] }
 0xcbb   :  { %v2082_v56 = vadd.f32 %v2081_v38, %v2080_v29  ;;  %v2094_v27 = vadd.f32 %v2093_v47, %v2092_v13  ;;  %v2105_v22 = vrot.slane %v2104_v23, 4 }
 0xcbc   :  { %15057 = vrcp.f32 %v2089_v1  ;;  %v2102_v39 = vrot.slane %v2101_v0, 1  ;;  %v2114_v44 = vrot.slane %v2113_v55, 2  ;;  %v16585_v1 = vld [vmem:[#allocation2] sm:$0xff] }
 0xcbd   :  { %15059 = vrcp.f32 %v2082_v56  ;;  %v2095_v58 = vrot.slane %v2094_v27, 1  ;;  %v2106_v26 = vadd.f32 %v2105_v22, %v2104_v23 }
 0xcbe   :  { %v2103_v40 = vadd.f32 %v2102_v39, %v2101_v0  ;;  %v2115_v63 = vadd.f32 %v2114_v44, %v2113_v55  ;;  %v16592_v39 = vld [vmem:[#allocation2 + $0x18] sm:$0xff] }
 0xcbf   :  { %v2096_v31 = vadd.f32 %v2095_v58, %v2094_v27  ;;  %v2107_v2 = vrot.slane %v2106_v26, 2 }
 0xcc0   :  { %15061 = vrcp.f32 %v2103_v40  ;;  %v2116_v4 = vrot.slane %v2115_v63, 1  ;;  %v16595_v40 = vld [vmem:[#allocation2 + $0x10] sm:$0xff] }
 0xcc1   :  { %15063 = vrcp.f32 %v2096_v31  ;;  %v2108_v37 = vadd.f32 %v2107_v2, %v2106_v26  ;;  %18979 = vst [vmem:[#allocation45_spill] sm:$0xff] %v16595_v40 }
 0xcc2   :  { %v15054_v12 = vpop.eup %15053  ;;  %v2117_v54 = vadd.f32 %v2116_v4, %v2115_v63 }
 0xcc3   :  { %v15056_v35 = vpop.eup %15055  ;;  %v2121_v29 = vmul.f32 %v15054_v12, %v16548_v46  ;;  %v2109_v13 = vrot.slane %v2108_v37, 1 }
 0xcc4   :  { %v2119_v11 = vmul.f32 %v15056_v35, %v16550_v43  ;;  %15065 = vrcp.f32 %v2117_v54 }
 0xcc5   :  { %v2135_v60 = vmul.f32 %v16582_v53, %v2121_v29  ;;  %v2110_v38 = vadd.f32 %v2109_v13, %v2108_v37  ;;  %v16602_v13 = vld [vmem:[#allocation2 + $0x28] sm:$0xff] }
 0xcc6   :  { %v15058_v47 = vpop.eup %15057  ;;  %v2134_v0 = vmul.f32 %v16585_v1, %v2119_v11  ;;  %18980 = vst [vmem:[#allocation46_spill] sm:$0xff] %v16602_v13 }
 0xcc7   :  { %v15060_v55 = vpop.eup %15059  ;;  %v2149_v23 = vsel %vm258_vm2, %v2135_v60, 0.0  ;;  %v2125_v56 = vmul.f32 %v15058_v47, %v16556_v57  ;;  %15067 = vrcp.f32 %v2110_v38 }
 0xcc8   :  { %v2150_v46 = vrot.slane %v2149_v23, 4  ;;  %v2142_v43 = vsel %vm258_vm2, %v2134_v0, 0.0  ;;  %v2123_v27 = vmul.f32 %v15060_v55, %v16558_v6  ;;  %v16605_v0 = vld [vmem:[#allocation2 + $0x20] sm:$0xff] }
 0xcc9   :  { %v2143_v22 = vrot.slane %v2142_v43, 4  ;;  %v2137_v44 = vmul.f32 %v16592_v39, %v2125_v56  ;;  %18981 = vst [vmem:[#allocation47_spill] sm:$0xff] %v16605_v0 }
 0xcca   :  { %v15062_v58 = vpop.eup %15061  ;;  %v2151_v26 = vadd.f32 %v2150_v46, %v2149_v23  ;;  %v2136_v63 = vmul.f32 %v16595_v40, %v2123_v27 }
 0xccb   :  { %v15064_v31 = vpop.eup %15063  ;;  %v2144_v2 = vadd.f32 %v2143_v22, %v2142_v43  ;;  %v2163_v57 = vsel %vm258_vm2, %v2137_v44, 0.0  ;;  %v2129_v4 = vmul.f32 %v15062_v58, %v16564_v36 }
 0xccc   :  { %v2152_v37 = vrot.slane %v2151_v26, 2  ;;  %v2164_v12 = vrot.slane %v2163_v57, 4  ;;  %v2156_v6 = vsel %vm258_vm2, %v2136_v63, 0.0  ;;  %v2127_v54 = vmul.f32 %v15064_v31, %v16566_v3  ;;  %v16611_v31 = vld [vmem:[#allocation2 + $0x38] sm:$0xff] }
 0xccd   :  { %v2145_v35 = vrot.slane %v2144_v2, 2  ;;  %v2157_v29 = vrot.slane %v2156_v6, 4  ;;  %v2139_v11 = vmul.f32 %v16602_v13, %v2129_v4 }
 0xcce   :  { %v15066_v60 = vpop.eup %15065  ;;  %v2153_v38 = vadd.f32 %v2152_v37, %v2151_v26  ;;  %v2165_v47 = vadd.f32 %v2164_v12, %v2163_v57  ;;  %v2138_v55 = vmul.f32 %v16605_v0, %v2127_v54 }
 0xccf   :  { %v2146_v36 = vadd.f32 %v2145_v35, %v2144_v2  ;;  %v2158_v23 = vadd.f32 %v2157_v29, %v2156_v6  ;;  %v2177_v56 = vsel %vm258_vm2, %v2139_v11, 0.0  ;;  %v2133_v46 = vmul.f32 %v15066_v60, %v16572_v50  ;;  %v16616_v29 = vld [vmem:[#allocation2 + $0x30] sm:$0xff] }
 0xcd0   :  { %v2154_v3 = vrot.slane %v2153_v38, 1  ;;  %v2166_v43 = vrot.slane %v2165_v47, 2  ;;  %v2178_v27 = vrot.slane %v2177_v56, 4  ;;  %v2170_v22 = vsel %vm258_vm2, %v2138_v55, 0.0 }
 0xcd1   :  { %v15068_v44 = vpop.eup %15067  ;;  %v2147_v58 = vrot.slane %v2146_v36, 1  ;;  %v2159_v63 = vrot.slane %v2158_v23, 2  ;;  %v2171_v26 = vrot.slane %v2170_v22, 4  ;;  %v2141_v57 = vmul.f32 %v16611_v31, %v2133_v46 }
 0xcd2   :  { %v2155_v4 = vadd.f32 %v2154_v3, %v2153_v38  ;;  %v2131_v2 = vmul.f32 %v15068_v44, %v16576_v19  ;;  %v2167_v37 = vadd.f32 %v2166_v43, %v2165_v47  ;;  %v2179_v12 = vadd.f32 %v2178_v27, %v2177_v56 }
 0xcd3   :  { %v2148_v6 = vadd.f32 %v2147_v58, %v2146_v36  ;;  %v2160_v50 = vadd.f32 %v2159_v63, %v2158_v23  ;;  %v2172_v54 = vadd.f32 %v2171_v26, %v2170_v22  ;;  %v2191_v35 = vsel %vm258_vm2, %v2141_v57, 0.0 }
 0xcd4   :  { %v2140_v11 = vmul.f32 %v16616_v29, %v2131_v2  ;;  %v2168_v60 = vrot.slane %v2167_v37, 1  ;;  %v2180_v55 = vrot.slane %v2179_v12, 2  ;;  %v2192_v0 = vrot.slane %v2191_v35, 4 }
 0xcd5   :  { %v2161_v13 = vrot.slane %v2160_v50, 1  ;;  %v2173_v40 = vrot.slane %v2172_v54, 2  ;;  %v2206_v38 = vsel %vm917_vm3, %v2155_v4, %v2148_v6 }
 0xcd6   :  { %v2181_v46 = vadd.f32 %v2180_v55, %v2179_v12  ;;  %v2184_v19 = vsel %vm258_vm2, %v2140_v11, 0.0  ;;  %v2193_v47 = vadd.f32 %v2192_v0, %v2191_v35  ;;  %v2169_v3 = vadd.f32 %v2168_v60, %v2167_v37 }
 0xcd7   :  { %v2162_v36 = vadd.f32 %v2161_v13, %v2160_v50  ;;  %v2174_v23 = vadd.f32 %v2173_v40, %v2172_v54  ;;  %v2185_v56 = vrot.slane %v2184_v19, 4  ;;  %v18982_v11 = vmov 0.0  }
 0xcd8   :  { %v2182_v43 = vrot.slane %v2181_v46, 1  ;;  %v2194_v27 = vrot.slane %v2193_v47, 2  ;;  %v18983_v60 = vmov 0.0|0.0  }
 0xcd9   :  { %v2175_v22 = vrot.slane %v2174_v23, 1  ;;  %v2186_v44 = vadd.f32 %v2185_v56, %v2184_v19  ;;  %v2207_v58 = vsel %vm919_vm4, %v2162_v36, %v2206_v38 }
 0xcda   :  { %v2195_v63 = vadd.f32 %v2194_v27, %v2193_v47  ;;  %v2208_v26 = vsel %vm921_vm5, %v2169_v3, %v2207_v58  ;;  %v2183_v4 = vadd.f32 %v2182_v43, %v2181_v46 }
 0xcdb   :  { %v2176_v57 = vadd.f32 %v2175_v22, %v2174_v23  ;;  %v2187_v2 = vrot.slane %v2186_v44, 2 }
 0xcdc   :  { %v2196_v0 = vrot.slane %v2195_v63, 1 }
 0xcdd   :  { %v2188_v12 = vadd.f32 %v2187_v2, %v2186_v44  ;;  %v2209_v6 = vsel %vm923_vm6, %v2176_v57, %v2208_v26 }
 0xcde   :  { %v2210_v40 = vsel %vm925_vm7, %v2183_v4, %v2209_v6  ;;  %v2197_v50 = vadd.f32 %v2196_v0, %v2195_v63 }
 0xcdf   :  { %v2189_v13 = vrot.slane %v2188_v12, 1 }
 0xce1   :  { %v2190_v37 = vadd.f32 %v2189_v13, %v2188_v12 }
 0xce3   :  { %v2211_v54 = vsel %vm927_vm8, %v2190_v37, %v2210_v40 }
 0xce4   :  { %v2212_v35 = vsel %vm929_vm9, %v2197_v50, %v2211_v54 }
 0xce5   :  { %13427 = vmatmul.mubr.msk.f32.vlgmr.msra.gmra.mrb[18].mxu0 %vm258_vm2, %v2212_v35 }
 0xce6   :  { %14477 = vmatpush3.bf16.msra.mxu0 %v16271_v52  ;;  %13437 = vmatprep.mubr.msk.f32.mxu0 %vm15742_vm0, %v18982_v11 }
 0xce7   :  { %14478 = vmatprep.subr.bf16.mxu0 %v18983_v60 }
 0xcea   :  { %14480 = vmatpush3.bf16.msra.mxu0 %v16277_v7 }
 0xceb   :  { %14481 = vmatprep.subr.bf16.mxu0 %v18983_v60 }
 0xdb8   :  { %v2281_v55 = vpop.f32.mrb[18].mxu0 }
 0xdb9   :  { %v2282_v38 = vadd.f32 %v16297_v16, %v2281_v55  ;;  %v13428_v46 = vpop.f32.mrb[19].mxu0 }
 0xdbb   :  { %13438 = vmatmul.mubr.msk.f32.vlgmr.msra.gmra.mrb[20].mxu0 %vm258_vm2, %v2282_v38 }
 0xdbc   :  { %14483 = vmatpush3.bf16.msra.mxu0 %v16299_v62  ;;  %13444 = vmatprep.mubr.msk.f32.mxu0 %vm15742_vm0, %v18982_v11 }
 0xdbd   :  { %14490 = vmatprep.subr.bf16.mxu0 %v18983_v60 }
 0xdbf   :  { %13445 = vmatmul.mubr.msk.f32.vlgmr.msra.gmra.mrb[22].mxu0 %vm1076_vm10, %v16516_v49 }
 0xdc0   :  { %14492 = vmatpush3.bf16.msra.mxu0 %v16306_v59  ;;  %13466 = vmatprep.mubr.msk.f32.mxu0 %vm15742_vm0, %v18982_v11 }
 0xdc1   :  { %14493 = vmatprep.subr.bf16.mxu0 %v18983_v60 }
 0xdc4   :  { %14495 = vmatpush3.bf16.msra.mxu0 %v16312_v28 }
 0xdc5   :  { %14502 = vmatprep.subr.bf16.mxu0 %v18983_v60 }
 0xdc7   :  { %13467 = vmatmul.mubr.msk.f32.vlgmr.msra.gmra.mrb[24].mxu0 %vm258_vm2, %v16387_v33 }
 0xdc8   :  { %14504 = vmatpush3.bf16.msra.mxu0 %v16318_v34  ;;  %13488 = vmatprep.mubr.msk.f32.mxu0 %vm15742_vm0, %v18982_v11 }
 0xdc9   :  { %14505 = vmatprep.subr.bf16.mxu0 %v18983_v60 }
 0xdcc   :  { %14507 = vmatpush3.bf16.msra.mxu0 %v16323_v25 }
 0xdcd   :  { %14514 = vmatprep.subr.bf16.mxu0 %v18983_v60 }
 0xdcf   :  { %13489 = vmatmul.mubr.msk.f32.vlgmr.msra.gmra.mrb[26].mxu0 %vm258_vm2, %v2282_v38 }
 0xdd0   :  { %14516 = vmatpush3.bf16.msra.mxu0 %v16027_v9  ;;  %13510 = vmatprep.mubr.msk.f32.mxu0 %vm15742_vm0, %v18982_v11 }
 0xdd1   :  { %14517 = vmatprep.subr.bf16.mxu0 %v18983_v60 }
 0xdd4   :  { %14519 = vmatpush3.bf16.msra.mxu0 %v16046_v14 }
 0xdd5   :  { %14527 = vmatprep.subr.bf16.mxu0 %v16058_v18 }
 0xe8e   :  { %v2354_v16 = vpop.f32.mrb[20].mxu0 }
 0xe8f   :  { %v13439_v33 = vpop.f32.mrb[21].mxu0 }
 0xe92   :  { %v2427_v49 = vpop.f32.mrb[22].mxu0 }
 0xe93   :  { %v2428_v19 = vadd.f32 %v2427_v49, %v2354_v16  ;;  %v13446_v47 = vpop.f32.mrb[23].mxu0 }
 0xe95   :  { %v2501_v36 = vadd.f32 %v16542_v61, %v2428_v19 }
 0xe97   :  { %v2502_v23 = vadd.f32 %v16340_v45, %v2501_v36 }
 0xe99   :  { %15069 = vtanh.f32 %v2502_v23  ;;  %v12557_v44 = vmul.f32 -1.442695, %v2502_v23 }
 0xe9a   :  { %v2593_v56 = vpop.f32.mrb[24].mxu0 }
 0xe9b   :  { %v13468_v3 = vpop.f32.mrb[25].mxu0  ;;  %15071 = vpow2.f32 %v12557_v44 }
 0xea2   :  { %v16665_v43 = vpop.f32.mrb[26].mxu0 }
 0xea3   :  { %v15070_v27 = vpop.eup %15069  ;;  %v13490_v22 = vpop.f32.mrb[27].mxu0 }
 0xea4   :  { %2512 = vrot.lane.b32.xlu0 %v15070_v27, %s15746_s1 }
 0xea5   :  { %v15072_v58 = vpop.eup %15071 }
 0xea6   :  { %v2506_v63 = vadd.f32 1.0, %v15072_v58 }
 0xea8   :  { %15073 = vrcp.f32 %v2506_v63 }
 0xeb2   :  { %v15074_v26 = vpop.eup %15073 }
 0xeb3   :  { %v2510_v45 = vmul.f32 %v15074_v26, %v16347_v20 }
 0xf16   :  { %v2513_v57 = vpop.permute.xlu0 %2512 }
 0xf17   :  { %v2515_v2 = vmul.f32 %v15074_v26, %v2513_v57 }
 0xf19   :  { %2517 = vrot.lane.b32.xlu1 %v2515_v2, %s15747_s14 }
 0xf8b   :  { %v2518_v61 = vpop.permute.xlu1 %2517 }
 0xf8c   :  { %v16670_v4 = vadd.f32 %v2518_v61, %v2510_v45 }
 0xf8e   :  { %15075 = vtanh.f32 %v16670_v4 }
 0xf98   :  { %v15076_v12 = vpop.eup %15075 }
 0xf99   :  { %2523 = vrot.lane.b32.xlu1 %v15076_v12, %s15746_s1 }
0x100b   :  { %v2524_v6 = vpop.permute.xlu1 %2523 }
0x100c   :  { %v2526_v0 = vmul.f32 %v15074_v26, %v2524_v6 }
0x100e   :  { %2598 = vrot.lane.b32.xlu0 %v2526_v0, %s15747_s14 }
0x1080   :  { %v16675_v40 = vpop.permute.xlu0 %2598 }
0x1081   :  { %13478 = vmatmul.mubr.msk.f32.vlgmr.msra.gmra.mrb[24].mxu1 %vm258_vm2, %v16675_v40 }
0x1082   :  { %14510 = vmatpush3.bf16.msra.mxu1 %v16377_v42  ;;  %13499 = vmatprep.mubr.msk.f32.mxu1 %vm15742_vm0, %v18982_v11 }
0x1083   :  { %14511 = vmatprep.subr.bf16.mxu1 %v18983_v60 }
0x1086   :  { %14513 = vmatpush3.bf16.msra.mxu1 %v16380_v21 }
0x1087   :  { %14520 = vmatprep.subr.bf16.mxu1 %v18983_v60 }
0x1154   :  { %v2668_v20 = vpop.f32.mrb[24].mxu1 }
0x1155   :  { %v2669_v13 = vadd.f32 %v2668_v20, %v2593_v56  ;;  %v13479_v37 = vpop.f32.mrb[25].mxu1 }
0x1157   :  { %v2672_v50 = vadd.f32 %v16369_v48, %v2669_v13  ;;  %v18985_v13 = vld [vmem:[#allocation23_spill] sm:$0xff] }
0x1159   :  { %15077 = vtanh.f32 %v2672_v50  ;;  %v12560_v35 = vmul.f32 -1.442695, %v2672_v50 }
0x115b   :  { %15079 = vpow2.f32 %v12560_v35 }
0x1163   :  { %v15078_v54 = vpop.eup %15077 }
0x1164   :  { %2682 = vrot.lane.b32.xlu1 %v15078_v54, %s15746_s1 }
0x1165   :  { %v15080_v55 = vpop.eup %15079 }
0x1166   :  { %v2676_v38 = vadd.f32 1.0, %v15080_v55 }
0x1168   :  { %15081 = vrcp.f32 %v2676_v38 }
0x1172   :  { %v15082_v46 = vpop.eup %15081 }
0x1173   :  { %v2680_v49 = vmul.f32 %v15082_v46, %v16374_v8 }
0x11d6   :  { %v2683_v16 = vpop.permute.xlu1 %2682 }
0x11d7   :  { %v2685_v33 = vmul.f32 %v15082_v46, %v2683_v16 }
0x11d9   :  { %2687 = vrot.lane.b32.xlu0 %v2685_v33, %s15747_s14  ;;  %v18986_v33 = vld [vmem:[#allocation24_spill] sm:$0xff] }
0x124b   :  { %v2688_v19 = vpop.permute.xlu0 %2687 }
0x124c   :  { %v16689_v47 = vadd.f32 %v2688_v19, %v2680_v49 }
0x124e   :  { %15083 = vtanh.f32 %v16689_v47 }
0x1258   :  { %v15084_v48 = vpop.eup %15083 }
0x1259   :  { %2693 = vrot.lane.b32.xlu1 %v15084_v48, %s15746_s1 }
0x12cb   :  { %v2694_v36 = vpop.permute.xlu1 %2693 }
0x12cc   :  { %v2696_v23 = vmul.f32 %v15082_v46, %v2694_v36 }
0x12ce   :  { %2768 = vrot.lane.b32.xlu0 %v2696_v23, %s15747_s14 }
0x1340   :  { %v16694_v56 = vpop.permute.xlu0 %2768 }
0x1341   :  { %13500 = vmatmul.mubr.msk.f32.vlgmr.msra.gmra.mrb[26].mxu1 %vm258_vm2, %v16694_v56 }
0x1342   :  { %14522 = vmatpush3.bf16.msra.mxu1 %v16016_v5  ;;  %13521 = vmatprep.mubr.msk.f32.mxu1 %vm15742_vm0, %v18982_v11 }
0x1343   :  { %14523 = vmatprep.subr.bf16.mxu1 %v18983_v60 }
0x1346   :  { %14525 = vmatpush3.bf16.msra.mxu1 %v16030_v10 }
0x1347   :  { %14534 = vmatprep.subr.bf16.mxu1 %v18983_v60 }
0x1349   :  { %13522 = vmatmul.mubr.msk.f32.vlgmr.msra.gmra.mrb[28].mxu1 %vm258_vm2, %v16694_v56 }
0x134a   :  { %14536 = vmatpush3.bf16.msra.mxu1 %v16156_v30  ;;  %13552 = vmatprep.mubr.msk.f32.mxu1 %vm15742_vm0, %v18982_v11 }
0x134b   :  { %14537 = vmatprep.subr.bf16.mxu1 %v18983_v60 }
0x134e   :  { %14539 = vmatpush3.bf16.msra.mxu1 %v16159_v32 }
0x134f   :  { %14540 = vmatprep.subr.bf16.mxu1 %v18983_v60 }
0x1414   :  { %v2838_v8 = vpop.f32.mrb[26].mxu1 }
0x1415   :  { %v2839_v3 = vadd.f32 %v2838_v8, %v16665_v43  ;;  %v13501_v27 = vpop.f32.mrb[27].mxu1  ;;  %v18987_v8 = vld [vmem:[#allocation37_spill] sm:$0xff] }
0x1417   :  { %v16714_v22 = vadd.f32 %v16408_v51, %v2839_v3 }
0x1419   :  { %18984 = vst [vmem:[#allocation48_spill] sm:$0xff] %v16714_v22  ;;  %v2843_v44 = vsel %vm258_vm2, %v16714_v22, -inf }
0x141a   :  { %2844 = vmax.xlane.f32.xlu1 %v2843_v44 }
0x141c   :  { %v3005_v58 = vpop.f32.mrb[28].mxu1 }
0x141d   :  { %v13523_v63 = vpop.f32.mrb[29].mxu1  ;;  %v3006_v0 = vadd.f32 %v16422_v41, %v3005_v58 }
0x141e   :  { %v18988_v63 = vld [vmem:[#allocation22_spill] sm:$0xff] }
0x141f   :  { %v3009_v20 = vmul.f32 0.35355338, %v3006_v0 }
0x1421   :  { %v3018_v37 = vrot.slane %v3009_v20, %v18985_v13  ;;  %v3011_v55 = vcombine.high %v3009_v20, %v3009_v20  ;;  %v18991_v20 = vld [vmem:[#allocation26_spill] sm:$0xff] }
0x1423   :  { %v3034_v54 = vrot.slane %v3018_v37, %v18985_v13  ;;  %v3026_v38 = vcombine.high %v3018_v37, %v3018_v37  ;;  %v3025_v48 = vrot.slane %v3011_v55, %v18985_v13  ;;  %v18993_v55 = vld [vmem:[#allocation41_spill] sm:$0xff] }
0x1425   :  { %v3063_v49 = vrot.slane %v3034_v54, %v18986_v33  ;;  %v3048_v36 = vrot.slane %v3026_v38, %v18985_v13  ;;  %v3056_v41 = vcombine.high %v3034_v54, %v3034_v54  ;;  %v3027_v27 = vcombine.high %v3025_v48, %v3025_v48 }
0x1427   :  { %v3100_v3 = vmul.f32 %v18987_v8, %v3063_v49  ;;  %v3058_v44 = vcombine.high %v3048_v36, %v3048_v36  ;;  %v3067_v58 = vrot.slane %v3048_v36, %v18986_v33  ;;  %v18995_v49 = vld [vmem:[#allocation42_spill] sm:$0xff]  ;;  %v18996_v36 = vld [vmem:[#allocation43_spill] sm:$0xff] }
0x14a7   :  { %v2845_v26 = vpop.xlane.xlu1 %2844 }
0x14a8   :  { %vm2846_vm14 = vcmp.ge.f32.partialorder %v16714_v22, %v2845_v26  ;;  %v3041_v26 = vrot.slane %v3025_v48, %v18985_v13 }
0x14a9   :  { %v2847_v57 = vsel %vm2846_vm14, %v16048_v15, 32 }
0x14aa   :  { %v2848_v2 = vsel %vm258_vm2, %v2847_v57, 2147483647  ;;  %v3071_v57 = vrot.slane %v3056_v41, %v18986_v33 }
0x14ab   :  { %v2850_v45 = vshra.s32 %v2848_v2, 16  ;;  %v2849_v43 = vand.u32 65535, %v2848_v2  ;;  %v3055_v2 = vrot.slane %v3027_v27, %v18985_v13  ;;  %v18999_v27 = vld [vmem:[#allocation35_spill] sm:$0xff] }
0x14ad   :  { %v2852_v61 = vcvt.s32.f32 %v2850_v45  ;;  %v2851_v51 = vcvt.s32.f32 %v2849_v43  ;;  %v18989_v45 = vld [vmem:[#allocation38_spill] sm:$0xff]  ;;  %v3075_v43 = vrot.slane %v3058_v44, %v18986_v33  ;;  %v3059_v37 = vcombine.high %v3055_v2, %v3055_v2 }
0x14af   :  { %2853 = vmin.xlane.f32.xlu0 %v2852_v61  ;;  %v3091_v48 = vrot.slane %v3059_v37, %v18986_v33  ;;  %v19002_v37 = vld [vmem:[#allocation30_spill] sm:$0xff] }
0x153c   :  { %v2854_v12 = vpop.xlane.xlu0 %2853 }
0x153d   :  { %vm2855_vm15 = vcmp.eq.f32.partialorder %v2852_v61, %v2854_v12  ;;  %v2860_v50 = vcvt.f32.s32 %v2854_v12  ;;  %v3101_v61 = vmul.f32 %v18989_v45, %v3067_v58  ;;  %v3057_v12 = vcombine.high %v3041_v26, %v3041_v26 }
0x153e   :  { %v2856_v6 = vsel %vm2855_vm15, %v2851_v51, inf  ;;  %v3079_v51 = vrot.slane %v3041_v26, %v18986_v33 }
0x153f   :  { %2857 = vmin.xlane.f32.xlu0 %v2856_v6  ;;  %v2861_v46 = vshll.u32 %v2860_v50, 16  ;;  %v18990_v6 = vld [vmem:[#allocation39_spill] sm:$0xff]  ;;  %v18992_v50 = vld [vmem:[#allocation40_spill] sm:$0xff] }
0x1540   :  { %v3102_v0 = vmul.f32 %v18990_v6, %v3071_v57  ;;  %v3103_v54 = vmul.f32 %v18992_v50, %v3075_v43  ;;  %v3104_v38 = vmul.f32 %v18993_v55, %v3079_v51  ;;  %v19000_v57 = vld [vmem:[#allocation29_spill] sm:$0xff]  ;;  %v19003_v55 = vld [vmem:[#allocation28_spill] sm:$0xff] }
0x15cc   :  { %v2858_v35 = vpop.xlane.xlu0 %2857 }
0x15cd   :  { %v2859_v16 = vcvt.f32.s32 %v2858_v35  ;;  %v3083_v35 = vrot.slane %v3055_v2, %v18986_v33 }
0x15cf   :  { %v2862_v19 = vadd.s32 %v2861_v46, %v2859_v16  ;;  %v3087_v46 = vrot.slane %v3057_v12, %v18986_v33  ;;  %v18994_v16 = vld [vmem:[#allocation33_spill] sm:$0xff] }
0x15d1   :  { %vm2863_vm1 = vcmp.eq.s32.totalorder %v16048_v15, %v2862_v19  ;;  %v3105_v19 = vmul.f32 %v18995_v49, %v3083_v35  ;;  %v3106_v41 = vmul.f32 %v18996_v36, %v3087_v46 }
0x15d2   :  { %v12563_v23 = vsel %vm2863_vm1, 1.0, %v18982_v11 }
0x15d3   :  { %13511 = vmatmul.mubr.msk.f32.vlgmr.msra.gmra.mrb[28].mxu0 %vm258_vm2, %v12563_v23  ;;  %v18997_v23 = vld [vmem:[#allocation44_spill] sm:$0xff] }
0x15d4   :  { %14529 = vmatpush3.bf16.msra.mxu0 %v16058_v18  ;;  %13532 = vmatprep.mubr.msk.f32.mxu0 %vm258_vm2, %v3100_v3  ;;  %v3107_v8 = vmul.f32 %v18997_v23, %v3091_v48  ;;  %v18998_v3 = vld [vmem:[#allocation34_spill] sm:$0xff] }
0x15d5   :  { %14531 = vmatprep.subr.bf16.mxu0 %v18988_v63 }
0x15d8   :  { %14533 = vmatpush3.bf16.msra.mxu0 %v18988_v63 }
0x15d9   :  { %14549 = vmatprep.subr.bf16.mxu0 %v18983_v60 }
0x15db   :  { %13533 = vmatmul.mubr.msk.f32.vlgmr.msra.gmra.mrb[30].mxu0 %vm258_vm2, %v3101_v61  ;;  %v19001_v61 = vld [vmem:[#allocation27_spill] sm:$0xff] }
0x15dc   :  { %13535 = vmatprep.mubr.msk.f32.mxu0 %vm258_vm2, %v3102_v0  ;;  %14551 = vmatpush3.bf16.msra.mxu0 %v18991_v20 }
0x15dd   :  { %14552 = vmatprep.subr.bf16.mxu0 %v18983_v60 }
0x15df   :  { %13536 = vmatmul.mubr.msk.f32.gmra.mrb[32].mxu0 %vm258_vm2, %v3103_v54 }
0x15e0   :  { %13538 = vmatprep.mubr.msk.f32.mxu0 %vm258_vm2, %v3104_v38  ;;  %14554 = vmatpush3.bf16.msra.mxu0 %v18994_v16 }
0x15e1   :  { %14561 = vmatprep.subr.bf16.mxu0 %v18983_v60 }
0x15e3   :  { %13539 = vmatmul.mubr.msk.f32.gmra.mrb[34].mxu0 %vm258_vm2, %v3105_v19 }
0x15e4   :  { %13541 = vmatprep.mubr.msk.f32.mxu0 %vm258_vm2, %v3106_v41 }
0x15e7   :  { %13542 = vmatmul.mubr.msk.f32.gmra.mrb[36].mxu0 %vm258_vm2, %v3107_v8 }
0x15e8   :  { %13581 = vmatprep.mubr.msk.f32.mxu0 %vm15742_vm0, %v18982_v11 }
0x15eb   :  { %13582 = vmatmul.mubr.msk.f32.vlgmr.msra.gmra.mrb[38].mxu0 %vm258_vm2, %v16675_v40 }
0x15ec   :  { %14563 = vmatpush3.bf16.msra.mxu0 %v18998_v3  ;;  %13603 = vmatprep.mubr.msk.f32.mxu0 %vm15742_vm0, %v18982_v11 }
0x15ed   :  { %14564 = vmatprep.subr.bf16.mxu0 %v18983_v60 }
0x15f0   :  { %14566 = vmatpush3.bf16.msra.mxu0 %v18999_v27 }
0x15f1   :  { %14573 = vmatprep.subr.bf16.mxu0 %v18983_v60 }
0x16a6   :  { %v16773_v44 = vpop.f32.mrb[28].mxu0 }
0x16a7   :  { %v13512_v58 = vpop.f32.mrb[29].mxu0 }
0x16a8   :  { %v19004_v58 = vld [vmem:[#allocation31_spill] sm:$0xff] }
0x16ae   :  { %v13534_v26 = vpop.f32.mrb[30].mxu0 }
0x16af   :  { %v3238_v2 = vadd.f32 %v13534_v26, %v19000_v57  ;;  %v3198_v45 = vpop.f32.mrb[31].mxu0 }
0x16b0   :  { %v3237_v40 = vadd.f32 %v3198_v45, %v19001_v61 }
0x16b1   :  { %v3252_v43 = vsel %vm258_vm2, %v3238_v2, -inf }
0x16b2   :  { %v3253_v12 = vrot.slane %v3252_v43, 4  ;;  %v3245_v51 = vsel %vm258_vm2, %v3237_v40, -inf  ;;  %v13537_v6 = vpop.f32.mrb[32].mxu0 }
0x16b3   :  { %v3246_v0 = vrot.slane %v3245_v51, 4  ;;  %v16780_v50 = vadd.f32 %v13537_v6, %v19002_v37  ;;  %v3208_v54 = vpop.f32.mrb[33].mxu0  ;;  %v19005_v6 = vld [vmem:[#allocation32_spill] sm:$0xff] }
0x16b4   :  { %v3254_v35 = vmax.f32 %v3252_v43, %v3253_v12  ;;  %v16783_v38 = vadd.f32 %v3208_v54, %v19003_v55 }
0x16b5   :  { %v3247_v46 = vmax.f32 %v3245_v51, %v3246_v0  ;;  %v3266_v49 = vsel %vm258_vm2, %v16780_v50, -inf }
0x16b6   :  { %v3255_v19 = vrot.slane %v3254_v35, 2  ;;  %v3267_v48 = vrot.slane %v3266_v49, 4  ;;  %v3259_v36 = vsel %vm258_vm2, %v16783_v38, -inf  ;;  %v13540_v41 = vpop.f32.mrb[34].mxu0 }
0x16b7   :  { %v3248_v23 = vrot.slane %v3247_v46, 2  ;;  %v3260_v8 = vrot.slane %v3259_v36, 4  ;;  %v16790_v26 = vadd.f32 %v13540_v41, %v19004_v58  ;;  %v3218_v45 = vpop.f32.mrb[35].mxu0 }
0x16b8   :  { %v3256_v43 = vmax.f32 %v3254_v35, %v3255_v19  ;;  %v3268_v12 = vmax.f32 %v3266_v49, %v3267_v48  ;;  %v3241_v54 = vadd.f32 %v3218_v45, %v19005_v6 }
0x16b9   :  { %v3249_v51 = vmax.f32 %v3247_v46, %v3248_v23  ;;  %v3261_v0 = vmax.f32 %v3259_v36, %v3260_v8  ;;  %v3280_v22 = vsel %vm258_vm2, %v16790_v26, -inf }
0x16ba   :  { %v3257_v55 = vrot.slane %v3256_v43, 1  ;;  %v3269_v37 = vrot.slane %v3268_v12, 2  ;;  %v3281_v61 = vrot.slane %v3280_v22, 4  ;;  %v3273_v57 = vsel %vm258_vm2, %v3241_v54, -inf  ;;  %v13543_v27 = vpop.f32.mrb[36].mxu0 }
0x16bb   :  { %v3250_v3 = vrot.slane %v3249_v51, 1  ;;  %v3262_v16 = vrot.slane %v3261_v0, 2  ;;  %v3274_v41 = vrot.slane %v3273_v57, 4  ;;  %v3244_v58 = vadd.f32 %v13543_v27, %v16206_v17  ;;  %v3228_v35 = vpop.f32.mrb[37].mxu0 }
0x16bc   :  { %v3258_v49 = vmax.f32 %v3256_v43, %v3257_v55  ;;  %v3270_v19 = vmax.f32 %v3268_v12, %v3269_v37  ;;  %v3282_v48 = vmax.f32 %v3280_v22, %v3281_v61  ;;  %v3243_v46 = vadd.f32 %v3228_v35, %v16209_v24 }
0x16bd   :  { %v3251_v36 = vmax.f32 %v3249_v51, %v3250_v3  ;;  %v3263_v23 = vmax.f32 %v3261_v0, %v3262_v16  ;;  %v3275_v8 = vmax.f32 %v3273_v57, %v3274_v41  ;;  %v3294_v45 = vsel %vm258_vm2, %v3244_v58, -inf }
0x16be   :  { %v3302_v6 = vsub.f32 %v3238_v2, %v3258_v49  ;;  %v3271_v20 = vrot.slane %v3270_v19, 1  ;;  %v3283_v63 = vrot.slane %v3282_v48, 2  ;;  %v3295_v33 = vrot.slane %v3294_v45, 4  ;;  %v16799_v13 = vpop.f32.mrb[38].mxu0 }
0x16bf   :  { %v3301_v15 = vsub.f32 %v3237_v40, %v3251_v36  ;;  %v3264_v32 = vrot.slane %v3263_v23, 1  ;;  %v3276_v27 = vrot.slane %v3275_v8, 2  ;;  %v3287_v55 = vsel %vm258_vm2, %v3243_v46, -inf  ;;  %v13583_v37 = vpop.f32.mrb[39].mxu0 }
0x16c0   :  { %v3311_v22 = vmul.f32 1.442695, %v3302_v6  ;;  %v3272_v61 = vmax.f32 %v3270_v19, %v3271_v20  ;;  %v3284_v43 = vmax.f32 %v3282_v48, %v3283_v63  ;;  %v3296_v3 = vmax.f32 %v3294_v45, %v3295_v33 }
0x16c1   :  { %v3309_v16 = vmul.f32 1.442695, %v3301_v15  ;;  %v3265_v57 = vmax.f32 %v3263_v23, %v3264_v32  ;;  %v3277_v12 = vmax.f32 %v3275_v8, %v3276_v27  ;;  %v3288_v51 = vrot.slane %v3287_v55, 4 }
0x16c2   :  { %15085 = vpow2.f32 %v3311_v22  ;;  %v3304_v2 = vsub.f32 %v16780_v50, %v3272_v61  ;;  %v3285_v0 = vrot.slane %v3284_v43, 1  ;;  %v3297_v41 = vrot.slane %v3296_v3, 2 }
0x16c3   :  { %15087 = vpow2.f32 %v3309_v16  ;;  %v3303_v40 = vsub.f32 %v16783_v38, %v3265_v57  ;;  %v3278_v35 = vrot.slane %v3277_v12, 1  ;;  %v3289_v49 = vmax.f32 %v3287_v55, %v3288_v51 }
0x16c4   :  { %v3315_v36 = vmul.f32 1.442695, %v3304_v2  ;;  %v3286_v37 = vmax.f32 %v3284_v43, %v3285_v0  ;;  %v3298_v6 = vmax.f32 %v3296_v3, %v3297_v41 }
0x16c5   :  { %v3313_v20 = vmul.f32 1.442695, %v3303_v40  ;;  %v3279_v63 = vmax.f32 %v3277_v12, %v3278_v35  ;;  %v3290_v33 = vrot.slane %v3289_v49, 2 }
0x16c6   :  { %15089 = vpow2.f32 %v3315_v36  ;;  %v3306_v15 = vsub.f32 %v16790_v26, %v3286_v37  ;;  %v3299_v32 = vrot.slane %v3298_v6, 1 }
0x16c7   :  { %15091 = vpow2.f32 %v3313_v20  ;;  %v3305_v19 = vsub.f32 %v3241_v54, %v3279_v63  ;;  %v3291_v50 = vmax.f32 %v3289_v49, %v3290_v33 }
0x16c8   :  { %v3319_v48 = vmul.f32 1.442695, %v3306_v15  ;;  %v3300_v23 = vmax.f32 %v3298_v6, %v3299_v32 }
0x16c9   :  { %v3317_v8 = vmul.f32 1.442695, %v3305_v19  ;;  %v3292_v45 = vrot.slane %v3291_v50, 1 }
0x16ca   :  { %15093 = vpow2.f32 %v3319_v48  ;;  %v3308_v38 = vsub.f32 %v3244_v58, %v3300_v23 }
0x16cb   :  { %15095 = vpow2.f32 %v3317_v8  ;;  %v3293_v27 = vmax.f32 %v3291_v50, %v3292_v45 }
0x16cc   :  { %v16805_v55 = vpop.eup %15085  ;;  %v3323_v22 = vmul.f32 1.442695, %v3308_v38 }
0x16cd   :  { %v16807_v61 = vpop.eup %15087  ;;  %v3332_v26 = vsel %vm258_vm2, %v16805_v55, 0.0  ;;  %v3307_v43 = vsub.f32 %v3243_v46, %v3293_v27 }
0x16ce   :  { %v3333_v3 = vrot.slane %v3332_v26, 4  ;;  %v3325_v54 = vsel %vm258_vm2, %v16807_v61, 0.0  ;;  %15097 = vpow2.f32 %v3323_v22 }
0x16cf   :  { %v3326_v16 = vrot.slane %v3325_v54, 4  ;;  %v3321_v57 = vmul.f32 1.442695, %v3307_v43 }
0x16d0   :  { %v16813_v12 = vpop.eup %15089  ;;  %v3334_v58 = vadd.f32 %v3333_v3, %v3332_v26 }
0x16d1   :  { %v16815_v51 = vpop.eup %15091  ;;  %v3327_v2 = vadd.f32 %v3326_v16, %v3325_v54  ;;  %v3346_v0 = vsel %vm258_vm2, %v16813_v12, 0.0  ;;  %15099 = vpow2.f32 %v3321_v57 }
0x16d2   :  { %v3335_v41 = vrot.slane %v3334_v58, 2  ;;  %v3347_v40 = vrot.slane %v3346_v0, 4  ;;  %v3339_v46 = vsel %vm258_vm2, %v16815_v51, 0.0 }
0x16d3   :  { %v3328_v35 = vrot.slane %v3327_v2, 2  ;;  %v3340_v49 = vrot.slane %v3339_v46, 4 }
0x16d4   :  { %v16821_v36 = vpop.eup %15093  ;;  %v3336_v37 = vadd.f32 %v3335_v41, %v3334_v58  ;;  %v3348_v6 = vadd.f32 %v3347_v40, %v3346_v0 }
0x16d5   :  { %v16823_v20 = vpop.eup %15095  ;;  %v3329_v63 = vadd.f32 %v3328_v35, %v3327_v2  ;;  %v3341_v33 = vadd.f32 %v3340_v49, %v3339_v46  ;;  %v3360_v15 = vsel %vm258_vm2, %v16821_v36, 0.0 }
0x16d6   :  { %v3337_v32 = vrot.slane %v3336_v37, 1  ;;  %v3349_v19 = vrot.slane %v3348_v6, 2  ;;  %v3361_v50 = vrot.slane %v3360_v15, 4  ;;  %v3353_v48 = vsel %vm258_vm2, %v16823_v20, 0.0 }
0x16d7   :  { %v3330_v23 = vrot.slane %v3329_v63, 1  ;;  %v3342_v8 = vrot.slane %v3341_v33, 2  ;;  %v3354_v45 = vrot.slane %v3353_v48, 4 }
0x16d8   :  { %v16829_v38 = vpop.eup %15097  ;;  %v3338_v27 = vadd.f32 %v3337_v32, %v3336_v37  ;;  %v3350_v22 = vadd.f32 %v3349_v19, %v3348_v6  ;;  %v3362_v26 = vadd.f32 %v3361_v50, %v3360_v15 }
0x16d9   :  { %v3331_v43 = vadd.f32 %v3330_v23, %v3329_v63  ;;  %v3343_v3 = vadd.f32 %v3342_v8, %v3341_v33  ;;  %v3355_v54 = vadd.f32 %v3354_v45, %v3353_v48  ;;  %v3374_v16 = vsel %vm258_vm2, %v16829_v38, 0.0 }
0x16da   :  { %15101 = vrcp.f32 %v3338_v27  ;;  %v3351_v57 = vrot.slane %v3350_v22, 1  ;;  %v3363_v58 = vrot.slane %v3362_v26, 2  ;;  %v3375_v2 = vrot.slane %v3374_v16, 4 }
0x16db   :  { %v16833_v0 = vpop.eup %15099  ;;  %15103 = vrcp.f32 %v3331_v43  ;;  %v3344_v41 = vrot.slane %v3343_v3, 1  ;;  %v3356_v40 = vrot.slane %v3355_v54, 2 }
0x16dc   :  { %v3352_v46 = vadd.f32 %v3351_v57, %v3350_v22  ;;  %v3364_v35 = vadd.f32 %v3363_v58, %v3362_v26  ;;  %v3376_v49 = vadd.f32 %v3375_v2, %v3374_v16  ;;  %v3367_v37 = vsel %vm258_vm2, %v16833_v0, 0.0 }
0x16dd   :  { %v3345_v6 = vadd.f32 %v3344_v41, %v3343_v3  ;;  %v3357_v63 = vadd.f32 %v3356_v40, %v3355_v54  ;;  %v3368_v33 = vrot.slane %v3367_v37, 4 }
0x16de   :  { %15105 = vrcp.f32 %v3352_v46  ;;  %v3365_v15 = vrot.slane %v3364_v35, 1  ;;  %v3377_v32 = vrot.slane %v3376_v49, 2 }
0x16df   :  { %15107 = vrcp.f32 %v3345_v6  ;;  %v3358_v19 = vrot.slane %v3357_v63, 1  ;;  %v3369_v50 = vadd.f32 %v3368_v33, %v3367_v37 }
0x16e0   :  { %v3366_v48 = vadd.f32 %v3365_v15, %v3364_v35  ;;  %v3378_v23 = vadd.f32 %v3377_v32, %v3376_v49  ;;  %v19006_v15 = vld [vmem:[#allocation45_spill] sm:$0xff] }
0x16e1   :  { %v3359_v8 = vadd.f32 %v3358_v19, %v3357_v63  ;;  %v3370_v45 = vrot.slane %v3369_v50, 2 }
0x16e2   :  { %15109 = vrcp.f32 %v3366_v48  ;;  %v3379_v27 = vrot.slane %v3378_v23, 1 }
0x16e3   :  { %15111 = vrcp.f32 %v3359_v8  ;;  %v3371_v22 = vadd.f32 %v3370_v45, %v3369_v50 }
0x16e4   :  { %v15102_v26 = vpop.eup %15101  ;;  %v3380_v43 = vadd.f32 %v3379_v27, %v3378_v23 }
0x16e5   :  { %v15104_v16 = vpop.eup %15103  ;;  %v3384_v3 = vmul.f32 %v15102_v26, %v16805_v55  ;;  %v3372_v54 = vrot.slane %v3371_v22, 1 }
0x16e6   :  { %v3382_v57 = vmul.f32 %v15104_v16, %v16807_v61  ;;  %15113 = vrcp.f32 %v3380_v43 }
0x16e7   :  { %v3398_v58 = vmul.f32 %v16582_v53, %v3384_v3  ;;  %v3373_v2 = vadd.f32 %v3372_v54, %v3371_v22  ;;  %v19007_v22 = vld [vmem:[#allocation46_spill] sm:$0xff]  ;;  %v19008_v3 = vld [vmem:[#allocation47_spill] sm:$0xff] }
0x16e8   :  { %v15106_v41 = vpop.eup %15105  ;;  %v3397_v40 = vmul.f32 %v16585_v1, %v3382_v57 }
0x16e9   :  { %v15108_v46 = vpop.eup %15107  ;;  %v3412_v35 = vsel %vm258_vm2, %v3398_v58, 0.0  ;;  %v3388_v49 = vmul.f32 %v15106_v41, %v16813_v12  ;;  %15115 = vrcp.f32 %v3373_v2 }
0x16ea   :  { %v3413_v37 = vrot.slane %v3412_v35, 4  ;;  %v3405_v6 = vsel %vm258_vm2, %v3397_v40, 0.0  ;;  %v3386_v55 = vmul.f32 %v15108_v46, %v16815_v51 }
0x16eb   :  { %v3406_v63 = vrot.slane %v3405_v6, 4  ;;  %v3400_v61 = vmul.f32 %v16592_v39, %v3388_v49 }
0x16ec   :  { %v15110_v33 = vpop.eup %15109  ;;  %v3414_v53 = vadd.f32 %v3413_v37, %v3412_v35  ;;  %v3399_v32 = vmul.f32 %v19006_v15, %v3386_v55 }
0x16ed   :  { %v15112_v19 = vpop.eup %15111  ;;  %v3407_v1 = vadd.f32 %v3406_v63, %v3405_v6  ;;  %v3426_v50 = vsel %vm258_vm2, %v3400_v61, 0.0  ;;  %v3392_v48 = vmul.f32 %v15110_v33, %v16821_v36 }
0x16ee   :  { %v3415_v12 = vrot.slane %v3414_v53, 2  ;;  %v3427_v23 = vrot.slane %v3426_v50, 4  ;;  %v3419_v8 = vsel %vm258_vm2, %v3399_v32, 0.0  ;;  %v3390_v45 = vmul.f32 %v15112_v19, %v16823_v20 }
0x16ef   :  { %v3408_v51 = vrot.slane %v3407_v1, 2  ;;  %v3420_v27 = vrot.slane %v3419_v8, 4  ;;  %v3402_v39 = vmul.f32 %v19007_v22, %v3392_v48 }
0x16f0   :  { %v15114_v26 = vpop.eup %15113  ;;  %v3416_v43 = vadd.f32 %v3415_v12, %v3414_v53  ;;  %v3428_v16 = vadd.f32 %v3427_v23, %v3426_v50  ;;  %v3401_v54 = vmul.f32 %v19008_v3, %v3390_v45 }
0x16f1   :  { %v3409_v57 = vadd.f32 %v3408_v51, %v3407_v1  ;;  %v3421_v58 = vadd.f32 %v3420_v27, %v3419_v8  ;;  %v3440_v2 = vsel %vm258_vm2, %v3402_v39, 0.0  ;;  %v3396_v36 = vmul.f32 %v15114_v26, %v16829_v38 }
0x16f2   :  { %v3417_v41 = vrot.slane %v3416_v43, 1  ;;  %v3429_v40 = vrot.slane %v3428_v16, 2  ;;  %v3441_v46 = vrot.slane %v3440_v2, 4  ;;  %v3433_v20 = vsel %vm258_vm2, %v3401_v54, 0.0 }
0x16f3   :  { %v15116_v35 = vpop.eup %15115  ;;  %v3410_v49 = vrot.slane %v3409_v57, 1  ;;  %v3422_v37 = vrot.slane %v3421_v58, 2  ;;  %v3434_v6 = vrot.slane %v3433_v20, 4  ;;  %v3404_v55 = vmul.f32 %v16611_v31, %v3396_v36 }
0x16f4   :  { %v3418_v63 = vadd.f32 %v3417_v41, %v3416_v43  ;;  %v3394_v61 = vmul.f32 %v15116_v35, %v16833_v0  ;;  %v3430_v33 = vadd.f32 %v3429_v40, %v3428_v16  ;;  %v3442_v53 = vadd.f32 %v3441_v46, %v3440_v2 }
0x16f5   :  { %v3411_v15 = vadd.f32 %v3410_v49, %v3409_v57  ;;  %v3423_v32 = vadd.f32 %v3422_v37, %v3421_v58  ;;  %v3435_v19 = vadd.f32 %v3434_v6, %v3433_v20  ;;  %v3454_v38 = vsel %vm258_vm2, %v3404_v55, 0.0 }
0x16f6   :  { %v3403_v1 = vmul.f32 %v16616_v29, %v3394_v61  ;;  %v3431_v50 = vrot.slane %v3430_v33, 1  ;;  %v3443_v48 = vrot.slane %v3442_v53, 2  ;;  %v3455_v12 = vrot.slane %v3454_v38, 4 }
0x16f7   :  { %v3424_v23 = vrot.slane %v3423_v32, 1  ;;  %v3436_v8 = vrot.slane %v3435_v19, 2  ;;  %v3469_v45 = vsel %vm917_vm3, %v3418_v63, %v3411_v15 }
0x16f8   :  { %v3444_v31 = vadd.f32 %v3443_v48, %v3442_v53  ;;  %v3447_v51 = vsel %vm258_vm2, %v3403_v1, 0.0  ;;  %v3456_v0 = vadd.f32 %v3455_v12, %v3454_v38  ;;  %v3432_v26 = vadd.f32 %v3431_v50, %v3430_v33  ;;  %v16875_v33 = vld [vmem:[#allocation6] ss:$0 sm:$0xff] }
0x16f9   :  { %v3425_v27 = vadd.f32 %v3424_v23, %v3423_v32  ;;  %v3437_v22 = vadd.f32 %v3436_v8, %v3435_v19  ;;  %v3448_v39 = vrot.slane %v3447_v51, 4  ;;  %v16910_v50 = vld [vmem:[%s18828_s12] ss:$0 sm:$0xff] }
0x16fa   :  { %v3445_v43 = vrot.slane %v3444_v31, 1  ;;  %v3457_v16 = vrot.slane %v3456_v0, 2 }
0x16fb   :  { %v3438_v3 = vrot.slane %v3437_v22, 1  ;;  %v3449_v54 = vadd.f32 %v3448_v39, %v3447_v51  ;;  %v3470_v29 = vsel %vm919_vm4, %v3425_v27, %v3469_v45 }
0x16fc   :  { %v3458_v57 = vadd.f32 %v3457_v16, %v3456_v0  ;;  %v3471_v58 = vsel %vm921_vm5, %v3432_v26, %v3470_v29  ;;  %v3446_v41 = vadd.f32 %v3445_v43, %v3444_v31 }
0x16fd   :  { %v3439_v2 = vadd.f32 %v3438_v3, %v3437_v22  ;;  %v3450_v36 = vrot.slane %v3449_v54, 2 }
0x16fe   :  { %v3459_v20 = vrot.slane %v3458_v57, 1 }
0x16ff   :  { %v3451_v40 = vadd.f32 %v3450_v36, %v3449_v54  ;;  %v3472_v46 = vsel %vm923_vm6, %v3439_v2, %v3471_v58  ;;  %v16936_v36 = vld [vmem:[%s18831_s15] ss:$0 sm:$0xff] }
0x1700   :  { %v3473_v35 = vsel %vm925_vm7, %v3446_v41, %v3472_v46  ;;  %v3460_v6 = vadd.f32 %v3459_v20, %v3458_v57 }
0x1701   :  { %v3452_v49 = vrot.slane %v3451_v40, 1 }
0x1703   :  { %v3453_v37 = vadd.f32 %v3452_v49, %v3451_v40 }
0x1705   :  { %v3474_v55 = vsel %vm927_vm8, %v3453_v37, %v3473_v35 }
0x1706   :  { %v3475_v63 = vsel %vm929_vm9, %v3460_v6, %v3474_v55 }
0x1707   :  { %13553 = vmatmul.mubr.msk.f32.vlgmr.msra.gmra.mrb[30].mxu1 %vm258_vm2, %v3475_v63 }
0x1708   :  { %14542 = vmatpush3.bf16.msra.mxu1 %v16271_v52  ;;  %13563 = vmatprep.mubr.msk.f32.mxu1 %vm15742_vm0, %v18982_v11 }
0x1709   :  { %14543 = vmatprep.subr.bf16.mxu1 %v18983_v60 }
0x170c   :  { %14545 = vmatpush3.bf16.msra.mxu1 %v16277_v7 }
0x170d   :  { %14546 = vmatprep.subr.bf16.mxu1 %v18983_v60 }
0x17da   :  { %v3544_v61 = vpop.f32.mrb[30].mxu1 }
0x17db   :  { %v3545_v53 = vadd.f32 %v16875_v33, %v3544_v61  ;;  %v13554_v15 = vpop.f32.mrb[31].mxu1 }
0x17dd   :  { %13564 = vmatmul.mubr.msk.f32.vlgmr.msra.gmra.mrb[32].mxu1 %vm258_vm2, %v3545_v53 }
0x17de   :  { %14548 = vmatpush3.bf16.msra.mxu1 %v16299_v62  ;;  %13570 = vmatprep.mubr.msk.f32.mxu1 %vm15742_vm0, %v18982_v11 }
0x17df   :  { %14555 = vmatprep.subr.bf16.mxu1 %v18983_v60 }
0x17e1   :  { %13571 = vmatmul.mubr.msk.f32.vlgmr.msra.gmra.mrb[34].mxu1 %vm1076_vm10, %v16773_v44 }
0x17e2   :  { %14557 = vmatpush3.bf16.msra.mxu1 %v16306_v59  ;;  %13592 = vmatprep.mubr.msk.f32.mxu1 %vm15742_vm0, %v18982_v11 }
0x17e3   :  { %14558 = vmatprep.subr.bf16.mxu1 %v18983_v60 }
0x17e6   :  { %14560 = vmatpush3.bf16.msra.mxu1 %v16312_v28 }
0x17e7   :  { %14567 = vmatprep.subr.bf16.mxu1 %v18983_v60 }
0x17e9   :  { %13593 = vmatmul.mubr.msk.f32.vlgmr.msra.gmra.mrb[36].mxu1 %vm258_vm2, %v16694_v56 }
0x17ea   :  { %14569 = vmatpush3.bf16.msra.mxu1 %v16318_v34  ;;  %13614 = vmatprep.mubr.msk.f32.mxu1 %vm15742_vm0, %v18982_v11 }
0x17eb   :  { %14570 = vmatprep.subr.bf16.mxu1 %v18983_v60 }
0x17ee   :  { %14572 = vmatpush3.bf16.msra.mxu1 %v16323_v25 }
0x17ef   :  { %14579 = vmatprep.subr.bf16.mxu1 %v18983_v60 }
0x17f1   :  { %13615 = vmatmul.mubr.msk.f32.vlgmr.msra.gmra.mrb[38].mxu1 %vm258_vm2, %v3545_v53 }
0x17f2   :  { %14581 = vmatpush3.bf16.msra.mxu1 %v16027_v9  ;;  %13636 = vmatprep.mubr.msk.f32.mxu1 %vm15742_vm0, %v18982_v11 }
0x17f3   :  { %14582 = vmatprep.subr.bf16.mxu1 %v18983_v60 }
0x17f6   :  { %14584 = vmatpush3.bf16.msra.mxu1 %v16046_v14 }
0x17f7   :  { %14592 = vmatprep.subr.bf16.mxu1 %v16058_v18 }
0x18b0   :  { %v3617_v56 = vpop.f32.mrb[32].mxu1 }
0x18b1   :  { %v13565_v44 = vpop.f32.mrb[33].mxu1 }
0x18b4   :  { %v3690_v32 = vpop.f32.mrb[34].mxu1 }
0x18b5   :  { %v3691_v19 = vadd.f32 %v3690_v32, %v3617_v56  ;;  %v13572_v38 = vpop.f32.mrb[35].mxu1 }
0x18b7   :  { %v3764_v1 = vadd.f32 %v16799_v13, %v3691_v19 }
0x18b9   :  { %v3765_v48 = vadd.f32 %v16910_v50, %v3764_v1  ;;  %v16969_v1 = vld [vmem:[%s18834_s18] ss:$0 sm:$0xff] }
0x18bb   :  { %15117 = vtanh.f32 %v3765_v48  ;;  %v12578_v51 = vmul.f32 -1.442695, %v3765_v48 }
0x18bc   :  { %v3856_v12 = vpop.f32.mrb[36].mxu1 }
0x18bd   :  { %v13594_v23 = vpop.f32.mrb[37].mxu1  ;;  %15119 = vpow2.f32 %v12578_v51  ;;  %v19011_v51 = vld [vmem:[#allocation21_spill] sm:$0xff] }
0x18c4   :  { %v16913_v8 = vpop.f32.mrb[38].mxu1 }
0x18c5   :  { %v15118_v45 = vpop.eup %15117  ;;  %v13616_v31 = vpop.f32.mrb[39].mxu1 }
0x18c6   :  { %3775 = vrot.lane.b32.xlu1 %v15118_v45, %s15746_s1 }
0x18c7   :  { %v15120_v0 = vpop.eup %15119 }
0x18c8   :  { %v3769_v13 = vadd.f32 1.0, %v15120_v0 }
0x18ca   :  { %15121 = vrcp.f32 %v3769_v13 }
0x18d4   :  { %v15122_v27 = vpop.eup %15121 }
0x18d5   :  { %v3773_v26 = vmul.f32 %v15122_v27, %v16670_v4 }
0x1938   :  { %v3776_v22 = vpop.permute.xlu1 %3775 }
0x1939   :  { %v3778_v39 = vmul.f32 %v15122_v27, %v3776_v22 }
0x193b   :  { %3780 = vrot.lane.b32.xlu0 %v3778_v39, %s15747_s14 }
0x19ad   :  { %v3781_v43 = vpop.permute.xlu0 %3780 }
0x19ae   :  { %v16918_v16 = vadd.f32 %v3781_v43, %v3773_v26 }
0x19b0   :  { %15123 = vtanh.f32 %v16918_v16 }
0x19ba   :  { %v15124_v3 = vpop.eup %15123 }
0x19bb   :  { %3786 = vrot.lane.b32.xlu1 %v15124_v3, %s15746_s1  ;;  %v16982_v3 = vld [vmem:[%s18821_s5] ss:$0 sm:$0xff] }
0x19bc   :  { %19012 = vst [vmem:[#allocation38_spill] sm:$0xff] %v16982_v3 }
0x1a2d   :  { %v3787_v54 = vpop.permute.xlu1 %3786 }
0x1a2e   :  { %v3789_v29 = vmul.f32 %v15122_v27, %v3787_v54 }
0x1a30   :  { %3861 = vrot.lane.b32.xlu1 %v3789_v29, %s15747_s14 }
0x1aa2   :  { %v16923_v57 = vpop.permute.xlu1 %3861 }
0x1aa3   :  { %13604 = vmatmul.mubr.msk.f32.vlgmr.msra.gmra.mrb[40].mxu0 %vm258_vm2, %v16923_v57 }
0x1aa4   :  { %14575 = vmatpush3.bf16.msra.mxu0 %v16377_v42  ;;  %13625 = vmatprep.mubr.msk.f32.mxu0 %vm15742_vm0, %v18982_v11 }
0x1aa5   :  { %14576 = vmatprep.subr.bf16.mxu0 %v18983_v60 }
0x1aa8   :  { %14578 = vmatpush3.bf16.msra.mxu0 %v16380_v21 }
0x1aa9   :  { %14585 = vmatprep.subr.bf16.mxu0 %v18983_v60 }
0x1b76   :  { %v3931_v4 = vpop.f32.mrb[40].mxu0 }
0x1b77   :  { %v3932_v58 = vadd.f32 %v3931_v4, %v3856_v12  ;;  %v13605_v2 = vpop.f32.mrb[41].mxu0  ;;  %v19013_v4 = vld [vmem:[#allocation23_spill] sm:$0xff] }
0x1b79   :  { %v3935_v41 = vadd.f32 %v16936_v36, %v3932_v58 }
0x1b7b   :  { %15125 = vtanh.f32 %v3935_v41  ;;  %v12581_v46 = vmul.f32 -1.442695, %v3935_v41 }
0x1b7d   :  { %15127 = vpow2.f32 %v12581_v46 }
0x1b85   :  { %v15126_v40 = vpop.eup %15125 }
0x1b86   :  { %3945 = vrot.lane.b32.xlu0 %v15126_v40, %s15746_s1 }
0x1b87   :  { %v15128_v20 = vpop.eup %15127 }
0x1b88   :  { %v3939_v35 = vadd.f32 1.0, %v15128_v20 }
0x1b8a   :  { %15129 = vrcp.f32 %v3939_v35 }
0x1b94   :  { %v15130_v49 = vpop.eup %15129 }
0x1b95   :  { %v3943_v55 = vmul.f32 %v15130_v49, %v16689_v47  ;;  %v19009_v47 = vld [vmem:[#allocation25_spill] sm:$0xff] }
0x1bf8   :  { %v3946_v37 = vpop.permute.xlu0 %3945 }
0x1bf9   :  { %v3948_v6 = vmul.f32 %v15130_v49, %v3946_v37  ;;  %v19014_v37 = vld [vmem:[#allocation24_spill] sm:$0xff] }
0x1bfb   :  { %3950 = vrot.lane.b32.xlu1 %v3948_v6, %s15747_s14 }
0x1c6d   :  { %v3951_v63 = vpop.permute.xlu1 %3950 }
0x1c6e   :  { %v16942_v61 = vadd.f32 %v3951_v63, %v3943_v55 }
0x1c70   :  { %15131 = vtanh.f32 %v16942_v61 }
0x1c7a   :  { %v15132_v53 = vpop.eup %15131 }
0x1c7b   :  { %3956 = vrot.lane.b32.xlu0 %v15132_v53, %s15746_s1 }
0x1ced   :  { %v3957_v15 = vpop.permute.xlu0 %3956 }
0x1cee   :  { %v3959_v56 = vmul.f32 %v15130_v49, %v3957_v15 }
0x1cf0   :  { %4031 = vrot.lane.b32.xlu1 %v3959_v56, %s15747_s14 }
0x1d62   :  { %v16947_v44 = vpop.permute.xlu1 %4031 }
0x1d63   :  { %13626 = vmatmul.mubr.msk.f32.vlgmr.msra.gmra.mrb[42].mxu0 %vm258_vm2, %v16947_v44 }
0x1d64   :  { %14587 = vmatpush3.bf16.msra.mxu0 %v16016_v5  ;;  %13647 = vmatprep.mubr.msk.f32.mxu0 %vm15742_vm0, %v18982_v11 }
0x1d65   :  { %14588 = vmatprep.subr.bf16.mxu0 %v18983_v60 }
0x1d68   :  { %14590 = vmatpush3.bf16.msra.mxu0 %v16030_v10 }
0x1d69   :  { %14599 = vmatprep.subr.bf16.mxu0 %v18983_v60 }
0x1d6b   :  { %13648 = vmatmul.mubr.msk.f32.vlgmr.msra.gmra.mrb[44].mxu0 %vm258_vm2, %v16947_v44 }
0x1d6c   :  { %14601 = vmatpush3.bf16.msra.mxu0 %v16156_v30  ;;  %13678 = vmatprep.mubr.msk.f32.mxu0 %vm15742_vm0, %v18982_v11 }
0x1d6d   :  { %14602 = vmatprep.subr.bf16.mxu0 %v18983_v60 }
0x1d70   :  { %14604 = vmatpush3.bf16.msra.mxu0 %v19009_v47 }
0x1d71   :  { %14605 = vmatprep.subr.bf16.mxu0 %v18983_v60 }
0x1e36   :  { %v4101_v32 = vpop.f32.mrb[42].mxu0 }
0x1e37   :  { %v4102_v19 = vadd.f32 %v4101_v32, %v16913_v8  ;;  %v13627_v38 = vpop.f32.mrb[43].mxu0  ;;  %v16995_v32 = vld [vmem:[%s18958_s22] sm:$0xff] }
0x1e38   :  { %19015 = vst [vmem:[#allocation39_spill] sm:$0xff] %v16995_v32 }
0x1e39   :  { %v16972_v48 = vadd.f32 %v16969_v1, %v4102_v19 }
0x1e3b   :  { %19010 = vst [vmem:[#allocation37_spill] sm:$0xff] %v16972_v48  ;;  %v4106_v12 = vsel %vm258_vm2, %v16972_v48, -inf }
0x1e3c   :  { %4107 = vmax.xlane.f32.xlu0 %v4106_v12 }
0x1e3e   :  { %v4268_v23 = vpop.f32.mrb[44].mxu0 }
0x1e3f   :  { %v13649_v45 = vpop.f32.mrb[45].mxu0  ;;  %v4269_v54 = vadd.f32 %v16982_v3, %v4268_v23 }
0x1e40   :  { %v19016_v45 = vld [vmem:[#allocation22_spill] sm:$0xff] }
0x1e41   :  { %v4272_v29 = vmul.f32 0.35355338, %v4269_v54 }
0x1e43   :  { %v4281_v58 = vrot.slane %v4272_v29, %v19013_v4  ;;  %v4274_v46 = vcombine.high %v4272_v29, %v4272_v29  ;;  %v19019_v29 = vld [vmem:[#allocation26_spill] sm:$0xff] }
0x1e45   :  { %v4297_v41 = vrot.slane %v4281_v58, %v19013_v4  ;;  %v4289_v20 = vcombine.high %v4281_v58, %v4281_v58  ;;  %v4288_v63 = vrot.slane %v4274_v46, %v19013_v4  ;;  %v17036_v46 = vld [vmem:[%s18958_s22 + $0x20] sm:$0xff] }
0x1e46   :  { %19021 = vst [vmem:[#allocation43_spill] sm:$0xff] %v17036_v46 }
0x1e47   :  { %v4326_v6 = vrot.slane %v4297_v41, %v19014_v37  ;;  %v4311_v53 = vrot.slane %v4289_v20, %v19013_v4  ;;  %v4319_v15 = vcombine.high %v4297_v41, %v4297_v41  ;;  %v4290_v38 = vcombine.high %v4288_v63, %v4288_v63 }
0x1e49   :  { %v4363_v19 = vmul.f32 %v16995_v32, %v4326_v6  ;;  %v4321_v12 = vcombine.high %v4311_v53, %v4311_v53  ;;  %v4330_v23 = vrot.slane %v4311_v53, %v19014_v37  ;;  %v17046_v6 = vld [vmem:[%s18958_s22 + $0x28] sm:$0xff]  ;;  %v17054_v53 = vld [vmem:[%s18958_s22 + $0x30] sm:$0xff] }
0x1e4a   :  { %19023 = vst [vmem:[#allocation44_spill] sm:$0xff] %v17046_v6  ;;  %19024 = vst [vmem:[#allocation45_spill] sm:$0xff] %v17054_v53 }
0x1ec9   :  { %v4108_v31 = vpop.xlane.xlu0 %4107 }
0x1eca   :  { %vm4109_vm11 = vcmp.ge.f32.partialorder %v16972_v48, %v4108_v31  ;;  %v4304_v31 = vrot.slane %v4288_v63, %v19013_v4 }
0x1ecb   :  { %v4110_v8 = vsel %vm4109_vm11, %v19011_v51, 32 }
0x1ecc   :  { %v4111_v0 = vsel %vm258_vm2, %v4110_v8, 2147483647  ;;  %v4334_v8 = vrot.slane %v4319_v15, %v19014_v37 }
0x1ecd   :  { %v4113_v13 = vshra.s32 %v4111_v0, 16  ;;  %v4112_v22 = vand.u32 65535, %v4111_v0  ;;  %v4318_v0 = vrot.slane %v4290_v38, %v19013_v4  ;;  %v19026_v38 = vld [vmem:[#allocation34_spill] sm:$0xff] }
0x1ecf   :  { %v4115_v27 = vcvt.s32.f32 %v4113_v13  ;;  %v4114_v26 = vcvt.s32.f32 %v4112_v22  ;;  %v17010_v13 = vld [vmem:[%s18958_s22 + $0x8] sm:$0xff]  ;;  %v4338_v22 = vrot.slane %v4321_v12, %v19014_v37  ;;  %v4322_v58 = vcombine.high %v4318_v0, %v4318_v0 }
0x1ed0   :  { %19017 = vst [vmem:[#allocation40_spill] sm:$0xff] %v17010_v13  ;;  %v19027_v12 = vld [vmem:[#allocation35_spill] sm:$0xff] }
0x1ed1   :  { %4116 = vmin.xlane.f32.xlu1 %v4115_v27  ;;  %v4354_v63 = vrot.slane %v4322_v58, %v19014_v37 }
0x1f5e   :  { %v4117_v39 = vpop.xlane.xlu1 %4116 }
0x1f5f   :  { %vm4118_vm12 = vcmp.eq.f32.partialorder %v4115_v27, %v4117_v39  ;;  %v4123_v2 = vcvt.f32.s32 %v4117_v39  ;;  %v4364_v27 = vmul.f32 %v17010_v13, %v4330_v23  ;;  %v4320_v39 = vcombine.high %v4304_v31, %v4304_v31 }
0x1f60   :  { %v4119_v43 = vsel %vm4118_vm12, %v4114_v26, inf  ;;  %v4342_v26 = vrot.slane %v4304_v31, %v19014_v37 }
0x1f61   :  { %4120 = vmin.xlane.f32.xlu0 %v4119_v43  ;;  %v4124_v35 = vshll.u32 %v4123_v2, 16  ;;  %v17019_v43 = vld [vmem:[%s18958_s22 + $0x10] sm:$0xff]  ;;  %v17028_v2 = vld [vmem:[%s18958_s22 + $0x18] sm:$0xff] }
0x1f62   :  { %19018 = vst [vmem:[#allocation41_spill] sm:$0xff] %v17019_v43  ;;  %v4365_v54 = vmul.f32 %v17019_v43, %v4334_v8  ;;  %19020 = vst [vmem:[#allocation42_spill] sm:$0xff] %v17028_v2  ;;  %v4366_v41 = vmul.f32 %v17028_v2, %v4338_v22  ;;  %v4367_v20 = vmul.f32 %v17036_v46, %v4342_v26 }
0x1fee   :  { %v4121_v40 = vpop.xlane.xlu0 %4120 }
0x1fef   :  { %v4122_v49 = vcvt.f32.s32 %v4121_v40  ;;  %v4346_v40 = vrot.slane %v4318_v0, %v19014_v37  ;;  %v19028_v0 = vld [vmem:[#allocation29_spill] sm:$0xff] }
0x1ff1   :  { %v4125_v55 = vadd.s32 %v4124_v35, %v4122_v49  ;;  %v4350_v35 = vrot.slane %v4320_v39, %v19014_v37  ;;  %v19022_v49 = vld [vmem:[#allocation33_spill] sm:$0xff]  ;;  %v19029_v39 = vld [vmem:[#allocation27_spill] sm:$0xff] }
0x1ff3   :  { %vm4126_vm13 = vcmp.eq.s32.totalorder %v19011_v51, %v4125_v55  ;;  %v4368_v55 = vmul.f32 %v17046_v6, %v4346_v40  ;;  %v4369_v15 = vmul.f32 %v17054_v53, %v4350_v35 }
0x1ff4   :  { %v12584_v56 = vsel %vm4126_vm13, 1.0, %v18982_v11 }
0x1ff5   :  { %13637 = vmatmul.mubr.msk.f32.vlgmr.msra.gmra.mrb[40].mxu1 %vm258_vm2, %v12584_v56  ;;  %v17062_v56 = vld [vmem:[%s18958_s22 + $0x38] sm:$0xff] }
0x1ff6   :  { %14594 = vmatpush3.bf16.msra.mxu1 %v16058_v18  ;;  %13658 = vmatprep.mubr.msk.f32.mxu1 %vm258_vm2, %v4363_v19  ;;  %19025 = vst [vmem:[#allocation46_spill] sm:$0xff] %v17062_v56  ;;  %v4370_v19 = vmul.f32 %v17062_v56, %v4354_v63  ;;  %v19032_v56 = vld [vmem:[#allocation31_spill] sm:$0xff] }
0x1ff7   :  { %14596 = vmatprep.subr.bf16.mxu1 %v19016_v45 }
0x1ffa   :  { %14598 = vmatpush3.bf16.msra.mxu1 %v19016_v45 }
0x1ffb   :  { %14614 = vmatprep.subr.bf16.mxu1 %v18983_v60 }
0x1ffd   :  { %13659 = vmatmul.mubr.msk.f32.vlgmr.msra.gmra.mrb[42].mxu1 %vm258_vm2, %v4364_v27 }
0x1ffe   :  { %13661 = vmatprep.mubr.msk.f32.mxu1 %vm258_vm2, %v4365_v54  ;;  %14616 = vmatpush3.bf16.msra.mxu1 %v19019_v29 }
0x1fff   :  { %14617 = vmatprep.subr.bf16.mxu1 %v18983_v60 }
0x2001   :  { %13662 = vmatmul.mubr.msk.f32.gmra.mrb[44].mxu1 %vm258_vm2, %v4366_v41 }
0x2002   :  { %13664 = vmatprep.mubr.msk.f32.mxu1 %vm258_vm2, %v4367_v20  ;;  %14619 = vmatpush3.bf16.msra.mxu1 %v19022_v49  ;;  %v19030_v20 = vld [vmem:[#allocation30_spill] sm:$0xff] }
0x2003   :  { %14626 = vmatprep.subr.bf16.mxu1 %v18983_v60 }
0x2005   :  { %13665 = vmatmul.mubr.msk.f32.gmra.mrb[46].mxu1 %vm258_vm2, %v4368_v55 }
0x2006   :  { %13667 = vmatprep.mubr.msk.f32.mxu1 %vm258_vm2, %v4369_v15  ;;  %v19031_v15 = vld [vmem:[#allocation28_spill] sm:$0xff] }
0x2009   :  { %13668 = vmatmul.mubr.msk.f32.gmra.mrb[48].mxu1 %vm258_vm2, %v4370_v19 }
0x200a   :  { %13707 = vmatprep.mubr.msk.f32.mxu1 %vm15742_vm0, %v18982_v11 }
0x200d   :  { %13708 = vmatmul.mubr.msk.f32.vlgmr.msra.gmra.mrb[50].mxu1 %vm258_vm2, %v16923_v57 }
0x200e   :  { %14628 = vmatpush3.bf16.msra.mxu1 %v19026_v38  ;;  %13729 = vmatprep.mubr.msk.f32.mxu1 %vm15742_vm0, %v18982_v11 }
0x200f   :  { %14629 = vmatprep.subr.bf16.mxu1 %v18983_v60 }
0x2012   :  { %14631 = vmatpush3.bf16.msra.mxu1 %v19027_v12 }
0x2013   :  { %14638 = vmatprep.subr.bf16.mxu1 %v18983_v60 }
0x20c8   :  { %v17076_v23 = vpop.f32.mrb[40].mxu1 }
0x20c9   :  { %v13638_v31 = vpop.f32.mrb[41].mxu1 }
0x20d0   :  { %v13660_v8 = vpop.f32.mrb[42].mxu1 }
0x20d1   :  { %v4501_v27 = vadd.f32 %v13660_v8, %v19028_v0  ;;  %v4461_v22 = vpop.f32.mrb[43].mxu1 }
0x20d2   :  { %v4500_v57 = vadd.f32 %v4461_v22, %v19029_v39 }
0x20d3   :  { %v4515_v26 = vsel %vm258_vm2, %v4501_v27, -inf }
0x20d4   :  { %v4516_v54 = vrot.slane %v4515_v26, 4  ;;  %v4508_v58 = vsel %vm258_vm2, %v4500_v57, -inf  ;;  %v13663_v41 = vpop.f32.mrb[44].mxu1 }
0x20d5   :  { %v4509_v40 = vrot.slane %v4508_v58, 4  ;;  %v17083_v35 = vadd.f32 %v13663_v41, %v19030_v20  ;;  %v4471_v55 = vpop.f32.mrb[45].mxu1 }
0x20d6   :  { %v4517_v63 = vmax.f32 %v4515_v26, %v4516_v54  ;;  %v17086_v19 = vadd.f32 %v4471_v55, %v19031_v15  ;;  %v19033_v55 = vld [vmem:[#allocation32_spill] sm:$0xff] }
0x20d7   :  { %v4510_v31 = vmax.f32 %v4508_v58, %v4509_v40  ;;  %v4529_v8 = vsel %vm258_vm2, %v17083_v35, -inf }
0x20d8   :  { %v4518_v22 = vrot.slane %v4517_v63, 2  ;;  %v4530_v48 = vrot.slane %v4529_v8, 4  ;;  %v4522_v39 = vsel %vm258_vm2, %v17086_v19, -inf  ;;  %v13666_v0 = vpop.f32.mrb[46].mxu1 }
0x20d9   :  { %v4511_v12 = vrot.slane %v4510_v31, 2  ;;  %v4523_v38 = vrot.slane %v4522_v39, 4  ;;  %v17093_v41 = vadd.f32 %v13666_v0, %v19032_v56  ;;  %v4481_v20 = vpop.f32.mrb[47].mxu1 }
0x20da   :  { %v4519_v26 = vmax.f32 %v4517_v63, %v4518_v22  ;;  %v4531_v54 = vmax.f32 %v4529_v8, %v4530_v48  ;;  %v4504_v15 = vadd.f32 %v4481_v20, %v19033_v55 }
0x20db   :  { %v4512_v58 = vmax.f32 %v4510_v31, %v4511_v12  ;;  %v4524_v40 = vmax.f32 %v4522_v39, %v4523_v38  ;;  %v4543_v53 = vsel %vm258_vm2, %v17093_v41, -inf }
0x20dc   :  { %v4520_v6 = vrot.slane %v4519_v26, 1  ;;  %v4532_v49 = vrot.slane %v4531_v54, 2  ;;  %v4544_v46 = vrot.slane %v4543_v53, 4  ;;  %v4536_v2 = vsel %vm258_vm2, %v4504_v15, -inf  ;;  %v13669_v29 = vpop.f32.mrb[48].mxu1 }
0x20dd   :  { %v4513_v43 = vrot.slane %v4512_v58, 1  ;;  %v4525_v13 = vrot.slane %v4524_v40, 2  ;;  %v4537_v0 = vrot.slane %v4536_v2, 4  ;;  %v4507_v56 = vadd.f32 %v13669_v29, %v16206_v17  ;;  %v4491_v63 = vpop.f32.mrb[49].mxu1 }
0x20de   :  { %v4521_v48 = vmax.f32 %v4519_v26, %v4520_v6  ;;  %v4533_v8 = vmax.f32 %v4531_v54, %v4532_v49  ;;  %v4545_v20 = vmax.f32 %v4543_v53, %v4544_v46  ;;  %v4506_v38 = vadd.f32 %v4491_v63, %v16209_v24 }
0x20df   :  { %v4514_v12 = vmax.f32 %v4512_v58, %v4513_v43  ;;  %v4526_v39 = vmax.f32 %v4524_v40, %v4525_v13  ;;  %v4538_v31 = vmax.f32 %v4536_v2, %v4537_v0  ;;  %v4557_v22 = vsel %vm258_vm2, %v4507_v56, -inf }
0x20e0   :  { %v4565_v55 = vsub.f32 %v4501_v27, %v4521_v48  ;;  %v4534_v45 = vrot.slane %v4533_v8, 1  ;;  %v4546_v32 = vrot.slane %v4545_v20, 2  ;;  %v4558_v37 = vrot.slane %v4557_v22, 4  ;;  %v17102_v4 = vpop.f32.mrb[50].mxu1 }
0x20e1   :  { %v4564_v3 = vsub.f32 %v4500_v57, %v4514_v12  ;;  %v4527_v51 = vrot.slane %v4526_v39, 1  ;;  %v4539_v29 = vrot.slane %v4538_v31, 2  ;;  %v4550_v6 = vsel %vm258_vm2, %v4506_v38, -inf  ;;  %v13709_v49 = vpop.f32.mrb[51].mxu1 }
0x20e2   :  { %v4574_v46 = vmul.f32 1.442695, %v4565_v55  ;;  %v4535_v53 = vmax.f32 %v4533_v8, %v4534_v45  ;;  %v4547_v26 = vmax.f32 %v4545_v20, %v4546_v32  ;;  %v4559_v43 = vmax.f32 %v4557_v22, %v4558_v37 }
0x20e3   :  { %v4572_v13 = vmul.f32 1.442695, %v4564_v3  ;;  %v4528_v2 = vmax.f32 %v4526_v39, %v4527_v51  ;;  %v4540_v54 = vmax.f32 %v4538_v31, %v4539_v29  ;;  %v4551_v58 = vrot.slane %v4550_v6, 4 }
0x20e4   :  { %15133 = vpow2.f32 %v4574_v46  ;;  %v4567_v27 = vsub.f32 %v17083_v35, %v4535_v53  ;;  %v4548_v40 = vrot.slane %v4547_v26, 1  ;;  %v4560_v0 = vrot.slane %v4559_v43, 2 }
0x20e5   :  { %15135 = vpow2.f32 %v4572_v13  ;;  %v4566_v57 = vsub.f32 %v17086_v19, %v4528_v2  ;;  %v4541_v63 = vrot.slane %v4540_v54, 1  ;;  %v4552_v48 = vmax.f32 %v4550_v6, %v4551_v58 }
0x20e6   :  { %v4578_v12 = vmul.f32 1.442695, %v4567_v27  ;;  %v4549_v49 = vmax.f32 %v4547_v26, %v4548_v40  ;;  %v4561_v55 = vmax.f32 %v4559_v43, %v4560_v0 }
0x20e7   :  { %v4576_v45 = vmul.f32 1.442695, %v4566_v57  ;;  %v4542_v32 = vmax.f32 %v4540_v54, %v4541_v63  ;;  %v4553_v37 = vrot.slane %v4552_v48, 2 }
0x20e8   :  { %15137 = vpow2.f32 %v4578_v12  ;;  %v4569_v51 = vsub.f32 %v17093_v41, %v4549_v49  ;;  %v4562_v3 = vrot.slane %v4561_v55, 1 }
0x20e9   :  { %15139 = vpow2.f32 %v4576_v45  ;;  %v4568_v8 = vsub.f32 %v4504_v15, %v4542_v32  ;;  %v4554_v35 = vmax.f32 %v4552_v48, %v4553_v37 }
0x20ea   :  { %v4582_v20 = vmul.f32 1.442695, %v4569_v51  ;;  %v4563_v39 = vmax.f32 %v4561_v55, %v4562_v3 }
0x20eb   :  { %v4580_v31 = vmul.f32 1.442695, %v4568_v8  ;;  %v4555_v22 = vrot.slane %v4554_v35, 1 }
0x20ec   :  { %15141 = vpow2.f32 %v4582_v20  ;;  %v4571_v19 = vsub.f32 %v4507_v56, %v4563_v39 }
0x20ed   :  { %15143 = vpow2.f32 %v4580_v31  ;;  %v4556_v29 = vmax.f32 %v4554_v35, %v4555_v22 }
0x20ee   :  { %v17108_v6 = vpop.eup %15133  ;;  %v4586_v46 = vmul.f32 1.442695, %v4571_v19 }
0x20ef   :  { %v17110_v53 = vpop.eup %15135  ;;  %v4595_v41 = vsel %vm258_vm2, %v17108_v6, 0.0  ;;  %v4570_v26 = vsub.f32 %v4506_v38, %v4556_v29 }
0x20f0   :  { %v4596_v43 = vrot.slane %v4595_v41, 4  ;;  %v4588_v15 = vsel %vm258_vm2, %v17110_v53, 0.0  ;;  %15145 = vpow2.f32 %v4586_v46 }
0x20f1   :  { %v4589_v13 = vrot.slane %v4588_v15, 4  ;;  %v4584_v2 = vmul.f32 1.442695, %v4570_v26 }
0x20f2   :  { %v17116_v54 = vpop.eup %15137  ;;  %v4597_v56 = vadd.f32 %v4596_v43, %v4595_v41 }
0x20f3   :  { %v17118_v58 = vpop.eup %15139  ;;  %v4590_v27 = vadd.f32 %v4589_v13, %v4588_v15  ;;  %v4609_v40 = vsel %vm258_vm2, %v17116_v54, 0.0  ;;  %15147 = vpow2.f32 %v4584_v2 }
0x20f4   :  { %v4598_v0 = vrot.slane %v4597_v56, 2  ;;  %v4610_v57 = vrot.slane %v4609_v40, 4  ;;  %v4602_v38 = vsel %vm258_vm2, %v17118_v58, 0.0 }
0x20f5   :  { %v4591_v63 = vrot.slane %v4590_v27, 2  ;;  %v4603_v48 = vrot.slane %v4602_v38, 4 }
0x20f6   :  { %v17124_v12 = vpop.eup %15141  ;;  %v4599_v49 = vadd.f32 %v4598_v0, %v4597_v56  ;;  %v4611_v55 = vadd.f32 %v4610_v57, %v4609_v40 }
0x20f7   :  { %v17126_v45 = vpop.eup %15143  ;;  %v4592_v32 = vadd.f32 %v4591_v63, %v4590_v27  ;;  %v4604_v37 = vadd.f32 %v4603_v48, %v4602_v38  ;;  %v4623_v51 = vsel %vm258_vm2, %v17124_v12, 0.0 }
0x20f8   :  { %v4600_v3 = vrot.slane %v4599_v49, 1  ;;  %v4612_v8 = vrot.slane %v4611_v55, 2  ;;  %v4624_v35 = vrot.slane %v4623_v51, 4  ;;  %v4616_v20 = vsel %vm258_vm2, %v17126_v45, 0.0 }
0x20f9   :  { %v4593_v39 = vrot.slane %v4592_v32, 1  ;;  %v4605_v31 = vrot.slane %v4604_v37, 2  ;;  %v4617_v22 = vrot.slane %v4616_v20, 4 }
0x20fa   :  { %v17132_v19 = vpop.eup %15145  ;;  %v4601_v29 = vadd.f32 %v4600_v3, %v4599_v49  ;;  %v4613_v46 = vadd.f32 %v4612_v8, %v4611_v55  ;;  %v4625_v41 = vadd.f32 %v4624_v35, %v4623_v51 }
0x20fb   :  { %v4594_v26 = vadd.f32 %v4593_v39, %v4592_v32  ;;  %v4606_v43 = vadd.f32 %v4605_v31, %v4604_v37  ;;  %v4618_v15 = vadd.f32 %v4617_v22, %v4616_v20  ;;  %v4637_v13 = vsel %vm258_vm2, %v17132_v19, 0.0 }
0x20fc   :  { %15149 = vrcp.f32 %v4601_v29  ;;  %v4614_v2 = vrot.slane %v4613_v46, 1  ;;  %v4626_v56 = vrot.slane %v4625_v41, 2  ;;  %v4638_v27 = vrot.slane %v4637_v13, 4 }
0x20fd   :  { %v17136_v40 = vpop.eup %15147  ;;  %15151 = vrcp.f32 %v4594_v26  ;;  %v4607_v0 = vrot.slane %v4606_v43, 1  ;;  %v4619_v57 = vrot.slane %v4618_v15, 2 }
0x20fe   :  { %v4615_v38 = vadd.f32 %v4614_v2, %v4613_v46  ;;  %v4627_v63 = vadd.f32 %v4626_v56, %v4625_v41  ;;  %v4639_v48 = vadd.f32 %v4638_v27, %v4637_v13  ;;  %v4630_v49 = vsel %vm258_vm2, %v17136_v40, 0.0  ;;  %v17142_v56 = vld [vmem:[#allocation2 + $0x8] sm:$0xff] }
0x20ff   :  { %v4608_v55 = vadd.f32 %v4607_v0, %v4606_v43  ;;  %v4620_v32 = vadd.f32 %v4619_v57, %v4618_v15  ;;  %v4631_v37 = vrot.slane %v4630_v49, 4 }
0x2100   :  { %15153 = vrcp.f32 %v4615_v38  ;;  %v4628_v51 = vrot.slane %v4627_v63, 1  ;;  %v4640_v3 = vrot.slane %v4639_v48, 2  ;;  %v17145_v38 = vld [vmem:[#allocation2] sm:$0xff] }
0x2101   :  { %15155 = vrcp.f32 %v4608_v55  ;;  %v4621_v8 = vrot.slane %v4620_v32, 1  ;;  %v4632_v35 = vadd.f32 %v4631_v37, %v4630_v49 }
0x2102   :  { %v4629_v20 = vadd.f32 %v4628_v51, %v4627_v63  ;;  %v4641_v39 = vadd.f32 %v4640_v3, %v4639_v48  ;;  %v17152_v51 = vld [vmem:[#allocation2 + $0x18] sm:$0xff] }
0x2103   :  { %v4622_v31 = vadd.f32 %v4621_v8, %v4620_v32  ;;  %v4633_v22 = vrot.slane %v4632_v35, 2 }
0x2104   :  { %15157 = vrcp.f32 %v4629_v20  ;;  %v4642_v29 = vrot.slane %v4641_v39, 1  ;;  %v17155_v20 = vld [vmem:[#allocation2 + $0x10] sm:$0xff] }
0x2105   :  { %15159 = vrcp.f32 %v4622_v31  ;;  %v4634_v46 = vadd.f32 %v4633_v22, %v4632_v35  ;;  %19034 = vst [vmem:[#allocation47_spill] sm:$0xff] %v17155_v20 }
0x2106   :  { %v15150_v41 = vpop.eup %15149  ;;  %v4643_v26 = vadd.f32 %v4642_v29, %v4641_v39 }
0x2107   :  { %v15152_v13 = vpop.eup %15151  ;;  %v4647_v43 = vmul.f32 %v15150_v41, %v17108_v6  ;;  %v4635_v15 = vrot.slane %v4634_v46, 1 }
0x2108   :  { %v4645_v2 = vmul.f32 %v15152_v13, %v17110_v53  ;;  %15161 = vrcp.f32 %v4643_v26 }
0x2109   :  { %v4661_v27 = vmul.f32 %v17142_v56, %v4647_v43  ;;  %v4636_v0 = vadd.f32 %v4635_v15, %v4634_v46  ;;  %v17162_v15 = vld [vmem:[#allocation2 + $0x28] sm:$0xff] }
0x210a   :  { %v15154_v57 = vpop.eup %15153  ;;  %v4660_v63 = vmul.f32 %v17145_v38, %v4645_v2  ;;  %19035 = vst [vmem:[#allocation49_spill] sm:$0xff] %v17162_v15 }
0x210b   :  { %v15156_v48 = vpop.eup %15155  ;;  %v4675_v49 = vsel %vm258_vm2, %v4661_v27, 0.0  ;;  %v4651_v55 = vmul.f32 %v15154_v57, %v17116_v54  ;;  %15163 = vrcp.f32 %v4636_v0 }
0x210c   :  { %v4676_v6 = vrot.slane %v4675_v49, 4  ;;  %v4668_v53 = vsel %vm258_vm2, %v4660_v63, 0.0  ;;  %v4649_v32 = vmul.f32 %v15156_v48, %v17118_v58  ;;  %v17165_v63 = vld [vmem:[#allocation2 + $0x20] sm:$0xff] }
0x210d   :  { %v4669_v37 = vrot.slane %v4668_v53, 4  ;;  %v4663_v3 = vmul.f32 %v17152_v51, %v4651_v55  ;;  %19036 = vst [vmem:[#allocation50_spill] sm:$0xff] %v17165_v63 }
0x210e   :  { %v15158_v8 = vpop.eup %15157  ;;  %v4677_v35 = vadd.f32 %v4676_v6, %v4675_v49  ;;  %v4662_v39 = vmul.f32 %v17155_v20, %v4649_v32 }
0x210f   :  { %v15160_v31 = vpop.eup %15159  ;;  %v4670_v22 = vadd.f32 %v4669_v37, %v4668_v53  ;;  %v4689_v54 = vsel %vm258_vm2, %v4663_v3, 0.0  ;;  %v4655_v29 = vmul.f32 %v15158_v8, %v17124_v12 }
0x2110   :  { %v4678_v46 = vrot.slane %v4677_v35, 2  ;;  %v4690_v41 = vrot.slane %v4689_v54, 4  ;;  %v4682_v58 = vsel %vm258_vm2, %v4662_v39, 0.0  ;;  %v4653_v26 = vmul.f32 %v15160_v31, %v17126_v45  ;;  %v17171_v31 = vld [vmem:[#allocation2 + $0x38] sm:$0xff] }
0x2111   :  { %v4671_v13 = vrot.slane %v4670_v22, 2  ;;  %v4683_v43 = vrot.slane %v4682_v58, 4  ;;  %v4665_v2 = vmul.f32 %v17162_v15, %v4655_v29 }
0x2112   :  { %v15162_v27 = vpop.eup %15161  ;;  %v4679_v0 = vadd.f32 %v4678_v46, %v4677_v35  ;;  %v4691_v57 = vadd.f32 %v4690_v41, %v4689_v54  ;;  %v4664_v48 = vmul.f32 %v17165_v63, %v4653_v26 }
0x2113   :  { %v4672_v12 = vadd.f32 %v4671_v13, %v4670_v22  ;;  %v4684_v49 = vadd.f32 %v4683_v43, %v4682_v58  ;;  %v4703_v55 = vsel %vm258_vm2, %v4665_v2, 0.0  ;;  %v4659_v6 = vmul.f32 %v15162_v27, %v17132_v19  ;;  %v17176_v43 = vld [vmem:[#allocation2 + $0x30] sm:$0xff] }
0x2114   :  { %v4680_v45 = vrot.slane %v4679_v0, 1  ;;  %v4692_v53 = vrot.slane %v4691_v57, 2  ;;  %v4704_v32 = vrot.slane %v4703_v55, 4  ;;  %v4696_v37 = vsel %vm258_vm2, %v4664_v48, 0.0 }
0x2115   :  { %v15164_v3 = vpop.eup %15163  ;;  %v4673_v8 = vrot.slane %v4672_v12, 1  ;;  %v4685_v39 = vrot.slane %v4684_v49, 2  ;;  %v4697_v35 = vrot.slane %v4696_v37, 4  ;;  %v4667_v54 = vmul.f32 %v17171_v31, %v4659_v6 }
0x2116   :  { %v4681_v29 = vadd.f32 %v4680_v45, %v4679_v0  ;;  %v4657_v22 = vmul.f32 %v15164_v3, %v17136_v40  ;;  %v4693_v46 = vadd.f32 %v4692_v53, %v4691_v57  ;;  %v4705_v41 = vadd.f32 %v4704_v32, %v4703_v55 }
0x2117   :  { %v4674_v58 = vadd.f32 %v4673_v8, %v4672_v12  ;;  %v4686_v19 = vadd.f32 %v4685_v39, %v4684_v49  ;;  %v4698_v26 = vadd.f32 %v4697_v35, %v4696_v37  ;;  %v4717_v13 = vsel %vm258_vm2, %v4667_v54, 0.0 }
0x2118   :  { %v4666_v2 = vmul.f32 %v17176_v43, %v4657_v22  ;;  %v4694_v27 = vrot.slane %v4693_v46, 1  ;;  %v4706_v48 = vrot.slane %v4705_v41, 2  ;;  %v4718_v63 = vrot.slane %v4717_v13, 4 }
0x2119   :  { %v4687_v15 = vrot.slane %v4686_v19, 1  ;;  %v4699_v20 = vrot.slane %v4698_v26, 2  ;;  %v4732_v0 = vsel %vm917_vm3, %v4681_v29, %v4674_v58 }
0x211a   :  { %v4707_v6 = vadd.f32 %v4706_v48, %v4705_v41  ;;  %v4710_v40 = vsel %vm258_vm2, %v4666_v2, 0.0  ;;  %v4719_v57 = vadd.f32 %v4718_v63, %v4717_v13  ;;  %v4695_v45 = vadd.f32 %v4694_v27, %v4693_v46 }
0x211b   :  { %v4688_v12 = vadd.f32 %v4687_v15, %v4686_v19  ;;  %v4700_v49 = vadd.f32 %v4699_v20, %v4698_v26  ;;  %v4711_v55 = vrot.slane %v4710_v40, 4 }
0x211c   :  { %v4708_v53 = vrot.slane %v4707_v6, 1  ;;  %v4720_v32 = vrot.slane %v4719_v57, 2 }
0x211d   :  { %v4701_v37 = vrot.slane %v4700_v49, 1  ;;  %v4712_v3 = vadd.f32 %v4711_v55, %v4710_v40  ;;  %v4733_v8 = vsel %vm919_vm4, %v4688_v12, %v4732_v0 }
0x211e   :  { %v4721_v39 = vadd.f32 %v4720_v32, %v4719_v57  ;;  %v4734_v35 = vsel %vm921_vm5, %v4695_v45, %v4733_v8  ;;  %v4709_v29 = vadd.f32 %v4708_v53, %v4707_v6 }
0x211f   :  { %v4702_v54 = vadd.f32 %v4701_v37, %v4700_v49  ;;  %v4713_v22 = vrot.slane %v4712_v3, 2 }
0x2120   :  { %v4722_v63 = vrot.slane %v4721_v39, 1 }
0x2121   :  { %v4714_v41 = vadd.f32 %v4713_v22, %v4712_v3  ;;  %v4735_v58 = vsel %vm923_vm6, %v4702_v54, %v4734_v35 }
0x2122   :  { %v4736_v20 = vsel %vm925_vm7, %v4709_v29, %v4735_v58  ;;  %v4723_v19 = vadd.f32 %v4722_v63, %v4721_v39 }
0x2123   :  { %v4715_v15 = vrot.slane %v4714_v41, 1 }
0x2125   :  { %v4716_v46 = vadd.f32 %v4715_v15, %v4714_v41 }
0x2127   :  { %v4737_v26 = vsel %vm927_vm8, %v4716_v46, %v4736_v20 }
0x2128   :  { %v4738_v13 = vsel %vm929_vm9, %v4723_v19, %v4737_v26 }
0x2129   :  { %13679 = vmatmul.mubr.msk.f32.vlgmr.msra.gmra.mrb[46].mxu0 %vm258_vm2, %v4738_v13 }
0x212a   :  { %14607 = vmatpush3.bf16.msra.mxu0 %v16271_v52  ;;  %13689 = vmatprep.mubr.msk.f32.mxu0 %vm15742_vm0, %v18982_v11 }
0x212b   :  { %14608 = vmatprep.subr.bf16.mxu0 %v18983_v60 }
0x212e   :  { %14610 = vmatpush3.bf16.msra.mxu0 %v16277_v7 }
0x212f   :  { %14611 = vmatprep.subr.bf16.mxu0 %v18983_v60 }
0x21fc   :  { %v4807_v2 = vpop.f32.mrb[46].mxu0 }
0x21fd   :  { %v4808_v27 = vadd.f32 %v16875_v33, %v4807_v2  ;;  %v13680_v48 = vpop.f32.mrb[47].mxu0 }
0x21ff   :  { %13690 = vmatmul.mubr.msk.f32.vlgmr.msra.gmra.mrb[48].mxu0 %vm258_vm2, %v4808_v27 }
0x2200   :  { %14613 = vmatpush3.bf16.msra.mxu0 %v16299_v62  ;;  %13696 = vmatprep.mubr.msk.f32.mxu0 %vm15742_vm0, %v18982_v11 }
0x2201   :  { %14620 = vmatprep.subr.bf16.mxu0 %v18983_v60 }
0x2203   :  { %13697 = vmatmul.mubr.msk.f32.vlgmr.msra.gmra.mrb[50].mxu0 %vm1076_vm10, %v17076_v23 }
0x2204   :  { %14622 = vmatpush3.bf16.msra.mxu0 %v16306_v59  ;;  %13718 = vmatprep.mubr.msk.f32.mxu0 %vm15742_vm0, %v18982_v11 }
0x2205   :  { %14623 = vmatprep.subr.bf16.mxu0 %v18983_v60 }
0x2208   :  { %14625 = vmatpush3.bf16.msra.mxu0 %v16312_v28 }
0x2209   :  { %14632 = vmatprep.subr.bf16.mxu0 %v18983_v60 }
0x220b   :  { %13719 = vmatmul.mubr.msk.f32.vlgmr.msra.gmra.mrb[52].mxu0 %vm258_vm2, %v16947_v44 }
0x220c   :  { %14634 = vmatpush3.bf16.msra.mxu0 %v16318_v34  ;;  %13740 = vmatprep.mubr.msk.f32.mxu0 %vm15742_vm0, %v18982_v11 }
0x220d   :  { %14635 = vmatprep.subr.bf16.mxu0 %v18983_v60 }
0x2210   :  { %14637 = vmatpush3.bf16.msra.mxu0 %v16323_v25 }
0x2211   :  { %14644 = vmatprep.subr.bf16.mxu0 %v18983_v60 }
0x2213   :  { %13741 = vmatmul.mubr.msk.f32.vlgmr.msra.gmra.mrb[54].mxu0 %vm258_vm2, %v4808_v27 }
0x2214   :  { %14646 = vmatpush3.bf16.msra.mxu0 %v16027_v9  ;;  %13762 = vmatprep.mubr.msk.f32.mxu0 %vm15742_vm0, %v18982_v11 }
0x2215   :  { %14647 = vmatprep.subr.bf16.mxu0 %v18983_v60 }
0x2218   :  { %14649 = vmatpush3.bf16.msra.mxu0 %v16046_v14 }
0x2219   :  { %14657 = vmatprep.subr.bf16.mxu0 %v16058_v18 }
0x22d2   :  { %v4880_v33 = vpop.f32.mrb[48].mxu0 }
0x22d3   :  { %v13691_v44 = vpop.f32.mrb[49].mxu0 }
0x22d6   :  { %v4953_v23 = vpop.f32.mrb[50].mxu0 }
0x22d7   :  { %v4954_v0 = vadd.f32 %v4953_v23, %v4880_v33  ;;  %v13698_v6 = vpop.f32.mrb[51].mxu0 }
0x22d9   :  { %v5027_v40 = vadd.f32 %v17102_v4, %v4954_v0 }
0x22db   :  { %v5028_v57 = vadd.f32 %v16910_v50, %v5027_v40 }
0x22dd   :  { %15165 = vtanh.f32 %v5028_v57  ;;  %v12599_v32 = vmul.f32 -1.442695, %v5028_v57 }
0x22de   :  { %v5119_v12 = vpop.f32.mrb[52].mxu0 }
0x22df   :  { %v13720_v49 = vpop.f32.mrb[53].mxu0  ;;  %15167 = vpow2.f32 %v12599_v32 }
0x22e6   :  { %v17225_v55 = vpop.f32.mrb[54].mxu0 }
0x22e7   :  { %v15166_v45 = vpop.eup %15165  ;;  %v13742_v53 = vpop.f32.mrb[55].mxu0 }
0x22e8   :  { %5038 = vrot.lane.b32.xlu0 %v15166_v45, %s15746_s1 }
0x22e9   :  { %v15168_v37 = vpop.eup %15167 }
0x22ea   :  { %v5032_v3 = vadd.f32 1.0, %v15168_v37 }
0x22ec   :  { %15169 = vrcp.f32 %v5032_v3  ;;  %v19038_v3 = vld [vmem:[#allocation21_spill] sm:$0xff] }
0x22f6   :  { %v15170_v8 = vpop.eup %15169 }
0x22f7   :  { %v5036_v50 = vmul.f32 %v15170_v8, %v16918_v16 }
0x235a   :  { %v5039_v39 = vpop.permute.xlu0 %5038 }
0x235b   :  { %v5041_v35 = vmul.f32 %v15170_v8, %v5039_v39 }
0x235d   :  { %5043 = vrot.lane.b32.xlu1 %v5041_v35, %s15747_s14 }
0x23cf   :  { %v5044_v4 = vpop.permute.xlu1 %5043 }
0x23d0   :  { %v17230_v54 = vadd.f32 %v5044_v4, %v5036_v50 }
0x23d2   :  { %15171 = vtanh.f32 %v17230_v54 }
0x23dc   :  { %v15172_v22 = vpop.eup %15171 }
0x23dd   :  { %5049 = vrot.lane.b32.xlu1 %v15172_v22, %s15746_s1 }
0x244f   :  { %v5050_v29 = vpop.permute.xlu1 %5049 }
0x2450   :  { %v5052_v41 = vmul.f32 %v15170_v8, %v5050_v29  ;;  %v19039_v29 = vld [vmem:[#allocation38_spill] sm:$0xff] }
0x2452   :  { %5124 = vrot.lane.b32.xlu0 %v5052_v41, %s15747_s14 }
0x24c4   :  { %v17235_v58 = vpop.permute.xlu0 %5124 }
0x24c5   :  { %13730 = vmatmul.mubr.msk.f32.vlgmr.msra.gmra.mrb[52].mxu1 %vm258_vm2, %v17235_v58 }
0x24c6   :  { %14640 = vmatpush3.bf16.msra.mxu1 %v16377_v42  ;;  %13751 = vmatprep.mubr.msk.f32.mxu1 %vm15742_vm0, %v18982_v11 }
0x24c7   :  { %14641 = vmatprep.subr.bf16.mxu1 %v18983_v60 }
0x24ca   :  { %14643 = vmatpush3.bf16.msra.mxu1 %v16380_v21 }
0x24cb   :  { %14650 = vmatprep.subr.bf16.mxu1 %v18983_v60 }
0x2598   :  { %v5194_v16 = vpop.f32.mrb[52].mxu1 }
0x2599   :  { %v5195_v63 = vadd.f32 %v5194_v16, %v5119_v12  ;;  %v13731_v20 = vpop.f32.mrb[53].mxu1 }
0x259b   :  { %v5198_v15 = vadd.f32 %v16936_v36, %v5195_v63  ;;  %v19040_v63 = vld [vmem:[#allocation23_spill] sm:$0xff] }
0x259d   :  { %15173 = vtanh.f32 %v5198_v15  ;;  %v12602_v19 = vmul.f32 -1.442695, %v5198_v15 }
0x259f   :  { %15175 = vpow2.f32 %v12602_v19 }
0x25a7   :  { %v15174_v46 = vpop.eup %15173 }
0x25a8   :  { %5208 = vrot.lane.b32.xlu1 %v15174_v46, %s15746_s1 }
0x25a9   :  { %v15176_v26 = vpop.eup %15175 }
0x25aa   :  { %v5202_v13 = vadd.f32 1.0, %v15176_v26 }
0x25ac   :  { %15177 = vrcp.f32 %v5202_v13 }
0x25b6   :  { %v15178_v2 = vpop.eup %15177 }
0x25b7   :  { %v5206_v33 = vmul.f32 %v15178_v2, %v16942_v61 }
0x261a   :  { %v5209_v27 = vpop.permute.xlu1 %5208 }
0x261b   :  { %v5211_v48 = vmul.f32 %v15178_v2, %v5209_v27 }
0x261d   :  { %5213 = vrot.lane.b32.xlu0 %v5211_v48, %s15747_s14  ;;  %v19041_v48 = vld [vmem:[#allocation24_spill] sm:$0xff] }
0x268f   :  { %v5214_v44 = vpop.permute.xlu0 %5213 }
0x2690   :  { %v17249_v23 = vadd.f32 %v5214_v44, %v5206_v33 }
0x2692   :  { %15179 = vtanh.f32 %v17249_v23 }
0x269c   :  { %v15180_v36 = vpop.eup %15179 }
0x269d   :  { %5219 = vrot.lane.b32.xlu1 %v15180_v36, %s15746_s1 }
0x270f   :  { %v5220_v0 = vpop.permute.xlu1 %5219 }
0x2710   :  { %v5222_v6 = vmul.f32 %v15178_v2, %v5220_v0 }
0x2712   :  { %5294 = vrot.lane.b32.xlu0 %v5222_v6, %s15747_s14 }
0x2784   :  { %v17254_v40 = vpop.permute.xlu0 %5294 }
0x2785   :  { %13752 = vmatmul.mubr.msk.f32.vlgmr.msra.gmra.mrb[54].mxu1 %vm258_vm2, %v17254_v40 }
0x2786   :  { %14652 = vmatpush3.bf16.msra.mxu1 %v16016_v5  ;;  %13773 = vmatprep.mubr.msk.f32.mxu1 %vm15742_vm0, %v18982_v11 }
0x2787   :  { %14653 = vmatprep.subr.bf16.mxu1 %v18983_v60 }
0x278a   :  { %14655 = vmatpush3.bf16.msra.mxu1 %v16030_v10 }
0x278b   :  { %14664 = vmatprep.subr.bf16.mxu1 %v18983_v60 }
0x278d   :  { %13774 = vmatmul.mubr.msk.f32.vlgmr.msra.gmra.mrb[56].mxu1 %vm258_vm2, %v17254_v40 }
0x278e   :  { %14666 = vmatpush3.bf16.msra.mxu1 %v16156_v30  ;;  %13804 = vmatprep.mubr.msk.f32.mxu1 %vm15742_vm0, %v18982_v11 }
0x278f   :  { %14667 = vmatprep.subr.bf16.mxu1 %v18983_v60 }
0x2792   :  { %14669 = vmatpush3.bf16.msra.mxu1 %v19009_v47 }
0x2793   :  { %14670 = vmatprep.subr.bf16.mxu1 %v18983_v60 }
0x2858   :  { %v5364_v61 = vpop.f32.mrb[54].mxu1 }
0x2859   :  { %v5365_v57 = vadd.f32 %v5364_v61, %v17225_v55  ;;  %v13753_v12 = vpop.f32.mrb[55].mxu1 }
0x285b   :  { %v17274_v49 = vadd.f32 %v16969_v1, %v5365_v57  ;;  %v19042_v57 = vld [vmem:[#allocation39_spill] sm:$0xff] }
0x285d   :  { %19037 = vst [vmem:[#allocation51_spill] sm:$0xff] %v17274_v49  ;;  %v5369_v45 = vsel %vm258_vm2, %v17274_v49, -inf }
0x285e   :  { %5370 = vmax.xlane.f32.xlu1 %v5369_v45 }
0x2860   :  { %v5531_v53 = vpop.f32.mrb[56].mxu1 }
0x2861   :  { %v13775_v32 = vpop.f32.mrb[57].mxu1  ;;  %v5532_v41 = vadd.f32 %v19039_v29, %v5531_v53  ;;  %v19045_v29 = vld [vmem:[#allocation41_spill] sm:$0xff] }
0x2863   :  { %v5535_v16 = vmul.f32 0.35355338, %v5532_v41 }
0x2865   :  { %v5544_v20 = vrot.slane %v5535_v16, %v19040_v63  ;;  %v5537_v26 = vcombine.high %v5535_v16, %v5535_v16  ;;  %v19046_v16 = vld [vmem:[#allocation26_spill] sm:$0xff] }
0x2867   :  { %v5560_v46 = vrot.slane %v5544_v20, %v19040_v63  ;;  %v5552_v13 = vcombine.high %v5544_v20, %v5544_v20  ;;  %v5551_v36 = vrot.slane %v5537_v26, %v19040_v63  ;;  %v19048_v26 = vld [vmem:[#allocation43_spill] sm:$0xff] }
0x2869   :  { %v5589_v33 = vrot.slane %v5560_v46, %v19041_v48  ;;  %v5574_v0 = vrot.slane %v5552_v13, %v19040_v63  ;;  %v5582_v6 = vcombine.high %v5560_v46, %v5560_v46  ;;  %v5553_v45 = vcombine.high %v5551_v36, %v5551_v36 }
0x286b   :  { %v5626_v12 = vmul.f32 %v19042_v57, %v5589_v33  ;;  %v5584_v53 = vcombine.high %v5574_v0, %v5574_v0  ;;  %v5593_v32 = vrot.slane %v5574_v0, %v19041_v48  ;;  %v19050_v33 = vld [vmem:[#allocation44_spill] sm:$0xff]  ;;  %v19051_v0 = vld [vmem:[#allocation45_spill] sm:$0xff] }
0x28eb   :  { %v5371_v37 = vpop.xlane.xlu1 %5370 }
0x28ec   :  { %vm5372_vm14 = vcmp.ge.f32.partialorder %v17274_v49, %v5371_v37  ;;  %v19043_v37 = vld [vmem:[#allocation22_spill] sm:$0xff] }
0x28ed   :  { %v5373_v8 = vsel %vm5372_vm14, %v19038_v3, 32 }
0x28ee   :  { %v5374_v39 = vsel %vm258_vm2, %v5373_v8, 2147483647  ;;  %v5567_v8 = vrot.slane %v5551_v36, %v19040_v63 }
0x28ef   :  { %v5376_v35 = vshra.s32 %v5374_v39, 16  ;;  %v5375_v55 = vand.u32 65535, %v5374_v39  ;;  %v5597_v39 = vrot.slane %v5582_v6, %v19041_v48 }
0x28f1   :  { %v5378_v50 = vcvt.s32.f32 %v5376_v35  ;;  %v5377_v1 = vcvt.s32.f32 %v5375_v55  ;;  %v5581_v35 = vrot.slane %v5553_v45, %v19040_v63  ;;  %v5628_v41 = vmul.f32 %v19045_v29, %v5597_v39  ;;  %v19054_v45 = vld [vmem:[#allocation35_spill] sm:$0xff]  ;;  %v19055_v39 = vld [vmem:[#allocation29_spill] sm:$0xff] }
0x28f3   :  { %5379 = vmin.xlane.f32.xlu0 %v5378_v50  ;;  %v5585_v20 = vcombine.high %v5581_v35, %v5581_v35 }
0x28f5   :  { %v5617_v36 = vrot.slane %v5585_v20, %v19041_v48  ;;  %v19057_v20 = vld [vmem:[#allocation30_spill] sm:$0xff] }
0x2980   :  { %v5380_v4 = vpop.xlane.xlu0 %5379 }
0x2981   :  { %vm5381_vm15 = vcmp.eq.f32.partialorder %v5378_v50, %v5380_v4  ;;  %v5386_v15 = vcvt.f32.s32 %v5380_v4  ;;  %v19044_v50 = vld [vmem:[#allocation40_spill] sm:$0xff]  ;;  %v5601_v4 = vrot.slane %v5584_v53, %v19041_v48 }
0x2982   :  { %v5382_v22 = vsel %vm5381_vm15, %v5377_v1, inf  ;;  %v5627_v55 = vmul.f32 %v19044_v50, %v5593_v32  ;;  %v5583_v1 = vcombine.high %v5567_v8, %v5567_v8 }
0x2983   :  { %5383 = vmin.xlane.f32.xlu0 %v5382_v22  ;;  %v5387_v2 = vshll.u32 %v5386_v15, 16  ;;  %v5605_v22 = vrot.slane %v5567_v8, %v19041_v48  ;;  %v19047_v15 = vld [vmem:[#allocation42_spill] sm:$0xff] }
0x2984   :  { %v5629_v46 = vmul.f32 %v19047_v15, %v5601_v4 }
0x2985   :  { %v5630_v13 = vmul.f32 %v19048_v26, %v5605_v22  ;;  %v19058_v26 = vld [vmem:[#allocation28_spill] sm:$0xff] }
0x2a10   :  { %v5384_v19 = vpop.xlane.xlu0 %5383 }
0x2a11   :  { %v5385_v27 = vcvt.f32.s32 %v5384_v19  ;;  %v5609_v19 = vrot.slane %v5581_v35, %v19041_v48 }
0x2a13   :  { %v5388_v44 = vadd.s32 %v5387_v2, %v5385_v27  ;;  %v5613_v2 = vrot.slane %v5583_v1, %v19041_v48  ;;  %v19049_v27 = vld [vmem:[#allocation33_spill] sm:$0xff] }
0x2a15   :  { %vm5389_vm1 = vcmp.eq.s32.totalorder %v19038_v3, %v5388_v44  ;;  %v5631_v44 = vmul.f32 %v19050_v33, %v5609_v19  ;;  %v5632_v6 = vmul.f32 %v19051_v0, %v5613_v2 }
0x2a16   :  { %v12605_v61 = vsel %vm5389_vm1, 1.0, %v18982_v11 }
0x2a17   :  { %13763 = vmatmul.mubr.msk.f32.vlgmr.msra.gmra.mrb[56].mxu0 %vm258_vm2, %v12605_v61  ;;  %v19052_v61 = vld [vmem:[#allocation46_spill] sm:$0xff] }
0x2a18   :  { %14659 = vmatpush3.bf16.msra.mxu0 %v16058_v18  ;;  %13784 = vmatprep.mubr.msk.f32.mxu0 %vm258_vm2, %v5626_v12  ;;  %v5633_v57 = vmul.f32 %v19052_v61, %v5617_v36  ;;  %v19053_v12 = vld [vmem:[#allocation34_spill] sm:$0xff] }
0x2a19   :  { %14661 = vmatprep.subr.bf16.mxu0 %v19043_v37 }
0x2a1c   :  { %14663 = vmatpush3.bf16.msra.mxu0 %v19043_v37 }
0x2a1d   :  { %14679 = vmatprep.subr.bf16.mxu0 %v18983_v60 }
0x2a1f   :  { %13785 = vmatmul.mubr.msk.f32.vlgmr.msra.gmra.mrb[58].mxu0 %vm258_vm2, %v5627_v55  ;;  %v19056_v55 = vld [vmem:[#allocation27_spill] sm:$0xff] }
0x2a20   :  { %13787 = vmatprep.mubr.msk.f32.mxu0 %vm258_vm2, %v5628_v41  ;;  %14681 = vmatpush3.bf16.msra.mxu0 %v19046_v16 }
0x2a21   :  { %14682 = vmatprep.subr.bf16.mxu0 %v18983_v60 }
0x2a23   :  { %13788 = vmatmul.mubr.msk.f32.gmra.mrb[60].mxu0 %vm258_vm2, %v5629_v46 }
0x2a24   :  { %13790 = vmatprep.mubr.msk.f32.mxu0 %vm258_vm2, %v5630_v13  ;;  %14684 = vmatpush3.bf16.msra.mxu0 %v19049_v27 }
0x2a25   :  { %14691 = vmatprep.subr.bf16.mxu0 %v18983_v60 }
0x2a27   :  { %13791 = vmatmul.mubr.msk.f32.gmra.mrb[62].mxu0 %vm258_vm2, %v5631_v44 }
0x2a28   :  { %13793 = vmatprep.mubr.msk.f32.mxu0 %vm258_vm2, %v5632_v6 }
0x2a2b   :  { %13794 = vmatmul.mubr.msk.f32.gmra.mrb[64].mxu0 %vm258_vm2, %v5633_v57 }
0x2a2c   :  { %13833 = vmatprep.mubr.msk.f32.mxu0 %vm15742_vm0, %v18982_v11 }
0x2a2f   :  { %13834 = vmatmul.mubr.msk.f32.vlgmr.msra.gmra.mrb[66].mxu0 %vm258_vm2, %v17235_v58 }
0x2a30   :  { %14693 = vmatpush3.bf16.msra.mxu0 %v19053_v12  ;;  %13855 = vmatprep.mubr.msk.f32.mxu0 %vm15742_vm0, %v18982_v11 }
0x2a31   :  { %14694 = vmatprep.subr.bf16.mxu0 %v18983_v60 }
0x2a34   :  { %14696 = vmatpush3.bf16.msra.mxu0 %v19054_v45 }
0x2a35   :  { %14703 = vmatprep.subr.bf16.mxu0 %v18983_v60 }
0x2aea   :  { %v17333_v53 = vpop.f32.mrb[56].mxu0 }
0x2aeb   :  { %v13764_v32 = vpop.f32.mrb[57].mxu0 }
0x2aec   :  { %v19059_v32 = vld [vmem:[#allocation31_spill] sm:$0xff] }
0x2af2   :  { %v13786_v8 = vpop.f32.mrb[58].mxu0 }
0x2af3   :  { %v5764_v35 = vadd.f32 %v13786_v8, %v19055_v39  ;;  %v5724_v50 = vpop.f32.mrb[59].mxu0 }
0x2af4   :  { %v5763_v58 = vadd.f32 %v5724_v50, %v19056_v55 }
0x2af5   :  { %v5778_v4 = vsel %vm258_vm2, %v5764_v35, -inf }
0x2af6   :  { %v5779_v1 = vrot.slane %v5778_v4, 4  ;;  %v5771_v22 = vsel %vm258_vm2, %v5763_v58, -inf  ;;  %v13789_v29 = vpop.f32.mrb[60].mxu0 }
0x2af7   :  { %v5772_v41 = vrot.slane %v5771_v22, 4  ;;  %v17340_v15 = vadd.f32 %v13789_v29, %v19057_v20  ;;  %v5734_v46 = vpop.f32.mrb[61].mxu0  ;;  %v19060_v29 = vld [vmem:[#allocation32_spill] sm:$0xff] }
0x2af8   :  { %v5780_v19 = vmax.f32 %v5778_v4, %v5779_v1  ;;  %v17343_v13 = vadd.f32 %v5734_v46, %v19058_v26 }
0x2af9   :  { %v5773_v2 = vmax.f32 %v5771_v22, %v5772_v41  ;;  %v5792_v33 = vsel %vm258_vm2, %v17340_v15, -inf }
0x2afa   :  { %v5781_v44 = vrot.slane %v5780_v19, 2  ;;  %v5793_v36 = vrot.slane %v5792_v33, 4  ;;  %v5785_v0 = vsel %vm258_vm2, %v17343_v13, -inf  ;;  %v13792_v6 = vpop.f32.mrb[62].mxu0 }
0x2afb   :  { %v5774_v61 = vrot.slane %v5773_v2, 2  ;;  %v5786_v57 = vrot.slane %v5785_v0, 4  ;;  %v17350_v8 = vadd.f32 %v13792_v6, %v19059_v32  ;;  %v5744_v50 = vpop.f32.mrb[63].mxu0 }
0x2afc   :  { %v5782_v4 = vmax.f32 %v5780_v19, %v5781_v44  ;;  %v5794_v1 = vmax.f32 %v5792_v33, %v5793_v36  ;;  %v5767_v46 = vadd.f32 %v5744_v50, %v19060_v29 }
0x2afd   :  { %v5775_v22 = vmax.f32 %v5773_v2, %v5774_v61  ;;  %v5787_v41 = vmax.f32 %v5785_v0, %v5786_v57  ;;  %v5806_v49 = vsel %vm258_vm2, %v17350_v8, -inf }
0x2afe   :  { %v5783_v26 = vrot.slane %v5782_v4, 1  ;;  %v5795_v20 = vrot.slane %v5794_v1, 2  ;;  %v5807_v55 = vrot.slane %v5806_v49, 4  ;;  %v5799_v39 = vsel %vm258_vm2, %v5767_v46, -inf  ;;  %v13795_v45 = vpop.f32.mrb[64].mxu0 }
0x2aff   :  { %v5776_v12 = vrot.slane %v5775_v22, 1  ;;  %v5788_v27 = vrot.slane %v5787_v41, 2  ;;  %v5800_v6 = vrot.slane %v5799_v39, 4  ;;  %v5770_v32 = vadd.f32 %v13795_v45, %v16206_v17  ;;  %v5754_v19 = vpop.f32.mrb[65].mxu0 }
0x2b00   :  { %v5784_v33 = vmax.f32 %v5782_v4, %v5783_v26  ;;  %v5796_v44 = vmax.f32 %v5794_v1, %v5795_v20  ;;  %v5808_v36 = vmax.f32 %v5806_v49, %v5807_v55  ;;  %v5769_v2 = vadd.f32 %v5754_v19, %v16209_v24 }
0x2b01   :  { %v5777_v0 = vmax.f32 %v5775_v22, %v5776_v12  ;;  %v5789_v61 = vmax.f32 %v5787_v41, %v5788_v27  ;;  %v5801_v57 = vmax.f32 %v5799_v39, %v5800_v6  ;;  %v5820_v50 = vsel %vm258_vm2, %v5770_v32, -inf }
0x2b02   :  { %v5828_v29 = vsub.f32 %v5764_v35, %v5784_v33  ;;  %v5797_v16 = vrot.slane %v5796_v44, 1  ;;  %v5809_v37 = vrot.slane %v5808_v36, 2  ;;  %v5821_v48 = vrot.slane %v5820_v50, 4  ;;  %v17359_v63 = vpop.f32.mrb[66].mxu0 }
0x2b03   :  { %v5827_v3 = vsub.f32 %v5763_v58, %v5777_v0  ;;  %v5790_v47 = vrot.slane %v5789_v61, 1  ;;  %v5802_v45 = vrot.slane %v5801_v57, 2  ;;  %v5813_v26 = vsel %vm258_vm2, %v5769_v2, -inf  ;;  %v13835_v20 = vpop.f32.mrb[67].mxu0 }
0x2b04   :  { %v5837_v49 = vmul.f32 1.442695, %v5828_v29  ;;  %v5798_v55 = vmax.f32 %v5796_v44, %v5797_v16  ;;  %v5810_v4 = vmax.f32 %v5808_v36, %v5809_v37  ;;  %v5822_v12 = vmax.f32 %v5820_v50, %v5821_v48 }
0x2b05   :  { %v5835_v27 = vmul.f32 1.442695, %v5827_v3  ;;  %v5791_v39 = vmax.f32 %v5789_v61, %v5790_v47  ;;  %v5803_v1 = vmax.f32 %v5801_v57, %v5802_v45  ;;  %v5814_v22 = vrot.slane %v5813_v26, 4 }
0x2b06   :  { %15181 = vpow2.f32 %v5837_v49  ;;  %v5830_v35 = vsub.f32 %v17340_v15, %v5798_v55  ;;  %v5811_v41 = vrot.slane %v5810_v4, 1  ;;  %v5823_v6 = vrot.slane %v5822_v12, 2 }
0x2b07   :  { %15183 = vpow2.f32 %v5835_v27  ;;  %v5829_v58 = vsub.f32 %v17343_v13, %v5791_v39  ;;  %v5804_v19 = vrot.slane %v5803_v1, 1  ;;  %v5815_v33 = vmax.f32 %v5813_v26, %v5814_v22 }
0x2b08   :  { %v5841_v0 = vmul.f32 1.442695, %v5830_v35  ;;  %v5812_v20 = vmax.f32 %v5810_v4, %v5811_v41  ;;  %v5824_v29 = vmax.f32 %v5822_v12, %v5823_v6 }
0x2b09   :  { %v5839_v16 = vmul.f32 1.442695, %v5829_v58  ;;  %v5805_v37 = vmax.f32 %v5803_v1, %v5804_v19  ;;  %v5816_v48 = vrot.slane %v5815_v33, 2 }
0x2b0a   :  { %15185 = vpow2.f32 %v5841_v0  ;;  %v5832_v47 = vsub.f32 %v17350_v8, %v5812_v20  ;;  %v5825_v3 = vrot.slane %v5824_v29, 1 }
0x2b0b   :  { %15187 = vpow2.f32 %v5839_v16  ;;  %v5831_v44 = vsub.f32 %v5767_v46, %v5805_v37  ;;  %v5817_v15 = vmax.f32 %v5815_v33, %v5816_v48 }
0x2b0c   :  { %v5845_v36 = vmul.f32 1.442695, %v5832_v47  ;;  %v5826_v61 = vmax.f32 %v5824_v29, %v5825_v3 }
0x2b0d   :  { %v5843_v57 = vmul.f32 1.442695, %v5831_v44  ;;  %v5818_v50 = vrot.slane %v5817_v15, 1 }
0x2b0e   :  { %15189 = vpow2.f32 %v5845_v36  ;;  %v5834_v13 = vsub.f32 %v5770_v32, %v5826_v61 }
0x2b0f   :  { %15191 = vpow2.f32 %v5843_v57  ;;  %v5819_v45 = vmax.f32 %v5817_v15, %v5818_v50 }
0x2b10   :  { %v17365_v26 = vpop.eup %15181  ;;  %v5849_v49 = vmul.f32 1.442695, %v5834_v13 }
0x2b11   :  { %v17367_v55 = vpop.eup %15183  ;;  %v5858_v8 = vsel %vm258_vm2, %v17365_v26, 0.0  ;;  %v5833_v4 = vsub.f32 %v5769_v2, %v5819_v45 }
0x2b12   :  { %v5859_v12 = vrot.slane %v5858_v8, 4  ;;  %v5851_v46 = vsel %vm258_vm2, %v17367_v55, 0.0  ;;  %15193 = vpow2.f32 %v5849_v49 }
0x2b13   :  { %v5852_v27 = vrot.slane %v5851_v46, 4  ;;  %v5847_v39 = vmul.f32 1.442695, %v5833_v4 }
0x2b14   :  { %v17373_v1 = vpop.eup %15185  ;;  %v5860_v32 = vadd.f32 %v5859_v12, %v5858_v8 }
0x2b15   :  { %v17375_v22 = vpop.eup %15187  ;;  %v5853_v35 = vadd.f32 %v5852_v27, %v5851_v46  ;;  %v5872_v41 = vsel %vm258_vm2, %v17373_v1, 0.0  ;;  %15195 = vpow2.f32 %v5847_v39 }
0x2b16   :  { %v5861_v6 = vrot.slane %v5860_v32, 2  ;;  %v5873_v58 = vrot.slane %v5872_v41, 4  ;;  %v5865_v2 = vsel %vm258_vm2, %v17375_v22, 0.0 }
0x2b17   :  { %v5854_v19 = vrot.slane %v5853_v35, 2  ;;  %v5866_v33 = vrot.slane %v5865_v2, 4 }
0x2b18   :  { %v17381_v0 = vpop.eup %15189  ;;  %v5862_v20 = vadd.f32 %v5861_v6, %v5860_v32  ;;  %v5874_v29 = vadd.f32 %v5873_v58, %v5872_v41 }
0x2b19   :  { %v17383_v16 = vpop.eup %15191  ;;  %v5855_v37 = vadd.f32 %v5854_v19, %v5853_v35  ;;  %v5867_v48 = vadd.f32 %v5866_v33, %v5865_v2  ;;  %v5886_v47 = vsel %vm258_vm2, %v17381_v0, 0.0 }
0x2b1a   :  { %v5863_v3 = vrot.slane %v5862_v20, 1  ;;  %v5875_v44 = vrot.slane %v5874_v29, 2  ;;  %v5887_v15 = vrot.slane %v5886_v47, 4  ;;  %v5879_v36 = vsel %vm258_vm2, %v17383_v16, 0.0 }
0x2b1b   :  { %v5856_v61 = vrot.slane %v5855_v37, 1  ;;  %v5868_v57 = vrot.slane %v5867_v48, 2  ;;  %v5880_v50 = vrot.slane %v5879_v36, 4 }
0x2b1c   :  { %v17389_v13 = vpop.eup %15193  ;;  %v5864_v45 = vadd.f32 %v5863_v3, %v5862_v20  ;;  %v5876_v49 = vadd.f32 %v5875_v44, %v5874_v29  ;;  %v5888_v8 = vadd.f32 %v5887_v15, %v5886_v47 }
0x2b1d   :  { %v5857_v4 = vadd.f32 %v5856_v61, %v5855_v37  ;;  %v5869_v12 = vadd.f32 %v5868_v57, %v5867_v48  ;;  %v5881_v46 = vadd.f32 %v5880_v50, %v5879_v36  ;;  %v5900_v27 = vsel %vm258_vm2, %v17389_v13, 0.0 }
0x2b1e   :  { %15197 = vrcp.f32 %v5864_v45  ;;  %v5877_v39 = vrot.slane %v5876_v49, 1  ;;  %v5889_v32 = vrot.slane %v5888_v8, 2  ;;  %v5901_v35 = vrot.slane %v5900_v27, 4 }
0x2b1f   :  { %v17393_v41 = vpop.eup %15195  ;;  %15199 = vrcp.f32 %v5857_v4  ;;  %v5870_v6 = vrot.slane %v5869_v12, 1  ;;  %v5882_v58 = vrot.slane %v5881_v46, 2 }
0x2b20   :  { %v5878_v2 = vadd.f32 %v5877_v39, %v5876_v49  ;;  %v5890_v19 = vadd.f32 %v5889_v32, %v5888_v8  ;;  %v5902_v33 = vadd.f32 %v5901_v35, %v5900_v27  ;;  %v5893_v20 = vsel %vm258_vm2, %v17393_v41, 0.0 }
0x2b21   :  { %v5871_v29 = vadd.f32 %v5870_v6, %v5869_v12  ;;  %v5883_v37 = vadd.f32 %v5882_v58, %v5881_v46  ;;  %v5894_v48 = vrot.slane %v5893_v20, 4 }
0x2b22   :  { %15201 = vrcp.f32 %v5878_v2  ;;  %v5891_v47 = vrot.slane %v5890_v19, 1  ;;  %v5903_v3 = vrot.slane %v5902_v33, 2 }
0x2b23   :  { %15203 = vrcp.f32 %v5871_v29  ;;  %v5884_v44 = vrot.slane %v5883_v37, 1  ;;  %v5895_v15 = vadd.f32 %v5894_v48, %v5893_v20 }
0x2b24   :  { %v5892_v36 = vadd.f32 %v5891_v47, %v5890_v19  ;;  %v5904_v61 = vadd.f32 %v5903_v3, %v5902_v33  ;;  %v19061_v47 = vld [vmem:[#allocation47_spill] sm:$0xff] }
0x2b25   :  { %v5885_v57 = vadd.f32 %v5884_v44, %v5883_v37  ;;  %v5896_v50 = vrot.slane %v5895_v15, 2 }
0x2b26   :  { %15205 = vrcp.f32 %v5892_v36  ;;  %v5905_v45 = vrot.slane %v5904_v61, 1 }
0x2b27   :  { %15207 = vrcp.f32 %v5885_v57  ;;  %v5897_v49 = vadd.f32 %v5896_v50, %v5895_v15 }
0x2b28   :  { %v15198_v8 = vpop.eup %15197  ;;  %v5906_v4 = vadd.f32 %v5905_v45, %v5904_v61 }
0x2b29   :  { %v15200_v27 = vpop.eup %15199  ;;  %v5910_v12 = vmul.f32 %v15198_v8, %v17365_v26  ;;  %v5898_v46 = vrot.slane %v5897_v49, 1 }
0x2b2a   :  { %v5908_v39 = vmul.f32 %v15200_v27, %v17367_v55  ;;  %15209 = vrcp.f32 %v5906_v4 }
0x2b2b   :  { %v5924_v32 = vmul.f32 %v17142_v56, %v5910_v12  ;;  %v5899_v35 = vadd.f32 %v5898_v46, %v5897_v49  ;;  %v19062_v49 = vld [vmem:[#allocation49_spill] sm:$0xff]  ;;  %v19063_v12 = vld [vmem:[#allocation50_spill] sm:$0xff] }
0x2b2c   :  { %v15202_v6 = vpop.eup %15201  ;;  %v5923_v58 = vmul.f32 %v17145_v38, %v5908_v39 }
0x2b2d   :  { %v15204_v2 = vpop.eup %15203  ;;  %v5938_v19 = vsel %vm258_vm2, %v5924_v32, 0.0  ;;  %v5914_v33 = vmul.f32 %v15202_v6, %v17373_v1  ;;  %15211 = vrcp.f32 %v5899_v35 }
0x2b2e   :  { %v5939_v20 = vrot.slane %v5938_v19, 4  ;;  %v5931_v29 = vsel %vm258_vm2, %v5923_v58, 0.0  ;;  %v5912_v26 = vmul.f32 %v15204_v2, %v17375_v22 }
0x2b2f   :  { %v5932_v37 = vrot.slane %v5931_v29, 4  ;;  %v5926_v55 = vmul.f32 %v17152_v51, %v5914_v33 }
0x2b30   :  { %v15206_v48 = vpop.eup %15205  ;;  %v5940_v56 = vadd.f32 %v5939_v20, %v5938_v19  ;;  %v5925_v3 = vmul.f32 %v19061_v47, %v5912_v26 }
0x2b31   :  { %v15208_v44 = vpop.eup %15207  ;;  %v5933_v38 = vadd.f32 %v5932_v37, %v5931_v29  ;;  %v5952_v15 = vsel %vm258_vm2, %v5926_v55, 0.0  ;;  %v5918_v36 = vmul.f32 %v15206_v48, %v17381_v0 }
0x2b32   :  { %v5941_v1 = vrot.slane %v5940_v56, 2  ;;  %v5953_v61 = vrot.slane %v5952_v15, 4  ;;  %v5945_v57 = vsel %vm258_vm2, %v5925_v3, 0.0  ;;  %v5916_v50 = vmul.f32 %v15208_v44, %v17383_v16 }
0x2b33   :  { %v5934_v22 = vrot.slane %v5933_v38, 2  ;;  %v5946_v45 = vrot.slane %v5945_v57, 4  ;;  %v5928_v51 = vmul.f32 %v19062_v49, %v5918_v36 }
0x2b34   :  { %v15210_v8 = vpop.eup %15209  ;;  %v5942_v4 = vadd.f32 %v5941_v1, %v5940_v56  ;;  %v5954_v27 = vadd.f32 %v5953_v61, %v5952_v15  ;;  %v5927_v46 = vmul.f32 %v19063_v12, %v5916_v50 }
0x2b35   :  { %v5935_v39 = vadd.f32 %v5934_v22, %v5933_v38  ;;  %v5947_v32 = vadd.f32 %v5946_v45, %v5945_v57  ;;  %v5966_v35 = vsel %vm258_vm2, %v5928_v51, 0.0  ;;  %v5922_v0 = vmul.f32 %v15210_v8, %v17389_v13 }
0x2b36   :  { %v5943_v6 = vrot.slane %v5942_v4, 1  ;;  %v5955_v58 = vrot.slane %v5954_v27, 2  ;;  %v5967_v2 = vrot.slane %v5966_v35, 4  ;;  %v5959_v16 = vsel %vm258_vm2, %v5927_v46, 0.0 }
0x2b37   :  { %v15212_v19 = vpop.eup %15211  ;;  %v5936_v33 = vrot.slane %v5935_v39, 1  ;;  %v5948_v20 = vrot.slane %v5947_v32, 2  ;;  %v5960_v29 = vrot.slane %v5959_v16, 4  ;;  %v5930_v26 = vmul.f32 %v17171_v31, %v5922_v0 }
0x2b38   :  { %v5944_v37 = vadd.f32 %v5943_v6, %v5942_v4  ;;  %v5920_v55 = vmul.f32 %v15212_v19, %v17393_v41  ;;  %v5956_v48 = vadd.f32 %v5955_v58, %v5954_v27  ;;  %v5968_v56 = vadd.f32 %v5967_v2, %v5966_v35 }
0x2b39   :  { %v5937_v47 = vadd.f32 %v5936_v33, %v5935_v39  ;;  %v5949_v3 = vadd.f32 %v5948_v20, %v5947_v32  ;;  %v5961_v44 = vadd.f32 %v5960_v29, %v5959_v16  ;;  %v5980_v13 = vsel %vm258_vm2, %v5930_v26, 0.0 }
0x2b3a   :  { %v5929_v38 = vmul.f32 %v17176_v43, %v5920_v55  ;;  %v5957_v15 = vrot.slane %v5956_v48, 1  ;;  %v5969_v36 = vrot.slane %v5968_v56, 2  ;;  %v5981_v1 = vrot.slane %v5980_v13, 4 }
0x2b3b   :  { %v5950_v61 = vrot.slane %v5949_v3, 1  ;;  %v5962_v57 = vrot.slane %v5961_v44, 2  ;;  %v5995_v50 = vsel %vm917_vm3, %v5944_v37, %v5937_v47 }
0x2b3c   :  { %v5970_v31 = vadd.f32 %v5969_v36, %v5968_v56  ;;  %v5973_v22 = vsel %vm258_vm2, %v5929_v38, 0.0  ;;  %v5982_v41 = vadd.f32 %v5981_v1, %v5980_v13  ;;  %v5958_v8 = vadd.f32 %v5957_v15, %v5956_v48  ;;  %v17435_v48 = vld [vmem:[#allocation6] ss:$0 sm:$0xff] }
0x2b3d   :  { %v5951_v45 = vadd.f32 %v5950_v61, %v5949_v3  ;;  %v5963_v49 = vadd.f32 %v5962_v57, %v5961_v44  ;;  %v5974_v51 = vrot.slane %v5973_v22, 4  ;;  %v17470_v15 = vld [vmem:[%s18828_s12] ss:$0 sm:$0xff] }
0x2b3e   :  { %v5971_v4 = vrot.slane %v5970_v31, 1  ;;  %v5983_v27 = vrot.slane %v5982_v41, 2 }
0x2b3f   :  { %v5964_v12 = vrot.slane %v5963_v49, 1  ;;  %v5975_v46 = vadd.f32 %v5974_v51, %v5973_v22  ;;  %v5996_v43 = vsel %vm919_vm4, %v5951_v45, %v5995_v50 }
0x2b40   :  { %v5984_v39 = vadd.f32 %v5983_v27, %v5982_v41  ;;  %v5997_v32 = vsel %vm921_vm5, %v5958_v8, %v5996_v43  ;;  %v5972_v6 = vadd.f32 %v5971_v4, %v5970_v31 }
0x2b41   :  { %v5965_v35 = vadd.f32 %v5964_v12, %v5963_v49  ;;  %v5976_v0 = vrot.slane %v5975_v46, 2 }
0x2b42   :  { %v5985_v16 = vrot.slane %v5984_v39, 1 }
0x2b43   :  { %v5977_v58 = vadd.f32 %v5976_v0, %v5975_v46  ;;  %v5998_v2 = vsel %vm923_vm6, %v5965_v35, %v5997_v32  ;;  %v17496_v0 = vld [vmem:[%s18831_s15] ss:$0 sm:$0xff] }
0x2b44   :  { %v5999_v19 = vsel %vm925_vm7, %v5972_v6, %v5998_v2  ;;  %v5986_v29 = vadd.f32 %v5985_v16, %v5984_v39 }
0x2b45   :  { %v5978_v33 = vrot.slane %v5977_v58, 1 }
0x2b47   :  { %v5979_v20 = vadd.f32 %v5978_v33, %v5977_v58 }
0x2b49   :  { %v6000_v26 = vsel %vm927_vm8, %v5979_v20, %v5999_v19 }
0x2b4a   :  { %v6001_v37 = vsel %vm929_vm9, %v5986_v29, %v6000_v26 }
0x2b4b   :  { %13805 = vmatmul.mubr.msk.f32.vlgmr.msra.gmra.mrb[58].mxu1 %vm258_vm2, %v6001_v37 }
0x2b4c   :  { %14672 = vmatpush3.bf16.msra.mxu1 %v16271_v52  ;;  %13815 = vmatprep.mubr.msk.f32.mxu1 %vm15742_vm0, %v18982_v11 }
0x2b4d   :  { %14673 = vmatprep.subr.bf16.mxu1 %v18983_v60 }
0x2b50   :  { %14675 = vmatpush3.bf16.msra.mxu1 %v16277_v7 }
0x2b51   :  { %14676 = vmatprep.subr.bf16.mxu1 %v18983_v60 }
0x2c1e   :  { %v6070_v55 = vpop.f32.mrb[58].mxu1 }
0x2c1f   :  { %v6071_v56 = vadd.f32 %v17435_v48, %v6070_v55  ;;  %v13806_v47 = vpop.f32.mrb[59].mxu1 }
0x2c21   :  { %13816 = vmatmul.mubr.msk.f32.vlgmr.msra.gmra.mrb[60].mxu1 %vm258_vm2, %v6071_v56 }
0x2c22   :  { %14678 = vmatpush3.bf16.msra.mxu1 %v16299_v62  ;;  %13822 = vmatprep.mubr.msk.f32.mxu1 %vm15742_vm0, %v18982_v11 }
0x2c23   :  { %14685 = vmatprep.subr.bf16.mxu1 %v18983_v60 }
0x2c25   :  { %13823 = vmatmul.mubr.msk.f32.vlgmr.msra.gmra.mrb[62].mxu1 %vm1076_vm10, %v17333_v53 }
0x2c26   :  { %14687 = vmatpush3.bf16.msra.mxu1 %v16306_v59  ;;  %13844 = vmatprep.mubr.msk.f32.mxu1 %vm15742_vm0, %v18982_v11 }
0x2c27   :  { %14688 = vmatprep.subr.bf16.mxu1 %v18983_v60 }
0x2c2a   :  { %14690 = vmatpush3.bf16.msra.mxu1 %v16312_v28 }
0x2c2b   :  { %14697 = vmatprep.subr.bf16.mxu1 %v18983_v60 }
0x2c2d   :  { %13845 = vmatmul.mubr.msk.f32.vlgmr.msra.gmra.mrb[64].mxu1 %vm258_vm2, %v17254_v40 }
0x2c2e   :  { %14699 = vmatpush3.bf16.msra.mxu1 %v16318_v34  ;;  %13866 = vmatprep.mubr.msk.f32.mxu1 %vm15742_vm0, %v18982_v11 }
0x2c2f   :  { %14700 = vmatprep.subr.bf16.mxu1 %v18983_v60 }
0x2c32   :  { %14702 = vmatpush3.bf16.msra.mxu1 %v16323_v25 }
0x2c33   :  { %14709 = vmatprep.subr.bf16.mxu1 %v18983_v60 }
0x2c35   :  { %13867 = vmatmul.mubr.msk.f32.vlgmr.msra.gmra.mrb[66].mxu1 %vm258_vm2, %v6071_v56 }
0x2c36   :  { %14711 = vmatpush3.bf16.msra.mxu1 %v16027_v9  ;;  %13888 = vmatprep.mubr.msk.f32.mxu1 %vm15742_vm0, %v18982_v11 }
0x2c37   :  { %14712 = vmatprep.subr.bf16.mxu1 %v18983_v60 }
0x2c3a   :  { %14714 = vmatpush3.bf16.msra.mxu1 %v16046_v14 }
0x2c3b   :  { %14722 = vmatprep.subr.bf16.mxu1 %v16058_v18 }
0x2cf4   :  { %v6143_v40 = vpop.f32.mrb[60].mxu1 }
0x2cf5   :  { %v13817_v53 = vpop.f32.mrb[61].mxu1 }
0x2cf8   :  { %v6216_v3 = vpop.f32.mrb[62].mxu1 }
0x2cf9   :  { %v6217_v44 = vadd.f32 %v6216_v3, %v6143_v40  ;;  %v13824_v13 = vpop.f32.mrb[63].mxu1 }
0x2cfb   :  { %v6290_v38 = vadd.f32 %v17359_v63, %v6217_v44 }
0x2cfd   :  { %v6291_v36 = vadd.f32 %v17470_v15, %v6290_v38  ;;  %v17529_v38 = vld [vmem:[%s18834_s18] ss:$0 sm:$0xff] }
0x2cff   :  { %15213 = vtanh.f32 %v6291_v36  ;;  %v12620_v22 = vmul.f32 -1.442695, %v6291_v36 }
0x2d00   :  { %v6382_v1 = vpop.f32.mrb[64].mxu1 }
0x2d01   :  { %v13846_v61 = vpop.f32.mrb[65].mxu1  ;;  %15215 = vpow2.f32 %v12620_v22  ;;  %v19066_v22 = vld [vmem:[#allocation21_spill] sm:$0xff] }
0x2d08   :  { %v17473_v57 = vpop.f32.mrb[66].mxu1 }
0x2d09   :  { %v15214_v50 = vpop.eup %15213  ;;  %v13868_v31 = vpop.f32.mrb[67].mxu1 }
0x2d0a   :  { %6301 = vrot.lane.b32.xlu1 %v15214_v50, %s15746_s1 }
0x2d0b   :  { %v15216_v41 = vpop.eup %15215 }
0x2d0c   :  { %v6295_v63 = vadd.f32 1.0, %v15216_v41 }
0x2d0e   :  { %15217 = vrcp.f32 %v6295_v63 }
0x2d18   :  { %v15218_v45 = vpop.eup %15217 }
0x2d19   :  { %v6299_v8 = vmul.f32 %v15218_v45, %v17230_v54 }
0x2d7c   :  { %v6302_v49 = vpop.permute.xlu1 %6301 }
0x2d7d   :  { %v6304_v51 = vmul.f32 %v15218_v45, %v6302_v49 }
0x2d7f   :  { %6306 = vrot.lane.b32.xlu0 %v6304_v51, %s15747_s14 }
0x2df1   :  { %v6307_v4 = vpop.permute.xlu0 %6306 }
0x2df2   :  { %v17478_v27 = vadd.f32 %v6307_v4, %v6299_v8 }
0x2df4   :  { %15219 = vtanh.f32 %v17478_v27 }
0x2dfe   :  { %v15220_v12 = vpop.eup %15219 }
0x2dff   :  { %6312 = vrot.lane.b32.xlu1 %v15220_v12, %s15746_s1  ;;  %v17542_v12 = vld [vmem:[%s18821_s5] ss:$0 sm:$0xff] }
0x2e00   :  { %19067 = vst [vmem:[#allocation39_spill] sm:$0xff] %v17542_v12 }
0x2e71   :  { %v6313_v46 = vpop.permute.xlu1 %6312 }
0x2e72   :  { %v6315_v43 = vmul.f32 %v15218_v45, %v6313_v46 }
0x2e74   :  { %6387 = vrot.lane.b32.xlu1 %v6315_v43, %s15747_s14 }
0x2ee6   :  { %v17483_v39 = vpop.permute.xlu1 %6387 }
0x2ee7   :  { %13856 = vmatmul.mubr.msk.f32.vlgmr.msra.gmra.mrb[68].mxu0 %vm258_vm2, %v17483_v39 }
0x2ee8   :  { %14705 = vmatpush3.bf16.msra.mxu0 %v16377_v42  ;;  %13877 = vmatprep.mubr.msk.f32.mxu0 %vm15742_vm0, %v18982_v11 }
0x2ee9   :  { %14706 = vmatprep.subr.bf16.mxu0 %v18983_v60 }
0x2eec   :  { %14708 = vmatpush3.bf16.msra.mxu0 %v16380_v21 }
0x2eed   :  { %14715 = vmatprep.subr.bf16.mxu0 %v18983_v60 }
0x2fba   :  { %v6457_v54 = vpop.f32.mrb[68].mxu0 }
0x2fbb   :  { %v6458_v32 = vadd.f32 %v6457_v54, %v6382_v1  ;;  %v13857_v35 = vpop.f32.mrb[69].mxu0  ;;  %v19068_v54 = vld [vmem:[#allocation23_spill] sm:$0xff] }
0x2fbd   :  { %v6461_v6 = vadd.f32 %v17496_v0, %v6458_v32 }
0x2fbf   :  { %15221 = vtanh.f32 %v6461_v6  ;;  %v12623_v2 = vmul.f32 -1.442695, %v6461_v6 }
0x2fc1   :  { %15223 = vpow2.f32 %v12623_v2 }
0x2fc9   :  { %v15222_v58 = vpop.eup %15221 }
0x2fca   :  { %6471 = vrot.lane.b32.xlu0 %v15222_v58, %s15746_s1 }
0x2fcb   :  { %v15224_v16 = vpop.eup %15223 }
0x2fcc   :  { %v6465_v19 = vadd.f32 1.0, %v15224_v16 }
0x2fce   :  { %15225 = vrcp.f32 %v6465_v19 }
0x2fd8   :  { %v15226_v33 = vpop.eup %15225 }
0x2fd9   :  { %v6469_v26 = vmul.f32 %v15226_v33, %v17249_v23  ;;  %v19064_v23 = vld [vmem:[#allocation25_spill] sm:$0xff] }
0x303c   :  { %v6472_v20 = vpop.permute.xlu0 %6471 }
0x303d   :  { %v6474_v29 = vmul.f32 %v15226_v33, %v6472_v20  ;;  %v19069_v20 = vld [vmem:[#allocation24_spill] sm:$0xff] }
0x303f   :  { %6476 = vrot.lane.b32.xlu1 %v6474_v29, %s15747_s14 }
0x30b1   :  { %v6477_v37 = vpop.permute.xlu1 %6476 }
0x30b2   :  { %v17502_v55 = vadd.f32 %v6477_v37, %v6469_v26 }
0x30b4   :  { %15227 = vtanh.f32 %v17502_v55 }
0x30be   :  { %v15228_v56 = vpop.eup %15227 }
0x30bf   :  { %6482 = vrot.lane.b32.xlu0 %v15228_v56, %s15746_s1 }
0x3131   :  { %v6483_v47 = vpop.permute.xlu0 %6482 }
0x3132   :  { %v6485_v40 = vmul.f32 %v15226_v33, %v6483_v47 }
0x3134   :  { %6557 = vrot.lane.b32.xlu1 %v6485_v40, %s15747_s14 }
0x31a6   :  { %v17507_v53 = vpop.permute.xlu1 %6557 }
0x31a7   :  { %13878 = vmatmul.mubr.msk.f32.vlgmr.msra.gmra.mrb[70].mxu0 %vm258_vm2, %v17507_v53 }
0x31a8   :  { %14717 = vmatpush3.bf16.msra.mxu0 %v16016_v5  ;;  %13899 = vmatprep.mubr.msk.f32.mxu0 %vm15742_vm0, %v18982_v11 }
0x31a9   :  { %14718 = vmatprep.subr.bf16.mxu0 %v18983_v60 }
0x31ac   :  { %14720 = vmatpush3.bf16.msra.mxu0 %v16030_v10 }
0x31ad   :  { %14729 = vmatprep.subr.bf16.mxu0 %v18983_v60 }
0x31af   :  { %13900 = vmatmul.mubr.msk.f32.vlgmr.msra.gmra.mrb[72].mxu0 %vm258_vm2, %v17507_v53 }
0x31b0   :  { %14731 = vmatpush3.bf16.msra.mxu0 %v16156_v30  ;;  %13930 = vmatprep.mubr.msk.f32.mxu0 %vm15742_vm0, %v18982_v11 }
0x31b1   :  { %14732 = vmatprep.subr.bf16.mxu0 %v18983_v60 }
0x31b4   :  { %14734 = vmatpush3.bf16.msra.mxu0 %v19064_v23 }
0x31b5   :  { %14735 = vmatprep.subr.bf16.mxu0 %v18983_v60 }
0x327a   :  { %v6627_v3 = vpop.f32.mrb[70].mxu0 }
0x327b   :  { %v6628_v44 = vadd.f32 %v6627_v3, %v17473_v57  ;;  %v13879_v13 = vpop.f32.mrb[71].mxu0  ;;  %v17555_v3 = vld [vmem:[%s18958_s22] sm:$0xff] }
0x327c   :  { %19070 = vst [vmem:[#allocation40_spill] sm:$0xff] %v17555_v3 }
0x327d   :  { %v17532_v36 = vadd.f32 %v17529_v38, %v6628_v44 }
0x327f   :  { %19065 = vst [vmem:[#allocation38_spill] sm:$0xff] %v17532_v36  ;;  %v6632_v1 = vsel %vm258_vm2, %v17532_v36, -inf }
0x3280   :  { %6633 = vmax.xlane.f32.xlu0 %v6632_v1 }
0x3282   :  { %v6794_v61 = vpop.f32.mrb[72].mxu0 }
0x3283   :  { %v13901_v50 = vpop.f32.mrb[73].mxu0  ;;  %v6795_v46 = vadd.f32 %v17542_v12, %v6794_v61 }
0x3284   :  { %v19071_v50 = vld [vmem:[#allocation22_spill] sm:$0xff] }
0x3285   :  { %v6798_v43 = vmul.f32 0.35355338, %v6795_v46 }
0x3287   :  { %v6807_v32 = vrot.slane %v6798_v43, %v19068_v54  ;;  %v6800_v2 = vcombine.high %v6798_v43, %v6798_v43  ;;  %v19074_v43 = vld [vmem:[#allocation26_spill] sm:$0xff] }
0x3289   :  { %v6823_v6 = vrot.slane %v6807_v32, %v19068_v54  ;;  %v6815_v16 = vcombine.high %v6807_v32, %v6807_v32  ;;  %v6814_v37 = vrot.slane %v6800_v2, %v19068_v54  ;;  %v17596_v2 = vld [vmem:[%s18958_s22 + $0x20] sm:$0xff] }
0x328a   :  { %19076 = vst [vmem:[#allocation44_spill] sm:$0xff] %v17596_v2 }
0x328b   :  { %v6852_v29 = vrot.slane %v6823_v6, %v19069_v20  ;;  %v6837_v56 = vrot.slane %v6815_v16, %v19068_v54  ;;  %v6845_v47 = vcombine.high %v6823_v6, %v6823_v6  ;;  %v6816_v13 = vcombine.high %v6814_v37, %v6814_v37 }
0x328d   :  { %v6889_v44 = vmul.f32 %v17555_v3, %v6852_v29  ;;  %v6847_v1 = vcombine.high %v6837_v56, %v6837_v56  ;;  %v6856_v61 = vrot.slane %v6837_v56, %v19069_v20  ;;  %v17606_v29 = vld [vmem:[%s18958_s22 + $0x28] sm:$0xff]  ;;  %v17614_v56 = vld [vmem:[%s18958_s22 + $0x30] sm:$0xff] }
0x328e   :  { %19078 = vst [vmem:[#allocation45_spill] sm:$0xff] %v17606_v29  ;;  %19079 = vst [vmem:[#allocation46_spill] sm:$0xff] %v17614_v56 }
0x330d   :  { %v6634_v31 = vpop.xlane.xlu0 %6633 }
0x330e   :  { %vm6635_vm11 = vcmp.ge.f32.partialorder %v17532_v36, %v6634_v31  ;;  %v6830_v31 = vrot.slane %v6814_v37, %v19068_v54 }
0x330f   :  { %v6636_v57 = vsel %vm6635_vm11, %v19066_v22, 32 }
0x3310   :  { %v6637_v41 = vsel %vm258_vm2, %v6636_v57, 2147483647  ;;  %v6860_v57 = vrot.slane %v6845_v47, %v19069_v20 }
0x3311   :  { %v6639_v63 = vshra.s32 %v6637_v41, 16  ;;  %v6638_v49 = vand.u32 65535, %v6637_v41  ;;  %v6844_v41 = vrot.slane %v6816_v13, %v19068_v54  ;;  %v19081_v13 = vld [vmem:[#allocation34_spill] sm:$0xff] }
0x3313   :  { %v6641_v45 = vcvt.s32.f32 %v6639_v63  ;;  %v6640_v8 = vcvt.s32.f32 %v6638_v49  ;;  %v17570_v63 = vld [vmem:[%s18958_s22 + $0x8] sm:$0xff]  ;;  %v6864_v49 = vrot.slane %v6847_v1, %v19069_v20  ;;  %v6848_v32 = vcombine.high %v6844_v41, %v6844_v41 }
0x3314   :  { %19072 = vst [vmem:[#allocation41_spill] sm:$0xff] %v17570_v63  ;;  %v19082_v1 = vld [vmem:[#allocation35_spill] sm:$0xff] }
0x3315   :  { %6642 = vmin.xlane.f32.xlu1 %v6641_v45  ;;  %v6880_v37 = vrot.slane %v6848_v32, %v19069_v20 }
0x33a2   :  { %v6643_v51 = vpop.xlane.xlu1 %6642 }
0x33a3   :  { %vm6644_vm12 = vcmp.eq.f32.partialorder %v6641_v45, %v6643_v51  ;;  %v6649_v35 = vcvt.f32.s32 %v6643_v51  ;;  %v6890_v45 = vmul.f32 %v17570_v63, %v6856_v61  ;;  %v6846_v51 = vcombine.high %v6830_v31, %v6830_v31 }
0x33a4   :  { %v6645_v4 = vsel %vm6644_vm12, %v6640_v8, inf  ;;  %v6868_v8 = vrot.slane %v6830_v31, %v19069_v20 }
0x33a5   :  { %6646 = vmin.xlane.f32.xlu0 %v6645_v4  ;;  %v6650_v19 = vshll.u32 %v6649_v35, 16  ;;  %v17579_v4 = vld [vmem:[%s18958_s22 + $0x10] sm:$0xff]  ;;  %v17588_v35 = vld [vmem:[%s18958_s22 + $0x18] sm:$0xff] }
0x33a6   :  { %19073 = vst [vmem:[#allocation42_spill] sm:$0xff] %v17579_v4  ;;  %v6891_v46 = vmul.f32 %v17579_v4, %v6860_v57  ;;  %19075 = vst [vmem:[#allocation43_spill] sm:$0xff] %v17588_v35  ;;  %v6892_v6 = vmul.f32 %v17588_v35, %v6864_v49  ;;  %v6893_v16 = vmul.f32 %v17596_v2, %v6868_v8 }
0x3432   :  { %v6647_v58 = vpop.xlane.xlu0 %6646 }
0x3433   :  { %v6648_v33 = vcvt.f32.s32 %v6647_v58  ;;  %v6872_v58 = vrot.slane %v6844_v41, %v19069_v20  ;;  %v19083_v41 = vld [vmem:[#allocation29_spill] sm:$0xff] }
0x3435   :  { %v6651_v26 = vadd.s32 %v6650_v19, %v6648_v33  ;;  %v6876_v19 = vrot.slane %v6846_v51, %v19069_v20  ;;  %v19077_v33 = vld [vmem:[#allocation33_spill] sm:$0xff]  ;;  %v19084_v51 = vld [vmem:[#allocation27_spill] sm:$0xff] }
0x3437   :  { %vm6652_vm13 = vcmp.eq.s32.totalorder %v19066_v22, %v6651_v26  ;;  %v6894_v26 = vmul.f32 %v17606_v29, %v6872_v58  ;;  %v6895_v47 = vmul.f32 %v17614_v56, %v6876_v19 }
0x3438   :  { %v12626_v40 = vsel %vm6652_vm13, 1.0, %v18982_v11 }
0x3439   :  { %13889 = vmatmul.mubr.msk.f32.vlgmr.msra.gmra.mrb[68].mxu1 %vm258_vm2, %v12626_v40  ;;  %v17622_v40 = vld [vmem:[%s18958_s22 + $0x38] sm:$0xff] }
0x343a   :  { %14724 = vmatpush3.bf16.msra.mxu1 %v16058_v18  ;;  %13910 = vmatprep.mubr.msk.f32.mxu1 %vm258_vm2, %v6889_v44  ;;  %19080 = vst [vmem:[#allocation47_spill] sm:$0xff] %v17622_v40  ;;  %v6896_v44 = vmul.f32 %v17622_v40, %v6880_v37  ;;  %v19087_v40 = vld [vmem:[#allocation31_spill] sm:$0xff] }
0x343b   :  { %14726 = vmatprep.subr.bf16.mxu1 %v19071_v50 }
0x343e   :  { %14728 = vmatpush3.bf16.msra.mxu1 %v19071_v50 }
0x343f   :  { %14744 = vmatprep.subr.bf16.mxu1 %v18983_v60 }
0x3441   :  { %13911 = vmatmul.mubr.msk.f32.vlgmr.msra.gmra.mrb[70].mxu1 %vm258_vm2, %v6890_v45 }
0x3442   :  { %13913 = vmatprep.mubr.msk.f32.mxu1 %vm258_vm2, %v6891_v46  ;;  %14746 = vmatpush3.bf16.msra.mxu1 %v19074_v43 }
0x3443   :  { %14747 = vmatprep.subr.bf16.mxu1 %v18983_v60 }
0x3445   :  { %13914 = vmatmul.mubr.msk.f32.gmra.mrb[72].mxu1 %vm258_vm2, %v6892_v6 }
0x3446   :  { %13916 = vmatprep.mubr.msk.f32.mxu1 %vm258_vm2, %v6893_v16  ;;  %14749 = vmatpush3.bf16.msra.mxu1 %v19077_v33  ;;  %v19085_v16 = vld [vmem:[#allocation30_spill] sm:$0xff] }
0x3447   :  { %14756 = vmatprep.subr.bf16.mxu1 %v18983_v60 }
0x3449   :  { %13917 = vmatmul.mubr.msk.f32.gmra.mrb[74].mxu1 %vm258_vm2, %v6894_v26 }
0x344a   :  { %13919 = vmatprep.mubr.msk.f32.mxu1 %vm258_vm2, %v6895_v47  ;;  %v19086_v47 = vld [vmem:[#allocation28_spill] sm:$0xff] }
0x344d   :  { %13920 = vmatmul.mubr.msk.f32.gmra.mrb[76].mxu1 %vm258_vm2, %v6896_v44 }
0x344e   :  { %13959 = vmatprep.mubr.msk.f32.mxu1 %vm15742_vm0, %v18982_v11 }
0x3451   :  { %13960 = vmatmul.mubr.msk.f32.vlgmr.msra.gmra.mrb[78].mxu1 %vm258_vm2, %v17483_v39 }
0x3452   :  { %14758 = vmatpush3.bf16.msra.mxu1 %v19081_v13  ;;  %13981 = vmatprep.mubr.msk.f32.mxu1 %vm15742_vm0, %v18982_v11 }
0x3453   :  { %14759 = vmatprep.subr.bf16.mxu1 %v18983_v60 }
0x3456   :  { %14761 = vmatpush3.bf16.msra.mxu1 %v19082_v1 }
0x3457   :  { %14768 = vmatprep.subr.bf16.mxu1 %v18983_v60 }
0x350c   :  { %v17636_v61 = vpop.f32.mrb[68].mxu1 }
0x350d   :  { %v13890_v31 = vpop.f32.mrb[69].mxu1 }
0x3514   :  { %v13912_v57 = vpop.f32.mrb[70].mxu1 }
0x3515   :  { %v7027_v45 = vadd.f32 %v13912_v57, %v19083_v41  ;;  %v6987_v49 = vpop.f32.mrb[71].mxu1 }
0x3516   :  { %v7026_v39 = vadd.f32 %v6987_v49, %v19084_v51 }
0x3517   :  { %v7041_v8 = vsel %vm258_vm2, %v7027_v45, -inf }
0x3518   :  { %v7042_v46 = vrot.slane %v7041_v8, 4  ;;  %v7034_v32 = vsel %vm258_vm2, %v7026_v39, -inf  ;;  %v13915_v6 = vpop.f32.mrb[72].mxu1 }
0x3519   :  { %v7035_v58 = vrot.slane %v7034_v32, 4  ;;  %v17643_v19 = vadd.f32 %v13915_v6, %v19085_v16  ;;  %v6997_v26 = vpop.f32.mrb[73].mxu1 }
0x351a   :  { %v7043_v37 = vmax.f32 %v7041_v8, %v7042_v46  ;;  %v17646_v44 = vadd.f32 %v6997_v26, %v19086_v47  ;;  %v19088_v26 = vld [vmem:[#allocation32_spill] sm:$0xff] }
0x351b   :  { %v7036_v31 = vmax.f32 %v7034_v32, %v7035_v58  ;;  %v7055_v57 = vsel %vm258_vm2, %v17643_v19, -inf }
0x351c   :  { %v7044_v49 = vrot.slane %v7043_v37, 2  ;;  %v7056_v36 = vrot.slane %v7055_v57, 4  ;;  %v7048_v51 = vsel %vm258_vm2, %v17646_v44, -inf  ;;  %v13918_v41 = vpop.f32.mrb[74].mxu1 }
0x351d   :  { %v7037_v1 = vrot.slane %v7036_v31, 2  ;;  %v7049_v13 = vrot.slane %v7048_v51, 4  ;;  %v17653_v6 = vadd.f32 %v13918_v41, %v19087_v40  ;;  %v7007_v16 = vpop.f32.mrb[75].mxu1 }
0x351e   :  { %v7045_v8 = vmax.f32 %v7043_v37, %v7044_v49  ;;  %v7057_v46 = vmax.f32 %v7055_v57, %v7056_v36  ;;  %v7030_v47 = vadd.f32 %v7007_v16, %v19088_v26 }
0x351f   :  { %v7038_v32 = vmax.f32 %v7036_v31, %v7037_v1  ;;  %v7050_v58 = vmax.f32 %v7048_v51, %v7049_v13  ;;  %v7069_v56 = vsel %vm258_vm2, %v17653_v6, -inf }
0x3520   :  { %v7046_v29 = vrot.slane %v7045_v8, 1  ;;  %v7058_v33 = vrot.slane %v7057_v46, 2  ;;  %v7070_v2 = vrot.slane %v7069_v56, 4  ;;  %v7062_v35 = vsel %vm258_vm2, %v7030_v47, -inf  ;;  %v13921_v43 = vpop.f32.mrb[76].mxu1 }
0x3521   :  { %v7039_v4 = vrot.slane %v7038_v32, 1  ;;  %v7051_v63 = vrot.slane %v7050_v58, 2  ;;  %v7063_v41 = vrot.slane %v7062_v35, 4  ;;  %v7033_v40 = vadd.f32 %v13921_v43, %v16206_v17  ;;  %v7017_v37 = vpop.f32.mrb[77].mxu1 }
0x3522   :  { %v7047_v36 = vmax.f32 %v7045_v8, %v7046_v29  ;;  %v7059_v57 = vmax.f32 %v7057_v46, %v7058_v33  ;;  %v7071_v16 = vmax.f32 %v7069_v56, %v7070_v2  ;;  %v7032_v13 = vadd.f32 %v7017_v37, %v16209_v24 }
0x3523   :  { %v7040_v1 = vmax.f32 %v7038_v32, %v7039_v4  ;;  %v7052_v51 = vmax.f32 %v7050_v58, %v7051_v63  ;;  %v7064_v31 = vmax.f32 %v7062_v35, %v7063_v41  ;;  %v7083_v49 = vsel %vm258_vm2, %v7033_v40, -inf }
0x3524   :  { %v7091_v26 = vsub.f32 %v7027_v45, %v7047_v36  ;;  %v7060_v50 = vrot.slane %v7059_v57, 1  ;;  %v7072_v3 = vrot.slane %v7071_v16, 2  ;;  %v7084_v20 = vrot.slane %v7083_v49, 4  ;;  %v17662_v54 = vpop.f32.mrb[78].mxu1 }
0x3525   :  { %v7090_v12 = vsub.f32 %v7026_v39, %v7040_v1  ;;  %v7053_v22 = vrot.slane %v7052_v51, 1  ;;  %v7065_v43 = vrot.slane %v7064_v31, 2  ;;  %v7076_v29 = vsel %vm258_vm2, %v7032_v13, -inf  ;;  %v13961_v33 = vpop.f32.mrb[79].mxu1 }
0x3526   :  { %v7100_v2 = vmul.f32 1.442695, %v7091_v26  ;;  %v7061_v56 = vmax.f32 %v7059_v57, %v7060_v50  ;;  %v7073_v8 = vmax.f32 %v7071_v16, %v7072_v3  ;;  %v7085_v4 = vmax.f32 %v7083_v49, %v7084_v20 }
0x3527   :  { %v7098_v63 = vmul.f32 1.442695, %v7090_v12  ;;  %v7054_v35 = vmax.f32 %v7052_v51, %v7053_v22  ;;  %v7066_v46 = vmax.f32 %v7064_v31, %v7065_v43  ;;  %v7077_v32 = vrot.slane %v7076_v29, 4 }
0x3528   :  { %15229 = vpow2.f32 %v7100_v2  ;;  %v7093_v45 = vsub.f32 %v17643_v19, %v7061_v56  ;;  %v7074_v58 = vrot.slane %v7073_v8, 1  ;;  %v7086_v41 = vrot.slane %v7085_v4, 2 }
0x3529   :  { %15231 = vpow2.f32 %v7098_v63  ;;  %v7092_v39 = vsub.f32 %v17646_v44, %v7054_v35  ;;  %v7067_v37 = vrot.slane %v7066_v46, 1  ;;  %v7078_v36 = vmax.f32 %v7076_v29, %v7077_v32 }
0x352a   :  { %v7104_v1 = vmul.f32 1.442695, %v7093_v45  ;;  %v7075_v33 = vmax.f32 %v7073_v8, %v7074_v58  ;;  %v7087_v26 = vmax.f32 %v7085_v4, %v7086_v41 }
0x352b   :  { %v7102_v50 = vmul.f32 1.442695, %v7092_v39  ;;  %v7068_v3 = vmax.f32 %v7066_v46, %v7067_v37  ;;  %v7079_v20 = vrot.slane %v7078_v36, 2 }
0x352c   :  { %15233 = vpow2.f32 %v7104_v1  ;;  %v7095_v22 = vsub.f32 %v17653_v6, %v7075_v33  ;;  %v7088_v12 = vrot.slane %v7087_v26, 1 }
0x352d   :  { %15235 = vpow2.f32 %v7102_v50  ;;  %v7094_v57 = vsub.f32 %v7030_v47, %v7068_v3  ;;  %v7080_v19 = vmax.f32 %v7078_v36, %v7079_v20 }
0x352e   :  { %v7108_v16 = vmul.f32 1.442695, %v7095_v22  ;;  %v7089_v51 = vmax.f32 %v7087_v26, %v7088_v12 }
0x352f   :  { %v7106_v31 = vmul.f32 1.442695, %v7094_v57  ;;  %v7081_v49 = vrot.slane %v7080_v19, 1 }
0x3530   :  { %15237 = vpow2.f32 %v7108_v16  ;;  %v7097_v44 = vsub.f32 %v7033_v40, %v7089_v51 }
0x3531   :  { %15239 = vpow2.f32 %v7106_v31  ;;  %v7082_v43 = vmax.f32 %v7080_v19, %v7081_v49 }
0x3532   :  { %v17668_v29 = vpop.eup %15229  ;;  %v7112_v2 = vmul.f32 1.442695, %v7097_v44 }
0x3533   :  { %v17670_v56 = vpop.eup %15231  ;;  %v7121_v6 = vsel %vm258_vm2, %v17668_v29, 0.0  ;;  %v7096_v8 = vsub.f32 %v7032_v13, %v7082_v43 }
0x3534   :  { %v7122_v4 = vrot.slane %v7121_v6, 4  ;;  %v7114_v47 = vsel %vm258_vm2, %v17670_v56, 0.0  ;;  %15241 = vpow2.f32 %v7112_v2 }
0x3535   :  { %v7115_v63 = vrot.slane %v7114_v47, 4  ;;  %v7110_v35 = vmul.f32 1.442695, %v7096_v8 }
0x3536   :  { %v17676_v46 = vpop.eup %15233  ;;  %v7123_v40 = vadd.f32 %v7122_v4, %v7121_v6 }
0x3537   :  { %v17678_v32 = vpop.eup %15235  ;;  %v7116_v45 = vadd.f32 %v7115_v63, %v7114_v47  ;;  %v7135_v58 = vsel %vm258_vm2, %v17676_v46, 0.0  ;;  %15243 = vpow2.f32 %v7110_v35 }
0x3538   :  { %v7124_v41 = vrot.slane %v7123_v40, 2  ;;  %v7136_v39 = vrot.slane %v7135_v58, 4  ;;  %v7128_v13 = vsel %vm258_vm2, %v17678_v32, 0.0 }
0x3539   :  { %v7117_v37 = vrot.slane %v7116_v45, 2  ;;  %v7129_v36 = vrot.slane %v7128_v13, 4 }
0x353a   :  { %v17684_v1 = vpop.eup %15237  ;;  %v7125_v33 = vadd.f32 %v7124_v41, %v7123_v40  ;;  %v7137_v26 = vadd.f32 %v7136_v39, %v7135_v58 }
0x353b   :  { %v17686_v50 = vpop.eup %15239  ;;  %v7118_v3 = vadd.f32 %v7117_v37, %v7116_v45  ;;  %v7130_v20 = vadd.f32 %v7129_v36, %v7128_v13  ;;  %v7149_v22 = vsel %vm258_vm2, %v17684_v1, 0.0 }
0x353c   :  { %v7126_v12 = vrot.slane %v7125_v33, 1  ;;  %v7138_v57 = vrot.slane %v7137_v26, 2  ;;  %v7150_v19 = vrot.slane %v7149_v22, 4  ;;  %v7142_v16 = vsel %vm258_vm2, %v17686_v50, 0.0 }
0x353d   :  { %v7119_v51 = vrot.slane %v7118_v3, 1  ;;  %v7131_v31 = vrot.slane %v7130_v20, 2  ;;  %v7143_v49 = vrot.slane %v7142_v16, 4 }
0x353e   :  { %v17692_v44 = vpop.eup %15241  ;;  %v7127_v43 = vadd.f32 %v7126_v12, %v7125_v33  ;;  %v7139_v2 = vadd.f32 %v7138_v57, %v7137_v26  ;;  %v7151_v6 = vadd.f32 %v7150_v19, %v7149_v22 }
0x353f   :  { %v7120_v8 = vadd.f32 %v7119_v51, %v7118_v3  ;;  %v7132_v4 = vadd.f32 %v7131_v31, %v7130_v20  ;;  %v7144_v47 = vadd.f32 %v7143_v49, %v7142_v16  ;;  %v7163_v63 = vsel %vm258_vm2, %v17692_v44, 0.0 }
0x3540   :  { %15245 = vrcp.f32 %v7127_v43  ;;  %v7140_v35 = vrot.slane %v7139_v2, 1  ;;  %v7152_v40 = vrot.slane %v7151_v6, 2  ;;  %v7164_v45 = vrot.slane %v7163_v63, 4 }
0x3541   :  { %v17696_v58 = vpop.eup %15243  ;;  %15247 = vrcp.f32 %v7120_v8  ;;  %v7133_v41 = vrot.slane %v7132_v4, 1  ;;  %v7145_v39 = vrot.slane %v7144_v47, 2 }
0x3542   :  { %v7141_v13 = vadd.f32 %v7140_v35, %v7139_v2  ;;  %v7153_v37 = vadd.f32 %v7152_v40, %v7151_v6  ;;  %v7165_v36 = vadd.f32 %v7164_v45, %v7163_v63  ;;  %v7156_v33 = vsel %vm258_vm2, %v17696_v58, 0.0  ;;  %v17702_v40 = vld [vmem:[#allocation2 + $0x8] sm:$0xff] }
0x3543   :  { %v7134_v26 = vadd.f32 %v7133_v41, %v7132_v4  ;;  %v7146_v3 = vadd.f32 %v7145_v39, %v7144_v47  ;;  %v7157_v20 = vrot.slane %v7156_v33, 4 }
0x3544   :  { %15249 = vrcp.f32 %v7141_v13  ;;  %v7154_v22 = vrot.slane %v7153_v37, 1  ;;  %v7166_v12 = vrot.slane %v7165_v36, 2  ;;  %v17705_v13 = vld [vmem:[#allocation2] sm:$0xff] }
0x3545   :  { %15251 = vrcp.f32 %v7134_v26  ;;  %v7147_v57 = vrot.slane %v7146_v3, 1  ;;  %v7158_v19 = vadd.f32 %v7157_v20, %v7156_v33 }
0x3546   :  { %v7155_v16 = vadd.f32 %v7154_v22, %v7153_v37  ;;  %v7167_v51 = vadd.f32 %v7166_v12, %v7165_v36  ;;  %v17712_v22 = vld [vmem:[#allocation2 + $0x18] sm:$0xff] }
0x3547   :  { %v7148_v31 = vadd.f32 %v7147_v57, %v7146_v3  ;;  %v7159_v49 = vrot.slane %v7158_v19, 2 }
0x3548   :  { %15253 = vrcp.f32 %v7155_v16  ;;  %v7168_v43 = vrot.slane %v7167_v51, 1  ;;  %v17715_v16 = vld [vmem:[#allocation2 + $0x10] sm:$0xff] }
0x3549   :  { %15255 = vrcp.f32 %v7148_v31  ;;  %v7160_v2 = vadd.f32 %v7159_v49, %v7158_v19  ;;  %19089 = vst [vmem:[#allocation49_spill] sm:$0xff] %v17715_v16 }
0x354a   :  { %v15246_v6 = vpop.eup %15245  ;;  %v7169_v8 = vadd.f32 %v7168_v43, %v7167_v51 }
0x354b   :  { %v15248_v63 = vpop.eup %15247  ;;  %v7173_v4 = vmul.f32 %v15246_v6, %v17668_v29  ;;  %v7161_v47 = vrot.slane %v7160_v2, 1 }
0x354c   :  { %v7171_v35 = vmul.f32 %v15248_v63, %v17670_v56  ;;  %15257 = vrcp.f32 %v7169_v8 }
0x354d   :  { %v7187_v45 = vmul.f32 %v17702_v40, %v7173_v4  ;;  %v7162_v41 = vadd.f32 %v7161_v47, %v7160_v2  ;;  %v17722_v47 = vld [vmem:[#allocation2 + $0x28] sm:$0xff] }
0x354e   :  { %v15250_v39 = vpop.eup %15249  ;;  %v7186_v37 = vmul.f32 %v17705_v13, %v7171_v35  ;;  %19090 = vst [vmem:[#allocation50_spill] sm:$0xff] %v17722_v47 }
0x354f   :  { %v15252_v36 = vpop.eup %15251  ;;  %v7201_v33 = vsel %vm258_vm2, %v7187_v45, 0.0  ;;  %v7177_v26 = vmul.f32 %v15250_v39, %v17676_v46  ;;  %15259 = vrcp.f32 %v7162_v41 }
0x3550   :  { %v7202_v29 = vrot.slane %v7201_v33, 4  ;;  %v7194_v56 = vsel %vm258_vm2, %v7186_v37, 0.0  ;;  %v7175_v3 = vmul.f32 %v15252_v36, %v17678_v32  ;;  %v17725_v37 = vld [vmem:[#allocation2 + $0x20] sm:$0xff] }
0x3551   :  { %v7195_v20 = vrot.slane %v7194_v56, 4  ;;  %v7189_v12 = vmul.f32 %v17712_v22, %v7177_v26  ;;  %19091 = vst [vmem:[#allocation52_spill] sm:$0xff] %v17725_v37 }
0x3552   :  { %v15254_v57 = vpop.eup %15253  ;;  %v7203_v19 = vadd.f32 %v7202_v29, %v7201_v33  ;;  %v7188_v51 = vmul.f32 %v17715_v16, %v7175_v3 }
0x3553   :  { %v15256_v31 = vpop.eup %15255  ;;  %v7196_v49 = vadd.f32 %v7195_v20, %v7194_v56  ;;  %v7215_v46 = vsel %vm258_vm2, %v7189_v12, 0.0  ;;  %v7181_v43 = vmul.f32 %v15254_v57, %v17684_v1 }
0x3554   :  { %v7204_v2 = vrot.slane %v7203_v19, 2  ;;  %v7216_v6 = vrot.slane %v7215_v46, 4  ;;  %v7208_v32 = vsel %vm258_vm2, %v7188_v51, 0.0  ;;  %v7179_v8 = vmul.f32 %v15256_v31, %v17686_v50  ;;  %v17731_v31 = vld [vmem:[#allocation2 + $0x38] sm:$0xff] }
0x3555   :  { %v7197_v63 = vrot.slane %v7196_v49, 2  ;;  %v7209_v4 = vrot.slane %v7208_v32, 4  ;;  %v7191_v35 = vmul.f32 %v17722_v47, %v7181_v43 }
0x3556   :  { %v15258_v45 = vpop.eup %15257  ;;  %v7205_v41 = vadd.f32 %v7204_v2, %v7203_v19  ;;  %v7217_v39 = vadd.f32 %v7216_v6, %v7215_v46  ;;  %v7190_v36 = vmul.f32 %v17725_v37, %v7179_v8 }
0x3557   :  { %v7198_v1 = vadd.f32 %v7197_v63, %v7196_v49  ;;  %v7210_v33 = vadd.f32 %v7209_v4, %v7208_v32  ;;  %v7229_v26 = vsel %vm258_vm2, %v7191_v35, 0.0  ;;  %v7185_v29 = vmul.f32 %v15258_v45, %v17692_v44  ;;  %v17736_v4 = vld [vmem:[#allocation2 + $0x30] sm:$0xff] }
0x3558   :  { %v7206_v50 = vrot.slane %v7205_v41, 1  ;;  %v7218_v56 = vrot.slane %v7217_v39, 2  ;;  %v7230_v3 = vrot.slane %v7229_v26, 4  ;;  %v7222_v20 = vsel %vm258_vm2, %v7190_v36, 0.0 }
0x3559   :  { %v15260_v12 = vpop.eup %15259  ;;  %v7199_v57 = vrot.slane %v7198_v1, 1  ;;  %v7211_v51 = vrot.slane %v7210_v33, 2  ;;  %v7223_v19 = vrot.slane %v7222_v20, 4  ;;  %v7193_v46 = vmul.f32 %v17731_v31, %v7185_v29 }
0x355a   :  { %v7207_v43 = vadd.f32 %v7206_v50, %v7205_v41  ;;  %v7183_v49 = vmul.f32 %v15260_v12, %v17696_v58  ;;  %v7219_v2 = vadd.f32 %v7218_v56, %v7217_v39  ;;  %v7231_v6 = vadd.f32 %v7230_v3, %v7229_v26 }
0x355b   :  { %v7200_v32 = vadd.f32 %v7199_v57, %v7198_v1  ;;  %v7212_v44 = vadd.f32 %v7211_v51, %v7210_v33  ;;  %v7224_v8 = vadd.f32 %v7223_v19, %v7222_v20  ;;  %v7243_v63 = vsel %vm258_vm2, %v7193_v46, 0.0 }
0x355c   :  { %v7192_v35 = vmul.f32 %v17736_v4, %v7183_v49  ;;  %v7220_v45 = vrot.slane %v7219_v2, 1  ;;  %v7232_v36 = vrot.slane %v7231_v6, 2  ;;  %v7244_v37 = vrot.slane %v7243_v63, 4 }
0x355d   :  { %v7213_v47 = vrot.slane %v7212_v44, 1  ;;  %v7225_v16 = vrot.slane %v7224_v8, 2  ;;  %v7258_v41 = vsel %vm917_vm3, %v7207_v43, %v7200_v32 }
0x355e   :  { %v7233_v29 = vadd.f32 %v7232_v36, %v7231_v6  ;;  %v7236_v58 = vsel %vm258_vm2, %v7192_v35, 0.0  ;;  %v7245_v39 = vadd.f32 %v7244_v37, %v7243_v63  ;;  %v7221_v50 = vadd.f32 %v7220_v45, %v7219_v2 }
0x355f   :  { %v7214_v1 = vadd.f32 %v7213_v47, %v7212_v44  ;;  %v7226_v33 = vadd.f32 %v7225_v16, %v7224_v8  ;;  %v7237_v26 = vrot.slane %v7236_v58, 4 }
0x3560   :  { %v7234_v56 = vrot.slane %v7233_v29, 1  ;;  %v7246_v3 = vrot.slane %v7245_v39, 2 }
0x3561   :  { %v7227_v20 = vrot.slane %v7226_v33, 1  ;;  %v7238_v12 = vadd.f32 %v7237_v26, %v7236_v58  ;;  %v7259_v57 = vsel %vm919_vm4, %v7214_v1, %v7258_v41 }
0x3562   :  { %v7247_v51 = vadd.f32 %v7246_v3, %v7245_v39  ;;  %v7260_v19 = vsel %vm921_vm5, %v7221_v50, %v7259_v57  ;;  %v7235_v43 = vadd.f32 %v7234_v56, %v7233_v29 }
0x3563   :  { %v7228_v46 = vadd.f32 %v7227_v20, %v7226_v33  ;;  %v7239_v49 = vrot.slane %v7238_v12, 2 }
0x3564   :  { %v7248_v37 = vrot.slane %v7247_v51, 1 }
0x3565   :  { %v7240_v6 = vadd.f32 %v7239_v49, %v7238_v12  ;;  %v7261_v32 = vsel %vm923_vm6, %v7228_v46, %v7260_v19 }
0x3566   :  { %v7262_v16 = vsel %vm925_vm7, %v7235_v43, %v7261_v32  ;;  %v7249_v44 = vadd.f32 %v7248_v37, %v7247_v51 }
0x3567   :  { %v7241_v47 = vrot.slane %v7240_v6, 1 }
0x3569   :  { %v7242_v2 = vadd.f32 %v7241_v47, %v7240_v6 }
0x356b   :  { %v7263_v8 = vsel %vm927_vm8, %v7242_v2, %v7262_v16 }
0x356c   :  { %v7264_v63 = vsel %vm929_vm9, %v7249_v44, %v7263_v8 }
0x356d   :  { %13931 = vmatmul.mubr.msk.f32.vlgmr.msra.gmra.mrb[74].mxu0 %vm258_vm2, %v7264_v63 }
0x356e   :  { %14737 = vmatpush3.bf16.msra.mxu0 %v16271_v52  ;;  %13941 = vmatprep.mubr.msk.f32.mxu0 %vm15742_vm0, %v18982_v11 }
0x356f   :  { %14738 = vmatprep.subr.bf16.mxu0 %v18983_v60 }
0x3572   :  { %14740 = vmatpush3.bf16.msra.mxu0 %v16277_v7 }
0x3573   :  { %14741 = vmatprep.subr.bf16.mxu0 %v18983_v60 }
0x3640   :  { %v7333_v35 = vpop.f32.mrb[74].mxu0 }
0x3641   :  { %v7334_v45 = vadd.f32 %v17435_v48, %v7333_v35  ;;  %v13932_v36 = vpop.f32.mrb[75].mxu0 }
0x3643   :  { %13942 = vmatmul.mubr.msk.f32.vlgmr.msra.gmra.mrb[76].mxu0 %vm258_vm2, %v7334_v45 }
0x3644   :  { %14743 = vmatpush3.bf16.msra.mxu0 %v16299_v62  ;;  %13948 = vmatprep.mubr.msk.f32.mxu0 %vm15742_vm0, %v18982_v11 }
0x3645   :  { %14750 = vmatprep.subr.bf16.mxu0 %v18983_v60 }
0x3647   :  { %13949 = vmatmul.mubr.msk.f32.vlgmr.msra.gmra.mrb[78].mxu0 %vm1076_vm10, %v17636_v61 }
0x3648   :  { %14752 = vmatpush3.bf16.msra.mxu0 %v16306_v59  ;;  %13970 = vmatprep.mubr.msk.f32.mxu0 %vm15742_vm0, %v18982_v11 }
0x3649   :  { %14753 = vmatprep.subr.bf16.mxu0 %v18983_v60 }
0x364c   :  { %14755 = vmatpush3.bf16.msra.mxu0 %v16312_v28 }
0x364d   :  { %14762 = vmatprep.subr.bf16.mxu0 %v18983_v60 }
0x364f   :  { %13971 = vmatmul.mubr.msk.f32.vlgmr.msra.gmra.mrb[80].mxu0 %vm258_vm2, %v17507_v53 }
0x3650   :  { %14764 = vmatpush3.bf16.msra.mxu0 %v16318_v34  ;;  %13992 = vmatprep.mubr.msk.f32.mxu0 %vm15742_vm0, %v18982_v11 }
0x3651   :  { %14765 = vmatprep.subr.bf16.mxu0 %v18983_v60 }
0x3654   :  { %14767 = vmatpush3.bf16.msra.mxu0 %v16323_v25 }
0x3655   :  { %14774 = vmatprep.subr.bf16.mxu0 %v18983_v60 }
0x3657   :  { %13993 = vmatmul.mubr.msk.f32.vlgmr.msra.gmra.mrb[82].mxu0 %vm258_vm2, %v7334_v45 }
0x3658   :  { %14776 = vmatpush3.bf16.msra.mxu0 %v16027_v9  ;;  %14014 = vmatprep.mubr.msk.f32.mxu0 %vm15742_vm0, %v18982_v11 }
0x3659   :  { %14777 = vmatprep.subr.bf16.mxu0 %v18983_v60 }
0x365c   :  { %14779 = vmatpush3.bf16.msra.mxu0 %v16046_v14 }
0x365d   :  { %14787 = vmatprep.subr.bf16.mxu0 %v16058_v18 }
0x3716   :  { %v7406_v48 = vpop.f32.mrb[76].mxu0 }
0x3717   :  { %v13943_v53 = vpop.f32.mrb[77].mxu0 }
0x371a   :  { %v7479_v61 = vpop.f32.mrb[78].mxu0 }
0x371b   :  { %v7480_v41 = vadd.f32 %v7479_v61, %v7406_v48  ;;  %v13950_v29 = vpop.f32.mrb[79].mxu0 }
0x371d   :  { %v7553_v58 = vadd.f32 %v17662_v54, %v7480_v41 }
0x371f   :  { %v7554_v39 = vadd.f32 %v17470_v15, %v7553_v58 }
0x3721   :  { %15261 = vtanh.f32 %v7554_v39  ;;  %v12641_v3 = vmul.f32 -1.442695, %v7554_v39 }
0x3722   :  { %v7645_v1 = vpop.f32.mrb[80].mxu0 }
0x3723   :  { %v13972_v33 = vpop.f32.mrb[81].mxu0  ;;  %15263 = vpow2.f32 %v12641_v3 }
0x372a   :  { %v17785_v26 = vpop.f32.mrb[82].mxu0 }
0x372b   :  { %v15262_v50 = vpop.eup %15261  ;;  %v13994_v56 = vpop.f32.mrb[83].mxu0 }
0x372c   :  { %7564 = vrot.lane.b32.xlu0 %v15262_v50, %s15746_s1 }
0x372d   :  { %v15264_v20 = vpop.eup %15263 }
0x372e   :  { %v7558_v12 = vadd.f32 1.0, %v15264_v20 }
0x3730   :  { %15265 = vrcp.f32 %v7558_v12  ;;  %v19093_v12 = vld [vmem:[#allocation21_spill] sm:$0xff] }
0x373a   :  { %v15266_v57 = vpop.eup %15265 }
0x373b   :  { %v7562_v15 = vmul.f32 %v15266_v57, %v17478_v27 }
0x379e   :  { %v7565_v51 = vpop.permute.xlu0 %7564 }
0x379f   :  { %v7567_v19 = vmul.f32 %v15266_v57, %v7565_v51 }
0x37a1   :  { %7569 = vrot.lane.b32.xlu1 %v7567_v19, %s15747_s14 }
0x3813   :  { %v7570_v54 = vpop.permute.xlu1 %7569 }
0x3814   :  { %v17790_v46 = vadd.f32 %v7570_v54, %v7562_v15 }
0x3816   :  { %15267 = vtanh.f32 %v17790_v46 }
0x3820   :  { %v15268_v49 = vpop.eup %15267 }
0x3821   :  { %7575 = vrot.lane.b32.xlu1 %v15268_v49, %s15746_s1 }
0x3893   :  { %v7576_v43 = vpop.permute.xlu1 %7575 }
0x3894   :  { %v7578_v6 = vmul.f32 %v15266_v57, %v7576_v43  ;;  %v19094_v43 = vld [vmem:[#allocation39_spill] sm:$0xff] }
0x3896   :  { %7650 = vrot.lane.b32.xlu0 %v7578_v6, %s15747_s14 }
0x3908   :  { %v17795_v32 = vpop.permute.xlu0 %7650 }
0x3909   :  { %13982 = vmatmul.mubr.msk.f32.vlgmr.msra.gmra.mrb[80].mxu1 %vm258_vm2, %v17795_v32 }
0x390a   :  { %14770 = vmatpush3.bf16.msra.mxu1 %v16377_v42  ;;  %14003 = vmatprep.mubr.msk.f32.mxu1 %vm15742_vm0, %v18982_v11 }
0x390b   :  { %14771 = vmatprep.subr.bf16.mxu1 %v18983_v60 }
0x390e   :  { %14773 = vmatpush3.bf16.msra.mxu1 %v16380_v21 }
0x390f   :  { %14780 = vmatprep.subr.bf16.mxu1 %v18983_v60 }
0x39dc   :  { %v7720_v27 = vpop.f32.mrb[80].mxu1 }
0x39dd   :  { %v7721_v37 = vadd.f32 %v7720_v27, %v7645_v1  ;;  %v13983_v16 = vpop.f32.mrb[81].mxu1 }
0x39df   :  { %v7724_v47 = vadd.f32 %v17496_v0, %v7721_v37  ;;  %v19095_v37 = vld [vmem:[#allocation23_spill] sm:$0xff] }
0x39e1   :  { %15269 = vtanh.f32 %v7724_v47  ;;  %v12644_v44 = vmul.f32 -1.442695, %v7724_v47 }
0x39e3   :  { %15271 = vpow2.f32 %v12644_v44 }
0x39eb   :  { %v15270_v2 = vpop.eup %15269 }
0x39ec   :  { %7734 = vrot.lane.b32.xlu1 %v15270_v2, %s15746_s1 }
0x39ed   :  { %v15272_v8 = vpop.eup %15271 }
0x39ee   :  { %v7728_v63 = vadd.f32 1.0, %v15272_v8 }
0x39f0   :  { %15273 = vrcp.f32 %v7728_v63 }
0x39fa   :  { %v15274_v35 = vpop.eup %15273 }
0x39fb   :  { %v7732_v48 = vmul.f32 %v15274_v35, %v17502_v55 }
0x3a5e   :  { %v7735_v45 = vpop.permute.xlu1 %7734 }
0x3a5f   :  { %v7737_v36 = vmul.f32 %v15274_v35, %v7735_v45 }
0x3a61   :  { %7739 = vrot.lane.b32.xlu0 %v7737_v36, %s15747_s14  ;;  %v19096_v36 = vld [vmem:[#allocation24_spill] sm:$0xff] }
0x3ad3   :  { %v7740_v53 = vpop.permute.xlu0 %7739 }
0x3ad4   :  { %v17809_v61 = vadd.f32 %v7740_v53, %v7732_v48 }
0x3ad6   :  { %15275 = vtanh.f32 %v17809_v61 }
0x3ae0   :  { %v15276_v0 = vpop.eup %15275 }
0x3ae1   :  { %7745 = vrot.lane.b32.xlu1 %v15276_v0, %s15746_s1 }
0x3b53   :  { %v7746_v41 = vpop.permute.xlu1 %7745 }
0x3b54   :  { %v7748_v29 = vmul.f32 %v15274_v35, %v7746_v41 }
0x3b56   :  { %7820 = vrot.lane.b32.xlu0 %v7748_v29, %s15747_s14 }
0x3bc8   :  { %v17814_v58 = vpop.permute.xlu0 %7820 }
0x3bc9   :  { %14004 = vmatmul.mubr.msk.f32.vlgmr.msra.gmra.mrb[82].mxu1 %vm258_vm2, %v17814_v58 }
0x3bca   :  { %14782 = vmatpush3.bf16.msra.mxu1 %v16016_v5  ;;  %14025 = vmatprep.mubr.msk.f32.mxu1 %vm15742_vm0, %v18982_v11 }
0x3bcb   :  { %14783 = vmatprep.subr.bf16.mxu1 %v18983_v60 }
0x3bce   :  { %14785 = vmatpush3.bf16.msra.mxu1 %v16030_v10 }
0x3bcf   :  { %14794 = vmatprep.subr.bf16.mxu1 %v18983_v60 }
0x3bd1   :  { %14026 = vmatmul.mubr.msk.f32.vlgmr.msra.gmra.mrb[84].mxu1 %vm258_vm2, %v17814_v58 }
0x3bd2   :  { %14796 = vmatpush3.bf16.msra.mxu1 %v16156_v30  ;;  %14056 = vmatprep.mubr.msk.f32.mxu1 %vm15742_vm0, %v18982_v11 }
0x3bd3   :  { %14797 = vmatprep.subr.bf16.mxu1 %v18983_v60 }
0x3bd6   :  { %14799 = vmatpush3.bf16.msra.mxu1 %v19064_v23 }
0x3bd7   :  { %14800 = vmatprep.subr.bf16.mxu1 %v18983_v60 }
0x3c9c   :  { %v7890_v55 = vpop.f32.mrb[82].mxu1 }
0x3c9d   :  { %v7891_v39 = vadd.f32 %v7890_v55, %v17785_v26  ;;  %v14005_v1 = vpop.f32.mrb[83].mxu1 }
0x3c9f   :  { %v17834_v33 = vadd.f32 %v17529_v38, %v7891_v39  ;;  %v19097_v39 = vld [vmem:[#allocation40_spill] sm:$0xff] }
0x3ca1   :  { %19092 = vst [vmem:[#allocation53_spill] sm:$0xff] %v17834_v33  ;;  %v7895_v50 = vsel %vm258_vm2, %v17834_v33, -inf }
0x3ca2   :  { %7896 = vmax.xlane.f32.xlu1 %v7895_v50 }
0x3ca4   :  { %v8057_v56 = vpop.f32.mrb[84].mxu1 }
0x3ca5   :  { %v14027_v3 = vpop.f32.mrb[85].mxu1  ;;  %v8058_v6 = vadd.f32 %v19094_v43, %v8057_v56  ;;  %v19100_v43 = vld [vmem:[#allocation42_spill] sm:$0xff] }
0x3ca7   :  { %v8061_v27 = vmul.f32 0.35355338, %v8058_v6 }
0x3ca9   :  { %v8070_v16 = vrot.slane %v8061_v27, %v19095_v37  ;;  %v8063_v8 = vcombine.high %v8061_v27, %v8061_v27  ;;  %v19101_v27 = vld [vmem:[#allocation26_spill] sm:$0xff] }
0x3cab   :  { %v8086_v2 = vrot.slane %v8070_v16, %v19095_v37  ;;  %v8078_v63 = vcombine.high %v8070_v16, %v8070_v16  ;;  %v8077_v0 = vrot.slane %v8063_v8, %v19095_v37  ;;  %v19103_v8 = vld [vmem:[#allocation44_spill] sm:$0xff] }
0x3cad   :  { %v8115_v48 = vrot.slane %v8086_v2, %v19096_v36  ;;  %v8100_v41 = vrot.slane %v8078_v63, %v19095_v37  ;;  %v8108_v29 = vcombine.high %v8086_v2, %v8086_v2  ;;  %v8079_v50 = vcombine.high %v8077_v0, %v8077_v0 }
0x3caf   :  { %v8152_v1 = vmul.f32 %v19097_v39, %v8115_v48  ;;  %v8110_v56 = vcombine.high %v8100_v41, %v8100_v41  ;;  %v8119_v3 = vrot.slane %v8100_v41, %v19096_v36  ;;  %v19105_v48 = vld [vmem:[#allocation45_spill] sm:$0xff]  ;;  %v19106_v41 = vld [vmem:[#allocation46_spill] sm:$0xff] }
0x3d2f   :  { %v7897_v20 = vpop.xlane.xlu1 %7896 }
0x3d30   :  { %vm7898_vm14 = vcmp.ge.f32.partialorder %v17834_v33, %v7897_v20  ;;  %v19098_v20 = vld [vmem:[#allocation22_spill] sm:$0xff] }
0x3d31   :  { %v7899_v57 = vsel %vm7898_vm14, %v19093_v12, 32  ;;  %vm12430_vm14 = vcmask 1040384  }
0x3d32   :  { %v7900_v51 = vsel %vm258_vm2, %v7899_v57, 2147483647  ;;  %v8093_v57 = vrot.slane %v8077_v0, %v19095_v37 }
0x3d33   :  { %v7902_v19 = vshra.s32 %v7900_v51, 16  ;;  %v7901_v26 = vand.u32 65535, %v7900_v51  ;;  %v8123_v51 = vrot.slane %v8108_v29, %v19096_v36 }
0x3d35   :  { %v7904_v15 = vcvt.s32.f32 %v7902_v19  ;;  %v7903_v38 = vcvt.s32.f32 %v7901_v26  ;;  %v8107_v19 = vrot.slane %v8079_v50, %v19095_v37  ;;  %v8154_v6 = vmul.f32 %v19100_v43, %v8123_v51  ;;  %v19109_v50 = vld [vmem:[#allocation35_spill] sm:$0xff]  ;;  %v19110_v51 = vld [vmem:[#allocation29_spill] sm:$0xff] }
0x3d37   :  { %7905 = vmin.xlane.f32.xlu0 %v7904_v15  ;;  %v8111_v16 = vcombine.high %v8107_v19, %v8107_v19 }
0x3d39   :  { %v8143_v0 = vrot.slane %v8111_v16, %v19096_v36  ;;  %v19112_v16 = vld [vmem:[#allocation30_spill] sm:$0xff] }
0x3dc4   :  { %v7906_v54 = vpop.xlane.xlu0 %7905 }
0x3dc5   :  { %vm7907_vm15 = vcmp.eq.f32.partialorder %v7904_v15, %v7906_v54  ;;  %v7912_v47 = vcvt.f32.s32 %v7906_v54  ;;  %v19099_v15 = vld [vmem:[#allocation41_spill] sm:$0xff]  ;;  %v8127_v54 = vrot.slane %v8110_v56, %v19096_v36 }
0x3dc6   :  { %v7908_v49 = vsel %vm7907_vm15, %v7903_v38, inf  ;;  %v8153_v26 = vmul.f32 %v19099_v15, %v8119_v3  ;;  %v8109_v38 = vcombine.high %v8093_v57, %v8093_v57  ;;  %vm12439_vm15 = vcmask 1041408  }
0x3dc7   :  { %7909 = vmin.xlane.f32.xlu0 %v7908_v49  ;;  %v7913_v35 = vshll.u32 %v7912_v47, 16  ;;  %v8131_v49 = vrot.slane %v8093_v57, %v19096_v36  ;;  %v19102_v47 = vld [vmem:[#allocation43_spill] sm:$0xff] }
0x3dc8   :  { %v8155_v2 = vmul.f32 %v19102_v47, %v8127_v54 }
0x3dc9   :  { %v8156_v63 = vmul.f32 %v19103_v8, %v8131_v49  ;;  %v19113_v8 = vld [vmem:[#allocation28_spill] sm:$0xff] }
0x3e54   :  { %v7910_v44 = vpop.xlane.xlu0 %7909 }
0x3e55   :  { %v7911_v45 = vcvt.f32.s32 %v7910_v44  ;;  %v8135_v44 = vrot.slane %v8107_v19, %v19096_v36 }
0x3e57   :  { %v7914_v53 = vadd.s32 %v7913_v35, %v7911_v45  ;;  %v8139_v35 = vrot.slane %v8109_v38, %v19096_v36  ;;  %v19104_v45 = vld [vmem:[#allocation33_spill] sm:$0xff] }
0x3e59   :  { %vm7915_vm1 = vcmp.eq.s32.totalorder %v19093_v12, %v7914_v53  ;;  %v8157_v53 = vmul.f32 %v19105_v48, %v8135_v44  ;;  %v8158_v29 = vmul.f32 %v19106_v41, %v8139_v35 }
0x3e5a   :  { %v12647_v55 = vsel %vm7915_vm1, 1.0, %v18982_v11  ;;  %vm12448_vm1 = vcmask 1042432  }
0x3e5b   :  { %14015 = vmatmul.mubr.msk.f32.vlgmr.msra.gmra.mrb[84].mxu0 %vm258_vm2, %v12647_v55  ;;  %v19107_v55 = vld [vmem:[#allocation47_spill] sm:$0xff] }
0x3e5c   :  { %14789 = vmatpush3.bf16.msra.mxu0 %v16058_v18  ;;  %14036 = vmatprep.mubr.msk.f32.mxu0 %vm258_vm2, %v8152_v1  ;;  %v8159_v39 = vmul.f32 %v19107_v55, %v8143_v0  ;;  %v19108_v1 = vld [vmem:[#allocation34_spill] sm:$0xff] }
0x3e5d   :  { %14791 = vmatprep.subr.bf16.mxu0 %v19098_v20 }
0x3e60   :  { %14793 = vmatpush3.bf16.msra.mxu0 %v19098_v20 }
0x3e61   :  { %14809 = vmatprep.subr.bf16.mxu0 %v18983_v60 }
0x3e63   :  { %14037 = vmatmul.mubr.msk.f32.vlgmr.msra.gmra.mrb[86].mxu0 %vm258_vm2, %v8153_v26  ;;  %v19111_v26 = vld [vmem:[#allocation27_spill] sm:$0xff] }
0x3e64   :  { %14039 = vmatprep.mubr.msk.f32.mxu0 %vm258_vm2, %v8154_v6  ;;  %14811 = vmatpush3.bf16.msra.mxu0 %v19101_v27 }
0x3e65   :  { %14812 = vmatprep.subr.bf16.mxu0 %v18983_v60 }
0x3e67   :  { %14040 = vmatmul.mubr.msk.f32.gmra.mrb[88].mxu0 %vm258_vm2, %v8155_v2 }
0x3e68   :  { %14042 = vmatprep.mubr.msk.f32.mxu0 %vm258_vm2, %v8156_v63  ;;  %14814 = vmatpush3.bf16.msra.mxu0 %v19104_v45 }
0x3e69   :  { %14821 = vmatprep.subr.bf16.mxu0 %v18983_v60 }
0x3e6b   :  { %14043 = vmatmul.mubr.msk.f32.gmra.mrb[90].mxu0 %vm258_vm2, %v8157_v53 }
0x3e6c   :  { %14045 = vmatprep.mubr.msk.f32.mxu0 %vm258_vm2, %v8158_v29 }
0x3e6f   :  { %14046 = vmatmul.mubr.msk.f32.gmra.mrb[92].mxu0 %vm258_vm2, %v8159_v39 }
0x3e70   :  { %14085 = vmatprep.mubr.msk.f32.mxu0 %vm15742_vm0, %v18982_v11 }
0x3e73   :  { %14086 = vmatmul.mubr.msk.f32.vlgmr.msra.gmra.mrb[94].mxu0 %vm258_vm2, %v17795_v32 }
0x3e74   :  { %14823 = vmatpush3.bf16.msra.mxu0 %v19108_v1  ;;  %14107 = vmatprep.mubr.msk.f32.mxu0 %vm15742_vm0, %v18982_v11 }
0x3e75   :  { %14824 = vmatprep.subr.bf16.mxu0 %v18983_v60 }
0x3e78   :  { %14826 = vmatpush3.bf16.msra.mxu0 %v19109_v50 }
0x3e79   :  { %14833 = vmatprep.subr.bf16.mxu0 %v18983_v60 }
0x3f2e   :  { %v17893_v56 = vpop.f32.mrb[84].mxu0 }
0x3f2f   :  { %v14016_v3 = vpop.f32.mrb[85].mxu0 }
0x3f30   :  { %v19114_v3 = vld [vmem:[#allocation31_spill] sm:$0xff] }
0x3f36   :  { %v14038_v57 = vpop.f32.mrb[86].mxu0 }
0x3f37   :  { %v8290_v19 = vadd.f32 %v14038_v57, %v19110_v51  ;;  %v8250_v15 = vpop.f32.mrb[87].mxu0 }
0x3f38   :  { %v8289_v32 = vadd.f32 %v8250_v15, %v19111_v26 }
0x3f39   :  { %v8304_v54 = vsel %vm258_vm2, %v8290_v19, -inf }
0x3f3a   :  { %v8305_v38 = vrot.slane %v8304_v54, 4  ;;  %v8297_v49 = vsel %vm258_vm2, %v8289_v32, -inf  ;;  %v14041_v43 = vpop.f32.mrb[88].mxu0 }
0x3f3b   :  { %v8298_v6 = vrot.slane %v8297_v49, 4  ;;  %v17900_v47 = vadd.f32 %v14041_v43, %v19112_v16  ;;  %v8260_v2 = vpop.f32.mrb[89].mxu0  ;;  %v19115_v43 = vld [vmem:[#allocation32_spill] sm:$0xff] }
0x3f3c   :  { %v8306_v44 = vmax.f32 %v8304_v54, %v8305_v38  ;;  %v17903_v63 = vadd.f32 %v8260_v2, %v19113_v8 }
0x3f3d   :  { %v8299_v35 = vmax.f32 %v8297_v49, %v8298_v6  ;;  %v8318_v48 = vsel %vm258_vm2, %v17900_v47, -inf }
0x3f3e   :  { %v8307_v53 = vrot.slane %v8306_v44, 2  ;;  %v8319_v0 = vrot.slane %v8318_v48, 4  ;;  %v8311_v41 = vsel %vm258_vm2, %v17903_v63, -inf  ;;  %v14044_v29 = vpop.f32.mrb[90].mxu0 }
0x3f3f   :  { %v8300_v55 = vrot.slane %v8299_v35, 2  ;;  %v8312_v39 = vrot.slane %v8311_v41, 4  ;;  %v17910_v57 = vadd.f32 %v14044_v29, %v19114_v3  ;;  %v8270_v15 = vpop.f32.mrb[91].mxu0 }
0x3f40   :  { %v8308_v54 = vmax.f32 %v8306_v44, %v8307_v53  ;;  %v8320_v38 = vmax.f32 %v8318_v48, %v8319_v0  ;;  %v8293_v2 = vadd.f32 %v8270_v15, %v19115_v43 }
0x3f41   :  { %v8301_v49 = vmax.f32 %v8299_v35, %v8300_v55  ;;  %v8313_v6 = vmax.f32 %v8311_v41, %v8312_v39  ;;  %v8332_v33 = vsel %vm258_vm2, %v17910_v57, -inf }
0x3f42   :  { %v8309_v8 = vrot.slane %v8308_v54, 1  ;;  %v8321_v16 = vrot.slane %v8320_v38, 2  ;;  %v8333_v26 = vrot.slane %v8332_v33, 4  ;;  %v8325_v51 = vsel %vm258_vm2, %v8293_v2, -inf  ;;  %v14047_v50 = vpop.f32.mrb[92].mxu0 }
0x3f43   :  { %v8302_v1 = vrot.slane %v8301_v49, 1  ;;  %v8314_v45 = vrot.slane %v8313_v6, 2  ;;  %v8326_v29 = vrot.slane %v8325_v51, 4  ;;  %v8296_v3 = vadd.f32 %v14047_v50, %v16206_v17  ;;  %v8280_v44 = vpop.f32.mrb[93].mxu0 }
0x3f44   :  { %v8310_v48 = vmax.f32 %v8308_v54, %v8309_v8  ;;  %v8322_v53 = vmax.f32 %v8320_v38, %v8321_v16  ;;  %v8334_v0 = vmax.f32 %v8332_v33, %v8333_v26  ;;  %v8295_v35 = vadd.f32 %v8280_v44, %v16209_v24 }
0x3f45   :  { %v8303_v41 = vmax.f32 %v8301_v49, %v8302_v1  ;;  %v8315_v55 = vmax.f32 %v8313_v6, %v8314_v45  ;;  %v8327_v39 = vmax.f32 %v8325_v51, %v8326_v29  ;;  %v8346_v15 = vsel %vm258_vm2, %v8296_v3, -inf }
0x3f46   :  { %v8354_v43 = vsub.f32 %v8290_v19, %v8310_v48  ;;  %v8323_v27 = vrot.slane %v8322_v53, 1  ;;  %v8335_v20 = vrot.slane %v8334_v0, 2  ;;  %v8347_v36 = vrot.slane %v8346_v15, 4  ;;  %v17919_v37 = vpop.f32.mrb[94].mxu0 }
0x3f47   :  { %v8353_v12 = vsub.f32 %v8289_v32, %v8303_v41  ;;  %v8316_v23 = vrot.slane %v8315_v55, 1  ;;  %v8328_v50 = vrot.slane %v8327_v39, 2  ;;  %v8339_v8 = vsel %vm258_vm2, %v8295_v35, -inf  ;;  %v14087_v16 = vpop.f32.mrb[95].mxu0 }
0x3f48   :  { %v8363_v33 = vmul.f32 1.442695, %v8354_v43  ;;  %v8324_v26 = vmax.f32 %v8322_v53, %v8323_v27  ;;  %v8336_v54 = vmax.f32 %v8334_v0, %v8335_v20  ;;  %v8348_v1 = vmax.f32 %v8346_v15, %v8347_v36 }
0x3f49   :  { %v8361_v45 = vmul.f32 1.442695, %v8353_v12  ;;  %v8317_v51 = vmax.f32 %v8315_v55, %v8316_v23  ;;  %v8329_v38 = vmax.f32 %v8327_v39, %v8328_v50  ;;  %v8340_v49 = vrot.slane %v8339_v8, 4 }
0x3f4a   :  { %15277 = vpow2.f32 %v8363_v33  ;;  %v8356_v19 = vsub.f32 %v17900_v47, %v8324_v26  ;;  %v8337_v6 = vrot.slane %v8336_v54, 1  ;;  %v8349_v29 = vrot.slane %v8348_v1, 2 }
0x3f4b   :  { %15279 = vpow2.f32 %v8361_v45  ;;  %v8355_v32 = vsub.f32 %v17903_v63, %v8317_v51  ;;  %v8330_v44 = vrot.slane %v8329_v38, 1  ;;  %v8341_v48 = vmax.f32 %v8339_v8, %v8340_v49 }
0x3f4c   :  { %v8367_v41 = vmul.f32 1.442695, %v8356_v19  ;;  %v8338_v16 = vmax.f32 %v8336_v54, %v8337_v6  ;;  %v8350_v43 = vmax.f32 %v8348_v1, %v8349_v29 }
0x3f4d   :  { %v8365_v27 = vmul.f32 1.442695, %v8355_v32  ;;  %v8331_v20 = vmax.f32 %v8329_v38, %v8330_v44  ;;  %v8342_v36 = vrot.slane %v8341_v48, 2 }
0x3f4e   :  { %15281 = vpow2.f32 %v8367_v41  ;;  %v8358_v23 = vsub.f32 %v17910_v57, %v8338_v16  ;;  %v8351_v12 = vrot.slane %v8350_v43, 1 }
0x3f4f   :  { %15283 = vpow2.f32 %v8365_v27  ;;  %v8357_v53 = vsub.f32 %v8293_v2, %v8331_v20  ;;  %v8343_v47 = vmax.f32 %v8341_v48, %v8342_v36 }
0x3f50   :  { %v8371_v0 = vmul.f32 1.442695, %v8358_v23  ;;  %v8352_v55 = vmax.f32 %v8350_v43, %v8351_v12 }
0x3f51   :  { %v8369_v39 = vmul.f32 1.442695, %v8357_v53  ;;  %v8344_v15 = vrot.slane %v8343_v47, 1 }
0x3f52   :  { %15285 = vpow2.f32 %v8371_v0  ;;  %v8360_v63 = vsub.f32 %v8296_v3, %v8352_v55 }
0x3f53   :  { %15287 = vpow2.f32 %v8369_v39  ;;  %v8345_v50 = vmax.f32 %v8343_v47, %v8344_v15 }
0x3f54   :  { %v17925_v8 = vpop.eup %15277  ;;  %v8375_v33 = vmul.f32 1.442695, %v8360_v63 }
0x3f55   :  { %v17927_v26 = vpop.eup %15279  ;;  %v8384_v57 = vsel %vm258_vm2, %v17925_v8, 0.0  ;;  %v8359_v54 = vsub.f32 %v8295_v35, %v8345_v50 }
0x3f56   :  { %v8385_v1 = vrot.slane %v8384_v57, 4  ;;  %v8377_v2 = vsel %vm258_vm2, %v17927_v26, 0.0  ;;  %15289 = vpow2.f32 %v8375_v33 }
0x3f57   :  { %v8378_v45 = vrot.slane %v8377_v2, 4  ;;  %v8373_v51 = vmul.f32 1.442695, %v8359_v54 }
0x3f58   :  { %v17933_v38 = vpop.eup %15281  ;;  %v8386_v3 = vadd.f32 %v8385_v1, %v8384_v57 }
0x3f59   :  { %v17935_v49 = vpop.eup %15283  ;;  %v8379_v19 = vadd.f32 %v8378_v45, %v8377_v2  ;;  %v8398_v6 = vsel %vm258_vm2, %v17933_v38, 0.0  ;;  %15291 = vpow2.f32 %v8373_v51 }
0x3f5a   :  { %v8387_v29 = vrot.slane %v8386_v3, 2  ;;  %v8399_v32 = vrot.slane %v8398_v6, 4  ;;  %v8391_v35 = vsel %vm258_vm2, %v17935_v49, 0.0 }
0x3f5b   :  { %v8380_v44 = vrot.slane %v8379_v19, 2  ;;  %v8392_v48 = vrot.slane %v8391_v35, 4 }
0x3f5c   :  { %v17941_v41 = vpop.eup %15285  ;;  %v8388_v16 = vadd.f32 %v8387_v29, %v8386_v3  ;;  %v8400_v43 = vadd.f32 %v8399_v32, %v8398_v6 }
0x3f5d   :  { %v17943_v27 = vpop.eup %15287  ;;  %v8381_v20 = vadd.f32 %v8380_v44, %v8379_v19  ;;  %v8393_v36 = vadd.f32 %v8392_v48, %v8391_v35  ;;  %v8412_v23 = vsel %vm258_vm2, %v17941_v41, 0.0 }
0x3f5e   :  { %v8389_v12 = vrot.slane %v8388_v16, 1  ;;  %v8401_v53 = vrot.slane %v8400_v43, 2  ;;  %v8413_v47 = vrot.slane %v8412_v23, 4  ;;  %v8405_v0 = vsel %vm258_vm2, %v17943_v27, 0.0 }
0x3f5f   :  { %v8382_v55 = vrot.slane %v8381_v20, 1  ;;  %v8394_v39 = vrot.slane %v8393_v36, 2  ;;  %v8406_v15 = vrot.slane %v8405_v0, 4 }
0x3f60   :  { %v17949_v63 = vpop.eup %15289  ;;  %v8390_v50 = vadd.f32 %v8389_v12, %v8388_v16  ;;  %v8402_v33 = vadd.f32 %v8401_v53, %v8400_v43  ;;  %v8414_v57 = vadd.f32 %v8413_v47, %v8412_v23 }
0x3f61   :  { %v8383_v54 = vadd.f32 %v8382_v55, %v8381_v20  ;;  %v8395_v1 = vadd.f32 %v8394_v39, %v8393_v36  ;;  %v8407_v2 = vadd.f32 %v8406_v15, %v8405_v0  ;;  %v8426_v45 = vsel %vm258_vm2, %v17949_v63, 0.0 }
0x3f62   :  { %15293 = vrcp.f32 %v8390_v50  ;;  %v8403_v51 = vrot.slane %v8402_v33, 1  ;;  %v8415_v3 = vrot.slane %v8414_v57, 2  ;;  %v8427_v19 = vrot.slane %v8426_v45, 4 }
0x3f63   :  { %v17953_v6 = vpop.eup %15291  ;;  %15295 = vrcp.f32 %v8383_v54  ;;  %v8396_v29 = vrot.slane %v8395_v1, 1  ;;  %v8408_v32 = vrot.slane %v8407_v2, 2 }
0x3f64   :  { %v8404_v35 = vadd.f32 %v8403_v51, %v8402_v33  ;;  %v8416_v44 = vadd.f32 %v8415_v3, %v8414_v57  ;;  %v8428_v48 = vadd.f32 %v8427_v19, %v8426_v45  ;;  %v8419_v16 = vsel %vm258_vm2, %v17953_v6, 0.0 }
0x3f65   :  { %v8397_v43 = vadd.f32 %v8396_v29, %v8395_v1  ;;  %v8409_v20 = vadd.f32 %v8408_v32, %v8407_v2  ;;  %v8420_v36 = vrot.slane %v8419_v16, 4 }
0x3f66   :  { %15297 = vrcp.f32 %v8404_v35  ;;  %v8417_v23 = vrot.slane %v8416_v44, 1  ;;  %v8429_v12 = vrot.slane %v8428_v48, 2 }
0x3f67   :  { %15299 = vrcp.f32 %v8397_v43  ;;  %v8410_v53 = vrot.slane %v8409_v20, 1  ;;  %v8421_v47 = vadd.f32 %v8420_v36, %v8419_v16 }
0x3f68   :  { %v8418_v0 = vadd.f32 %v8417_v23, %v8416_v44  ;;  %v8430_v55 = vadd.f32 %v8429_v12, %v8428_v48  ;;  %v19116_v23 = vld [vmem:[#allocation49_spill] sm:$0xff] }
0x3f69   :  { %v8411_v39 = vadd.f32 %v8410_v53, %v8409_v20  ;;  %v8422_v15 = vrot.slane %v8421_v47, 2 }
0x3f6a   :  { %15301 = vrcp.f32 %v8418_v0  ;;  %v8431_v50 = vrot.slane %v8430_v55, 1 }
0x3f6b   :  { %15303 = vrcp.f32 %v8411_v39  ;;  %v8423_v33 = vadd.f32 %v8422_v15, %v8421_v47 }
0x3f6c   :  { %v15294_v57 = vpop.eup %15293  ;;  %v8432_v54 = vadd.f32 %v8431_v50, %v8430_v55 }
0x3f6d   :  { %v15296_v45 = vpop.eup %15295  ;;  %v8436_v1 = vmul.f32 %v15294_v57, %v17925_v8  ;;  %v8424_v2 = vrot.slane %v8423_v33, 1 }
0x3f6e   :  { %v8434_v51 = vmul.f32 %v15296_v45, %v17927_v26  ;;  %15305 = vrcp.f32 %v8432_v54 }
0x3f6f   :  { %v8450_v3 = vmul.f32 %v17702_v40, %v8436_v1  ;;  %v8425_v19 = vadd.f32 %v8424_v2, %v8423_v33  ;;  %v19117_v33 = vld [vmem:[#allocation50_spill] sm:$0xff]  ;;  %v19118_v1 = vld [vmem:[#allocation52_spill] sm:$0xff] }
0x3f70   :  { %v15298_v29 = vpop.eup %15297  ;;  %v8449_v32 = vmul.f32 %v17705_v13, %v8434_v51 }
0x3f71   :  { %v15300_v35 = vpop.eup %15299  ;;  %v8464_v44 = vsel %vm258_vm2, %v8450_v3, 0.0  ;;  %v8440_v48 = vmul.f32 %v15298_v29, %v17933_v38  ;;  %15307 = vrcp.f32 %v8425_v19 }
0x3f72   :  { %v8465_v16 = vrot.slane %v8464_v44, 4  ;;  %v8457_v43 = vsel %vm258_vm2, %v8449_v32, 0.0  ;;  %v8438_v8 = vmul.f32 %v15300_v35, %v17935_v49 }
0x3f73   :  { %v8458_v20 = vrot.slane %v8457_v43, 4  ;;  %v8452_v26 = vmul.f32 %v17712_v22, %v8440_v48 }
0x3f74   :  { %v15302_v36 = vpop.eup %15301  ;;  %v8466_v40 = vadd.f32 %v8465_v16, %v8464_v44  ;;  %v8451_v12 = vmul.f32 %v19116_v23, %v8438_v8 }
0x3f75   :  { %v15304_v53 = vpop.eup %15303  ;;  %v8459_v13 = vadd.f32 %v8458_v20, %v8457_v43  ;;  %v8478_v47 = vsel %vm258_vm2, %v8452_v26, 0.0  ;;  %v8444_v0 = vmul.f32 %v15302_v36, %v17941_v41 }
0x3f76   :  { %v8467_v38 = vrot.slane %v8466_v40, 2  ;;  %v8479_v55 = vrot.slane %v8478_v47, 4  ;;  %v8471_v39 = vsel %vm258_vm2, %v8451_v12, 0.0  ;;  %v8442_v15 = vmul.f32 %v15304_v53, %v17943_v27 }
0x3f77   :  { %v8460_v49 = vrot.slane %v8459_v13, 2  ;;  %v8472_v50 = vrot.slane %v8471_v39, 4  ;;  %v8454_v22 = vmul.f32 %v19117_v33, %v8444_v0 }
0x3f78   :  { %v15306_v57 = vpop.eup %15305  ;;  %v8468_v54 = vadd.f32 %v8467_v38, %v8466_v40  ;;  %v8480_v45 = vadd.f32 %v8479_v55, %v8478_v47  ;;  %v8453_v2 = vmul.f32 %v19118_v1, %v8442_v15 }
0x3f79   :  { %v8461_v51 = vadd.f32 %v8460_v49, %v8459_v13  ;;  %v8473_v3 = vadd.f32 %v8472_v50, %v8471_v39  ;;  %v8492_v19 = vsel %vm258_vm2, %v8454_v22, 0.0  ;;  %v8448_v41 = vmul.f32 %v15306_v57, %v17949_v63 }
0x3f7a   :  { %v8469_v29 = vrot.slane %v8468_v54, 1  ;;  %v8481_v32 = vrot.slane %v8480_v45, 2  ;;  %v8493_v35 = vrot.slane %v8492_v19, 4  ;;  %v8485_v27 = vsel %vm258_vm2, %v8453_v2, 0.0 }
0x3f7b   :  { %v15308_v44 = vpop.eup %15307  ;;  %v8462_v48 = vrot.slane %v8461_v51, 1  ;;  %v8474_v16 = vrot.slane %v8473_v3, 2  ;;  %v8486_v43 = vrot.slane %v8485_v27, 4  ;;  %v8456_v8 = vmul.f32 %v17731_v31, %v8448_v41 }
0x3f7c   :  { %v8470_v20 = vadd.f32 %v8469_v29, %v8468_v54  ;;  %v8446_v26 = vmul.f32 %v15308_v44, %v17953_v6  ;;  %v8482_v36 = vadd.f32 %v8481_v32, %v8480_v45  ;;  %v8494_v40 = vadd.f32 %v8493_v35, %v8492_v19 }
0x3f7d   :  { %v8463_v23 = vadd.f32 %v8462_v48, %v8461_v51  ;;  %v8475_v12 = vadd.f32 %v8474_v16, %v8473_v3  ;;  %v8487_v53 = vadd.f32 %v8486_v43, %v8485_v27  ;;  %v8506_v63 = vsel %vm258_vm2, %v8456_v8, 0.0 }
0x3f7e   :  { %v8455_v13 = vmul.f32 %v17736_v4, %v8446_v26  ;;  %v8483_v47 = vrot.slane %v8482_v36, 1  ;;  %v8495_v0 = vrot.slane %v8494_v40, 2  ;;  %v8507_v38 = vrot.slane %v8506_v63, 4 }
0x3f7f   :  { %v8476_v55 = vrot.slane %v8475_v12, 1  ;;  %v8488_v39 = vrot.slane %v8487_v53, 2  ;;  %v8521_v15 = vsel %vm917_vm3, %v8470_v20, %v8463_v23 }
0x3f80   :  { %v8496_v31 = vadd.f32 %v8495_v0, %v8494_v40  ;;  %v8499_v49 = vsel %vm258_vm2, %v8455_v13, 0.0  ;;  %v8508_v6 = vadd.f32 %v8507_v38, %v8506_v63  ;;  %v8484_v57 = vadd.f32 %v8483_v47, %v8482_v36  ;;  %v17995_v36 = vld [vmem:[#allocation6] ss:$0 sm:$0xff] }
0x3f81   :  { %v8477_v50 = vadd.f32 %v8476_v55, %v8475_v12  ;;  %v8489_v33 = vadd.f32 %v8488_v39, %v8487_v53  ;;  %v8500_v22 = vrot.slane %v8499_v49, 4  ;;  %v18030_v47 = vld [vmem:[%s18828_s12] ss:$0 sm:$0xff] }
0x3f82   :  { %v8497_v54 = vrot.slane %v8496_v31, 1  ;;  %v8509_v45 = vrot.slane %v8508_v6, 2 }
0x3f83   :  { %v8490_v1 = vrot.slane %v8489_v33, 1  ;;  %v8501_v2 = vadd.f32 %v8500_v22, %v8499_v49  ;;  %v8522_v4 = vsel %vm919_vm4, %v8477_v50, %v8521_v15 }
0x3f84   :  { %v8510_v51 = vadd.f32 %v8509_v45, %v8508_v6  ;;  %v8523_v3 = vsel %vm921_vm5, %v8484_v57, %v8522_v4  ;;  %v8498_v29 = vadd.f32 %v8497_v54, %v8496_v31 }
0x3f85   :  { %v8491_v19 = vadd.f32 %v8490_v1, %v8489_v33  ;;  %v8502_v41 = vrot.slane %v8501_v2, 2 }
0x3f86   :  { %v8511_v27 = vrot.slane %v8510_v51, 1 }
0x3f87   :  { %v8503_v32 = vadd.f32 %v8502_v41, %v8501_v2  ;;  %v8524_v35 = vsel %vm923_vm6, %v8491_v19, %v8523_v3  ;;  %v18056_v41 = vld [vmem:[%s18831_s15] ss:$0 sm:$0xff] }
0x3f88   :  { %v8525_v44 = vsel %vm925_vm7, %v8498_v29, %v8524_v35  ;;  %v8512_v43 = vadd.f32 %v8511_v27, %v8510_v51 }
0x3f89   :  { %v8504_v48 = vrot.slane %v8503_v32, 1 }
0x3f8b   :  { %v8505_v16 = vadd.f32 %v8504_v48, %v8503_v32 }
0x3f8d   :  { %v8526_v8 = vsel %vm927_vm8, %v8505_v16, %v8525_v44 }
0x3f8e   :  { %v8527_v20 = vsel %vm929_vm9, %v8512_v43, %v8526_v8 }
0x3f8f   :  { %14057 = vmatmul.mubr.msk.f32.vlgmr.msra.gmra.mrb[86].mxu1 %vm258_vm2, %v8527_v20 }
0x3f90   :  { %14802 = vmatpush3.bf16.msra.mxu1 %v16271_v52  ;;  %14067 = vmatprep.mubr.msk.f32.mxu1 %vm15742_vm0, %v18982_v11 }
0x3f91   :  { %14803 = vmatprep.subr.bf16.mxu1 %v18983_v60 }
0x3f94   :  { %14805 = vmatpush3.bf16.msra.mxu1 %v16277_v7 }
0x3f95   :  { %14806 = vmatprep.subr.bf16.mxu1 %v18983_v60 }
0x4062   :  { %v8596_v26 = vpop.f32.mrb[86].mxu1 }
0x4063   :  { %v8597_v40 = vadd.f32 %v17995_v36, %v8596_v26  ;;  %v14058_v23 = vpop.f32.mrb[87].mxu1 }
0x4065   :  { %14068 = vmatmul.mubr.msk.f32.vlgmr.msra.gmra.mrb[88].mxu1 %vm258_vm2, %v8597_v40 }
0x4066   :  { %14808 = vmatpush3.bf16.msra.mxu1 %v16299_v62  ;;  %14074 = vmatprep.mubr.msk.f32.mxu1 %vm15742_vm0, %v18982_v11 }
0x4067   :  { %14815 = vmatprep.subr.bf16.mxu1 %v18983_v60 }
0x4069   :  { %14075 = vmatmul.mubr.msk.f32.vlgmr.msra.gmra.mrb[90].mxu1 %vm1076_vm10, %v17893_v56 }
0x406a   :  { %14817 = vmatpush3.bf16.msra.mxu1 %v16306_v59  ;;  %14096 = vmatprep.mubr.msk.f32.mxu1 %vm15742_vm0, %v18982_v11 }
0x406b   :  { %14818 = vmatprep.subr.bf16.mxu1 %v18983_v60 }
0x406e   :  { %14820 = vmatpush3.bf16.msra.mxu1 %v16312_v28 }
0x406f   :  { %14827 = vmatprep.subr.bf16.mxu1 %v18983_v60 }
0x4071   :  { %14097 = vmatmul.mubr.msk.f32.vlgmr.msra.gmra.mrb[92].mxu1 %vm258_vm2, %v17814_v58 }
0x4072   :  { %14829 = vmatpush3.bf16.msra.mxu1 %v16318_v34  ;;  %14118 = vmatprep.mubr.msk.f32.mxu1 %vm15742_vm0, %v18982_v11 }
0x4073   :  { %14830 = vmatprep.subr.bf16.mxu1 %v18983_v60 }
0x4076   :  { %14832 = vmatpush3.bf16.msra.mxu1 %v16323_v25 }
0x4077   :  { %14839 = vmatprep.subr.bf16.mxu1 %v18983_v60 }
0x4079   :  { %14119 = vmatmul.mubr.msk.f32.vlgmr.msra.gmra.mrb[94].mxu1 %vm258_vm2, %v8597_v40 }
0x407a   :  { %14841 = vmatpush3.bf16.msra.mxu1 %v16027_v9  ;;  %14140 = vmatprep.mubr.msk.f32.mxu1 %vm15742_vm0, %v18982_v11 }
0x407b   :  { %14842 = vmatprep.subr.bf16.mxu1 %v18983_v60 }
0x407e   :  { %14844 = vmatpush3.bf16.msra.mxu1 %v16046_v14 }
0x407f   :  { %14852 = vmatprep.subr.bf16.mxu1 %v16058_v18 }
0x4138   :  { %v8669_v58 = vpop.f32.mrb[88].mxu1 }
0x4139   :  { %v14069_v56 = vpop.f32.mrb[89].mxu1 }
0x413c   :  { %v8742_v12 = vpop.f32.mrb[90].mxu1 }
0x413d   :  { %v8743_v53 = vadd.f32 %v8742_v12, %v8669_v58  ;;  %v14076_v63 = vpop.f32.mrb[91].mxu1 }
0x413f   :  { %v8816_v13 = vadd.f32 %v17919_v37, %v8743_v53 }
0x4141   :  { %v8817_v0 = vadd.f32 %v18030_v47, %v8816_v13  ;;  %v15483_v13 = vld [vmem:[%s18834_s18] ss:$0 sm:$0xff] }
0x4143   :  { %15309 = vtanh.f32 %v8817_v0  ;;  %v12662_v49 = vmul.f32 -1.442695, %v8817_v0 }
0x4144   :  { %v8908_v38 = vpop.f32.mrb[92].mxu1 }
0x4145   :  { %v14098_v55 = vpop.f32.mrb[93].mxu1  ;;  %15311 = vpow2.f32 %v12662_v49  ;;  %v19121_v49 = vld [vmem:[#allocation21_spill] sm:$0xff] }
0x414c   :  { %v18033_v39 = vpop.f32.mrb[94].mxu1 }
0x414d   :  { %v15310_v15 = vpop.eup %15309  ;;  %v14120_v31 = vpop.f32.mrb[95].mxu1 }
0x414e   :  { %8827 = vrot.lane.b32.xlu1 %v15310_v15, %s15746_s1 }
0x414f   :  { %v15312_v6 = vpop.eup %15311 }
0x4150   :  { %v8821_v37 = vadd.f32 1.0, %v15312_v6 }
0x4152   :  { %15313 = vrcp.f32 %v8821_v37 }
0x415c   :  { %v15314_v50 = vpop.eup %15313 }
0x415d   :  { %v8825_v57 = vmul.f32 %v15314_v50, %v17790_v46 }
0x41c0   :  { %v8828_v33 = vpop.permute.xlu1 %8827 }
0x41c1   :  { %v8830_v22 = vmul.f32 %v15314_v50, %v8828_v33 }
0x41c3   :  { %8832 = vrot.lane.b32.xlu0 %v8830_v22, %s15747_s14 }
0x4235   :  { %v8833_v54 = vpop.permute.xlu0 %8832 }
0x4236   :  { %v18038_v45 = vadd.f32 %v8833_v54, %v8825_v57 }
0x4238   :  { %15315 = vtanh.f32 %v18038_v45 }
0x4242   :  { %v15316_v1 = vpop.eup %15315 }
0x4243   :  { %8838 = vrot.lane.b32.xlu1 %v15316_v1, %s15746_s1  ;;  %v15484_v1 = vld [vmem:[%s18821_s5] ss:$0 sm:$0xff] }
0x42b5   :  { %v8839_v2 = vpop.permute.xlu1 %8838 }
0x42b6   :  { %v8841_v4 = vmul.f32 %v15314_v50, %v8839_v2 }
0x42b8   :  { %8913 = vrot.lane.b32.xlu1 %v8841_v4, %s15747_s14 }
0x432a   :  { %v18043_v51 = vpop.permute.xlu1 %8913 }
0x432b   :  { %14108 = vmatmul.mubr.msk.f32.vlgmr.msra.gmra.mrb[96].mxu0 %vm258_vm2, %v18043_v51 }
0x432c   :  { %14835 = vmatpush3.bf16.msra.mxu0 %v16377_v42  ;;  %14129 = vmatprep.mubr.msk.f32.mxu0 %vm15742_vm0, %v18982_v11 }
0x432d   :  { %14836 = vmatprep.subr.bf16.mxu0 %v18983_v60 }
0x4330   :  { %14838 = vmatpush3.bf16.msra.mxu0 %v16380_v21 }
0x4331   :  { %14845 = vmatprep.subr.bf16.mxu0 %v18983_v60 }
0x43fe   :  { %v8983_v46 = vpop.f32.mrb[96].mxu0 }
0x43ff   :  { %v8984_v3 = vadd.f32 %v8983_v46, %v8908_v38  ;;  %v14109_v19 = vpop.f32.mrb[97].mxu0  ;;  %v19122_v46 = vld [vmem:[#allocation23_spill] sm:$0xff] }
0x4401   :  { %v8987_v29 = vadd.f32 %v18056_v41, %v8984_v3 }
0x4403   :  { %15317 = vtanh.f32 %v8987_v29  ;;  %v12665_v35 = vmul.f32 -1.442695, %v8987_v29 }
0x4405   :  { %15319 = vpow2.f32 %v12665_v35 }
0x440d   :  { %v15318_v32 = vpop.eup %15317 }
0x440e   :  { %8997 = vrot.lane.b32.xlu0 %v15318_v32, %s15746_s1 }
0x440f   :  { %v15320_v27 = vpop.eup %15319 }
0x4410   :  { %v8991_v44 = vadd.f32 1.0, %v15320_v27 }
0x4412   :  { %15321 = vrcp.f32 %v8991_v44 }
0x441c   :  { %v15322_v48 = vpop.eup %15321 }
0x441d   :  { %v8995_v8 = vmul.f32 %v15322_v48, %v17809_v61  ;;  %v19119_v61 = vld [vmem:[#allocation25_spill] sm:$0xff] }
0x4480   :  { %v8998_v16 = vpop.permute.xlu0 %8997 }
0x4481   :  { %v9000_v43 = vmul.f32 %v15322_v48, %v8998_v16  ;;  %v19123_v16 = vld [vmem:[#allocation24_spill] sm:$0xff] }
0x4483   :  { %9002 = vrot.lane.b32.xlu1 %v9000_v43, %s15747_s14 }
0x44f5   :  { %v9003_v20 = vpop.permute.xlu1 %9002 }
0x44f6   :  { %v18062_v26 = vadd.f32 %v9003_v20, %v8995_v8 }
0x44f8   :  { %15323 = vtanh.f32 %v18062_v26 }
0x4502   :  { %v15324_v40 = vpop.eup %15323 }
0x4503   :  { %9008 = vrot.lane.b32.xlu0 %v15324_v40, %s15746_s1 }
0x4575   :  { %v9009_v23 = vpop.permute.xlu0 %9008 }
0x4576   :  { %v9011_v58 = vmul.f32 %v15322_v48, %v9009_v23 }
0x4578   :  { %9083 = vrot.lane.b32.xlu1 %v9011_v58, %s15747_s14 }
0x45ea   :  { %v18067_v56 = vpop.permute.xlu1 %9083 }
0x45eb   :  { %14130 = vmatmul.mubr.msk.f32.vlgmr.msra.gmra.mrb[98].mxu0 %vm258_vm2, %v18067_v56 }
0x45ec   :  { %14847 = vmatpush3.bf16.msra.mxu0 %v16016_v5  ;;  %14151 = vmatprep.mubr.msk.f32.mxu0 %vm15742_vm0, %v18982_v11 }
0x45ed   :  { %14848 = vmatprep.subr.bf16.mxu0 %v18983_v60 }
0x45f0   :  { %14850 = vmatpush3.bf16.msra.mxu0 %v16030_v10 }
0x45f1   :  { %14859 = vmatprep.subr.bf16.mxu0 %v18983_v60 }
0x45f3   :  { %14152 = vmatmul.mubr.msk.f32.vlgmr.msra.gmra.mrb[100].mxu0 %vm258_vm2, %v18067_v56 }
0x45f4   :  { %14861 = vmatpush3.bf16.msra.mxu0 %v16156_v30  ;;  %14182 = vmatprep.mubr.msk.f32.mxu0 %vm15742_vm0, %v18982_v11 }
0x45f5   :  { %14862 = vmatprep.subr.bf16.mxu0 %v18983_v60 }
0x45f8   :  { %14864 = vmatpush3.bf16.msra.mxu0 %v19119_v61 }
0x45f9   :  { %14865 = vmatprep.subr.bf16.mxu0 %v18983_v60 }
0x46be   :  { %v9153_v12 = vpop.f32.mrb[98].mxu0 }
0x46bf   :  { %v9154_v53 = vadd.f32 %v9153_v12, %v18033_v39  ;;  %v14131_v63 = vpop.f32.mrb[99].mxu0  ;;  %v15485_v12 = vld [vmem:[%s18958_s22] sm:$0xff] }
0x46c1   :  { %v18089_v0 = vadd.f32 %v15483_v13, %v9154_v53 }
0x46c3   :  { %19120 = vst [vmem:[#allocation39_spill] sm:$0xff] %v18089_v0  ;;  %v9158_v38 = vsel %vm258_vm2, %v18089_v0, -inf }
0x46c4   :  { %9159 = vmax.xlane.f32.xlu0 %v9158_v38 }
0x46c6   :  { %v9320_v55 = vpop.f32.mrb[100].mxu0 }
0x46c7   :  { %v14153_v15 = vpop.f32.mrb[101].mxu0  ;;  %v9321_v2 = vadd.f32 %v15484_v1, %v9320_v55  ;;  %v19124_v55 = vld [vmem:[#allocation22_spill] sm:$0xff] }
0x46c8   :  { %v19125_v1 = vld [vmem:[#allocation26_spill] sm:$0xff] }
0x46c9   :  { %v9324_v4 = vmul.f32 0.35355338, %v9321_v2 }
0x46cb   :  { %v9333_v3 = vrot.slane %v9324_v4, %v19122_v46  ;;  %v9326_v35 = vcombine.high %v9324_v4, %v9324_v4  ;;  %v15488_v4 = vld [vmem:[%s18958_s22 + $0x18] sm:$0xff] }
0x46cd   :  { %v9349_v29 = vrot.slane %v9333_v3, %v19122_v46  ;;  %v9341_v27 = vcombine.high %v9333_v3, %v9333_v3  ;;  %v9340_v20 = vrot.slane %v9326_v35, %v19122_v46 }
0x46cf   :  { %v9378_v43 = vrot.slane %v9349_v29, %v19123_v16  ;;  %v9363_v40 = vrot.slane %v9341_v27, %v19122_v46  ;;  %v9371_v23 = vcombine.high %v9349_v29, %v9349_v29  ;;  %v9342_v63 = vcombine.high %v9340_v20, %v9340_v20  ;;  %v15489_v29 = vld [vmem:[%s18958_s22 + $0x20] sm:$0xff]  ;;  %v19126_v27 = vld [vmem:[#allocation33_spill] sm:$0xff] }
0x46d0   :  { %v9356_v15 = vrot.slane %v9340_v20, %v19122_v46 }
0x46d1   :  { %v9415_v53 = vmul.f32 %v15485_v12, %v9378_v43  ;;  %v9373_v13 = vcombine.high %v9363_v40, %v9363_v40  ;;  %v9382_v38 = vrot.slane %v9363_v40, %v19123_v16  ;;  %v15492_v40 = vld [vmem:[%s18958_s22 + $0x38] sm:$0xff]  ;;  %v19128_v12 = vld [vmem:[#allocation35_spill] sm:$0xff] }
0x4751   :  { %v9160_v31 = vpop.xlane.xlu0 %9159 }
0x4752   :  { %vm9161_vm11 = vcmp.ge.f32.partialorder %v18089_v0, %v9160_v31  ;;  %v9386_v31 = vrot.slane %v9371_v23, %v19123_v16 }
0x4753   :  { %v9162_v6 = vsel %vm9161_vm11, %v19121_v49, 32  ;;  %vm12457_vm11 = vcmask 1043456  }
0x4754   :  { %v9163_v39 = vsel %vm258_vm2, %v9162_v6, 2147483647  ;;  %v9370_v6 = vrot.slane %v9342_v63, %v19122_v46 }
0x4755   :  { %v9165_v37 = vshra.s32 %v9163_v39, 16  ;;  %v9164_v33 = vand.u32 65535, %v9163_v39  ;;  %v15486_v39 = vld [vmem:[%s18958_s22 + $0x8] sm:$0xff] }
0x4756   :  { %v9374_v2 = vcombine.high %v9370_v6, %v9370_v6 }
0x4757   :  { %v9167_v50 = vcvt.s32.f32 %v9165_v37  ;;  %v9166_v57 = vcvt.s32.f32 %v9164_v33  ;;  %v9416_v37 = vmul.f32 %v15486_v39, %v9382_v38  ;;  %v9372_v33 = vcombine.high %v9356_v15, %v9356_v15  ;;  %v19129_v38 = vld [vmem:[#allocation29_spill] sm:$0xff] }
0x4758   :  { %v9406_v43 = vrot.slane %v9374_v2, %v19123_v16 }
0x4759   :  { %9168 = vmin.xlane.f32.xlu1 %v9167_v50  ;;  %v9402_v35 = vrot.slane %v9372_v33, %v19123_v16 }
0x475a   :  { %v9422_v23 = vmul.f32 %v15492_v40, %v9406_v43  ;;  %v19133_v40 = vld [vmem:[#allocation31_spill] sm:$0xff] }
0x47e6   :  { %v9169_v22 = vpop.xlane.xlu1 %9168 }
0x47e7   :  { %vm9170_vm12 = vcmp.eq.f32.partialorder %v9167_v50, %v9169_v22  ;;  %v9175_v19 = vcvt.f32.s32 %v9169_v22  ;;  %v9390_v50 = vrot.slane %v9373_v13, %v19123_v16  ;;  %v9394_v22 = vrot.slane %v9356_v15, %v19123_v16 }
0x47e8   :  { %v9171_v54 = vsel %vm9170_vm12, %v9166_v57, inf  ;;  %v15487_v57 = vld [vmem:[%s18958_s22 + $0x10] sm:$0xff]  ;;  %vm12466_vm12 = vcmask 1044480  }
0x47e9   :  { %9172 = vmin.xlane.f32.xlu0 %v9171_v54  ;;  %v9176_v44 = vshll.u32 %v9175_v19, 16  ;;  %v9417_v54 = vmul.f32 %v15487_v57, %v9386_v31  ;;  %v9418_v3 = vmul.f32 %v15488_v4, %v9390_v50  ;;  %v9398_v19 = vrot.slane %v9370_v6, %v19123_v16  ;;  %v19130_v6 = vld [vmem:[#allocation27_spill] sm:$0xff]  ;;  %v19131_v57 = vld [vmem:[#allocation30_spill] sm:$0xff] }
0x4876   :  { %v9173_v32 = vpop.xlane.xlu0 %9172 }
0x4877   :  { %v9174_v48 = vcvt.f32.s32 %v9173_v32  ;;  %v9419_v32 = vmul.f32 %v15489_v29, %v9394_v22 }
0x4879   :  { %v9177_v8 = vadd.s32 %v9176_v44, %v9174_v48  ;;  %v15490_v44 = vld [vmem:[%s18958_s22 + $0x28] sm:$0xff] }
0x487a   :  { %v9420_v48 = vmul.f32 %v15490_v44, %v9398_v19 }
0x487b   :  { %vm9178_vm13 = vcmp.eq.s32.totalorder %v19121_v49, %v9177_v8  ;;  %v15491_v8 = vld [vmem:[%s18958_s22 + $0x30] sm:$0xff] }
0x487c   :  { %v12668_v58 = vsel %vm9178_vm13, 1.0, %v18982_v11  ;;  %v9421_v20 = vmul.f32 %v15491_v8, %v9402_v35  ;;  %vm12475_vm13 = vcmask 1045504  }
0x487d   :  { %14141 = vmatmul.mubr.msk.f32.vlgmr.msra.gmra.mrb[96].mxu1 %vm258_vm2, %v12668_v58  ;;  %v19127_v58 = vld [vmem:[#allocation34_spill] sm:$0xff] }
0x487e   :  { %14854 = vmatpush3.bf16.msra.mxu1 %v16058_v18  ;;  %14162 = vmatprep.mubr.msk.f32.mxu1 %vm258_vm2, %v9415_v53 }
0x487f   :  { %14856 = vmatprep.subr.bf16.mxu1 %v19124_v55 }
0x4882   :  { %14858 = vmatpush3.bf16.msra.mxu1 %v19124_v55 }
0x4883   :  { %14874 = vmatprep.subr.bf16.mxu1 %v18983_v60 }
0x4885   :  { %14163 = vmatmul.mubr.msk.f32.vlgmr.msra.gmra.mrb[98].mxu1 %vm258_vm2, %v9416_v37 }
0x4886   :  { %14165 = vmatprep.mubr.msk.f32.mxu1 %vm258_vm2, %v9417_v54  ;;  %14876 = vmatpush3.bf16.msra.mxu1 %v19125_v1 }
0x4887   :  { %14877 = vmatprep.subr.bf16.mxu1 %v18983_v60 }
0x4889   :  { %14166 = vmatmul.mubr.msk.f32.gmra.mrb[100].mxu1 %vm258_vm2, %v9418_v3  ;;  %v19132_v3 = vld [vmem:[#allocation28_spill] sm:$0xff] }
0x488a   :  { %14168 = vmatprep.mubr.msk.f32.mxu1 %vm258_vm2, %v9419_v32  ;;  %14879 = vmatpush3.bf16.msra.mxu1 %v19126_v27 }
0x488b   :  { %14886 = vmatprep.subr.bf16.mxu1 %v18983_v60 }
0x488d   :  { %14169 = vmatmul.mubr.msk.f32.gmra.mrb[102].mxu1 %vm258_vm2, %v9420_v48 }
0x488e   :  { %14171 = vmatprep.mubr.msk.f32.mxu1 %vm258_vm2, %v9421_v20 }
0x4891   :  { %14172 = vmatmul.mubr.msk.f32.gmra.mrb[104].mxu1 %vm258_vm2, %v9422_v23 }
0x4892   :  { %14211 = vmatprep.mubr.msk.f32.mxu1 %vm15742_vm0, %v18982_v11 }
0x4895   :  { %14212 = vmatmul.mubr.msk.f32.vlgmr.msra.gmra.mrb[106].mxu1 %vm258_vm2, %v18043_v51 }
0x4896   :  { %14888 = vmatpush3.bf16.msra.mxu1 %v19127_v58  ;;  %14233 = vmatprep.mubr.msk.f32.mxu1 %vm15742_vm0, %v18982_v11 }
0x4897   :  { %14889 = vmatprep.subr.bf16.mxu1 %v18983_v60 }
0x489a   :  { %14891 = vmatpush3.bf16.msra.mxu1 %v19128_v12 }
0x489b   :  { %14898 = vmatprep.subr.bf16.mxu1 %v18983_v60 }
0x4950   :  { %v18166_v53 = vpop.f32.mrb[96].mxu1 }
0x4951   :  { %v14142_v63 = vpop.f32.mrb[97].mxu1 }
0x4958   :  { %v14164_v13 = vpop.f32.mrb[98].mxu1 }
0x4959   :  { %v9553_v15 = vadd.f32 %v14164_v13, %v19129_v38  ;;  %v9513_v31 = vpop.f32.mrb[99].mxu1 }
0x495a   :  { %v9552_v51 = vadd.f32 %v9513_v31, %v19130_v6 }
0x495b   :  { %v9567_v39 = vsel %vm258_vm2, %v9553_v15, -inf }
0x495c   :  { %v9568_v37 = vrot.slane %v9567_v39, 4  ;;  %v9560_v50 = vsel %vm258_vm2, %v9552_v51, -inf  ;;  %v14167_v33 = vpop.f32.mrb[100].mxu1 }
0x495d   :  { %v9561_v22 = vrot.slane %v9560_v50, 4  ;;  %v18173_v54 = vadd.f32 %v14167_v33, %v19131_v57  ;;  %v9523_v2 = vpop.f32.mrb[101].mxu1 }
0x495e   :  { %v9569_v4 = vmax.f32 %v9567_v39, %v9568_v37  ;;  %v18176_v19 = vadd.f32 %v9523_v2, %v19132_v3  ;;  %v19134_v39 = vld [vmem:[#allocation32_spill] sm:$0xff] }
0x495f   :  { %v9562_v29 = vmax.f32 %v9560_v50, %v9561_v22  ;;  %v9581_v32 = vsel %vm258_vm2, %v18173_v54, -inf }
0x4960   :  { %v9570_v35 = vrot.slane %v9569_v4, 2  ;;  %v9582_v44 = vrot.slane %v9581_v32, 4  ;;  %v9574_v48 = vsel %vm258_vm2, %v18176_v19, -inf  ;;  %v14170_v43 = vpop.f32.mrb[102].mxu1 }
0x4961   :  { %v9563_v8 = vrot.slane %v9562_v29, 2  ;;  %v9575_v20 = vrot.slane %v9574_v48, 4  ;;  %v18183_v23 = vadd.f32 %v14170_v43, %v19133_v40  ;;  %v9533_v63 = vpop.f32.mrb[103].mxu1 }
0x4962   :  { %v9571_v13 = vmax.f32 %v9569_v4, %v9570_v35  ;;  %v9583_v31 = vmax.f32 %v9581_v32, %v9582_v44  ;;  %v9556_v37 = vadd.f32 %v9533_v63, %v19134_v39 }
0x4963   :  { %v9564_v50 = vmax.f32 %v9562_v29, %v9563_v8  ;;  %v9576_v33 = vmax.f32 %v9574_v48, %v9575_v20  ;;  %v9595_v22 = vsel %vm258_vm2, %v18183_v23, -inf }
0x4964   :  { %v9572_v2 = vrot.slane %v9571_v13, 1  ;;  %v9584_v3 = vrot.slane %v9583_v31, 2  ;;  %v9596_v57 = vrot.slane %v9595_v22, 4  ;;  %v9588_v6 = vsel %vm258_vm2, %v9556_v37, -inf  ;;  %v14173_v38 = vpop.f32.mrb[104].mxu1 }
0x4965   :  { %v9565_v12 = vrot.slane %v9564_v50, 1  ;;  %v9577_v58 = vrot.slane %v9576_v33, 2  ;;  %v9589_v43 = vrot.slane %v9588_v6, 4  ;;  %v9559_v40 = vadd.f32 %v14173_v38, %v16206_v17  ;;  %v9543_v4 = vpop.f32.mrb[105].mxu1 }
0x4966   :  { %v9573_v32 = vmax.f32 %v9571_v13, %v9572_v2  ;;  %v9585_v35 = vmax.f32 %v9583_v31, %v9584_v3  ;;  %v9597_v44 = vmax.f32 %v9595_v22, %v9596_v57  ;;  %v9558_v29 = vadd.f32 %v9543_v4, %v16209_v24 }
0x4967   :  { %v9566_v48 = vmax.f32 %v9564_v50, %v9565_v12  ;;  %v9578_v8 = vmax.f32 %v9576_v33, %v9577_v58  ;;  %v9590_v20 = vmax.f32 %v9588_v6, %v9589_v43  ;;  %v9609_v63 = vsel %vm258_vm2, %v9559_v40, -inf }
0x4968   :  { %v9617_v39 = vsub.f32 %v9553_v15, %v9573_v32  ;;  %v9586_v27 = vrot.slane %v9585_v35, 1  ;;  %v9598_v1 = vrot.slane %v9597_v44, 2  ;;  %v9610_v55 = vrot.slane %v9609_v63, 4  ;;  %v18192_v49 = vpop.f32.mrb[106].mxu1 }
0x4969   :  { %v9616_v0 = vsub.f32 %v9552_v51, %v9566_v48  ;;  %v9579_v16 = vrot.slane %v9578_v8, 1  ;;  %v9591_v38 = vrot.slane %v9590_v20, 2  ;;  %v9602_v13 = vsel %vm258_vm2, %v9558_v29, -inf  ;;  %v14213_v3 = vpop.f32.mrb[107].mxu1 }
0x496a   :  { %v9626_v57 = vmul.f32 1.442695, %v9617_v39  ;;  %v9587_v31 = vmax.f32 %v9585_v35, %v9586_v27  ;;  %v9599_v22 = vmax.f32 %v9597_v44, %v9598_v1  ;;  %v9611_v12 = vmax.f32 %v9609_v63, %v9610_v55 }
0x496b   :  { %v9624_v58 = vmul.f32 1.442695, %v9616_v0  ;;  %v9580_v6 = vmax.f32 %v9578_v8, %v9579_v16  ;;  %v9592_v50 = vmax.f32 %v9590_v20, %v9591_v38  ;;  %v9603_v33 = vrot.slane %v9602_v13, 4 }
0x496c   :  { %15325 = vpow2.f32 %v9626_v57  ;;  %v9619_v15 = vsub.f32 %v18173_v54, %v9587_v31  ;;  %v9600_v2 = vrot.slane %v9599_v22, 1  ;;  %v9612_v43 = vrot.slane %v9611_v12, 2 }
0x496d   :  { %15327 = vpow2.f32 %v9624_v58  ;;  %v9618_v51 = vsub.f32 %v18176_v19, %v9580_v6  ;;  %v9593_v4 = vrot.slane %v9592_v50, 1  ;;  %v9604_v32 = vmax.f32 %v9602_v13, %v9603_v33 }
0x496e   :  { %v9630_v48 = vmul.f32 1.442695, %v9619_v15  ;;  %v9601_v3 = vmax.f32 %v9599_v22, %v9600_v2  ;;  %v9613_v39 = vmax.f32 %v9611_v12, %v9612_v43 }
0x496f   :  { %v9628_v27 = vmul.f32 1.442695, %v9618_v51  ;;  %v9594_v1 = vmax.f32 %v9592_v50, %v9593_v4  ;;  %v9605_v55 = vrot.slane %v9604_v32, 2 }
0x4970   :  { %15329 = vpow2.f32 %v9630_v48  ;;  %v9621_v0 = vsub.f32 %v18183_v23, %v9601_v3  ;;  %v9614_v16 = vrot.slane %v9613_v39, 1 }
0x4971   :  { %15331 = vpow2.f32 %v9628_v27  ;;  %v9620_v35 = vsub.f32 %v9556_v37, %v9594_v1  ;;  %v9606_v54 = vmax.f32 %v9604_v32, %v9605_v55 }
0x4972   :  { %v9634_v44 = vmul.f32 1.442695, %v9621_v0  ;;  %v9615_v8 = vmax.f32 %v9613_v39, %v9614_v16 }
0x4973   :  { %v9632_v20 = vmul.f32 1.442695, %v9620_v35  ;;  %v9607_v63 = vrot.slane %v9606_v54, 1 }
0x4974   :  { %15333 = vpow2.f32 %v9634_v44  ;;  %v9623_v19 = vsub.f32 %v9559_v40, %v9615_v8 }
0x4975   :  { %15335 = vpow2.f32 %v9632_v20  ;;  %v9608_v38 = vmax.f32 %v9606_v54, %v9607_v63 }
0x4976   :  { %v18198_v13 = vpop.eup %15325  ;;  %v9638_v57 = vmul.f32 1.442695, %v9623_v19 }
0x4977   :  { %v18200_v31 = vpop.eup %15327  ;;  %v9647_v23 = vsel %vm258_vm2, %v18198_v13, 0.0  ;;  %v9622_v22 = vsub.f32 %v9558_v29, %v9608_v38 }
0x4978   :  { %v9648_v12 = vrot.slane %v9647_v23, 4  ;;  %v9640_v37 = vsel %vm258_vm2, %v18200_v31, 0.0  ;;  %15337 = vpow2.f32 %v9638_v57 }
0x4979   :  { %v9641_v58 = vrot.slane %v9640_v37, 4  ;;  %v9636_v6 = vmul.f32 1.442695, %v9622_v22 }
0x497a   :  { %v18206_v50 = vpop.eup %15329  ;;  %v9649_v40 = vadd.f32 %v9648_v12, %v9647_v23 }
0x497b   :  { %v18208_v33 = vpop.eup %15331  ;;  %v9642_v15 = vadd.f32 %v9641_v58, %v9640_v37  ;;  %v9661_v2 = vsel %vm258_vm2, %v18206_v50, 0.0  ;;  %15339 = vpow2.f32 %v9636_v6 }
0x497c   :  { %v9650_v43 = vrot.slane %v9649_v40, 2  ;;  %v9662_v51 = vrot.slane %v9661_v2, 4  ;;  %v9654_v29 = vsel %vm258_vm2, %v18208_v33, 0.0 }
0x497d   :  { %v9643_v4 = vrot.slane %v9642_v15, 2  ;;  %v9655_v32 = vrot.slane %v9654_v29, 4 }
0x497e   :  { %v18214_v48 = vpop.eup %15333  ;;  %v9651_v3 = vadd.f32 %v9650_v43, %v9649_v40  ;;  %v9663_v39 = vadd.f32 %v9662_v51, %v9661_v2 }
0x497f   :  { %v18216_v27 = vpop.eup %15335  ;;  %v9644_v1 = vadd.f32 %v9643_v4, %v9642_v15  ;;  %v9656_v55 = vadd.f32 %v9655_v32, %v9654_v29  ;;  %v9675_v0 = vsel %vm258_vm2, %v18214_v48, 0.0 }
0x4980   :  { %v9652_v16 = vrot.slane %v9651_v3, 1  ;;  %v9664_v35 = vrot.slane %v9663_v39, 2  ;;  %v9676_v54 = vrot.slane %v9675_v0, 4  ;;  %v9668_v44 = vsel %vm258_vm2, %v18216_v27, 0.0 }
0x4981   :  { %v9645_v8 = vrot.slane %v9644_v1, 1  ;;  %v9657_v20 = vrot.slane %v9656_v55, 2  ;;  %v9669_v63 = vrot.slane %v9668_v44, 4 }
0x4982   :  { %v18222_v19 = vpop.eup %15337  ;;  %v9653_v38 = vadd.f32 %v9652_v16, %v9651_v3  ;;  %v9665_v57 = vadd.f32 %v9664_v35, %v9663_v39  ;;  %v9677_v23 = vadd.f32 %v9676_v54, %v9675_v0 }
0x4983   :  { %v9646_v22 = vadd.f32 %v9645_v8, %v9644_v1  ;;  %v9658_v12 = vadd.f32 %v9657_v20, %v9656_v55  ;;  %v9670_v37 = vadd.f32 %v9669_v63, %v9668_v44  ;;  %v9689_v58 = vsel %vm258_vm2, %v18222_v19, 0.0 }
0x4984   :  { %15341 = vrcp.f32 %v9653_v38  ;;  %v9666_v6 = vrot.slane %v9665_v57, 1  ;;  %v9678_v40 = vrot.slane %v9677_v23, 2  ;;  %v9690_v15 = vrot.slane %v9689_v58, 4 }
0x4985   :  { %v18226_v2 = vpop.eup %15339  ;;  %15343 = vrcp.f32 %v9646_v22  ;;  %v9659_v43 = vrot.slane %v9658_v12, 1  ;;  %v9671_v51 = vrot.slane %v9670_v37, 2 }
0x4986   :  { %v9667_v29 = vadd.f32 %v9666_v6, %v9665_v57  ;;  %v9679_v4 = vadd.f32 %v9678_v40, %v9677_v23  ;;  %v9691_v32 = vadd.f32 %v9690_v15, %v9689_v58  ;;  %v9682_v3 = vsel %vm258_vm2, %v18226_v2, 0.0  ;;  %v15493_v40 = vld [vmem:[#allocation2 + $0x8] sm:$0xff] }
0x4987   :  { %v9660_v39 = vadd.f32 %v9659_v43, %v9658_v12  ;;  %v9672_v1 = vadd.f32 %v9671_v51, %v9670_v37  ;;  %v9683_v55 = vrot.slane %v9682_v3, 4 }
0x4988   :  { %15345 = vrcp.f32 %v9667_v29  ;;  %v9680_v0 = vrot.slane %v9679_v4, 1  ;;  %v9692_v16 = vrot.slane %v9691_v32, 2  ;;  %v15494_v29 = vld [vmem:[#allocation2] sm:$0xff] }
0x4989   :  { %15347 = vrcp.f32 %v9660_v39  ;;  %v9673_v35 = vrot.slane %v9672_v1, 1  ;;  %v9684_v54 = vadd.f32 %v9683_v55, %v9682_v3 }
0x498a   :  { %v9681_v44 = vadd.f32 %v9680_v0, %v9679_v4  ;;  %v9693_v8 = vadd.f32 %v9692_v16, %v9691_v32 }
0x498b   :  { %v9674_v20 = vadd.f32 %v9673_v35, %v9672_v1  ;;  %v9685_v63 = vrot.slane %v9684_v54, 2 }
0x498c   :  { %15349 = vrcp.f32 %v9681_v44  ;;  %v9694_v38 = vrot.slane %v9693_v8, 1  ;;  %v15496_v44 = vld [vmem:[#allocation2 + $0x10] sm:$0xff] }
0x498d   :  { %15351 = vrcp.f32 %v9674_v20  ;;  %v9686_v57 = vadd.f32 %v9685_v63, %v9684_v54 }
0x498e   :  { %v15342_v23 = vpop.eup %15341  ;;  %v9695_v22 = vadd.f32 %v9694_v38, %v9693_v8 }
0x498f   :  { %v15344_v58 = vpop.eup %15343  ;;  %v9699_v12 = vmul.f32 %v15342_v23, %v18198_v13  ;;  %v9687_v37 = vrot.slane %v9686_v57, 1 }
0x4990   :  { %v9697_v6 = vmul.f32 %v15344_v58, %v18200_v31  ;;  %15353 = vrcp.f32 %v9695_v22  ;;  %v15495_v31 = vld [vmem:[#allocation2 + $0x18] sm:$0xff] }
0x4991   :  { %v9713_v15 = vmul.f32 %v15493_v40, %v9699_v12  ;;  %v9688_v43 = vadd.f32 %v9687_v37, %v9686_v57  ;;  %v15497_v37 = vld [vmem:[#allocation2 + $0x28] sm:$0xff] }
0x4992   :  { %v15346_v51 = vpop.eup %15345  ;;  %v9712_v4 = vmul.f32 %v15494_v29, %v9697_v6 }
0x4993   :  { %v15348_v32 = vpop.eup %15347  ;;  %v9727_v3 = vsel %vm258_vm2, %v9713_v15, 0.0  ;;  %v9703_v39 = vmul.f32 %v15346_v51, %v18206_v50  ;;  %15355 = vrcp.f32 %v9688_v43  ;;  %v15498_v51 = vld [vmem:[#allocation2 + $0x20] sm:$0xff] }
0x4994   :  { %v9728_v1 = vrot.slane %v9727_v3, 4  ;;  %v9720_v55 = vsel %vm258_vm2, %v9712_v4, 0.0  ;;  %v9701_v13 = vmul.f32 %v15348_v32, %v18208_v33 }
0x4995   :  { %v9721_v0 = vrot.slane %v9720_v55, 4  ;;  %v9715_v16 = vmul.f32 %v15495_v31, %v9703_v39 }
0x4996   :  { %v15350_v35 = vpop.eup %15349  ;;  %v9729_v54 = vadd.f32 %v9728_v1, %v9727_v3  ;;  %v9714_v8 = vmul.f32 %v15496_v44, %v9701_v13 }
0x4997   :  { %v15352_v20 = vpop.eup %15351  ;;  %v9722_v63 = vadd.f32 %v9721_v0, %v9720_v55  ;;  %v9741_v38 = vsel %vm258_vm2, %v9715_v16, 0.0  ;;  %v9707_v57 = vmul.f32 %v15350_v35, %v18214_v48  ;;  %v15499_v35 = vld [vmem:[#allocation2 + $0x38] sm:$0xff] }
0x4998   :  { %v9730_v50 = vrot.slane %v9729_v54, 2  ;;  %v9742_v23 = vrot.slane %v9741_v38, 4  ;;  %v9734_v22 = vsel %vm258_vm2, %v9714_v8, 0.0  ;;  %v9705_v58 = vmul.f32 %v15352_v20, %v18216_v27 }
0x4999   :  { %v9723_v33 = vrot.slane %v9722_v63, 2  ;;  %v9735_v12 = vrot.slane %v9734_v22, 4  ;;  %v9717_v6 = vmul.f32 %v15497_v37, %v9707_v57 }
0x499a   :  { %v15354_v40 = vpop.eup %15353  ;;  %v9731_v15 = vadd.f32 %v9730_v50, %v9729_v54  ;;  %v9743_v43 = vadd.f32 %v9742_v23, %v9741_v38  ;;  %v9716_v29 = vmul.f32 %v15498_v51, %v9705_v58  ;;  %v15500_v23 = vld [vmem:[#allocation2 + $0x30] sm:$0xff] }
0x499b   :  { %v9724_v4 = vadd.f32 %v9723_v33, %v9722_v63  ;;  %v9736_v32 = vadd.f32 %v9735_v12, %v9734_v22  ;;  %v9755_v3 = vsel %vm258_vm2, %v9717_v6, 0.0  ;;  %v9711_v48 = vmul.f32 %v15354_v40, %v18222_v19 }
0x499c   :  { %v9732_v39 = vrot.slane %v9731_v15, 1  ;;  %v9744_v1 = vrot.slane %v9743_v43, 2  ;;  %v9756_v55 = vrot.slane %v9755_v3, 4  ;;  %v9748_v27 = vsel %vm258_vm2, %v9716_v29, 0.0 }
0x499d   :  { %v15356_v13 = vpop.eup %15355  ;;  %v9725_v0 = vrot.slane %v9724_v4, 1  ;;  %v9737_v31 = vrot.slane %v9736_v32, 2  ;;  %v9749_v16 = vrot.slane %v9748_v27, 4  ;;  %v9719_v54 = vmul.f32 %v15499_v35, %v9711_v48 }
0x499e   :  { %v9733_v44 = vadd.f32 %v9732_v39, %v9731_v15  ;;  %v9709_v8 = vmul.f32 %v15356_v13, %v18226_v2  ;;  %v9745_v20 = vadd.f32 %v9744_v1, %v9743_v43  ;;  %v9757_v63 = vadd.f32 %v9756_v55, %v9755_v3 }
0x499f   :  { %v9726_v38 = vadd.f32 %v9725_v0, %v9724_v4  ;;  %v9738_v57 = vadd.f32 %v9737_v31, %v9736_v32  ;;  %v9750_v50 = vadd.f32 %v9749_v16, %v9748_v27  ;;  %v9769_v19 = vsel %vm258_vm2, %v9719_v54, 0.0 }
0x49a0   :  { %v9718_v22 = vmul.f32 %v15500_v23, %v9709_v8  ;;  %v9746_v58 = vrot.slane %v9745_v20, 1  ;;  %v9758_v33 = vrot.slane %v9757_v63, 2  ;;  %v9770_v12 = vrot.slane %v9769_v19, 4 }
0x49a1   :  { %v9739_v37 = vrot.slane %v9738_v57, 1  ;;  %v9751_v6 = vrot.slane %v9750_v50, 2  ;;  %v9784_v40 = vsel %vm917_vm3, %v9733_v44, %v9726_v38 }
0x49a2   :  { %v9759_v51 = vadd.f32 %v9758_v33, %v9757_v63  ;;  %v9762_v15 = vsel %vm258_vm2, %v9718_v22, 0.0  ;;  %v9771_v2 = vadd.f32 %v9770_v12, %v9769_v19  ;;  %v9747_v32 = vadd.f32 %v9746_v58, %v9745_v20 }
0x49a3   :  { %v9740_v43 = vadd.f32 %v9739_v37, %v9738_v57  ;;  %v9752_v29 = vadd.f32 %v9751_v6, %v9750_v50  ;;  %v9763_v4 = vrot.slane %v9762_v15, 4 }
0x49a4   :  { %v9760_v3 = vrot.slane %v9759_v51, 1  ;;  %v9772_v48 = vrot.slane %v9771_v2, 2 }
0x49a5   :  { %v9753_v39 = vrot.slane %v9752_v29, 1  ;;  %v9764_v1 = vadd.f32 %v9763_v4, %v9762_v15  ;;  %v9785_v55 = vsel %vm919_vm4, %v9740_v43, %v9784_v40 }
0x49a6   :  { %v9773_v27 = vadd.f32 %v9772_v48, %v9771_v2  ;;  %v9786_v13 = vsel %vm921_vm5, %v9747_v32, %v9785_v55  ;;  %v9761_v16 = vadd.f32 %v9760_v3, %v9759_v51 }
0x49a7   :  { %v9754_v0 = vadd.f32 %v9753_v39, %v9752_v29  ;;  %v9765_v31 = vrot.slane %v9764_v1, 2 }
0x49a8   :  { %v9774_v44 = vrot.slane %v9773_v27, 1 }
0x49a9   :  { %v9766_v35 = vadd.f32 %v9765_v31, %v9764_v1  ;;  %v9787_v54 = vsel %vm923_vm6, %v9754_v0, %v9786_v13 }
0x49aa   :  { %v9788_v8 = vsel %vm925_vm7, %v9761_v16, %v9787_v54  ;;  %v9775_v38 = vadd.f32 %v9774_v44, %v9773_v27 }
0x49ab   :  { %v9767_v63 = vrot.slane %v9766_v35, 1 }
0x49ad   :  { %v9768_v20 = vadd.f32 %v9767_v63, %v9766_v35 }
0x49af   :  { %v9789_v57 = vsel %vm927_vm8, %v9768_v20, %v9788_v8 }
0x49b0   :  { %v9790_v50 = vsel %vm929_vm9, %v9775_v38, %v9789_v57 }
0x49b1   :  { %14183 = vmatmul.mubr.msk.f32.vlgmr.msra.gmra.mrb[102].mxu0 %vm258_vm2, %v9790_v50 }
0x49b2   :  { %14867 = vmatpush3.bf16.msra.mxu0 %v16271_v52  ;;  %14193 = vmatprep.mubr.msk.f32.mxu0 %vm15742_vm0, %v18982_v11 }
0x49b3   :  { %14868 = vmatprep.subr.bf16.mxu0 %v18983_v60 }
0x49b6   :  { %14870 = vmatpush3.bf16.msra.mxu0 %v16277_v7 }
0x49b7   :  { %14871 = vmatprep.subr.bf16.mxu0 %v18983_v60 }
0x4a84   :  { %v9859_v19 = vpop.f32.mrb[102].mxu0 }
0x4a85   :  { %v9860_v23 = vadd.f32 %v17995_v36, %v9859_v19  ;;  %v14184_v22 = vpop.f32.mrb[103].mxu0 }
0x4a86   :  { %v19136_v22 = vld [vmem:[#allocation36_spill] sm:$0xff] }
0x4a87   :  { %14194 = vmatmul.mubr.msk.f32.vlgmr.msra.gmra.mrb[104].mxu0 %vm258_vm2, %v9860_v23 }
0x4a88   :  { %14873 = vmatpush3.bf16.msra.mxu0 %v16299_v62  ;;  %14200 = vmatprep.mubr.msk.f32.mxu0 %vm15742_vm0, %v18982_v11 }
0x4a89   :  { %14880 = vmatprep.subr.bf16.mxu0 %v18983_v60 }
0x4a8b   :  { %14201 = vmatmul.mubr.msk.f32.vlgmr.msra.gmra.mrb[106].mxu0 %vm1076_vm10, %v18166_v53 }
0x4a8c   :  { %14882 = vmatpush3.bf16.msra.mxu0 %v16306_v59  ;;  %14222 = vmatprep.mubr.msk.f32.mxu0 %vm15742_vm0, %v18982_v11 }
0x4a8d   :  { %14883 = vmatprep.subr.bf16.mxu0 %v18983_v60 }
0x4a90   :  { %14885 = vmatpush3.bf16.msra.mxu0 %v16312_v28 }
0x4a91   :  { %14892 = vmatprep.subr.bf16.mxu0 %v18983_v60 }
0x4a93   :  { %14223 = vmatmul.mubr.msk.f32.vlgmr.msra.gmra.mrb[108].mxu0 %vm258_vm2, %v18067_v56 }
0x4a94   :  { %14894 = vmatpush3.bf16.msra.mxu0 %v16318_v34  ;;  %14244 = vmatprep.mubr.msk.f32.mxu0 %vm15742_vm0, %v18982_v11 }
0x4a95   :  { %14895 = vmatprep.subr.bf16.mxu0 %v18983_v60 }
0x4a98   :  { %14897 = vmatpush3.bf16.msra.mxu0 %v16323_v25 }
0x4a99   :  { %14904 = vmatprep.subr.bf16.mxu0 %v18983_v60 }
0x4a9b   :  { %14245 = vmatmul.mubr.msk.f32.vlgmr.msra.gmra.mrb[110].mxu0 %vm258_vm2, %v9860_v23 }
0x4a9c   :  { %14906 = vmatpush3.bf16.msra.mxu0 %v16027_v9  ;;  %14266 = vmatprep.mubr.msk.f32.mxu0 %vm15742_vm0, %v18982_v11 }
0x4a9d   :  { %14907 = vmatprep.subr.bf16.mxu0 %v18983_v60 }
0x4aa0   :  { %14909 = vmatpush3.bf16.msra.mxu0 %v16046_v14 }
0x4aa1   :  { %14917 = vmatprep.subr.bf16.mxu0 %v16058_v18 }
0x4b5a   :  { %v9932_v36 = vpop.f32.mrb[104].mxu0 }
0x4b5b   :  { %v14195_v56 = vpop.f32.mrb[105].mxu0 }
0x4b5e   :  { %v10005_v53 = vpop.f32.mrb[106].mxu0 }
0x4b5f   :  { %v10006_v58 = vadd.f32 %v10005_v53, %v9932_v36  ;;  %v14202_v33 = vpop.f32.mrb[107].mxu0  ;;  %v11685_v36 = vcombine.high %v19136_v22, %v19136_v22 }
0x4b61   :  { %v10079_v12 = vadd.f32 %v18192_v49, %v10006_v58  ;;  %v11699_v58 = vrot.slane %v11685_v36, %v19122_v46 }
0x4b63   :  { %v10080_v37 = vadd.f32 %v18030_v47, %v10079_v12  ;;  %v19137_v12 = vld [vmem:[#allocation37_spill] sm:$0xff] }
0x4b65   :  { %15357 = vtanh.f32 %v10080_v37  ;;  %v12683_v14 = vmul.f32 -1.442695, %v10080_v37  ;;  %v11793_v37 = vcombine.high %v19137_v12, %v19137_v12 }
0x4b66   :  { %v10171_v9 = vpop.f32.mrb[108].mxu0 }
0x4b67   :  { %v14224_v6 = vpop.f32.mrb[109].mxu0  ;;  %15359 = vpow2.f32 %v12683_v14  ;;  %v11701_v14 = vcombine.high %v11699_v58, %v11699_v58 }
0x4b6e   :  { %v18291_v40 = vpop.f32.mrb[110].mxu0 }
0x4b6f   :  { %v15358_v51 = vpop.eup %15357  ;;  %v14246_v15 = vpop.f32.mrb[111].mxu0 }
0x4b70   :  { %10090 = vrot.lane.b32.xlu0 %v15358_v51, %s15746_s1  ;;  %v11800_v15 = vrot.slane %v19137_v12, %v19122_v46 }
0x4b71   :  { %v15360_v2 = vpop.eup %15359 }
0x4b72   :  { %v10084_v43 = vadd.f32 1.0, %v15360_v2  ;;  %v11715_v2 = vrot.slane %v11699_v58, %v19122_v46 }
0x4b74   :  { %15361 = vrcp.f32 %v10084_v43 }
0x4b7e   :  { %v15362_v29 = vpop.eup %15361 }
0x4b7f   :  { %v10088_v47 = vmul.f32 %v15362_v29, %v18038_v45 }
0x4be2   :  { %v10091_v4 = vpop.permute.xlu0 %10090 }
0x4be3   :  { %v10093_v32 = vmul.f32 %v15362_v29, %v10091_v4 }
0x4be5   :  { %10095 = vrot.lane.b32.xlu1 %v10093_v32, %s15747_s14  ;;  %v11807_v32 = vrot.slane %v11793_v37, %v19122_v46 }
0x4c57   :  { %v10096_v49 = vpop.permute.xlu1 %10095 }
0x4c58   :  { %v18296_v3 = vadd.f32 %v10096_v49, %v10088_v47 }
0x4c5a   :  { %15363 = vtanh.f32 %v18296_v3 }
0x4c64   :  { %v15364_v48 = vpop.eup %15363 }
0x4c65   :  { %10101 = vrot.lane.b32.xlu1 %v15364_v48, %s15746_s1 }
0x4cd7   :  { %v10102_v39 = vpop.permute.xlu1 %10101 }
0x4cd8   :  { %v10104_v1 = vmul.f32 %v15362_v29, %v10102_v39  ;;  %v11808_v39 = vcombine.high %v11800_v15, %v11800_v15 }
0x4cda   :  { %10176 = vrot.lane.b32.xlu0 %v10104_v1, %s15747_s14  ;;  %v11729_v1 = vrot.slane %v11701_v14, %v19122_v46 }
0x4d4c   :  { %v18301_v55 = vpop.permute.xlu0 %10176 }
0x4d4d   :  { %14234 = vmatmul.mubr.msk.f32.vlgmr.msra.gmra.mrb[108].mxu1 %vm258_vm2, %v18301_v55 }
0x4d4e   :  { %14900 = vmatpush3.bf16.msra.mxu1 %v16377_v42  ;;  %14255 = vmatprep.mubr.msk.f32.mxu1 %vm15742_vm0, %v18982_v11 }
0x4d4f   :  { %14901 = vmatprep.subr.bf16.mxu1 %v18983_v60 }
0x4d52   :  { %14903 = vmatpush3.bf16.msra.mxu1 %v16380_v21 }
0x4d53   :  { %14910 = vmatprep.subr.bf16.mxu1 %v18983_v60 }
0x4e20   :  { %v10246_v45 = vpop.f32.mrb[108].mxu1 }
0x4e21   :  { %v10247_v27 = vadd.f32 %v10246_v45, %v10171_v9  ;;  %v14235_v13 = vpop.f32.mrb[109].mxu1  ;;  %v11731_v45 = vcombine.high %v11715_v2, %v11715_v2 }
0x4e23   :  { %v10250_v0 = vadd.f32 %v18056_v41, %v10247_v27  ;;  %v19138_v27 = vld [vmem:[#allocation24_spill] sm:$0xff] }
0x4e25   :  { %15365 = vtanh.f32 %v10250_v0  ;;  %v12686_v16 = vmul.f32 -1.442695, %v10250_v0 }
0x4e27   :  { %15367 = vpow2.f32 %v12686_v16 }
0x4e2f   :  { %v15366_v31 = vpop.eup %15365 }
0x4e30   :  { %10260 = vrot.lane.b32.xlu1 %v15366_v31, %s15746_s1 }
0x4e31   :  { %v15368_v35 = vpop.eup %15367 }
0x4e32   :  { %v10254_v54 = vadd.f32 1.0, %v15368_v35  ;;  %v11816_v35 = vrot.slane %v11800_v15, %v19122_v46 }
0x4e34   :  { %15369 = vrcp.f32 %v10254_v54  ;;  %v12193_v14 = vrot.slane %v11816_v35, %v19138_v27 }
0x4e3e   :  { %v15370_v44 = vpop.eup %15369 }
0x4e3f   :  { %v10258_v20 = vmul.f32 %v15370_v44, %v18062_v26 }
0x4ea2   :  { %v10261_v8 = vpop.permute.xlu1 %10260 }
0x4ea3   :  { %v10263_v63 = vmul.f32 %v15370_v44, %v10261_v8  ;;  %v19139_v8 = vld [vmem:[#allocation51_spill] sm:$0xff] }
0x4ea5   :  { %10265 = vrot.lane.b32.xlu0 %v10263_v63, %s15747_s14  ;;  %v11843_v63 = vcombine.high %v19139_v8, %v19139_v8 }
0x4f17   :  { %v10266_v38 = vpop.permute.xlu0 %10265 }
0x4f18   :  { %v18315_v57 = vadd.f32 %v10266_v38, %v10258_v20  ;;  %v11850_v20 = vrot.slane %v19139_v8, %v19122_v46 }
0x4f1a   :  { %15371 = vtanh.f32 %v18315_v57  ;;  %v11858_v12 = vcombine.high %v11850_v20, %v11850_v20 }
0x4f24   :  { %v15372_v41 = vpop.eup %15371 }
0x4f25   :  { %10271 = vrot.lane.b32.xlu1 %v15372_v41, %s15746_s1 }
0x4f97   :  { %v10272_v50 = vpop.permute.xlu1 %10271 }
0x4f98   :  { %v10274_v19 = vmul.f32 %v15370_v44, %v10272_v50  ;;  %v11809_v44 = vcombine.high %v11807_v32, %v11807_v32 }
0x4f9a   :  { %10346 = vrot.lane.b32.xlu0 %v10274_v19, %s15747_s14  ;;  %v11830_v19 = vrot.slane %v11808_v39, %v19122_v46  ;;  %v11880_v39 = vrot.slane %v11858_v12, %v19122_v46 }
0x500c   :  { %v18320_v23 = vpop.permute.xlu0 %10346 }
0x500d   :  { %14256 = vmatmul.mubr.msk.f32.vlgmr.msra.gmra.mrb[110].mxu1 %vm258_vm2, %v18320_v23 }
0x500e   :  { %14912 = vmatpush3.bf16.msra.mxu1 %v16016_v5  ;;  %14277 = vmatprep.mubr.msk.f32.mxu1 %vm15742_vm0, %v18982_v11  ;;  %v19135_v5 = vld [vmem:[#allocation48_spill] sm:$0xff] }
0x500f   :  { %14913 = vmatprep.subr.bf16.mxu1 %v18983_v60  ;;  %v11743_v26 = vcombine.high %v19135_v5, %v19135_v5 }
0x5011   :  { %v11757_v56 = vrot.slane %v11743_v26, %v19122_v46  ;;  %v11733_v26 = vcombine.high %v11729_v1, %v11729_v1 }
0x5012   :  { %14915 = vmatpush3.bf16.msra.mxu1 %v16030_v10  ;;  %v11750_v10 = vrot.slane %v19135_v5, %v19122_v46 }
0x5013   :  { %14924 = vmatprep.subr.bf16.mxu1 %v18983_v60  ;;  %v11759_v6 = vcombine.high %v11757_v56, %v11757_v56  ;;  %v11773_v43 = vrot.slane %v11757_v56, %v19122_v46 }
0x5014   :  { %v11758_v53 = vcombine.high %v11750_v10, %v11750_v10 }
0x5015   :  { %14278 = vmatmul.mubr.msk.f32.vlgmr.msra.gmra.mrb[112].mxu1 %vm258_vm2, %v18320_v23  ;;  %v11787_v49 = vrot.slane %v11759_v6, %v19122_v46  ;;  %v11789_v0 = vcombine.high %v11773_v43, %v11773_v43  ;;  %v12169_v54 = vrot.slane %v11773_v43, %v19138_v27  ;;  %v11866_v43 = vrot.slane %v11850_v20, %v19122_v46 }
0x5016   :  { %14926 = vmatpush3.bf16.msra.mxu1 %v16156_v30  ;;  %14308 = vmatprep.mubr.msk.f32.mxu1 %vm15742_vm0, %v18982_v11  ;;  %v11692_v30 = vrot.slane %v19136_v22, %v19122_v46  ;;  %v11780_v51 = vrot.slane %v11758_v53, %v19122_v46  ;;  %v11823_v22 = vrot.slane %v11807_v32, %v19122_v46  ;;  %v19140_v32 = vld [vmem:[#allocation38_spill] sm:$0xff] }
0x5017   :  { %14927 = vmatprep.subr.bf16.mxu1 %v18983_v60  ;;  %v11791_v38 = vcombine.high %v11787_v49, %v11787_v49  ;;  %v12173_v50 = vrot.slane %v11787_v49, %v19138_v27  ;;  %v12177_v36 = vrot.slane %v11789_v0, %v19138_v27  ;;  %v11838_v53 = vcombine.high %v11816_v35, %v11816_v35 }
0x5018   :  { %v11700_v33 = vcombine.high %v11692_v30, %v11692_v30  ;;  %v11708_v9 = vrot.slane %v11692_v30, %v19122_v46  ;;  %v11790_v48 = vcombine.high %v11780_v51, %v11780_v51  ;;  %v12157_v31 = vrot.slane %v11780_v51, %v19138_v27 }
0x5019   :  { %v12435_v58 = vsel %vm12430_vm14, %v11715_v2, %v12169_v54  ;;  %v12181_v37 = vrot.slane %v11791_v38, %v19138_v27  ;;  %v12436_v6 = vsel %vm12430_vm14, %v11729_v1, %v12173_v50  ;;  %v11840_v51 = vcombine.high %v11830_v19, %v11830_v19 }
0x501a   :  { %14929 = vmatpush3.bf16.msra.mxu1 %v19119_v61  ;;  %v11766_v61 = vrot.slane %v11750_v10, %v19122_v46  ;;  %v11722_v4 = vrot.slane %v11700_v33, %v19122_v46  ;;  %v11730_v47 = vcombine.high %v11708_v9, %v11708_v9  ;;  %v12165_v41 = vrot.slane %v11790_v48, %v19138_v27 }
0x501b   :  { %14930 = vmatprep.subr.bf16.mxu1 %v18983_v60  ;;  %v11857_v33 = vrot.slane %v11843_v63, %v19122_v46  ;;  %v11839_v15 = vcombine.high %v11823_v22, %v11823_v22  ;;  %v12197_v2 = vrot.slane %v11830_v19, %v19138_v27  ;;  %v11900_v1 = vrot.slane %v19140_v32, %v19122_v46 }
0x501c   :  { %v11788_v29 = vcombine.high %v11766_v61, %v11766_v61  ;;  %v12153_v13 = vrot.slane %v11766_v61, %v19138_v27  ;;  %v11732_v5 = vcombine.high %v11722_v4, %v11722_v4  ;;  %v12432_v30 = vsel %vm12430_vm14, %v11722_v4, %v12157_v31 }
0x501d   :  { %v11837_v61 = vrot.slane %v11809_v44, %v19122_v46  ;;  %v12209_v4 = vrot.slane %v11823_v22, %v19138_v27  ;;  %v11859_v48 = vcombine.high %v11857_v33, %v11857_v33  ;;  %v12438_v0 = vsel %vm12430_vm14, %v11733_v26, %v12181_v37 }
0x501e   :  { %v12161_v16 = vrot.slane %v11788_v29, %v19138_v27  ;;  %v12431_v10 = vsel %vm12430_vm14, %v11708_v9, %v12153_v13  ;;  %v12434_v9 = vsel %vm12430_vm14, %v11732_v5, %v12165_v41  ;;  %v12201_v29 = vrot.slane %v11838_v53, %v19138_v27 }
0x501f   :  { %v11841_v49 = vcombine.high %v11837_v61, %v11837_v61  ;;  %v12437_v13 = vsel %vm12430_vm14, %v11731_v45, %v12177_v36  ;;  %v12205_v31 = vrot.slane %v11840_v51, %v19138_v27  ;;  %v12217_v35 = vrot.slane %v11839_v15, %v19138_v27  ;;  %v19141_v36 = vld [vmem:[#allocation53_spill] sm:$0xff] }
0x5020   :  { %v12433_v56 = vsel %vm12430_vm14, %v11730_v47, %v12161_v16  ;;  %v11893_v47 = vcombine.high %v19140_v32, %v19140_v32  ;;  %v12213_v16 = vrot.slane %v11837_v61, %v19138_v27  ;;  %v12440_v54 = vsel %vm12439_vm15, %v12431_v10, %v12193_v14 }
0x5021   :  { %v11873_v44 = vrot.slane %v11857_v33, %v19122_v46  ;;  %v11888_v8 = vcombine.high %v11866_v43, %v11866_v43  ;;  %v12441_v63 = vsel %vm12439_vm15, %v12432_v30, %v12197_v2  ;;  %v12442_v20 = vsel %vm12439_vm15, %v12433_v56, %v12201_v29 }
0x5022   :  { %v12444_v38 = vsel %vm12439_vm15, %v12435_v58, %v12209_v4  ;;  %v11907_v45 = vrot.slane %v11893_v47, %v19122_v46  ;;  %v12221_v41 = vrot.slane %v11841_v49, %v19138_v27  ;;  %v11887_v50 = vrot.slane %v11859_v48, %v19122_v46 }
0x5023   :  { %v11890_v19 = vcombine.high %v11880_v39, %v11880_v39  ;;  %v11908_v5 = vcombine.high %v11900_v1, %v11900_v1  ;;  %v12443_v26 = vsel %vm12439_vm15, %v12434_v9, %v12205_v31  ;;  %v12445_v10 = vsel %vm12439_vm15, %v12436_v6, %v12213_v16 }
0x5024   :  { %v12233_v22 = vrot.slane %v11866_v43, %v19138_v27  ;;  %v11943_v30 = vcombine.high %v19141_v36, %v19141_v36  ;;  %v11889_v56 = vcombine.high %v11873_v44, %v11873_v44  ;;  %v12237_v53 = vrot.slane %v11880_v39, %v19138_v27 }
0x5025   :  { %v12241_v58 = vrot.slane %v11888_v8, %v19138_v27  ;;  %v12249_v61 = vrot.slane %v11873_v44, %v19138_v27  ;;  %v11909_v33 = vcombine.high %v11907_v45, %v11907_v45  ;;  %v11916_v12 = vrot.slane %v11900_v1, %v19122_v46 }
0x5026   :  { %v11950_v37 = vrot.slane %v19141_v36, %v19122_v46  ;;  %v11891_v9 = vcombine.high %v11887_v50, %v11887_v50  ;;  %v12245_v6 = vrot.slane %v11890_v19, %v19138_v27  ;;  %v12253_v51 = vrot.slane %v11887_v50, %v19138_v27 }
0x5027   :  { %v11930_v15 = vrot.slane %v11908_v5, %v19122_v46  ;;  %v12446_v14 = vsel %vm12439_vm15, %v12437_v13, %v12217_v35  ;;  %v12447_v43 = vsel %vm12439_vm15, %v12438_v0, %v12221_v41  ;;  %v12449_v2 = vsel %vm12448_vm1, %v12440_v54, %v12233_v22 }
0x5028   :  { %v11957_v29 = vrot.slane %v11943_v30, %v19122_v46  ;;  %v12257_v4 = vrot.slane %v11889_v56, %v19138_v27  ;;  %v12450_v32 = vsel %vm12448_vm1, %v12441_v63, %v12237_v53  ;;  %v12451_v47 = vsel %vm12448_vm1, %v12442_v20, %v12241_v58 }
0x5029   :  { %v11923_v49 = vrot.slane %v11907_v45, %v19122_v46  ;;  %v12453_v48 = vsel %vm12448_vm1, %v12444_v38, %v12249_v61  ;;  %v11937_v39 = vrot.slane %v11909_v33, %v19122_v46  ;;  %v11938_v1 = vcombine.high %v11916_v12, %v11916_v12  ;;  %v19142_v38 = vld [vmem:[#allocation39_spill] sm:$0xff] }
0x502a   :  { %v11958_v13 = vcombine.high %v11950_v37, %v11950_v37  ;;  %v12261_v0 = vrot.slane %v11891_v9, %v19138_v27  ;;  %v12452_v31 = vsel %vm12448_vm1, %v12443_v26, %v12245_v6  ;;  %v12454_v16 = vsel %vm12448_vm1, %v12445_v10, %v12253_v51 }
0x502b   :  { %v11940_v35 = vcombine.high %v11930_v15, %v11930_v15  ;;  %v12273_v54 = vrot.slane %v11916_v12, %v19138_v27  ;;  %v11959_v44 = vcombine.high %v11957_v29, %v11957_v29  ;;  %v11966_v8 = vrot.slane %v11950_v37, %v19122_v46 }
0x502c   :  { %v11939_v63 = vcombine.high %v11923_v49, %v11923_v49  ;;  %v12277_v20 = vrot.slane %v11930_v15, %v19138_v27  ;;  %v11993_v45 = vcombine.high %v19142_v38, %v19142_v38  ;;  %v12000_v41 = vrot.slane %v19142_v38, %v19122_v46 }
0x502d   :  { %v11941_v50 = vcombine.high %v11937_v39, %v11937_v39  ;;  %v12281_v19 = vrot.slane %v11938_v1, %v19138_v27  ;;  %v12289_v5 = vrot.slane %v11923_v49, %v19138_v27  ;;  %v11980_v26 = vrot.slane %v11958_v13, %v19122_v46 }
0x502e   :  { %v12455_v10 = vsel %vm12448_vm1, %v12446_v14, %v12257_v4  ;;  %v12456_v22 = vsel %vm12448_vm1, %v12447_v43, %v12261_v0  ;;  %v12285_v36 = vrot.slane %v11940_v35, %v19138_v27  ;;  %v11973_v30 = vrot.slane %v11957_v29, %v19122_v46 }
0x502f   :  { %v12293_v56 = vrot.slane %v11937_v39, %v19138_v27  ;;  %v12458_v53 = vsel %vm12457_vm11, %v12449_v2, %v12273_v54  ;;  %v11987_v58 = vrot.slane %v11959_v44, %v19122_v46  ;;  %v11988_v61 = vcombine.high %v11966_v8, %v11966_v8 }
0x5030   :  { %v12297_v33 = vrot.slane %v11939_v63, %v19138_v27  ;;  %v12459_v12 = vsel %vm12457_vm11, %v12450_v32, %v12277_v20  ;;  %v12007_v37 = vrot.slane %v11993_v45, %v19122_v46  ;;  %v12008_v9 = vcombine.high %v12000_v41, %v12000_v41 }
0x5031   :  { %v12301_v6 = vrot.slane %v11941_v50, %v19138_v27  ;;  %v12460_v51 = vsel %vm12457_vm11, %v12451_v47, %v12281_v19  ;;  %v12462_v15 = vsel %vm12457_vm11, %v12453_v48, %v12289_v5  ;;  %v11990_v14 = vcombine.high %v11980_v26, %v11980_v26 }
0x5032   :  { %v12461_v43 = vsel %vm12457_vm11, %v12452_v31, %v12285_v36  ;;  %v11989_v2 = vcombine.high %v11973_v30, %v11973_v30  ;;  %v12313_v29 = vrot.slane %v11966_v8, %v19138_v27  ;;  %v12016_v4 = vrot.slane %v12000_v41, %v19122_v46 }
0x5033   :  { %v11991_v49 = vcombine.high %v11987_v58, %v11987_v58  ;;  %v12317_v32 = vrot.slane %v11980_v26, %v19138_v27  ;;  %v12321_v39 = vrot.slane %v11988_v61, %v19138_v27  ;;  %v12463_v1 = vsel %vm12457_vm11, %v12454_v16, %v12293_v56  ;;  %v18484_v56 = vld [vmem:[%s18834_s18] ss:$0 sm:$0xff] }
0x5034   :  { %v12329_v47 = vrot.slane %v11973_v30, %v19138_v27  ;;  %v12009_v13 = vcombine.high %v12007_v37, %v12007_v37  ;;  %v12030_v48 = vrot.slane %v12008_v9, %v19122_v46  ;;  %v12464_v0 = vsel %vm12457_vm11, %v12455_v10, %v12297_v33 }
0x5035   :  { %v12465_v31 = vsel %vm12457_vm11, %v12456_v22, %v12301_v6  ;;  %v12325_v35 = vrot.slane %v11990_v14, %v19138_v27  ;;  %v12333_v54 = vrot.slane %v11987_v58, %v19138_v27  ;;  %v12337_v44 = vrot.slane %v11989_v2, %v19138_v27 }
0x5036   :  { %v12467_v8 = vsel %vm12466_vm12, %v12458_v53, %v12313_v29  ;;  %v12023_v63 = vrot.slane %v12007_v37, %v19122_v46  ;;  %v12038_v16 = vcombine.high %v12016_v4, %v12016_v4  ;;  %v12341_v38 = vrot.slane %v11991_v49, %v19138_v27 }
0x5037   :  { %v12468_v45 = vsel %vm12466_vm12, %v12459_v12, %v12317_v32  ;;  %v12469_v41 = vsel %vm12466_vm12, %v12460_v51, %v12321_v39  ;;  %v12471_v5 = vsel %vm12466_vm12, %v12462_v15, %v12329_v47  ;;  %v12037_v26 = vrot.slane %v12009_v13, %v19122_v46 }
0x5038   :  { %v12040_v10 = vcombine.high %v12030_v48, %v12030_v48  ;;  %v12353_v22 = vrot.slane %v12016_v4, %v19138_v27  ;;  %v12470_v36 = vsel %vm12466_vm12, %v12461_v43, %v12325_v35  ;;  %v12472_v30 = vsel %vm12466_vm12, %v12463_v1, %v12333_v54 }
0x5039   :  { %v12473_v53 = vsel %vm12466_vm12, %v12464_v0, %v12337_v44  ;;  %v12039_v58 = vcombine.high %v12023_v63, %v12023_v63  ;;  %v12357_v61 = vrot.slane %v12030_v48, %v19138_v27  ;;  %v12361_v33 = vrot.slane %v12038_v16, %v19138_v27 }
0x503a   :  { %v12474_v12 = vsel %vm12466_vm12, %v12465_v31, %v12341_v38  ;;  %v12041_v51 = vcombine.high %v12037_v26, %v12037_v26  ;;  %v12365_v15 = vrot.slane %v12040_v10, %v19138_v27  ;;  %v12369_v14 = vrot.slane %v12023_v63, %v19138_v27 }
0x503b   :  { %v12476_v43 = vsel %vm12475_vm13, %v12467_v8, %v12353_v22  ;;  %v12373_v2 = vrot.slane %v12037_v26, %v19138_v27  ;;  %v12377_v32 = vrot.slane %v12039_v58, %v19138_v27  ;;  %v12477_v39 = vsel %vm12475_vm13, %v12468_v45, %v12357_v61 }
0x503c   :  { %v12478_v1 = vsel %vm12475_vm13, %v12469_v41, %v12361_v33  ;;  %vm12484_vm14 = vcmask 1046528   ;;  %v12381_v54 = vrot.slane %v12041_v51, %v19138_v27  ;;  %v12479_v44 = vsel %vm12475_vm13, %v12470_v36, %v12365_v15 }
0x503d   :  { %v12480_v8 = vsel %vm12475_vm13, %v12471_v5, %v12369_v14  ;;  %v12481_v41 = vsel %vm12475_vm13, %v12472_v30, %v12373_v2  ;;  %v12482_v30 = vsel %vm12475_vm13, %v12473_v53, %v12377_v32  ;;  %v19143_v14 = vld [vmem:[#allocation21_spill] sm:$0xff] }
0x503e   :  { %v12483_v53 = vsel %vm12475_vm13, %v12474_v12, %v12381_v54 }
0x50e0   :  { %v10416_v20 = vpop.f32.mrb[110].mxu1 }
0x50e1   :  { %v10417_v50 = vadd.f32 %v10416_v20, %v18291_v40  ;;  %v14257_v19 = vpop.f32.mrb[111].mxu1 }
0x50e3   :  { %v18487_v40 = vadd.f32 %v18484_v56, %v10417_v50 }
0x50e5   :  { %v12043_v37 = vcombine.high %v18487_v40, %v18487_v40  ;;  %v12050_v9 = vrot.slane %v18487_v40, %v19122_v46  ;;  %v10421_v6 = vsel %vm258_vm2, %v18487_v40, -inf }
0x50e6   :  { %10422 = vmax.xlane.f32.xlu1 %v10421_v6 }
0x50e7   :  { %v12057_v29 = vrot.slane %v12043_v37, %v19122_v46  ;;  %v12058_v4 = vcombine.high %v12050_v9, %v12050_v9  ;;  %v12066_v49 = vrot.slane %v12050_v9, %v19122_v46 }
0x50e8   :  { %v10583_v47 = vpop.f32.mrb[112].mxu1 }
0x50e9   :  { %v12059_v13 = vcombine.high %v12057_v29, %v12057_v29  ;;  %v12073_v48 = vrot.slane %v12057_v29, %v19122_v46  ;;  %v12080_v0 = vrot.slane %v12058_v4, %v19122_v46  ;;  %v12088_v31 = vcombine.high %v12066_v49, %v12066_v49  ;;  %v14279_v35 = vpop.f32.mrb[113].mxu1 }
0x50ea   :  { %v12393_v63 = vrot.slane %v12066_v49, %v19138_v27 }
0x50eb   :  { %v12087_v16 = vrot.slane %v12059_v13, %v19122_v46  ;;  %v12089_v20 = vcombine.high %v12073_v48, %v12073_v48  ;;  %v12090_v38 = vcombine.high %v12080_v0, %v12080_v0  ;;  %v12397_v45 = vrot.slane %v12080_v0, %v19138_v27  ;;  %v15502_v13 = vld [vmem:[%s18821_s5] ss:$0 sm:$0xff] }
0x50ec   :  { %v12401_v50 = vrot.slane %v12088_v31, %v19138_v27  ;;  %v12409_v19 = vrot.slane %v12073_v48, %v19138_v27  ;;  %v12485_v26 = vsel %vm12484_vm14, %v12476_v43, %v12393_v63  ;;  %v10584_v48 = vadd.f32 %v15502_v13, %v10583_v47 }
0x50ed   :  { %v12091_v10 = vcombine.high %v12087_v16, %v12087_v16  ;;  %v12405_v22 = vrot.slane %v12090_v38, %v19138_v27  ;;  %v12413_v5 = vrot.slane %v12087_v16, %v19138_v27  ;;  %v12417_v36 = vrot.slane %v12089_v20, %v19138_v27  ;;  %12493 = vst.msk [vmem:[%s18835_s19] sm:$0xff] %vm258_vm2, %v12485_v26 }
0x50ee   :  { %v12486_v58 = vsel %vm12484_vm14, %v12477_v39, %v12397_v45  ;;  %v12487_v61 = vsel %vm12484_vm14, %v12478_v1, %v12401_v50  ;;  %v12489_v33 = vsel %vm12484_vm14, %v12480_v8, %v12409_v19  ;;  %v10587_v0 = vmul.f32 0.35355338, %v10584_v48  ;;  %v15503_v19 = vld [vmem:[%s18958_s22] sm:$0xff]  ;;  %v15509_v48 = vld [vmem:[%s18958_s22 + $0x30] sm:$0xff] }
0x50ef   :  { %v12421_v37 = vrot.slane %v12091_v10, %v19138_v27  ;;  %v12488_v9 = vsel %vm12484_vm14, %v12479_v44, %v12405_v22  ;;  %v12490_v6 = vsel %vm12484_vm14, %v12481_v41, %v12413_v5  ;;  %v12491_v51 = vsel %vm12484_vm14, %v12482_v30, %v12417_v36  ;;  %12496 = vst.msk [vmem:[%s18835_s19 + $0x10] sm:$0xff] %vm258_vm2, %v12486_v58  ;;  %v19144_v36 = vld [vmem:[#allocation22_spill] sm:$0xff] }
0x50f0   :  { %12498 = vst.msk [vmem:[%s18835_s19 + $0x20] sm:$0xff] %vm258_vm2, %v12487_v61  ;;  %12502 = vst.msk [vmem:[%s18835_s19 + $0x40] sm:$0xff] %vm258_vm2, %v12489_v33  ;;  %v10589_v44 = vcombine.high %v10587_v0, %v10587_v0 }
0x50f1   :  { %12500 = vst.msk [vmem:[%s18835_s19 + $0x30] sm:$0xff] %vm258_vm2, %v12488_v9  ;;  %12504 = vst.msk [vmem:[%s18835_s19 + $0x50] sm:$0xff] %vm258_vm2, %v12490_v6  ;;  %v12492_v15 = vsel %vm12484_vm14, %v12483_v53, %v12421_v37 }
0x50f2   :  { %12506 = vst.msk [vmem:[%s18835_s19 + $0x60] sm:$0xff] %vm258_vm2, %v12491_v51  ;;  %12508 = vst.msk [vmem:[%s18835_s19 + $0x70] sm:$0xff] %vm258_vm2, %v12492_v15  ;;  %v10603_v45 = vrot.slane %v10589_v44, %v19122_v46  ;;  %v15505_v51 = vld [vmem:[%s18958_s22 + $0x10] sm:$0xff]  ;;  %v19145_v15 = vld [vmem:[#allocation26_spill] sm:$0xff] }
0x50f4   :  { %v10605_v10 = vcombine.high %v10603_v45, %v10603_v45  ;;  %v10619_v30 = vrot.slane %v10603_v45, %v19122_v46 }
0x50f6   :  { %v10633_v61 = vrot.slane %v10605_v10, %v19122_v46  ;;  %v10635_v9 = vcombine.high %v10619_v30, %v10619_v30  ;;  %v10657_v6 = vrot.slane %v10619_v30, %v19138_v27 }
0x5173   :  { %v10423_v12 = vpop.xlane.xlu1 %10422 }
0x5174   :  { %vm10424_vm15 = vcmp.ge.f32.partialorder %v18487_v40, %v10423_v12  ;;  %v10596_v40 = vrot.slane %v10587_v0, %v19122_v46  ;;  %v10637_v12 = vcombine.high %v10633_v61, %v10633_v61 }
0x5175   :  { %v10425_v43 = vsel %vm10424_vm15, %v19143_v14, 32 }
0x5176   :  { %v10426_v2 = vsel %vm258_vm2, %v10425_v43, 2147483647  ;;  %v10612_v35 = vrot.slane %v10596_v40, %v19122_v46  ;;  %v10604_v8 = vcombine.high %v10596_v40, %v10596_v40  ;;  %v10669_v13 = vrot.slane %v10637_v12, %v19138_v27  ;;  %v15510_v40 = vld [vmem:[%s18958_s22 + $0x38] sm:$0xff] }
0x5177   :  { %v10428_v29 = vshra.s32 %v10426_v2, 16  ;;  %v10427_v49 = vand.u32 65535, %v10426_v2  ;;  %v10661_v2 = vrot.slane %v10633_v61, %v19138_v27 }
0x5178   :  { %v10641_v20 = vrot.slane %v10612_v35, %v19138_v27  ;;  %v10626_v41 = vrot.slane %v10604_v8, %v19122_v46  ;;  %v10634_v47 = vcombine.high %v10612_v35, %v10612_v35  ;;  %v19148_v35 = vld [vmem:[#allocation35_spill] sm:$0xff] }
0x5179   :  { %v10430_v4 = vcvt.s32.f32 %v10428_v29  ;;  %v10429_v39 = vcvt.s32.f32 %v10427_v49  ;;  %v15507_v29 = vld [vmem:[%s18958_s22 + $0x20] sm:$0xff]  ;;  %v10665_v49 = vrot.slane %v10635_v9, %v19138_v27 }
0x517a   :  { %v10678_v26 = vmul.f32 %v15503_v19, %v10641_v20  ;;  %v10636_v22 = vcombine.high %v10626_v41, %v10626_v41  ;;  %v10645_v5 = vrot.slane %v10626_v41, %v19138_v27  ;;  %v10649_v58 = vrot.slane %v10634_v47, %v19138_v27 }
0x517b   :  { %10431 = vmin.xlane.f32.xlu0 %v10430_v4  ;;  %v10684_v0 = vmul.f32 %v15509_v48, %v10665_v49 }
0x517c   :  { %v10653_v37 = vrot.slane %v10636_v22, %v19138_v27  ;;  %v10680_v53 = vmul.f32 %v15505_v51, %v10649_v58  ;;  %v19147_v27 = vld [vmem:[#allocation34_spill] sm:$0xff] }
0x5208   :  { %v10432_v32 = vpop.xlane.xlu0 %10431 }
0x5209   :  { %vm10433_vm1 = vcmp.eq.f32.partialorder %v10430_v4, %v10432_v32  ;;  %v10438_v31 = vcvt.f32.s32 %v10432_v32  ;;  %v10682_v4 = vmul.f32 %v15507_v29, %v10657_v6  ;;  %v19146_v32 = vld [vmem:[#allocation33_spill] sm:$0xff] }
0x520a   :  { %v10434_v1 = vsel %vm10433_vm1, %v10429_v39, inf  ;;  %v15508_v39 = vld [vmem:[%s18958_s22 + $0x28] sm:$0xff] }
0x520b   :  { %10435 = vmin.xlane.f32.xlu0 %v10434_v1  ;;  %v10439_v63 = vshll.u32 %v10438_v31, 16  ;;  %v10683_v1 = vmul.f32 %v15508_v39, %v10661_v2  ;;  %v10685_v31 = vmul.f32 %v15510_v40, %v10669_v13  ;;  %v19154_v2 = vld [vmem:[#allocation32_spill] sm:$0xff] }
0x5298   :  { %v10436_v54 = vpop.xlane.xlu0 %10435 }
0x5299   :  { %v10437_v16 = vcvt.f32.s32 %v10436_v54 }
0x529b   :  { %v10440_v38 = vadd.s32 %v10439_v63, %v10437_v16  ;;  %v19149_v63 = vld [vmem:[#allocation29_spill] sm:$0xff] }
0x529d   :  { %vm10441_vm11 = vcmp.eq.s32.totalorder %v19143_v14, %v10440_v38  ;;  %v15506_v14 = vld [vmem:[%s18958_s22 + $0x18] sm:$0xff]  ;;  %v19150_v38 = vld [vmem:[#allocation27_spill] sm:$0xff] }
0x529e   :  { %v12689_v50 = vsel %vm10441_vm11, 1.0, %v18982_v11  ;;  %v10681_v43 = vmul.f32 %v15506_v14, %v10653_v37 }
0x529f   :  { %14267 = vmatmul.mubr.msk.f32.vlgmr.msra.gmra.mrb[112].mxu0 %vm258_vm2, %v12689_v50 }
0x52a0   :  { %14919 = vmatpush3.bf16.msra.mxu0 %v16058_v18  ;;  %14288 = vmatprep.mubr.msk.f32.mxu0 %vm258_vm2, %v10678_v26  ;;  %v15504_v18 = vld [vmem:[%s18958_s22 + $0x8] sm:$0xff]  ;;  %v19151_v26 = vld [vmem:[#allocation30_spill] sm:$0xff] }
0x52a1   :  { %14921 = vmatprep.subr.bf16.mxu0 %v19144_v36  ;;  %v10679_v33 = vmul.f32 %v15504_v18, %v10645_v5 }
0x52a4   :  { %14923 = vmatpush3.bf16.msra.mxu0 %v19144_v36  ;;  %v19152_v36 = vld [vmem:[#allocation28_spill] sm:$0xff] }
0x52a5   :  { %14939 = vmatprep.subr.bf16.mxu0 %v18983_v60 }
0x52a7   :  { %14289 = vmatmul.mubr.msk.f32.vlgmr.msra.gmra.mrb[114].mxu0 %vm258_vm2, %v10679_v33 }
0x52a8   :  { %14291 = vmatprep.mubr.msk.f32.mxu0 %vm258_vm2, %v10680_v53  ;;  %14941 = vmatpush3.bf16.msra.mxu0 %v19145_v15  ;;  %v19153_v53 = vld [vmem:[#allocation31_spill] sm:$0xff] }
0x52a9   :  { %14942 = vmatprep.subr.bf16.mxu0 %v18983_v60 }
0x52ab   :  { %14292 = vmatmul.mubr.msk.f32.gmra.mrb[116].mxu0 %vm258_vm2, %v10681_v43 }
0x52ac   :  { %14294 = vmatprep.mubr.msk.f32.mxu0 %vm258_vm2, %v10682_v4  ;;  %14944 = vmatpush3.bf16.msra.mxu0 %v19146_v32 }
0x52ad   :  { %14951 = vmatprep.subr.bf16.mxu0 %v18983_v60 }
0x52af   :  { %14295 = vmatmul.mubr.msk.f32.gmra.mrb[118].mxu0 %vm258_vm2, %v10683_v1 }
0x52b0   :  { %14297 = vmatprep.mubr.msk.f32.mxu0 %vm258_vm2, %v10684_v0 }
0x52b3   :  { %14298 = vmatmul.mubr.msk.f32.gmra.mrb[120].mxu0 %vm258_vm2, %v10685_v31 }
0x52b4   :  { %14337 = vmatprep.mubr.msk.f32.mxu0 %vm15742_vm0, %v18982_v11 }
0x52b7   :  { %14338 = vmatmul.mubr.msk.f32.vlgmr.msra.gmra.mrb[122].mxu0 %vm258_vm2, %v18301_v55 }
0x52b8   :  { %14953 = vmatpush3.bf16.msra.mxu0 %v19147_v27  ;;  %14359 = vmatprep.mubr.msk.f32.mxu0 %vm15742_vm0, %v18982_v11 }
0x52b9   :  { %14954 = vmatprep.subr.bf16.mxu0 %v18983_v60 }
0x52bc   :  { %14956 = vmatpush3.bf16.msra.mxu0 %v19148_v35 }
0x52bd   :  { %14963 = vmatprep.subr.bf16.mxu0 %v18983_v60 }
0x5372   :  { %v18638_v54 = vpop.f32.mrb[112].mxu0 }
0x5373   :  { %v14268_v44 = vpop.f32.mrb[113].mxu0 }
0x537a   :  { %v14290_v8 = vpop.f32.mrb[114].mxu0 }
0x537b   :  { %v10816_v16 = vadd.f32 %v14290_v8, %v19149_v63  ;;  %v10776_v20 = vpop.f32.mrb[115].mxu0 }
0x537c   :  { %v10815_v55 = vadd.f32 %v10776_v20, %v19150_v38 }
0x537d   :  { %v10830_v45 = vsel %vm258_vm2, %v10816_v16, -inf }
0x537e   :  { %v10831_v41 = vrot.slane %v10830_v45, 4  ;;  %v10823_v47 = vsel %vm258_vm2, %v10815_v55, -inf  ;;  %v14293_v50 = vpop.f32.mrb[116].mxu0 }
0x537f   :  { %v10824_v19 = vrot.slane %v10823_v47, 4  ;;  %v18645_v10 = vadd.f32 %v14293_v50, %v19151_v26  ;;  %v10786_v22 = vpop.f32.mrb[117].mxu0 }
0x5380   :  { %v10832_v5 = vmax.f32 %v10830_v45, %v10831_v41  ;;  %v18648_v30 = vadd.f32 %v10786_v22, %v19152_v36 }
0x5381   :  { %v10825_v58 = vmax.f32 %v10823_v47, %v10824_v19  ;;  %v10844_v61 = vsel %vm258_vm2, %v18645_v10, -inf }
0x5382   :  { %v10833_v18 = vrot.slane %v10832_v5, 2  ;;  %v10845_v33 = vrot.slane %v10844_v61, 4  ;;  %v10837_v37 = vsel %vm258_vm2, %v18648_v30, -inf  ;;  %v14296_v9 = vpop.f32.mrb[118].mxu0 }
0x5383   :  { %v10826_v6 = vrot.slane %v10825_v58, 2  ;;  %v10838_v51 = vrot.slane %v10837_v37, 4  ;;  %v18655_v15 = vadd.f32 %v14296_v9, %v19153_v53  ;;  %v10796_v12 = vpop.f32.mrb[119].mxu0 }
0x5384   :  { %v10834_v14 = vmax.f32 %v10832_v5, %v10833_v18  ;;  %v10846_v43 = vmax.f32 %v10844_v61, %v10845_v33  ;;  %v10819_v29 = vadd.f32 %v10796_v12, %v19154_v2 }
0x5385   :  { %v10827_v4 = vmax.f32 %v10825_v58, %v10826_v6  ;;  %v10839_v49 = vmax.f32 %v10837_v37, %v10838_v51  ;;  %v10858_v32 = vsel %vm258_vm2, %v18655_v15, -inf }
0x5386   :  { %v10835_v39 = vrot.slane %v10834_v14, 1  ;;  %v10847_v1 = vrot.slane %v10846_v43, 2  ;;  %v10859_v13 = vrot.slane %v10858_v32, 4  ;;  %v10851_v48 = vsel %vm258_vm2, %v10819_v29, -inf  ;;  %v14299_v0 = vpop.f32.mrb[120].mxu0 }
0x5387   :  { %v10828_v40 = vrot.slane %v10827_v4, 1  ;;  %v10840_v31 = vrot.slane %v10839_v49, 2  ;;  %v10852_v27 = vrot.slane %v10851_v48, 4  ;;  %v10822_v35 = vadd.f32 %v14299_v0, %v16206_v17  ;;  %v10806_v44 = vpop.f32.mrb[121].mxu0 }
0x5388   :  { %v10836_v8 = vmax.f32 %v10834_v14, %v10835_v39  ;;  %v10848_v63 = vmax.f32 %v10846_v43, %v10847_v1  ;;  %v10860_v20 = vmax.f32 %v10858_v32, %v10859_v13  ;;  %v10821_v38 = vadd.f32 %v10806_v44, %v16209_v24 }
0x5389   :  { %v10829_v45 = vmax.f32 %v10827_v4, %v10828_v40  ;;  %v10841_v41 = vmax.f32 %v10839_v49, %v10840_v31  ;;  %v10853_v47 = vmax.f32 %v10851_v48, %v10852_v27  ;;  %v10872_v50 = vsel %vm258_vm2, %v10822_v35, -inf }
0x538a   :  { %v10880_v19 = vsub.f32 %v10816_v16, %v10836_v8  ;;  %v10849_v26 = vrot.slane %v10848_v63, 1  ;;  %v10861_v22 = vrot.slane %v10860_v20, 2  ;;  %v10873_v5 = vrot.slane %v10872_v50, 4  ;;  %v18664_v36 = vpop.f32.mrb[122].mxu0 }
0x538b   :  { %v10879_v58 = vsub.f32 %v10815_v55, %v10829_v45  ;;  %v10842_v61 = vrot.slane %v10841_v41, 1  ;;  %v10854_v17 = vrot.slane %v10853_v47, 2  ;;  %v10865_v18 = vsel %vm258_vm2, %v10821_v38, -inf  ;;  %v14339_v33 = vpop.f32.mrb[123].mxu0 }
0x538c   :  { %v10889_v37 = vmul.f32 1.442695, %v10880_v19  ;;  %v10850_v9 = vmax.f32 %v10848_v63, %v10849_v26  ;;  %v10862_v24 = vmax.f32 %v10860_v20, %v10861_v22  ;;  %v10874_v6 = vmax.f32 %v10872_v50, %v10873_v5 }
0x538d   :  { %v10887_v51 = vmul.f32 1.442695, %v10879_v58  ;;  %v10843_v53 = vmax.f32 %v10841_v41, %v10842_v61  ;;  %v10855_v12 = vmax.f32 %v10853_v47, %v10854_v17  ;;  %v10866_v14 = vrot.slane %v10865_v18, 4 }
0x538e   :  { %15373 = vpow2.f32 %v10889_v37  ;;  %v10882_v16 = vsub.f32 %v18645_v10, %v10850_v9  ;;  %v10863_v43 = vrot.slane %v10862_v24, 1  ;;  %v10875_v2 = vrot.slane %v10874_v6, 2 }
0x538f   :  { %15375 = vpow2.f32 %v10887_v51  ;;  %v10881_v55 = vsub.f32 %v18648_v30, %v10843_v53  ;;  %v10856_v4 = vrot.slane %v10855_v12, 1  ;;  %v10867_v49 = vmax.f32 %v10865_v18, %v10866_v14 }
0x5390   :  { %v10893_v32 = vmul.f32 1.442695, %v10882_v16  ;;  %v10864_v39 = vmax.f32 %v10862_v24, %v10863_v43  ;;  %v10876_v1 = vmax.f32 %v10874_v6, %v10875_v2 }
0x5391   :  { %v10891_v13 = vmul.f32 1.442695, %v10881_v55  ;;  %v10857_v48 = vmax.f32 %v10855_v12, %v10856_v4  ;;  %v10868_v0 = vrot.slane %v10867_v49, 2 }
0x5392   :  { %15377 = vpow2.f32 %v10893_v32  ;;  %v10884_v40 = vsub.f32 %v18655_v15, %v10864_v39  ;;  %v10877_v31 = vrot.slane %v10876_v1, 1 }
0x5393   :  { %15379 = vpow2.f32 %v10891_v13  ;;  %v10883_v27 = vsub.f32 %v10819_v29, %v10857_v48  ;;  %v10869_v10 = vmax.f32 %v10867_v49, %v10868_v0 }
0x5394   :  { %v10897_v44 = vmul.f32 1.442695, %v10884_v40  ;;  %v10878_v8 = vmax.f32 %v10876_v1, %v10877_v31 }
0x5395   :  { %v10895_v63 = vmul.f32 1.442695, %v10883_v27  ;;  %v10870_v20 = vrot.slane %v10869_v10, 1 }
0x5396   :  { %15381 = vpow2.f32 %v10897_v44  ;;  %v10886_v30 = vsub.f32 %v10822_v35, %v10878_v8 }
0x5397   :  { %15383 = vpow2.f32 %v10895_v63  ;;  %v10871_v45 = vmax.f32 %v10869_v10, %v10870_v20 }
0x5398   :  { %v18670_v41 = vpop.eup %15373  ;;  %v10901_v47 = vmul.f32 1.442695, %v10886_v30 }
0x5399   :  { %v18672_v50 = vpop.eup %15375  ;;  %v10910_v15 = vsel %vm258_vm2, %v18670_v41, 0.0  ;;  %v10885_v19 = vsub.f32 %v10821_v38, %v10871_v45 }
0x539a   :  { %v10911_v26 = vrot.slane %v10910_v15, 4  ;;  %v10903_v29 = vsel %vm258_vm2, %v18672_v50, 0.0  ;;  %15385 = vpow2.f32 %v10901_v47 }
0x539b   :  { %v10904_v22 = vrot.slane %v10903_v29, 4  ;;  %v10899_v5 = vmul.f32 1.442695, %v10885_v19 }
0x539c   :  { %v18678_v58 = vpop.eup %15377  ;;  %v10912_v35 = vadd.f32 %v10911_v26, %v10910_v15 }
0x539d   :  { %v18680_v61 = vpop.eup %15379  ;;  %v10905_v17 = vadd.f32 %v10904_v22, %v10903_v29  ;;  %v10924_v18 = vsel %vm258_vm2, %v18678_v58, 0.0  ;;  %15387 = vpow2.f32 %v10899_v5 }
0x539e   :  { %v10913_v33 = vrot.slane %v10912_v35, 2  ;;  %v10925_v37 = vrot.slane %v10924_v18, 4  ;;  %v10917_v38 = vsel %vm258_vm2, %v18680_v61, 0.0 }
0x539f   :  { %v10906_v9 = vrot.slane %v10905_v17, 2  ;;  %v10918_v24 = vrot.slane %v10917_v38, 4 }
0x53a0   :  { %v18686_v6 = vpop.eup %15381  ;;  %v10914_v51 = vadd.f32 %v10913_v33, %v10912_v35  ;;  %v10926_v53 = vadd.f32 %v10925_v37, %v10924_v18 }
0x53a1   :  { %v18688_v12 = vpop.eup %15383  ;;  %v10907_v14 = vadd.f32 %v10906_v9, %v10905_v17  ;;  %v10919_v16 = vadd.f32 %v10918_v24, %v10917_v38  ;;  %v10938_v43 = vsel %vm258_vm2, %v18686_v6, 0.0 }
0x53a2   :  { %v10915_v2 = vrot.slane %v10914_v51, 1  ;;  %v10927_v55 = vrot.slane %v10926_v53, 2  ;;  %v10939_v4 = vrot.slane %v10938_v43, 4  ;;  %v10931_v49 = vsel %vm258_vm2, %v18688_v12, 0.0 }
0x53a3   :  { %v10908_v32 = vrot.slane %v10907_v14, 1  ;;  %v10920_v39 = vrot.slane %v10919_v16, 2  ;;  %v10932_v1 = vrot.slane %v10931_v49, 4 }
0x53a4   :  { %v18694_v13 = vpop.eup %15385  ;;  %v10916_v48 = vadd.f32 %v10915_v2, %v10914_v51  ;;  %v10928_v0 = vadd.f32 %v10927_v55, %v10926_v53  ;;  %v10940_v40 = vadd.f32 %v10939_v4, %v10938_v43 }
0x53a5   :  { %v10909_v31 = vadd.f32 %v10908_v32, %v10907_v14  ;;  %v10921_v27 = vadd.f32 %v10920_v39, %v10919_v16  ;;  %v10933_v10 = vadd.f32 %v10932_v1, %v10931_v49  ;;  %v10952_v44 = vsel %vm258_vm2, %v18694_v13, 0.0  ;;  %v15511_v32 = vld [vmem:[#allocation2 + $0x8] sm:$0xff] }
0x53a6   :  { %15389 = vrcp.f32 %v10916_v48  ;;  %v10929_v8 = vrot.slane %v10928_v0, 1  ;;  %v10941_v63 = vrot.slane %v10940_v40, 2  ;;  %v10953_v20 = vrot.slane %v10952_v44, 4 }
0x53a7   :  { %v18698_v30 = vpop.eup %15387  ;;  %15391 = vrcp.f32 %v10909_v31  ;;  %v10922_v45 = vrot.slane %v10921_v27, 1  ;;  %v10934_v47 = vrot.slane %v10933_v10, 2 }
0x53a8   :  { %v10930_v15 = vadd.f32 %v10929_v8, %v10928_v0  ;;  %v10942_v19 = vadd.f32 %v10941_v63, %v10940_v40  ;;  %v10954_v26 = vadd.f32 %v10953_v20, %v10952_v44  ;;  %v10945_v29 = vsel %vm258_vm2, %v18698_v30, 0.0  ;;  %v15512_v0 = vld [vmem:[#allocation2] sm:$0xff] }
0x53a9   :  { %v10923_v22 = vadd.f32 %v10922_v45, %v10921_v27  ;;  %v10935_v5 = vadd.f32 %v10934_v47, %v10933_v10  ;;  %v10946_v35 = vrot.slane %v10945_v29, 4 }
0x53aa   :  { %15393 = vrcp.f32 %v10930_v15  ;;  %v10943_v17 = vrot.slane %v10942_v19, 1  ;;  %v10955_v18 = vrot.slane %v10954_v26, 2  ;;  %v15514_v15 = vld [vmem:[#allocation2 + $0x10] sm:$0xff] }
0x53ab   :  { %15395 = vrcp.f32 %v10923_v22  ;;  %v10936_v33 = vrot.slane %v10935_v5, 1  ;;  %v10947_v37 = vadd.f32 %v10946_v35, %v10945_v29 }
0x53ac   :  { %v10944_v38 = vadd.f32 %v10943_v17, %v10942_v19  ;;  %v10956_v9 = vadd.f32 %v10955_v18, %v10954_v26 }
0x53ad   :  { %v10937_v24 = vadd.f32 %v10936_v33, %v10935_v5  ;;  %v10948_v51 = vrot.slane %v10947_v37, 2 }
0x53ae   :  { %15397 = vrcp.f32 %v10944_v38  ;;  %v10957_v53 = vrot.slane %v10956_v9, 1 }
0x53af   :  { %15399 = vrcp.f32 %v10937_v24  ;;  %v10949_v14 = vadd.f32 %v10948_v51, %v10947_v37  ;;  %v15515_v37 = vld [vmem:[#allocation2 + $0x28] sm:$0xff] }
0x53b0   :  { %v15390_v16 = vpop.eup %15389  ;;  %v10958_v43 = vadd.f32 %v10957_v53, %v10956_v9  ;;  %v15516_v53 = vld [vmem:[#allocation2 + $0x20] sm:$0xff] }
0x53b1   :  { %v15392_v2 = vpop.eup %15391  ;;  %v10962_v55 = vmul.f32 %v15390_v16, %v18670_v41  ;;  %v10950_v4 = vrot.slane %v10949_v14, 1 }
0x53b2   :  { %v10960_v49 = vmul.f32 %v15392_v2, %v18672_v50  ;;  %15401 = vrcp.f32 %v10958_v43  ;;  %v15513_v50 = vld [vmem:[#allocation2 + $0x18] sm:$0xff] }
0x53b3   :  { %v10976_v39 = vmul.f32 %v15511_v32, %v10962_v55  ;;  %v10951_v1 = vadd.f32 %v10950_v4, %v10949_v14 }
0x53b4   :  { %v15394_v48 = vpop.eup %15393  ;;  %v10975_v40 = vmul.f32 %v15512_v0, %v10960_v49  ;;  %v15517_v0 = vld [vmem:[#allocation2 + $0x38] sm:$0xff] }
0x53b5   :  { %v15396_v31 = vpop.eup %15395  ;;  %v10990_v27 = vsel %vm258_vm2, %v10976_v39, 0.0  ;;  %v10966_v10 = vmul.f32 %v15394_v48, %v18678_v58  ;;  %15403 = vrcp.f32 %v10951_v1 }
0x53b6   :  { %v10991_v44 = vrot.slane %v10990_v27, 4  ;;  %v10983_v8 = vsel %vm258_vm2, %v10975_v40, 0.0  ;;  %v10964_v41 = vmul.f32 %v15396_v31, %v18680_v61 }
0x53b7   :  { %v10984_v63 = vrot.slane %v10983_v8, 4  ;;  %v10978_v20 = vmul.f32 %v15513_v50, %v10966_v10  ;;  %v15518_v50 = vld [vmem:[#allocation2 + $0x30] sm:$0xff] }
0x53b8   :  { %v15398_v45 = vpop.eup %15397  ;;  %v10992_v47 = vadd.f32 %v10991_v44, %v10990_v27  ;;  %v10977_v19 = vmul.f32 %v15514_v15, %v10964_v41 }
0x53b9   :  { %v15400_v26 = vpop.eup %15399  ;;  %v10985_v29 = vadd.f32 %v10984_v63, %v10983_v8  ;;  %v11004_v22 = vsel %vm258_vm2, %v10978_v20, 0.0  ;;  %v10970_v5 = vmul.f32 %v15398_v45, %v18686_v6 }
0x53ba   :  { %v10993_v58 = vrot.slane %v10992_v47, 2  ;;  %v11005_v35 = vrot.slane %v11004_v22, 4  ;;  %v10997_v17 = vsel %vm258_vm2, %v10977_v19, 0.0  ;;  %v10968_v18 = vmul.f32 %v15400_v26, %v18688_v12 }
0x53bb   :  { %v10986_v61 = vrot.slane %v10985_v29, 2  ;;  %v10998_v33 = vrot.slane %v10997_v17, 4  ;;  %v10980_v38 = vmul.f32 %v15515_v37, %v10970_v5 }
0x53bc   :  { %v15402_v9 = vpop.eup %15401  ;;  %v10994_v24 = vadd.f32 %v10993_v58, %v10992_v47  ;;  %v11006_v51 = vadd.f32 %v11005_v35, %v11004_v22  ;;  %v10979_v14 = vmul.f32 %v15516_v53, %v10968_v18 }
0x53bd   :  { %v10987_v16 = vadd.f32 %v10986_v61, %v10985_v29  ;;  %v10999_v43 = vadd.f32 %v10998_v33, %v10997_v17  ;;  %v11018_v2 = vsel %vm258_vm2, %v10980_v38, 0.0  ;;  %v10974_v6 = vmul.f32 %v15402_v9, %v18694_v13 }
0x53be   :  { %v10995_v55 = vrot.slane %v10994_v24, 1  ;;  %v11007_v4 = vrot.slane %v11006_v51, 2  ;;  %v11019_v49 = vrot.slane %v11018_v2, 4  ;;  %v11011_v12 = vsel %vm258_vm2, %v10979_v14, 0.0 }
0x53bf   :  { %v15404_v32 = vpop.eup %15403  ;;  %v10988_v39 = vrot.slane %v10987_v16, 1  ;;  %v11000_v1 = vrot.slane %v10999_v43, 2  ;;  %v11012_v48 = vrot.slane %v11011_v12, 4  ;;  %v10982_v40 = vmul.f32 %v15517_v0, %v10974_v6 }
0x53c0   :  { %v10996_v31 = vadd.f32 %v10995_v55, %v10994_v24  ;;  %v10972_v27 = vmul.f32 %v15404_v32, %v18698_v30  ;;  %v11008_v10 = vadd.f32 %v11007_v4, %v11006_v51  ;;  %v11020_v44 = vadd.f32 %v11019_v49, %v11018_v2 }
0x53c1   :  { %v10989_v8 = vadd.f32 %v10988_v39, %v10987_v16  ;;  %v11001_v41 = vadd.f32 %v11000_v1, %v10999_v43  ;;  %v11013_v63 = vadd.f32 %v11012_v48, %v11011_v12  ;;  %v11032_v13 = vsel %vm258_vm2, %v10982_v40, 0.0  ;;  %v15519_v48 = vld [vmem:[#allocation6] ss:$0 sm:$0xff] }
0x53c2   :  { %v10981_v20 = vmul.f32 %v15518_v50, %v10972_v27  ;;  %v11009_v45 = vrot.slane %v11008_v10, 1  ;;  %v11021_v47 = vrot.slane %v11020_v44, 2  ;;  %v11033_v15 = vrot.slane %v11032_v13, 4 }
0x53c3   :  { %v11002_v19 = vrot.slane %v11001_v41, 1  ;;  %v11014_v26 = vrot.slane %v11013_v63, 2  ;;  %v11047_v29 = vsel %vm917_vm3, %v10996_v31, %v10989_v8 }
0x53c4   :  { %v11022_v22 = vadd.f32 %v11021_v47, %v11020_v44  ;;  %v11025_v5 = vsel %vm258_vm2, %v10981_v20, 0.0  ;;  %v11034_v30 = vadd.f32 %v11033_v15, %v11032_v13  ;;  %v11010_v18 = vadd.f32 %v11009_v45, %v11008_v10 }
0x53c5   :  { %v11003_v58 = vadd.f32 %v11002_v19, %v11001_v41  ;;  %v11015_v35 = vadd.f32 %v11014_v26, %v11013_v63  ;;  %v11026_v17 = vrot.slane %v11025_v5, 4 }
0x53c6   :  { %v11023_v61 = vrot.slane %v11022_v22, 1  ;;  %v11035_v33 = vrot.slane %v11034_v30, 2 }
0x53c7   :  { %v11016_v37 = vrot.slane %v11015_v35, 1  ;;  %v11027_v38 = vadd.f32 %v11026_v17, %v11025_v5  ;;  %v11048_v9 = vsel %vm919_vm4, %v11003_v58, %v11047_v29 }
0x53c8   :  { %v11036_v24 = vadd.f32 %v11035_v33, %v11034_v30  ;;  %v11049_v51 = vsel %vm921_vm5, %v11010_v18, %v11048_v9  ;;  %v11024_v16 = vadd.f32 %v11023_v61, %v11022_v22  ;;  %v15521_v30 = vld [vmem:[%s18831_s15] ss:$0 sm:$0xff] }
0x53c9   :  { %v11017_v53 = vadd.f32 %v11016_v37, %v11015_v35  ;;  %v11028_v14 = vrot.slane %v11027_v38, 2 }
0x53ca   :  { %v11037_v6 = vrot.slane %v11036_v24, 1 }
0x53cb   :  { %v11029_v43 = vadd.f32 %v11028_v14, %v11027_v38  ;;  %v11050_v2 = vsel %vm923_vm6, %v11017_v53, %v11049_v51 }
0x53cc   :  { %v11051_v55 = vsel %vm925_vm7, %v11024_v16, %v11050_v2  ;;  %v11038_v12 = vadd.f32 %v11037_v6, %v11036_v24 }
0x53cd   :  { %v11030_v4 = vrot.slane %v11029_v43, 1 }
0x53cf   :  { %v11031_v49 = vadd.f32 %v11030_v4, %v11029_v43 }
0x53d1   :  { %v11052_v32 = vsel %vm927_vm8, %v11031_v49, %v11051_v55 }
0x53d2   :  { %v11053_v39 = vsel %vm929_vm9, %v11038_v12, %v11052_v32 }
0x53d3   :  { %14309 = vmatmul.mubr.msk.f32.vlgmr.msra.gmra.mrb[114].mxu1 %vm258_vm2, %v11053_v39 }
0x53d4   :  { %14932 = vmatpush3.bf16.msra.mxu1 %v16271_v52  ;;  %14319 = vmatprep.mubr.msk.f32.mxu1 %vm15742_vm0, %v18982_v11 }
0x53d5   :  { %14933 = vmatprep.subr.bf16.mxu1 %v18983_v60 }
0x53d8   :  { %14935 = vmatpush3.bf16.msra.mxu1 %v16277_v7 }
0x53d9   :  { %14936 = vmatprep.subr.bf16.mxu1 %v18983_v60 }
0x54a6   :  { %v11122_v1 = vpop.f32.mrb[114].mxu1 }
0x54a7   :  { %v11123_v0 = vadd.f32 %v15519_v48, %v11122_v1  ;;  %v14310_v40 = vpop.f32.mrb[115].mxu1 }
0x54a9   :  { %14320 = vmatmul.mubr.msk.f32.vlgmr.msra.gmra.mrb[116].mxu1 %vm258_vm2, %v11123_v0 }
0x54aa   :  { %14938 = vmatpush3.bf16.msra.mxu1 %v16299_v62  ;;  %14326 = vmatprep.mubr.msk.f32.mxu1 %vm15742_vm0, %v18982_v11 }
0x54ab   :  { %14945 = vmatprep.subr.bf16.mxu1 %v18983_v60 }
0x54ad   :  { %14327 = vmatmul.mubr.msk.f32.vlgmr.msra.gmra.mrb[118].mxu1 %vm1076_vm10, %v18638_v54 }
0x54ae   :  { %14947 = vmatpush3.bf16.msra.mxu1 %v16306_v59  ;;  %14348 = vmatprep.mubr.msk.f32.mxu1 %vm15742_vm0, %v18982_v11 }
0x54af   :  { %14948 = vmatprep.subr.bf16.mxu1 %v18983_v60 }
0x54b2   :  { %14950 = vmatpush3.bf16.msra.mxu1 %v16312_v28 }
0x54b3   :  { %14957 = vmatprep.subr.bf16.mxu1 %v18983_v60 }
0x54b5   :  { %14349 = vmatmul.mubr.msk.f32.vlgmr.msra.gmra.mrb[120].mxu1 %vm258_vm2, %v18320_v23 }
0x54b6   :  { %14959 = vmatpush3.bf16.msra.mxu1 %v16318_v34  ;;  %14370 = vmatprep.mubr.msk.f32.mxu1 %vm15742_vm0, %v18982_v11  ;;  %v15520_v34 = vld [vmem:[%s18828_s12] ss:$0 sm:$0xff] }
0x54b7   :  { %14960 = vmatprep.subr.bf16.mxu1 %v18983_v60 }
0x54ba   :  { %14962 = vmatpush3.bf16.msra.mxu1 %v16323_v25 }
0x54bd   :  { %14371 = vmatmul.mubr.msk.f32.vlgmr.msra.gmra.mrb[122].mxu1 %vm258_vm2, %v11123_v0 }
0x557c   :  { %v11195_v52 = vpop.f32.mrb[116].mxu1 }
0x557d   :  { %v14321_v7 = vpop.f32.mrb[117].mxu1 }
0x5580   :  { %v11268_v62 = vpop.f32.mrb[118].mxu1 }
0x5581   :  { %v11269_v59 = vadd.f32 %v11268_v62, %v11195_v52  ;;  %v14328_v28 = vpop.f32.mrb[119].mxu1 }
0x5583   :  { %v11342_v54 = vadd.f32 %v18664_v36, %v11269_v59 }
0x5585   :  { %v11343_v23 = vadd.f32 %v15520_v34, %v11342_v54 }
0x5587   :  { %15405 = vtanh.f32 %v11343_v23  ;;  %v12704_v8 = vmul.f32 -1.442695, %v11343_v23 }
0x5588   :  { %v11434_v31 = vpop.f32.mrb[120].mxu1 }
0x5589   :  { %v14350_v27 = vpop.f32.mrb[121].mxu1  ;;  %15407 = vpow2.f32 %v12704_v8 }
0x5590   :  { %v11604_v10 = vpop.f32.mrb[122].mxu1 }
0x5591   :  { %v15406_v44 = vpop.eup %15405  ;;  %v14372_v25 = vpop.f32.mrb[123].mxu1 }
0x5592   :  { %11353 = vrot.lane.b32.xlu1 %v15406_v44, %s15746_s1 }
0x5593   :  { %v15408_v41 = vpop.eup %15407 }
0x5594   :  { %v11347_v63 = vadd.f32 1.0, %v15408_v41 }
0x5596   :  { %15409 = vrcp.f32 %v11347_v63 }
0x55a0   :  { %v15410_v13 = vpop.eup %15409 }
0x55a1   :  { %v11351_v20 = vmul.f32 %v15410_v13, %v18296_v3 }
0x5604   :  { %v11354_v36 = vpop.permute.xlu1 %11353 }
0x5605   :  { %v11356_v50 = vmul.f32 %v15410_v13, %v11354_v36 }
0x5607   :  { %11358 = vrot.lane.b32.xlu0 %v11356_v50, %s15747_s14 }
0x5679   :  { %v11359_v45 = vpop.permute.xlu0 %11358 }
0x567a   :  { %v11361_v47 = vadd.f32 %v11359_v45, %v11351_v20 }
0x567c   :  { %15411 = vtanh.f32 %v11361_v47 }
0x5686   :  { %v15412_v15 = vpop.eup %15411 }
0x5687   :  { %11364 = vrot.lane.b32.xlu1 %v15412_v15, %s15746_s1 }
0x56f9   :  { %v11365_v19 = vpop.permute.xlu1 %11364 }
0x56fa   :  { %v11367_v26 = vmul.f32 %v15410_v13, %v11365_v19 }
0x56fc   :  { %11439 = vrot.lane.b32.xlu1 %v11367_v26, %s15747_s14 }
0x576e   :  { %v11440_v29 = vpop.permute.xlu1 %11439 }
0x576f   :  { %14360 = vmatmul.mubr.msk.f32.vlgmr.msra.gmra.mrb[124].mxu0 %vm258_vm2, %v11440_v29 }
0x5770   :  { %14965 = vmatpush3.bf16.msra.mxu0 %v16377_v42  ;;  %14381 = vmatprep.mubr.msk.f32.mxu0 %vm15742_vm0, %v18982_v11  ;;  %vm12494_vm0 = vcmask 253952  }
0x5771   :  { %14966 = vmatprep.subr.bf16.mxu0 %v18983_v60 }
0x5774   :  { %14968 = vmatpush3.bf16.msra.mxu0 %v16380_v21 }
0x5842   :  { %v11509_v3 = vpop.f32.mrb[124].mxu0 }
0x5843   :  { %v11510_v22 = vadd.f32 %v11509_v3, %v11434_v31  ;;  %v14361_v5 = vpop.f32.mrb[125].mxu0 }
0x5845   :  { %v11513_v58 = vadd.f32 %v15521_v30, %v11510_v22 }
0x5847   :  { %15413 = vtanh.f32 %v11513_v58  ;;  %v12707_v42 = vmul.f32 -1.442695, %v11513_v58 }
0x5849   :  { %15415 = vpow2.f32 %v12707_v42 }
0x5851   :  { %v15414_v35 = vpop.eup %15413 }
0x5852   :  { %11523 = vrot.lane.b32.xlu0 %v15414_v35, %s15746_s1 }
0x5853   :  { %v15416_v17 = vpop.eup %15415 }
0x5854   :  { %v11517_v11 = vadd.f32 1.0, %v15416_v17 }
0x5856   :  { %15417 = vrcp.f32 %v11517_v11 }
0x5860   :  { %v15418_v60 = vpop.eup %15417 }
0x5861   :  { %v11521_v61 = vmul.f32 %v15418_v60, %v18315_v57 }
0x58c4   :  { %v11524_v18 = vpop.permute.xlu0 %11523 }
0x58c5   :  { %v11526_v21 = vmul.f32 %v15418_v60, %v11524_v18 }
0x58c7   :  { %11528 = vrot.lane.b32.xlu1 %v11526_v21, %s15747_s14 }
0x5939   :  { %v11529_v33 = vpop.permute.xlu1 %11528 }
0x593a   :  { %v11531_v37 = vadd.f32 %v11529_v33, %v11521_v61 }
0x593c   :  { %15419 = vtanh.f32 %v11531_v37 }
0x5946   :  { %v15420_v38 = vpop.eup %15419 }
0x5947   :  { %11534 = vrot.lane.b32.xlu0 %v15420_v38, %s15746_s1 }
0x59b9   :  { %v11535_v9 = vpop.permute.xlu0 %11534 }
0x59ba   :  { %v11537_v24 = vmul.f32 %v15418_v60, %v11535_v9 }
0x59bc   :  { %11609 = vrot.lane.b32.xlu1 %v11537_v24, %s15747_s14 }
0x5a2e   :  { %v11610_v51 = vpop.permute.xlu1 %11609 }
0x5a2f   :  { %14382 = vmatmul.mubr.msk.f32.vlgmr.msra.gmra.mrb[126].mxu0 %vm258_vm2, %v11610_v51 }
0x5b02   :  { %v11679_v53 = vpop.f32.mrb[126].mxu0 }
0x5b03   :  { %v11680_v14 = vadd.f32 %v11679_v53, %v11604_v10  ;;  %v14383_v16 = vpop.f32.mrb[127].mxu0 }
0x5b05   :  { %v11683_v43 = vadd.f32 %v18484_v56, %v11680_v14 }
0x5b07   :  { %v12093_v2 = vcombine.high %v11683_v43, %v11683_v43  ;;  %v12100_v57 = vrot.slane %v11683_v43, %v19122_v46 }
0x5b09   :  { %v12107_v6 = vrot.slane %v12093_v2, %v19122_v46  ;;  %v12108_v55 = vcombine.high %v12100_v57, %v12100_v57  ;;  %v12116_v4 = vrot.slane %v12100_v57, %v19122_v46 }
0x5b0b   :  { %v12109_v49 = vcombine.high %v12107_v6, %v12107_v6  ;;  %v12123_v12 = vrot.slane %v12107_v6, %v19122_v46  ;;  %v12130_v32 = vrot.slane %v12108_v55, %v19122_v46  ;;  %v12138_v39 = vcombine.high %v12116_v4, %v12116_v4  ;;  %12495 = vst.msk [vmem:[%s18835_s19 + $0x8] sm:$0x1] %vm12494_vm0, %v12116_v4 }
0x5b0d   :  { %v12137_v56 = vrot.slane %v12109_v49, %v19122_v46  ;;  %v12139_v1 = vcombine.high %v12123_v12, %v12123_v12  ;;  %v12140_v48 = vcombine.high %v12130_v32, %v12130_v32  ;;  %12497 = vst.msk [vmem:[%s18835_s19 + $0x18] sm:$0x1] %vm12494_vm0, %v12130_v32  ;;  %12499 = vst.msk [vmem:[%s18835_s19 + $0x28] sm:$0x1] %vm12494_vm0, %v12138_v39 }
0x5b0e   :  { %12503 = vst.msk [vmem:[%s18835_s19 + $0x48] sm:$0x1] %vm12494_vm0, %v12123_v12 }
0x5b0f   :  { %v12141_v0 = vcombine.high %v12137_v56, %v12137_v56  ;;  %12501 = vst.msk [vmem:[%s18835_s19 + $0x38] sm:$0x1] %vm12494_vm0, %v12140_v48  ;;  %12505 = vst.msk [vmem:[%s18835_s19 + $0x58] sm:$0x1] %vm12494_vm0, %v12137_v56 }
0x5b10   :  { %12507 = vst.msk [vmem:[%s18835_s19 + $0x68] sm:$0x1] %vm12494_vm0, %v12139_v1 }
0x5b11   :  { %12509 = vst.msk [vmem:[%s18835_s19 + $0x78] sm:$0x1] %vm12494_vm0, %v12141_v0 }
0x5b12   :  { %12514 = vsyncpa [#allocation3], 1 }
0x5b13   :  { %12515 = vsyncpa [#allocation5], 1 }
0x5b14   :  { %12516 = vsyncpa [#allocation8], 1 }
0x5b15   :  { %12517 = vsyncpa [#allocation11], 1 }
0x5b16   :  { %12518 = vsyncpa [#allocation14], 1 }

</bundles_post_ra>
